<compile_context>
chip_gen: v7x
topology: tpu7x:2x2x1
jax: 0.10.0
libtpu: 0.0.40
codegen_flags: <defaults>
</compile_context>

<pallas_src>
import functools

import jax
import jax.numpy as jnp
from jax.experimental import pallas as pl
from jax.experimental.pallas import tpu as pltpu

# ----------------------------- model config ---------------------------------
INPUT_DIM = 1
HIDDEN_DIM = 32          # small stand-in for the 128 default (layout is padded)
NUM_LAYERS = 2
NUM_CLASSES = 5
WIN_SIZE = 8             # sequence length
BATCH = 2

H_PAD = 128              # lane-aligned hidden width
C_PAD = 128              # lane-aligned class width
B_PAD = 8                # sublane-aligned batch

_VMEM = pl.BlockSpec(memory_space=pltpu.MemorySpace.VMEM)


# ----------------------------- fused Pallas kernel ---------------------------
def fused_gru_kernel(
    x_ref,          # (T*B_PAD, 1) time-major input
    whh_ref,        # (L, 2*HP, 6*HP) block-diagonal packed recurrent weights
    wih1fc_ref,     # (2*HP, 7*HP): [0:6HP] layer-1 W_ih packed, [6HP:7HP] FC weight
    small_ref,      # (8, 6*HP): biases, layer-0 W_ih row, FC bias
    logits_ref,     # (B_PAD, C_PAD)
    h_out_ref,      # (2*L, B_PAD, HP) final hidden states
    *, seq_len, batch_pad, hp, cp, num_layers,
):
    T, B, HP = seq_len, batch_pad, hp
    f32 = jnp.float32

    x = x_ref[...]                                   # (T*B, 1)
    small = small_ref[...]                           # (8, 6*HP)

    # ---- layer-0 input projection, all T, both directions, all gates ----
    # D_in == 1 -> pure VPU broadcast multiply (no K=1 MXU pass).
    # b_ih (+ b_hh for r/z) already folded into small row 0.
    a0 = x * small[3:4, :] + small[0:1, :]           # (T*B, 6*HP)

    # b_hh_n per (layer, direction) stays separate (lives inside r * (...)).
    bn = [small[2:3, i * HP:(i + 1) * HP] for i in range(2 * num_layers)]

    def bidir_recurrence(a_all, whh, bn_f, bn_b, accumulate):
        """Fused fwd+bwd GRU over T steps; one MXU pass per step (all gates,
        both directions, via block-diagonal packed W_hh)."""
        h_f = jnp.zeros((B, HP), f32)
        h_b = jnp.zeros((B, HP), f32)
        sum_f = jnp.zeros((B, HP), f32)
        sum_b = jnp.zeros((B, HP), f32)
        hs_f, hs_b = [], []
        for t in range(T):                            # fully unrolled (static T)
            sf = t * B                                # forward position t
            sb = (T - 1 - t) * B                      # backward position T-1-t
            a_f = a_all[sf:sf + B, 0:3 * HP]
            a_b = a_all[sb:sb + B, 3 * HP:6 * HP]
            gh = jnp.dot(jnp.concatenate([h_f, h_b], axis=1), whh,
                         preferred_element_type=f32)  # (B, 6*HP), 1 MXU pass
            # forward direction
            r_f = jax.nn.sigmoid(a_f[:, 0:HP] + gh[:, 0:HP])
            z_f = jax.nn.sigmoid(a_f[:, HP:2 * HP] + gh[:, HP:2 * HP])
            n_f = jnp.tanh(a_f[:, 2 * HP:3 * HP] + r_f * (gh[:, 2 * HP:3 * HP] + bn_f))
            h_f = (1.0 - z_f) * n_f + z_f * h_f
            # backward direction
            r_b = jax.nn.sigmoid(a_b[:, 0:HP] + gh[:, 3 * HP:4 * HP])
            z_b = jax.nn.sigmoid(a_b[:, HP:2 * HP] + gh[:, 4 * HP:5 * HP])
            n_b = jnp.tanh(a_b[:, 2 * HP:3 * HP] + r_b * (gh[:, 5 * HP:6 * HP] + bn_b))
            h_b = (1.0 - z_b) * n_b + z_b * h_b
            hs_f.append(h_f)
            hs_b.append(h_b)
            if accumulate:                            # fused mean-pool accumulators
                sum_f = sum_f + h_f
                sum_b = sum_b + h_b
        return h_f, h_b, hs_f, hs_b, sum_f, sum_b

    # ---- layer 0 ----
    hT0f, hT0b, hs0_f, hs0_b, _, _ = bidir_recurrence(
        a0, whh_ref[0], bn[0], bn[1], False)
    h_out_ref[0] = hT0f
    h_out_ref[1] = hT0b

    # ---- layer-1 input projection: layer-0 outputs stay in vregs (no scratch
    #      round trip); one (T*B, 2HP) @ (2HP, 6HP) matmul for all gates/dirs.
    seq01 = jnp.concatenate(
        [jnp.concatenate([hs0_f[t], hs0_b[T - 1 - t]], axis=1) for t in range(T)],
        axis=0)                                       # (T*B, 2*HP), time-major
    a1 = jnp.dot(seq01, wih1fc_ref[:, 0:6 * HP],
                 preferred_element_type=f32) + small[1:2, :]

    # ---- layer 1 (with fused running mean-pool) ----
    hT1f, hT1b, _, _, sum_f, sum_b = bidir_recurrence(
        a1, whh_ref[1], bn[2], bn[3], True)
    h_out_ref[2] = hT1f
    h_out_ref[3] = hT1b

    # ---- mean pool + FC: single packed (2HP, C_PAD) dot, lane-dense store ----
    pooled = jnp.concatenate([sum_f, sum_b], axis=1) * (1.0 / T)   # (B, 2*HP)
    logits_ref[...] = (
        jnp.dot(pooled, wih1fc_ref[:, 6 * HP:7 * HP], preferred_element_type=f32)
        + small[4:5, 0:cp])


# ----------------------------- wrapper ---------------------------------------
def gru_classifier_forward(x, packed_params):
    """x: (B, input_dim, T) float32. Returns (logits (B, C), h (2*L, B, H))."""
    whh, wih1fc, small = packed_params
    B, d_in, T = x.shape
    # x.transpose(1, 2) -> (B, T, D); carry time-major, batch padded to 8 sublanes.
    x_tm = jnp.transpose(x, (2, 0, 1)).astype(jnp.float32)          # (T, B, D)
    x_tm = jnp.pad(x_tm, ((0, 0), (0, B_PAD - B), (0, 0)))
    x_flat = x_tm.reshape(T * B_PAD, d_in)

    kernel = functools.partial(
        fused_gru_kernel, seq_len=T, batch_pad=B_PAD, hp=H_PAD, cp=C_PAD,
        num_layers=NUM_LAYERS)
    logits_pad, h_pad = pl.pallas_call(
        kernel,
        out_shape=(
            jax.ShapeDtypeStruct((B_PAD, C_PAD), jnp.float32),
            jax.ShapeDtypeStruct((2 * NUM_LAYERS, B_PAD, H_PAD), jnp.float32),
        ),
        in_specs=[_VMEM] * 4,
        out_specs=(_VMEM, _VMEM),
    )(x_flat, whh, wih1fc, small)
    return logits_pad[:B, :NUM_CLASSES], h_pad[:, :B, :HIDDEN_DIM]


# ----------------------------- parameters ------------------------------------
def init_torch_style_params(key):
    """Parameters in PyTorch's native layout (W_ih (3H, D), W_hh (3H, H),
    biases (3H,), fc (C, 2H)), uniform(-k, k) like nn.GRU / nn.Linear."""
    H, C, D = HIDDEN_DIM, NUM_CLASSES, INPUT_DIM
    k = 1.0 / (H ** 0.5)
    p = {}
    for l in range(NUM_LAYERS):
        in_dim = D if l == 0 else 2 * H
        for suf in ("", "_reverse"):
            key, k1, k2, k3, k4 = jax.random.split(key, 5)
            p[f"weight_ih_l{l}{suf}"] = jax.random.uniform(k1, (3 * H, in_dim), jnp.float32, -k, k)
            p[f"weight_hh_l{l}{suf}"] = jax.random.uniform(k2, (3 * H, H), jnp.float32, -k, k)
            p[f"bias_ih_l{l}{suf}"] = jax.random.uniform(k3, (3 * H,), jnp.float32, -k, k)
            p[f"bias_hh_l{l}{suf}"] = jax.random.uniform(k4, (3 * H,), jnp.float32, -k, k)
    kf = 1.0 / ((2 * H) ** 0.5)
    key, k1, k2 = jax.random.split(key, 3)
    p["fc_weight"] = jax.random.uniform(k1, (NUM_CLASSES, 2 * H), jnp.float32, -kf, kf)
    p["fc_bias"] = jax.random.uniform(k2, (NUM_CLASSES,), jnp.float32, -kf, kf)
    return p


def pack_params(p):
    """Repack PyTorch-layout params into 3 lane-dense, (8,128)-padded slabs.
    Gate order is (r, z, n); padded rows/cols are zero, which keeps the math on
    real lanes identical and the padded hidden lanes exactly zero."""
    H, HP, C, L = HIDDEN_DIM, H_PAD, NUM_CLASSES, NUM_LAYERS
    whh = jnp.zeros((L, 2 * HP, 6 * HP), jnp.float32)       # block-diag recurrent
    wih1fc = jnp.zeros((2 * HP, 7 * HP), jnp.float32)       # layer-1 W_ih + FC weight
    small = jnp.zeros((8, 6 * HP), jnp.float32)             # biases, W_ih0, FC bias

    for l in range(L):
        for d, suf in enumerate(("", "_reverse")):
            w_ih = p[f"weight_ih_l{l}{suf}"]
            w_hh = p[f"weight_hh_l{l}{suf}"]
            b_ih = p[f"bias_ih_l{l}{suf}"]
            b_hh = p[f"bias_hh_l{l}{suf}"]
            for g in range(3):
                col = 3 * HP * d + g * HP
                # recurrent weights, transposed so the kernel computes h @ W
                whh = whh.at[l, HP * d:HP * d + H, col:col + H].set(
                    w_hh[g * H:(g + 1) * H, :].T)
                # combined input-side bias: b_ih (+ b_hh for r/z only)
                bias_g = b_ih[g * H:(g + 1) * H]
                if g < 2:
                    bias_g = bias_g + b_hh[g * H:(g + 1) * H]
                small = small.at[l, col:col + H].set(bias_g)
                if l == 0:
                    # D_in == 1: W_ih is a length-H row, used as VPU multiplier
                    small = small.at[3, col:col + H].set(w_ih[g * H:(g + 1) * H, 0])
                else:
                    # layer-1 input is [h_fwd | h_bwd] in lanes [0:HP | HP:2HP]
                    wih1fc = wih1fc.at[0:H, col:col + H].set(
                        w_ih[g * H:(g + 1) * H, 0:H].T)
                    wih1fc = wih1fc.at[HP:HP + H, col:col + H].set(
                        w_ih[g * H:(g + 1) * H, H:2 * H].T)
            # b_hh_n (stays inside r * (...)); slot index = 2*layer + direction
            idx = 2 * l + d
            small = small.at[2, idx * HP:idx * HP + H].set(b_hh[2 * H:3 * H])

    # FC weight (C, 2H) -> columns [6HP:7HP]; FC bias -> small row 4
    wih1fc = wih1fc.at[0:H, 6 * HP:6 * HP + C].set(p["fc_weight"][:, 0:H].T)
    wih1fc = wih1fc.at[HP:HP + H, 6 * HP:6 * HP + C].set(p["fc_weight"][:, H:2 * H].T)
    small = small.at[4, 0:C].set(p["fc_bias"])
    return whh, wih1fc, small


# ----------------------------- pure-JAX reference ----------------------------
def _gru_cell_ref(x_t, h, w_ih, w_hh, b_ih, b_hh):
    H = h.shape[-1]
    hi = jax.lax.Precision.HIGHEST
    gi = jnp.dot(x_t, w_ih.T, precision=hi) + b_ih
    gh = jnp.dot(h, w_hh.T, precision=hi) + b_hh
    r = jax.nn.sigmoid(gi[:, 0:H] + gh[:, 0:H])
    z = jax.nn.sigmoid(gi[:, H:2 * H] + gh[:, H:2 * H])
    n = jnp.tanh(gi[:, 2 * H:] + r * gh[:, 2 * H:])
    return (1.0 - z) * n + z * h


def reference_forward(x, p):
    B, _, T = x.shape
    H = HIDDEN_DIM
    layer_in = jnp.transpose(x, (0, 2, 1)).astype(jnp.float32)    # (B, T, D)
    h_n = []
    for l in range(NUM_LAYERS):
        wf = (p[f"weight_ih_l{l}"], p[f"weight_hh_l{l}"],
              p[f"bias_ih_l{l}"], p[f"bias_hh_l{l}"])
        wb = (p[f"weight_ih_l{l}_reverse"], p[f"weight_hh_l{l}_reverse"],
              p[f"bias_ih_l{l}_reverse"], p[f"bias_hh_l{l}_reverse"])
        h_f = jnp.zeros((B, H), jnp.float32)
        h_b = jnp.zeros((B, H), jnp.float32)
        outs_f, outs_b = [], []
        for t in range(T):
            h_f = _gru_cell_ref(layer_in[:, t, :], h_f, *wf)
            outs_f.append(h_f)
        for t in reversed(range(T)):
            h_b = _gru_cell_ref(layer_in[:, t, :], h_b, *wb)
            outs_b.append(h_b)
        outs_b = outs_b[::-1]
        layer_in = jnp.stack(
            [jnp.concatenate([outs_f[t], outs_b[t]], axis=-1) for t in range(T)],
            axis=1)                                               # (B, T, 2H)
        h_n += [h_f, h_b]
    pooled = layer_in.mean(axis=1)
    hi = jax.lax.Precision.HIGHEST
    logits = jnp.dot(pooled, p["fc_weight"].T, precision=hi) + p["fc_bias"]
    return logits, jnp.stack(h_n, axis=0)


# ----------------------------- main -------------------------------------------
if __name__ == "__main__":
    key = jax.random.PRNGKey(0)
    key, pkey, xkey = jax.random.split(key, 3)
    torch_params = init_torch_style_params(pkey)
    packed = pack_params(torch_params)
    x = jax.random.normal(xkey, (BATCH, INPUT_DIM, WIN_SIZE), jnp.float32)

    fwd = jax.jit(lambda xx: gru_classifier_forward(xx, packed))
    logits, h = fwd(x)
    jax.block_until_ready((logits, h))

    assert logits.shape == (BATCH, NUM_CLASSES)
    assert h.shape == (2 * NUM_LAYERS, BATCH, HIDDEN_DIM)

    # Numerical sanity check against a pure-JAX reference of the PyTorch forward.
    ref_logits, ref_h = jax.jit(lambda xx: reference_forward(xx, torch_params))(x)
    jax.block_until_ready((ref_logits, ref_h))
    assert jnp.allclose(logits, ref_logits, atol=3e-2, rtol=3e-2), "logits mismatch"
    assert jnp.allclose(h, ref_h, atol=3e-2, rtol=3e-2), "hidden-state mismatch"

    print("KERNEL_OK")
</pallas_src>

<mosaic_0001>
module attributes {stable_mosaic.version = 11 : i64} {
  func.func @fused_gru_kernel(%arg0: memref<64x1xf32, #tpu.memory_space<vmem>>, %arg1: memref<2x256x768xf32, #tpu.memory_space<vmem>>, %arg2: memref<256x896xf32, #tpu.memory_space<vmem>>, %arg3: memref<8x768xf32, #tpu.memory_space<vmem>>, %arg4: memref<8x128xf32, #tpu.memory_space<vmem>>, %arg5: memref<4x8x128xf32, #tpu.memory_space<vmem>>) attributes {dimension_semantics = [], scalar_prefetch = 0 : i64, scratch_operands = 0 : i64, tpu.core_type = #tpu.core_type<tc>} {
    %c0 = arith.constant 0 : index
    %c0_0 = arith.constant 0 : index
    %0 = vector.load %arg0[%c0, %c0_0] : memref<64x1xf32, #tpu.memory_space<vmem>>, vector<64x1xf32>
    %c0_1 = arith.constant 0 : index
    %c0_2 = arith.constant 0 : index
    %1 = vector.load %arg3[%c0_1, %c0_2] : memref<8x768xf32, #tpu.memory_space<vmem>>, vector<8x768xf32>
    %2 = vector.extract_strided_slice %1 {offsets = [3, 0], sizes = [1, 768], strides = [1, 1]} : vector<8x768xf32> to vector<1x768xf32>
    %3 = vector.broadcast %0 : vector<64x1xf32> to vector<64x768xf32>
    %4 = vector.broadcast %2 : vector<1x768xf32> to vector<64x768xf32>
    %5 = arith.mulf %3, %4 : vector<64x768xf32>
    %6 = vector.extract_strided_slice %1 {offsets = [0, 0], sizes = [1, 768], strides = [1, 1]} : vector<8x768xf32> to vector<1x768xf32>
    %7 = vector.broadcast %6 : vector<1x768xf32> to vector<64x768xf32>
    %8 = arith.addf %5, %7 : vector<64x768xf32>
    %9 = vector.extract_strided_slice %1 {offsets = [2, 0], sizes = [1, 128], strides = [1, 1]} : vector<8x768xf32> to vector<1x128xf32>
    %10 = vector.extract_strided_slice %1 {offsets = [2, 128], sizes = [1, 128], strides = [1, 1]} : vector<8x768xf32> to vector<1x128xf32>
    %11 = vector.extract_strided_slice %1 {offsets = [2, 256], sizes = [1, 128], strides = [1, 1]} : vector<8x768xf32> to vector<1x128xf32>
    %12 = vector.extract_strided_slice %1 {offsets = [2, 384], sizes = [1, 128], strides = [1, 1]} : vector<8x768xf32> to vector<1x128xf32>
    %c0_3 = arith.constant 0 : index
    %c0_4 = arith.constant 0 : index
    %c0_5 = arith.constant 0 : index
    %13 = vector.load %arg1[%c0_3, %c0_4, %c0_5] : memref<2x256x768xf32, #tpu.memory_space<vmem>>, vector<1x256x768xf32>
    %14 = vector.shape_cast %13 : vector<1x256x768xf32> to vector<256x768xf32>
    %cst = arith.constant 0.000000e+00 : f32
    %15 = vector.broadcast %cst : f32 to vector<8x128xf32>
    %cst_6 = arith.constant 0.000000e+00 : f32
    %16 = vector.broadcast %cst_6 : f32 to vector<8x128xf32>
    %17 = vector.extract_strided_slice %8 {offsets = [0, 0], sizes = [8, 384], strides = [1, 1]} : vector<64x768xf32> to vector<8x384xf32>
    %18 = vector.extract_strided_slice %8 {offsets = [56, 384], sizes = [8, 384], strides = [1, 1]} : vector<64x768xf32> to vector<8x384xf32>
    %19 = tpu.concatenate %15, %16 in 1 : vector<8x128xf32>, vector<8x128xf32> -> vector<8x256xf32>
    %cst_7 = arith.constant dense<0.000000e+00> : vector<8x768xf32>
    %20 = tpu.matmul %19, %14, %cst_7 {dimension_numbers = #tpu.dot_dimension_numbers<[1], [0], [0], [1], [0, 0, 1, 1], [], []>} : vector<8x256xf32>, vector<256x768xf32>, vector<8x768xf32> -> vector<8x768xf32>
    %21 = vector.extract_strided_slice %17 {offsets = [0, 0], sizes = [8, 128], strides = [1, 1]} : vector<8x384xf32> to vector<8x128xf32>
    %22 = vector.extract_strided_slice %20 {offsets = [0, 0], sizes = [8, 128], strides = [1, 1]} : vector<8x768xf32> to vector<8x128xf32>
    %23 = arith.addf %21, %22 : vector<8x128xf32>
    %24 = arith.negf %23 : vector<8x128xf32>
    %25 = math.exp %24 : vector<8x128xf32>
    %cst_8 = arith.constant 1.000000e+00 : f32
    %26 = vector.broadcast %cst_8 : f32 to vector<8x128xf32>
    %27 = arith.addf %26, %25 : vector<8x128xf32>
    %28 = arith.divf %26, %27 : vector<8x128xf32>
    %29 = vector.extract_strided_slice %17 {offsets = [0, 128], sizes = [8, 128], strides = [1, 1]} : vector<8x384xf32> to vector<8x128xf32>
    %30 = vector.extract_strided_slice %20 {offsets = [0, 128], sizes = [8, 128], strides = [1, 1]} : vector<8x768xf32> to vector<8x128xf32>
    %31 = arith.addf %29, %30 : vector<8x128xf32>
    %32 = arith.negf %31 : vector<8x128xf32>
    %33 = math.exp %32 : vector<8x128xf32>
    %cst_9 = arith.constant 1.000000e+00 : f32
    %34 = vector.broadcast %cst_9 : f32 to vector<8x128xf32>
    %35 = arith.addf %34, %33 : vector<8x128xf32>
    %36 = arith.divf %34, %35 : vector<8x128xf32>
    %37 = vector.extract_strided_slice %17 {offsets = [0, 256], sizes = [8, 128], strides = [1, 1]} : vector<8x384xf32> to vector<8x128xf32>
    %38 = vector.extract_strided_slice %20 {offsets = [0, 256], sizes = [8, 128], strides = [1, 1]} : vector<8x768xf32> to vector<8x128xf32>
    %39 = vector.broadcast %9 : vector<1x128xf32> to vector<8x128xf32>
    %40 = arith.addf %38, %39 : vector<8x128xf32>
    %41 = arith.mulf %28, %40 : vector<8x128xf32>
    %42 = arith.addf %37, %41 : vector<8x128xf32>
    %43 = math.tanh %42 : vector<8x128xf32>
    %cst_10 = arith.constant 1.000000e+00 : f32
    %44 = vector.broadcast %cst_10 : f32 to vector<8x128xf32>
    %45 = arith.subf %44, %36 : vector<8x128xf32>
    %46 = arith.mulf %45, %43 : vector<8x128xf32>
    %47 = arith.mulf %36, %15 : vector<8x128xf32>
    %48 = arith.addf %46, %47 : vector<8x128xf32>
    %49 = vector.extract_strided_slice %18 {offsets = [0, 0], sizes = [8, 128], strides = [1, 1]} : vector<8x384xf32> to vector<8x128xf32>
    %50 = vector.extract_strided_slice %20 {offsets = [0, 384], sizes = [8, 128], strides = [1, 1]} : vector<8x768xf32> to vector<8x128xf32>
    %51 = arith.addf %49, %50 : vector<8x128xf32>
    %52 = arith.negf %51 : vector<8x128xf32>
    %53 = math.exp %52 : vector<8x128xf32>
    %cst_11 = arith.constant 1.000000e+00 : f32
    %54 = vector.broadcast %cst_11 : f32 to vector<8x128xf32>
    %55 = arith.addf %54, %53 : vector<8x128xf32>
    %56 = arith.divf %54, %55 : vector<8x128xf32>
    %57 = vector.extract_strided_slice %18 {offsets = [0, 128], sizes = [8, 128], strides = [1, 1]} : vector<8x384xf32> to vector<8x128xf32>
    %58 = vector.extract_strided_slice %20 {offsets = [0, 512], sizes = [8, 128], strides = [1, 1]} : vector<8x768xf32> to vector<8x128xf32>
    %59 = arith.addf %57, %58 : vector<8x128xf32>
    %60 = arith.negf %59 : vector<8x128xf32>
    %61 = math.exp %60 : vector<8x128xf32>
    %cst_12 = arith.constant 1.000000e+00 : f32
    %62 = vector.broadcast %cst_12 : f32 to vector<8x128xf32>
    %63 = arith.addf %62, %61 : vector<8x128xf32>
    %64 = arith.divf %62, %63 : vector<8x128xf32>
    %65 = vector.extract_strided_slice %18 {offsets = [0, 256], sizes = [8, 128], strides = [1, 1]} : vector<8x384xf32> to vector<8x128xf32>
    %66 = vector.extract_strided_slice %20 {offsets = [0, 640], sizes = [8, 128], strides = [1, 1]} : vector<8x768xf32> to vector<8x128xf32>
    %67 = vector.broadcast %10 : vector<1x128xf32> to vector<8x128xf32>
    %68 = arith.addf %66, %67 : vector<8x128xf32>
    %69 = arith.mulf %56, %68 : vector<8x128xf32>
    %70 = arith.addf %65, %69 : vector<8x128xf32>
    %71 = math.tanh %70 : vector<8x128xf32>
    %cst_13 = arith.constant 1.000000e+00 : f32
    %72 = vector.broadcast %cst_13 : f32 to vector<8x128xf32>
    %73 = arith.subf %72, %64 : vector<8x128xf32>
    %74 = arith.mulf %73, %71 : vector<8x128xf32>
    %75 = arith.mulf %64, %16 : vector<8x128xf32>
    %76 = arith.addf %74, %75 : vector<8x128xf32>
    %77 = vector.extract_strided_slice %8 {offsets = [8, 0], sizes = [8, 384], strides = [1, 1]} : vector<64x768xf32> to vector<8x384xf32>
    %78 = vector.extract_strided_slice %8 {offsets = [48, 384], sizes = [8, 384], strides = [1, 1]} : vector<64x768xf32> to vector<8x384xf32>
    %79 = tpu.concatenate %48, %76 in 1 : vector<8x128xf32>, vector<8x128xf32> -> vector<8x256xf32>
    %cst_14 = arith.constant dense<0.000000e+00> : vector<8x768xf32>
    %80 = tpu.matmul %79, %14, %cst_14 {dimension_numbers = #tpu.dot_dimension_numbers<[1], [0], [0], [1], [0, 0, 1, 1], [], []>} : vector<8x256xf32>, vector<256x768xf32>, vector<8x768xf32> -> vector<8x768xf32>
    %81 = vector.extract_strided_slice %77 {offsets = [0, 0], sizes = [8, 128], strides = [1, 1]} : vector<8x384xf32> to vector<8x128xf32>
    %82 = vector.extract_strided_slice %80 {offsets = [0, 0], sizes = [8, 128], strides = [1, 1]} : vector<8x768xf32> to vector<8x128xf32>
    %83 = arith.addf %81, %82 : vector<8x128xf32>
    %84 = arith.negf %83 : vector<8x128xf32>
    %85 = math.exp %84 : vector<8x128xf32>
    %cst_15 = arith.constant 1.000000e+00 : f32
    %86 = vector.broadcast %cst_15 : f32 to vector<8x128xf32>
    %87 = arith.addf %86, %85 : vector<8x128xf32>
    %88 = arith.divf %86, %87 : vector<8x128xf32>
    %89 = vector.extract_strided_slice %77 {offsets = [0, 128], sizes = [8, 128], strides = [1, 1]} : vector<8x384xf32> to vector<8x128xf32>
    %90 = vector.extract_strided_slice %80 {offsets = [0, 128], sizes = [8, 128], strides = [1, 1]} : vector<8x768xf32> to vector<8x128xf32>
    %91 = arith.addf %89, %90 : vector<8x128xf32>
    %92 = arith.negf %91 : vector<8x128xf32>
    %93 = math.exp %92 : vector<8x128xf32>
    %cst_16 = arith.constant 1.000000e+00 : f32
    %94 = vector.broadcast %cst_16 : f32 to vector<8x128xf32>
    %95 = arith.addf %94, %93 : vector<8x128xf32>
    %96 = arith.divf %94, %95 : vector<8x128xf32>
    %97 = vector.extract_strided_slice %77 {offsets = [0, 256], sizes = [8, 128], strides = [1, 1]} : vector<8x384xf32> to vector<8x128xf32>
    %98 = vector.extract_strided_slice %80 {offsets = [0, 256], sizes = [8, 128], strides = [1, 1]} : vector<8x768xf32> to vector<8x128xf32>
    %99 = vector.broadcast %9 : vector<1x128xf32> to vector<8x128xf32>
    %100 = arith.addf %98, %99 : vector<8x128xf32>
    %101 = arith.mulf %88, %100 : vector<8x128xf32>
    %102 = arith.addf %97, %101 : vector<8x128xf32>
    %103 = math.tanh %102 : vector<8x128xf32>
    %cst_17 = arith.constant 1.000000e+00 : f32
    %104 = vector.broadcast %cst_17 : f32 to vector<8x128xf32>
    %105 = arith.subf %104, %96 : vector<8x128xf32>
    %106 = arith.mulf %105, %103 : vector<8x128xf32>
    %107 = arith.mulf %96, %48 : vector<8x128xf32>
    %108 = arith.addf %106, %107 : vector<8x128xf32>
    %109 = vector.extract_strided_slice %78 {offsets = [0, 0], sizes = [8, 128], strides = [1, 1]} : vector<8x384xf32> to vector<8x128xf32>
    %110 = vector.extract_strided_slice %80 {offsets = [0, 384], sizes = [8, 128], strides = [1, 1]} : vector<8x768xf32> to vector<8x128xf32>
    %111 = arith.addf %109, %110 : vector<8x128xf32>
    %112 = arith.negf %111 : vector<8x128xf32>
    %113 = math.exp %112 : vector<8x128xf32>
    %cst_18 = arith.constant 1.000000e+00 : f32
    %114 = vector.broadcast %cst_18 : f32 to vector<8x128xf32>
    %115 = arith.addf %114, %113 : vector<8x128xf32>
    %116 = arith.divf %114, %115 : vector<8x128xf32>
    %117 = vector.extract_strided_slice %78 {offsets = [0, 128], sizes = [8, 128], strides = [1, 1]} : vector<8x384xf32> to vector<8x128xf32>
    %118 = vector.extract_strided_slice %80 {offsets = [0, 512], sizes = [8, 128], strides = [1, 1]} : vector<8x768xf32> to vector<8x128xf32>
    %119 = arith.addf %117, %118 : vector<8x128xf32>
    %120 = arith.negf %119 : vector<8x128xf32>
    %121 = math.exp %120 : vector<8x128xf32>
    %cst_19 = arith.constant 1.000000e+00 : f32
    %122 = vector.broadcast %cst_19 : f32 to vector<8x128xf32>
    %123 = arith.addf %122, %121 : vector<8x128xf32>
    %124 = arith.divf %122, %123 : vector<8x128xf32>
    %125 = vector.extract_strided_slice %78 {offsets = [0, 256], sizes = [8, 128], strides = [1, 1]} : vector<8x384xf32> to vector<8x128xf32>
    %126 = vector.extract_strided_slice %80 {offsets = [0, 640], sizes = [8, 128], strides = [1, 1]} : vector<8x768xf32> to vector<8x128xf32>
    %127 = vector.broadcast %10 : vector<1x128xf32> to vector<8x128xf32>
    %128 = arith.addf %126, %127 : vector<8x128xf32>
    %129 = arith.mulf %116, %128 : vector<8x128xf32>
    %130 = arith.addf %125, %129 : vector<8x128xf32>
    %131 = math.tanh %130 : vector<8x128xf32>
    %cst_20 = arith.constant 1.000000e+00 : f32
    %132 = vector.broadcast %cst_20 : f32 to vector<8x128xf32>
    %133 = arith.subf %132, %124 : vector<8x128xf32>
    %134 = arith.mulf %133, %131 : vector<8x128xf32>
    %135 = arith.mulf %124, %76 : vector<8x128xf32>
    %136 = arith.addf %134, %135 : vector<8x128xf32>
    %137 = vector.extract_strided_slice %8 {offsets = [16, 0], sizes = [8, 384], strides = [1, 1]} : vector<64x768xf32> to vector<8x384xf32>
    %138 = vector.extract_strided_slice %8 {offsets = [40, 384], sizes = [8, 384], strides = [1, 1]} : vector<64x768xf32> to vector<8x384xf32>
    %139 = tpu.concatenate %108, %136 in 1 : vector<8x128xf32>, vector<8x128xf32> -> vector<8x256xf32>
    %cst_21 = arith.constant dense<0.000000e+00> : vector<8x768xf32>
    %140 = tpu.matmul %139, %14, %cst_21 {dimension_numbers = #tpu.dot_dimension_numbers<[1], [0], [0], [1], [0, 0, 1, 1], [], []>} : vector<8x256xf32>, vector<256x768xf32>, vector<8x768xf32> -> vector<8x768xf32>
    %141 = vector.extract_strided_slice %137 {offsets = [0, 0], sizes = [8, 128], strides = [1, 1]} : vector<8x384xf32> to vector<8x128xf32>
    %142 = vector.extract_strided_slice %140 {offsets = [0, 0], sizes = [8, 128], strides = [1, 1]} : vector<8x768xf32> to vector<8x128xf32>
    %143 = arith.addf %141, %142 : vector<8x128xf32>
    %144 = arith.negf %143 : vector<8x128xf32>
    %145 = math.exp %144 : vector<8x128xf32>
    %cst_22 = arith.constant 1.000000e+00 : f32
    %146 = vector.broadcast %cst_22 : f32 to vector<8x128xf32>
    %147 = arith.addf %146, %145 : vector<8x128xf32>
    %148 = arith.divf %146, %147 : vector<8x128xf32>
    %149 = vector.extract_strided_slice %137 {offsets = [0, 128], sizes = [8, 128], strides = [1, 1]} : vector<8x384xf32> to vector<8x128xf32>
    %150 = vector.extract_strided_slice %140 {offsets = [0, 128], sizes = [8, 128], strides = [1, 1]} : vector<8x768xf32> to vector<8x128xf32>
    %151 = arith.addf %149, %150 : vector<8x128xf32>
    %152 = arith.negf %151 : vector<8x128xf32>
    %153 = math.exp %152 : vector<8x128xf32>
    %cst_23 = arith.constant 1.000000e+00 : f32
    %154 = vector.broadcast %cst_23 : f32 to vector<8x128xf32>
    %155 = arith.addf %154, %153 : vector<8x128xf32>
    %156 = arith.divf %154, %155 : vector<8x128xf32>
    %157 = vector.extract_strided_slice %137 {offsets = [0, 256], sizes = [8, 128], strides = [1, 1]} : vector<8x384xf32> to vector<8x128xf32>
    %158 = vector.extract_strided_slice %140 {offsets = [0, 256], sizes = [8, 128], strides = [1, 1]} : vector<8x768xf32> to vector<8x128xf32>
    %159 = vector.broadcast %9 : vector<1x128xf32> to vector<8x128xf32>
    %160 = arith.addf %158, %159 : vector<8x128xf32>
    %161 = arith.mulf %148, %160 : vector<8x128xf32>
    %162 = arith.addf %157, %161 : vector<8x128xf32>
    %163 = math.tanh %162 : vector<8x128xf32>
    %cst_24 = arith.constant 1.000000e+00 : f32
    %164 = vector.broadcast %cst_24 : f32 to vector<8x128xf32>
    %165 = arith.subf %164, %156 : vector<8x128xf32>
    %166 = arith.mulf %165, %163 : vector<8x128xf32>
    %167 = arith.mulf %156, %108 : vector<8x128xf32>
    %168 = arith.addf %166, %167 : vector<8x128xf32>
    %169 = vector.extract_strided_slice %138 {offsets = [0, 0], sizes = [8, 128], strides = [1, 1]} : vector<8x384xf32> to vector<8x128xf32>
    %170 = vector.extract_strided_slice %140 {offsets = [0, 384], sizes = [8, 128], strides = [1, 1]} : vector<8x768xf32> to vector<8x128xf32>
    %171 = arith.addf %169, %170 : vector<8x128xf32>
    %172 = arith.negf %171 : vector<8x128xf32>
    %173 = math.exp %172 : vector<8x128xf32>
    %cst_25 = arith.constant 1.000000e+00 : f32
    %174 = vector.broadcast %cst_25 : f32 to vector<8x128xf32>
    %175 = arith.addf %174, %173 : vector<8x128xf32>
    %176 = arith.divf %174, %175 : vector<8x128xf32>
    %177 = vector.extract_strided_slice %138 {offsets = [0, 128], sizes = [8, 128], strides = [1, 1]} : vector<8x384xf32> to vector<8x128xf32>
    %178 = vector.extract_strided_slice %140 {offsets = [0, 512], sizes = [8, 128], strides = [1, 1]} : vector<8x768xf32> to vector<8x128xf32>
    %179 = arith.addf %177, %178 : vector<8x128xf32>
    %180 = arith.negf %179 : vector<8x128xf32>
    %181 = math.exp %180 : vector<8x128xf32>
    %cst_26 = arith.constant 1.000000e+00 : f32
    %182 = vector.broadcast %cst_26 : f32 to vector<8x128xf32>
    %183 = arith.addf %182, %181 : vector<8x128xf32>
    %184 = arith.divf %182, %183 : vector<8x128xf32>
    %185 = vector.extract_strided_slice %138 {offsets = [0, 256], sizes = [8, 128], strides = [1, 1]} : vector<8x384xf32> to vector<8x128xf32>
    %186 = vector.extract_strided_slice %140 {offsets = [0, 640], sizes = [8, 128], strides = [1, 1]} : vector<8x768xf32> to vector<8x128xf32>
    %187 = vector.broadcast %10 : vector<1x128xf32> to vector<8x128xf32>
    %188 = arith.addf %186, %187 : vector<8x128xf32>
    %189 = arith.mulf %176, %188 : vector<8x128xf32>
    %190 = arith.addf %185, %189 : vector<8x128xf32>
    %191 = math.tanh %190 : vector<8x128xf32>
    %cst_27 = arith.constant 1.000000e+00 : f32
    %192 = vector.broadcast %cst_27 : f32 to vector<8x128xf32>
    %193 = arith.subf %192, %184 : vector<8x128xf32>
    %194 = arith.mulf %193, %191 : vector<8x128xf32>
    %195 = arith.mulf %184, %136 : vector<8x128xf32>
    %196 = arith.addf %194, %195 : vector<8x128xf32>
    %197 = vector.extract_strided_slice %8 {offsets = [24, 0], sizes = [8, 384], strides = [1, 1]} : vector<64x768xf32> to vector<8x384xf32>
    %198 = vector.extract_strided_slice %8 {offsets = [32, 384], sizes = [8, 384], strides = [1, 1]} : vector<64x768xf32> to vector<8x384xf32>
    %199 = tpu.concatenate %168, %196 in 1 : vector<8x128xf32>, vector<8x128xf32> -> vector<8x256xf32>
    %cst_28 = arith.constant dense<0.000000e+00> : vector<8x768xf32>
    %200 = tpu.matmul %199, %14, %cst_28 {dimension_numbers = #tpu.dot_dimension_numbers<[1], [0], [0], [1], [0, 0, 1, 1], [], []>} : vector<8x256xf32>, vector<256x768xf32>, vector<8x768xf32> -> vector<8x768xf32>
    %201 = vector.extract_strided_slice %197 {offsets = [0, 0], sizes = [8, 128], strides = [1, 1]} : vector<8x384xf32> to vector<8x128xf32>
    %202 = vector.extract_strided_slice %200 {offsets = [0, 0], sizes = [8, 128], strides = [1, 1]} : vector<8x768xf32> to vector<8x128xf32>
    %203 = arith.addf %201, %202 : vector<8x128xf32>
    %204 = arith.negf %203 : vector<8x128xf32>
    %205 = math.exp %204 : vector<8x128xf32>
    %cst_29 = arith.constant 1.000000e+00 : f32
    %206 = vector.broadcast %cst_29 : f32 to vector<8x128xf32>
    %207 = arith.addf %206, %205 : vector<8x128xf32>
    %208 = arith.divf %206, %207 : vector<8x128xf32>
    %209 = vector.extract_strided_slice %197 {offsets = [0, 128], sizes = [8, 128], strides = [1, 1]} : vector<8x384xf32> to vector<8x128xf32>
    %210 = vector.extract_strided_slice %200 {offsets = [0, 128], sizes = [8, 128], strides = [1, 1]} : vector<8x768xf32> to vector<8x128xf32>
    %211 = arith.addf %209, %210 : vector<8x128xf32>
    %212 = arith.negf %211 : vector<8x128xf32>
    %213 = math.exp %212 : vector<8x128xf32>
    %cst_30 = arith.constant 1.000000e+00 : f32
    %214 = vector.broadcast %cst_30 : f32 to vector<8x128xf32>
    %215 = arith.addf %214, %213 : vector<8x128xf32>
    %216 = arith.divf %214, %215 : vector<8x128xf32>
    %217 = vector.extract_strided_slice %197 {offsets = [0, 256], sizes = [8, 128], strides = [1, 1]} : vector<8x384xf32> to vector<8x128xf32>
    %218 = vector.extract_strided_slice %200 {offsets = [0, 256], sizes = [8, 128], strides = [1, 1]} : vector<8x768xf32> to vector<8x128xf32>
    %219 = vector.broadcast %9 : vector<1x128xf32> to vector<8x128xf32>
    %220 = arith.addf %218, %219 : vector<8x128xf32>
    %221 = arith.mulf %208, %220 : vector<8x128xf32>
    %222 = arith.addf %217, %221 : vector<8x128xf32>
    %223 = math.tanh %222 : vector<8x128xf32>
    %cst_31 = arith.constant 1.000000e+00 : f32
    %224 = vector.broadcast %cst_31 : f32 to vector<8x128xf32>
    %225 = arith.subf %224, %216 : vector<8x128xf32>
    %226 = arith.mulf %225, %223 : vector<8x128xf32>
    %227 = arith.mulf %216, %168 : vector<8x128xf32>
    %228 = arith.addf %226, %227 : vector<8x128xf32>
    %229 = vector.extract_strided_slice %198 {offsets = [0, 0], sizes = [8, 128], strides = [1, 1]} : vector<8x384xf32> to vector<8x128xf32>
    %230 = vector.extract_strided_slice %200 {offsets = [0, 384], sizes = [8, 128], strides = [1, 1]} : vector<8x768xf32> to vector<8x128xf32>
    %231 = arith.addf %229, %230 : vector<8x128xf32>
    %232 = arith.negf %231 : vector<8x128xf32>
    %233 = math.exp %232 : vector<8x128xf32>
    %cst_32 = arith.constant 1.000000e+00 : f32
    %234 = vector.broadcast %cst_32 : f32 to vector<8x128xf32>
    %235 = arith.addf %234, %233 : vector<8x128xf32>
    %236 = arith.divf %234, %235 : vector<8x128xf32>
    %237 = vector.extract_strided_slice %198 {offsets = [0, 128], sizes = [8, 128], strides = [1, 1]} : vector<8x384xf32> to vector<8x128xf32>
    %238 = vector.extract_strided_slice %200 {offsets = [0, 512], sizes = [8, 128], strides = [1, 1]} : vector<8x768xf32> to vector<8x128xf32>
    %239 = arith.addf %237, %238 : vector<8x128xf32>
    %240 = arith.negf %239 : vector<8x128xf32>
    %241 = math.exp %240 : vector<8x128xf32>
    %cst_33 = arith.constant 1.000000e+00 : f32
    %242 = vector.broadcast %cst_33 : f32 to vector<8x128xf32>
    %243 = arith.addf %242, %241 : vector<8x128xf32>
    %244 = arith.divf %242, %243 : vector<8x128xf32>
    %245 = vector.extract_strided_slice %198 {offsets = [0, 256], sizes = [8, 128], strides = [1, 1]} : vector<8x384xf32> to vector<8x128xf32>
    %246 = vector.extract_strided_slice %200 {offsets = [0, 640], sizes = [8, 128], strides = [1, 1]} : vector<8x768xf32> to vector<8x128xf32>
    %247 = vector.broadcast %10 : vector<1x128xf32> to vector<8x128xf32>
    %248 = arith.addf %246, %247 : vector<8x128xf32>
    %249 = arith.mulf %236, %248 : vector<8x128xf32>
    %250 = arith.addf %245, %249 : vector<8x128xf32>
    %251 = math.tanh %250 : vector<8x128xf32>
    %cst_34 = arith.constant 1.000000e+00 : f32
    %252 = vector.broadcast %cst_34 : f32 to vector<8x128xf32>
    %253 = arith.subf %252, %244 : vector<8x128xf32>
    %254 = arith.mulf %253, %251 : vector<8x128xf32>
    %255 = arith.mulf %244, %196 : vector<8x128xf32>
    %256 = arith.addf %254, %255 : vector<8x128xf32>
    %257 = vector.extract_strided_slice %8 {offsets = [32, 0], sizes = [8, 384], strides = [1, 1]} : vector<64x768xf32> to vector<8x384xf32>
    %258 = vector.extract_strided_slice %8 {offsets = [24, 384], sizes = [8, 384], strides = [1, 1]} : vector<64x768xf32> to vector<8x384xf32>
    %259 = tpu.concatenate %228, %256 in 1 : vector<8x128xf32>, vector<8x128xf32> -> vector<8x256xf32>
    %cst_35 = arith.constant dense<0.000000e+00> : vector<8x768xf32>
    %260 = tpu.matmul %259, %14, %cst_35 {dimension_numbers = #tpu.dot_dimension_numbers<[1], [0], [0], [1], [0, 0, 1, 1], [], []>} : vector<8x256xf32>, vector<256x768xf32>, vector<8x768xf32> -> vector<8x768xf32>
    %261 = vector.extract_strided_slice %257 {offsets = [0, 0], sizes = [8, 128], strides = [1, 1]} : vector<8x384xf32> to vector<8x128xf32>
    %262 = vector.extract_strided_slice %260 {offsets = [0, 0], sizes = [8, 128], strides = [1, 1]} : vector<8x768xf32> to vector<8x128xf32>
    %263 = arith.addf %261, %262 : vector<8x128xf32>
    %264 = arith.negf %263 : vector<8x128xf32>
    %265 = math.exp %264 : vector<8x128xf32>
    %cst_36 = arith.constant 1.000000e+00 : f32
    %266 = vector.broadcast %cst_36 : f32 to vector<8x128xf32>
    %267 = arith.addf %266, %265 : vector<8x128xf32>
    %268 = arith.divf %266, %267 : vector<8x128xf32>
    %269 = vector.extract_strided_slice %257 {offsets = [0, 128], sizes = [8, 128], strides = [1, 1]} : vector<8x384xf32> to vector<8x128xf32>
    %270 = vector.extract_strided_slice %260 {offsets = [0, 128], sizes = [8, 128], strides = [1, 1]} : vector<8x768xf32> to vector<8x128xf32>
    %271 = arith.addf %269, %270 : vector<8x128xf32>
    %272 = arith.negf %271 : vector<8x128xf32>
    %273 = math.exp %272 : vector<8x128xf32>
    %cst_37 = arith.constant 1.000000e+00 : f32
    %274 = vector.broadcast %cst_37 : f32 to vector<8x128xf32>
    %275 = arith.addf %274, %273 : vector<8x128xf32>
    %276 = arith.divf %274, %275 : vector<8x128xf32>
    %277 = vector.extract_strided_slice %257 {offsets = [0, 256], sizes = [8, 128], strides = [1, 1]} : vector<8x384xf32> to vector<8x128xf32>
    %278 = vector.extract_strided_slice %260 {offsets = [0, 256], sizes = [8, 128], strides = [1, 1]} : vector<8x768xf32> to vector<8x128xf32>
    %279 = vector.broadcast %9 : vector<1x128xf32> to vector<8x128xf32>
    %280 = arith.addf %278, %279 : vector<8x128xf32>
    %281 = arith.mulf %268, %280 : vector<8x128xf32>
    %282 = arith.addf %277, %281 : vector<8x128xf32>
    %283 = math.tanh %282 : vector<8x128xf32>
    %cst_38 = arith.constant 1.000000e+00 : f32
    %284 = vector.broadcast %cst_38 : f32 to vector<8x128xf32>
    %285 = arith.subf %284, %276 : vector<8x128xf32>
    %286 = arith.mulf %285, %283 : vector<8x128xf32>
    %287 = arith.mulf %276, %228 : vector<8x128xf32>
    %288 = arith.addf %286, %287 : vector<8x128xf32>
    %289 = vector.extract_strided_slice %258 {offsets = [0, 0], sizes = [8, 128], strides = [1, 1]} : vector<8x384xf32> to vector<8x128xf32>
    %290 = vector.extract_strided_slice %260 {offsets = [0, 384], sizes = [8, 128], strides = [1, 1]} : vector<8x768xf32> to vector<8x128xf32>
    %291 = arith.addf %289, %290 : vector<8x128xf32>
    %292 = arith.negf %291 : vector<8x128xf32>
    %293 = math.exp %292 : vector<8x128xf32>
    %cst_39 = arith.constant 1.000000e+00 : f32
    %294 = vector.broadcast %cst_39 : f32 to vector<8x128xf32>
    %295 = arith.addf %294, %293 : vector<8x128xf32>
    %296 = arith.divf %294, %295 : vector<8x128xf32>
    %297 = vector.extract_strided_slice %258 {offsets = [0, 128], sizes = [8, 128], strides = [1, 1]} : vector<8x384xf32> to vector<8x128xf32>
    %298 = vector.extract_strided_slice %260 {offsets = [0, 512], sizes = [8, 128], strides = [1, 1]} : vector<8x768xf32> to vector<8x128xf32>
    %299 = arith.addf %297, %298 : vector<8x128xf32>
    %300 = arith.negf %299 : vector<8x128xf32>
    %301 = math.exp %300 : vector<8x128xf32>
    %cst_40 = arith.constant 1.000000e+00 : f32
    %302 = vector.broadcast %cst_40 : f32 to vector<8x128xf32>
    %303 = arith.addf %302, %301 : vector<8x128xf32>
    %304 = arith.divf %302, %303 : vector<8x128xf32>
    %305 = vector.extract_strided_slice %258 {offsets = [0, 256], sizes = [8, 128], strides = [1, 1]} : vector<8x384xf32> to vector<8x128xf32>
    %306 = vector.extract_strided_slice %260 {offsets = [0, 640], sizes = [8, 128], strides = [1, 1]} : vector<8x768xf32> to vector<8x128xf32>
    %307 = vector.broadcast %10 : vector<1x128xf32> to vector<8x128xf32>
    %308 = arith.addf %306, %307 : vector<8x128xf32>
    %309 = arith.mulf %296, %308 : vector<8x128xf32>
    %310 = arith.addf %305, %309 : vector<8x128xf32>
    %311 = math.tanh %310 : vector<8x128xf32>
    %cst_41 = arith.constant 1.000000e+00 : f32
    %312 = vector.broadcast %cst_41 : f32 to vector<8x128xf32>
    %313 = arith.subf %312, %304 : vector<8x128xf32>
    %314 = arith.mulf %313, %311 : vector<8x128xf32>
    %315 = arith.mulf %304, %256 : vector<8x128xf32>
    %316 = arith.addf %314, %315 : vector<8x128xf32>
    %317 = vector.extract_strided_slice %8 {offsets = [40, 0], sizes = [8, 384], strides = [1, 1]} : vector<64x768xf32> to vector<8x384xf32>
    %318 = vector.extract_strided_slice %8 {offsets = [16, 384], sizes = [8, 384], strides = [1, 1]} : vector<64x768xf32> to vector<8x384xf32>
    %319 = tpu.concatenate %288, %316 in 1 : vector<8x128xf32>, vector<8x128xf32> -> vector<8x256xf32>
    %cst_42 = arith.constant dense<0.000000e+00> : vector<8x768xf32>
    %320 = tpu.matmul %319, %14, %cst_42 {dimension_numbers = #tpu.dot_dimension_numbers<[1], [0], [0], [1], [0, 0, 1, 1], [], []>} : vector<8x256xf32>, vector<256x768xf32>, vector<8x768xf32> -> vector<8x768xf32>
    %321 = vector.extract_strided_slice %317 {offsets = [0, 0], sizes = [8, 128], strides = [1, 1]} : vector<8x384xf32> to vector<8x128xf32>
    %322 = vector.extract_strided_slice %320 {offsets = [0, 0], sizes = [8, 128], strides = [1, 1]} : vector<8x768xf32> to vector<8x128xf32>
    %323 = arith.addf %321, %322 : vector<8x128xf32>
    %324 = arith.negf %323 : vector<8x128xf32>
    %325 = math.exp %324 : vector<8x128xf32>
    %cst_43 = arith.constant 1.000000e+00 : f32
    %326 = vector.broadcast %cst_43 : f32 to vector<8x128xf32>
    %327 = arith.addf %326, %325 : vector<8x128xf32>
    %328 = arith.divf %326, %327 : vector<8x128xf32>
    %329 = vector.extract_strided_slice %317 {offsets = [0, 128], sizes = [8, 128], strides = [1, 1]} : vector<8x384xf32> to vector<8x128xf32>
    %330 = vector.extract_strided_slice %320 {offsets = [0, 128], sizes = [8, 128], strides = [1, 1]} : vector<8x768xf32> to vector<8x128xf32>
    %331 = arith.addf %329, %330 : vector<8x128xf32>
    %332 = arith.negf %331 : vector<8x128xf32>
    %333 = math.exp %332 : vector<8x128xf32>
    %cst_44 = arith.constant 1.000000e+00 : f32
    %334 = vector.broadcast %cst_44 : f32 to vector<8x128xf32>
    %335 = arith.addf %334, %333 : vector<8x128xf32>
    %336 = arith.divf %334, %335 : vector<8x128xf32>
    %337 = vector.extract_strided_slice %317 {offsets = [0, 256], sizes = [8, 128], strides = [1, 1]} : vector<8x384xf32> to vector<8x128xf32>
    %338 = vector.extract_strided_slice %320 {offsets = [0, 256], sizes = [8, 128], strides = [1, 1]} : vector<8x768xf32> to vector<8x128xf32>
    %339 = vector.broadcast %9 : vector<1x128xf32> to vector<8x128xf32>
    %340 = arith.addf %338, %339 : vector<8x128xf32>
    %341 = arith.mulf %328, %340 : vector<8x128xf32>
    %342 = arith.addf %337, %341 : vector<8x128xf32>
    %343 = math.tanh %342 : vector<8x128xf32>
    %cst_45 = arith.constant 1.000000e+00 : f32
    %344 = vector.broadcast %cst_45 : f32 to vector<8x128xf32>
    %345 = arith.subf %344, %336 : vector<8x128xf32>
    %346 = arith.mulf %345, %343 : vector<8x128xf32>
    %347 = arith.mulf %336, %288 : vector<8x128xf32>
    %348 = arith.addf %346, %347 : vector<8x128xf32>
    %349 = vector.extract_strided_slice %318 {offsets = [0, 0], sizes = [8, 128], strides = [1, 1]} : vector<8x384xf32> to vector<8x128xf32>
    %350 = vector.extract_strided_slice %320 {offsets = [0, 384], sizes = [8, 128], strides = [1, 1]} : vector<8x768xf32> to vector<8x128xf32>
    %351 = arith.addf %349, %350 : vector<8x128xf32>
    %352 = arith.negf %351 : vector<8x128xf32>
    %353 = math.exp %352 : vector<8x128xf32>
    %cst_46 = arith.constant 1.000000e+00 : f32
    %354 = vector.broadcast %cst_46 : f32 to vector<8x128xf32>
    %355 = arith.addf %354, %353 : vector<8x128xf32>
    %356 = arith.divf %354, %355 : vector<8x128xf32>
    %357 = vector.extract_strided_slice %318 {offsets = [0, 128], sizes = [8, 128], strides = [1, 1]} : vector<8x384xf32> to vector<8x128xf32>
    %358 = vector.extract_strided_slice %320 {offsets = [0, 512], sizes = [8, 128], strides = [1, 1]} : vector<8x768xf32> to vector<8x128xf32>
    %359 = arith.addf %357, %358 : vector<8x128xf32>
    %360 = arith.negf %359 : vector<8x128xf32>
    %361 = math.exp %360 : vector<8x128xf32>
    %cst_47 = arith.constant 1.000000e+00 : f32
    %362 = vector.broadcast %cst_47 : f32 to vector<8x128xf32>
    %363 = arith.addf %362, %361 : vector<8x128xf32>
    %364 = arith.divf %362, %363 : vector<8x128xf32>
    %365 = vector.extract_strided_slice %318 {offsets = [0, 256], sizes = [8, 128], strides = [1, 1]} : vector<8x384xf32> to vector<8x128xf32>
    %366 = vector.extract_strided_slice %320 {offsets = [0, 640], sizes = [8, 128], strides = [1, 1]} : vector<8x768xf32> to vector<8x128xf32>
    %367 = vector.broadcast %10 : vector<1x128xf32> to vector<8x128xf32>
    %368 = arith.addf %366, %367 : vector<8x128xf32>
    %369 = arith.mulf %356, %368 : vector<8x128xf32>
    %370 = arith.addf %365, %369 : vector<8x128xf32>
    %371 = math.tanh %370 : vector<8x128xf32>
    %cst_48 = arith.constant 1.000000e+00 : f32
    %372 = vector.broadcast %cst_48 : f32 to vector<8x128xf32>
    %373 = arith.subf %372, %364 : vector<8x128xf32>
    %374 = arith.mulf %373, %371 : vector<8x128xf32>
    %375 = arith.mulf %364, %316 : vector<8x128xf32>
    %376 = arith.addf %374, %375 : vector<8x128xf32>
    %377 = vector.extract_strided_slice %8 {offsets = [48, 0], sizes = [8, 384], strides = [1, 1]} : vector<64x768xf32> to vector<8x384xf32>
    %378 = vector.extract_strided_slice %8 {offsets = [8, 384], sizes = [8, 384], strides = [1, 1]} : vector<64x768xf32> to vector<8x384xf32>
    %379 = tpu.concatenate %348, %376 in 1 : vector<8x128xf32>, vector<8x128xf32> -> vector<8x256xf32>
    %cst_49 = arith.constant dense<0.000000e+00> : vector<8x768xf32>
    %380 = tpu.matmul %379, %14, %cst_49 {dimension_numbers = #tpu.dot_dimension_numbers<[1], [0], [0], [1], [0, 0, 1, 1], [], []>} : vector<8x256xf32>, vector<256x768xf32>, vector<8x768xf32> -> vector<8x768xf32>
    %381 = vector.extract_strided_slice %377 {offsets = [0, 0], sizes = [8, 128], strides = [1, 1]} : vector<8x384xf32> to vector<8x128xf32>
    %382 = vector.extract_strided_slice %380 {offsets = [0, 0], sizes = [8, 128], strides = [1, 1]} : vector<8x768xf32> to vector<8x128xf32>
    %383 = arith.addf %381, %382 : vector<8x128xf32>
    %384 = arith.negf %383 : vector<8x128xf32>
    %385 = math.exp %384 : vector<8x128xf32>
    %cst_50 = arith.constant 1.000000e+00 : f32
    %386 = vector.broadcast %cst_50 : f32 to vector<8x128xf32>
    %387 = arith.addf %386, %385 : vector<8x128xf32>
    %388 = arith.divf %386, %387 : vector<8x128xf32>
    %389 = vector.extract_strided_slice %377 {offsets = [0, 128], sizes = [8, 128], strides = [1, 1]} : vector<8x384xf32> to vector<8x128xf32>
    %390 = vector.extract_strided_slice %380 {offsets = [0, 128], sizes = [8, 128], strides = [1, 1]} : vector<8x768xf32> to vector<8x128xf32>
    %391 = arith.addf %389, %390 : vector<8x128xf32>
    %392 = arith.negf %391 : vector<8x128xf32>
    %393 = math.exp %392 : vector<8x128xf32>
    %cst_51 = arith.constant 1.000000e+00 : f32
    %394 = vector.broadcast %cst_51 : f32 to vector<8x128xf32>
    %395 = arith.addf %394, %393 : vector<8x128xf32>
    %396 = arith.divf %394, %395 : vector<8x128xf32>
    %397 = vector.extract_strided_slice %377 {offsets = [0, 256], sizes = [8, 128], strides = [1, 1]} : vector<8x384xf32> to vector<8x128xf32>
    %398 = vector.extract_strided_slice %380 {offsets = [0, 256], sizes = [8, 128], strides = [1, 1]} : vector<8x768xf32> to vector<8x128xf32>
    %399 = vector.broadcast %9 : vector<1x128xf32> to vector<8x128xf32>
    %400 = arith.addf %398, %399 : vector<8x128xf32>
    %401 = arith.mulf %388, %400 : vector<8x128xf32>
    %402 = arith.addf %397, %401 : vector<8x128xf32>
    %403 = math.tanh %402 : vector<8x128xf32>
    %cst_52 = arith.constant 1.000000e+00 : f32
    %404 = vector.broadcast %cst_52 : f32 to vector<8x128xf32>
    %405 = arith.subf %404, %396 : vector<8x128xf32>
    %406 = arith.mulf %405, %403 : vector<8x128xf32>
    %407 = arith.mulf %396, %348 : vector<8x128xf32>
    %408 = arith.addf %406, %407 : vector<8x128xf32>
    %409 = vector.extract_strided_slice %378 {offsets = [0, 0], sizes = [8, 128], strides = [1, 1]} : vector<8x384xf32> to vector<8x128xf32>
    %410 = vector.extract_strided_slice %380 {offsets = [0, 384], sizes = [8, 128], strides = [1, 1]} : vector<8x768xf32> to vector<8x128xf32>
    %411 = arith.addf %409, %410 : vector<8x128xf32>
    %412 = arith.negf %411 : vector<8x128xf32>
    %413 = math.exp %412 : vector<8x128xf32>
    %cst_53 = arith.constant 1.000000e+00 : f32
    %414 = vector.broadcast %cst_53 : f32 to vector<8x128xf32>
    %415 = arith.addf %414, %413 : vector<8x128xf32>
    %416 = arith.divf %414, %415 : vector<8x128xf32>
    %417 = vector.extract_strided_slice %378 {offsets = [0, 128], sizes = [8, 128], strides = [1, 1]} : vector<8x384xf32> to vector<8x128xf32>
    %418 = vector.extract_strided_slice %380 {offsets = [0, 512], sizes = [8, 128], strides = [1, 1]} : vector<8x768xf32> to vector<8x128xf32>
    %419 = arith.addf %417, %418 : vector<8x128xf32>
    %420 = arith.negf %419 : vector<8x128xf32>
    %421 = math.exp %420 : vector<8x128xf32>
    %cst_54 = arith.constant 1.000000e+00 : f32
    %422 = vector.broadcast %cst_54 : f32 to vector<8x128xf32>
    %423 = arith.addf %422, %421 : vector<8x128xf32>
    %424 = arith.divf %422, %423 : vector<8x128xf32>
    %425 = vector.extract_strided_slice %378 {offsets = [0, 256], sizes = [8, 128], strides = [1, 1]} : vector<8x384xf32> to vector<8x128xf32>
    %426 = vector.extract_strided_slice %380 {offsets = [0, 640], sizes = [8, 128], strides = [1, 1]} : vector<8x768xf32> to vector<8x128xf32>
    %427 = vector.broadcast %10 : vector<1x128xf32> to vector<8x128xf32>
    %428 = arith.addf %426, %427 : vector<8x128xf32>
    %429 = arith.mulf %416, %428 : vector<8x128xf32>
    %430 = arith.addf %425, %429 : vector<8x128xf32>
    %431 = math.tanh %430 : vector<8x128xf32>
    %cst_55 = arith.constant 1.000000e+00 : f32
    %432 = vector.broadcast %cst_55 : f32 to vector<8x128xf32>
    %433 = arith.subf %432, %424 : vector<8x128xf32>
    %434 = arith.mulf %433, %431 : vector<8x128xf32>
    %435 = arith.mulf %424, %376 : vector<8x128xf32>
    %436 = arith.addf %434, %435 : vector<8x128xf32>
    %437 = vector.extract_strided_slice %8 {offsets = [56, 0], sizes = [8, 384], strides = [1, 1]} : vector<64x768xf32> to vector<8x384xf32>
    %438 = vector.extract_strided_slice %8 {offsets = [0, 384], sizes = [8, 384], strides = [1, 1]} : vector<64x768xf32> to vector<8x384xf32>
    %439 = tpu.concatenate %408, %436 in 1 : vector<8x128xf32>, vector<8x128xf32> -> vector<8x256xf32>
    %cst_56 = arith.constant dense<0.000000e+00> : vector<8x768xf32>
    %440 = tpu.matmul %439, %14, %cst_56 {dimension_numbers = #tpu.dot_dimension_numbers<[1], [0], [0], [1], [0, 0, 1, 1], [], []>} : vector<8x256xf32>, vector<256x768xf32>, vector<8x768xf32> -> vector<8x768xf32>
    %441 = vector.extract_strided_slice %437 {offsets = [0, 0], sizes = [8, 128], strides = [1, 1]} : vector<8x384xf32> to vector<8x128xf32>
    %442 = vector.extract_strided_slice %440 {offsets = [0, 0], sizes = [8, 128], strides = [1, 1]} : vector<8x768xf32> to vector<8x128xf32>
    %443 = arith.addf %441, %442 : vector<8x128xf32>
    %444 = arith.negf %443 : vector<8x128xf32>
    %445 = math.exp %444 : vector<8x128xf32>
    %cst_57 = arith.constant 1.000000e+00 : f32
    %446 = vector.broadcast %cst_57 : f32 to vector<8x128xf32>
    %447 = arith.addf %446, %445 : vector<8x128xf32>
    %448 = arith.divf %446, %447 : vector<8x128xf32>
    %449 = vector.extract_strided_slice %437 {offsets = [0, 128], sizes = [8, 128], strides = [1, 1]} : vector<8x384xf32> to vector<8x128xf32>
    %450 = vector.extract_strided_slice %440 {offsets = [0, 128], sizes = [8, 128], strides = [1, 1]} : vector<8x768xf32> to vector<8x128xf32>
    %451 = arith.addf %449, %450 : vector<8x128xf32>
    %452 = arith.negf %451 : vector<8x128xf32>
    %453 = math.exp %452 : vector<8x128xf32>
    %cst_58 = arith.constant 1.000000e+00 : f32
    %454 = vector.broadcast %cst_58 : f32 to vector<8x128xf32>
    %455 = arith.addf %454, %453 : vector<8x128xf32>
    %456 = arith.divf %454, %455 : vector<8x128xf32>
    %457 = vector.extract_strided_slice %437 {offsets = [0, 256], sizes = [8, 128], strides = [1, 1]} : vector<8x384xf32> to vector<8x128xf32>
    %458 = vector.extract_strided_slice %440 {offsets = [0, 256], sizes = [8, 128], strides = [1, 1]} : vector<8x768xf32> to vector<8x128xf32>
    %459 = vector.broadcast %9 : vector<1x128xf32> to vector<8x128xf32>
    %460 = arith.addf %458, %459 : vector<8x128xf32>
    %461 = arith.mulf %448, %460 : vector<8x128xf32>
    %462 = arith.addf %457, %461 : vector<8x128xf32>
    %463 = math.tanh %462 : vector<8x128xf32>
    %cst_59 = arith.constant 1.000000e+00 : f32
    %464 = vector.broadcast %cst_59 : f32 to vector<8x128xf32>
    %465 = arith.subf %464, %456 : vector<8x128xf32>
    %466 = arith.mulf %465, %463 : vector<8x128xf32>
    %467 = arith.mulf %456, %408 : vector<8x128xf32>
    %468 = arith.addf %466, %467 : vector<8x128xf32>
    %469 = vector.extract_strided_slice %438 {offsets = [0, 0], sizes = [8, 128], strides = [1, 1]} : vector<8x384xf32> to vector<8x128xf32>
    %470 = vector.extract_strided_slice %440 {offsets = [0, 384], sizes = [8, 128], strides = [1, 1]} : vector<8x768xf32> to vector<8x128xf32>
    %471 = arith.addf %469, %470 : vector<8x128xf32>
    %472 = arith.negf %471 : vector<8x128xf32>
    %473 = math.exp %472 : vector<8x128xf32>
    %cst_60 = arith.constant 1.000000e+00 : f32
    %474 = vector.broadcast %cst_60 : f32 to vector<8x128xf32>
    %475 = arith.addf %474, %473 : vector<8x128xf32>
    %476 = arith.divf %474, %475 : vector<8x128xf32>
    %477 = vector.extract_strided_slice %438 {offsets = [0, 128], sizes = [8, 128], strides = [1, 1]} : vector<8x384xf32> to vector<8x128xf32>
    %478 = vector.extract_strided_slice %440 {offsets = [0, 512], sizes = [8, 128], strides = [1, 1]} : vector<8x768xf32> to vector<8x128xf32>
    %479 = arith.addf %477, %478 : vector<8x128xf32>
    %480 = arith.negf %479 : vector<8x128xf32>
    %481 = math.exp %480 : vector<8x128xf32>
    %cst_61 = arith.constant 1.000000e+00 : f32
    %482 = vector.broadcast %cst_61 : f32 to vector<8x128xf32>
    %483 = arith.addf %482, %481 : vector<8x128xf32>
    %484 = arith.divf %482, %483 : vector<8x128xf32>
    %485 = vector.extract_strided_slice %438 {offsets = [0, 256], sizes = [8, 128], strides = [1, 1]} : vector<8x384xf32> to vector<8x128xf32>
    %486 = vector.extract_strided_slice %440 {offsets = [0, 640], sizes = [8, 128], strides = [1, 1]} : vector<8x768xf32> to vector<8x128xf32>
    %487 = vector.broadcast %10 : vector<1x128xf32> to vector<8x128xf32>
    %488 = arith.addf %486, %487 : vector<8x128xf32>
    %489 = arith.mulf %476, %488 : vector<8x128xf32>
    %490 = arith.addf %485, %489 : vector<8x128xf32>
    %491 = math.tanh %490 : vector<8x128xf32>
    %cst_62 = arith.constant 1.000000e+00 : f32
    %492 = vector.broadcast %cst_62 : f32 to vector<8x128xf32>
    %493 = arith.subf %492, %484 : vector<8x128xf32>
    %494 = arith.mulf %493, %491 : vector<8x128xf32>
    %495 = arith.mulf %484, %436 : vector<8x128xf32>
    %496 = arith.addf %494, %495 : vector<8x128xf32>
    %c0_63 = arith.constant 0 : index
    %c0_64 = arith.constant 0 : index
    %c0_65 = arith.constant 0 : index
    %497 = vector.load %arg5[%c0_63, %c0_64, %c0_65] : memref<4x8x128xf32, #tpu.memory_space<vmem>>, vector<1x8x128xf32>
    %498 = vector.shape_cast %497 : vector<1x8x128xf32> to vector<8x128xf32>
    %499 = vector.shape_cast %468 : vector<8x128xf32> to vector<1x8x128xf32>
    tpu.vector_store %arg5[%c0_63, %c0_64, %c0_65], %499 {strides = array<i32>} : memref<4x8x128xf32, #tpu.memory_space<vmem>>, vector<1x8x128xf32>,
    %c1 = arith.constant 1 : index
    %c0_66 = arith.constant 0 : index
    %c0_67 = arith.constant 0 : index
    %500 = vector.load %arg5[%c1, %c0_66, %c0_67] : memref<4x8x128xf32, #tpu.memory_space<vmem>>, vector<1x8x128xf32>
    %501 = vector.shape_cast %500 : vector<1x8x128xf32> to vector<8x128xf32>
    %502 = vector.shape_cast %496 : vector<8x128xf32> to vector<1x8x128xf32>
    tpu.vector_store %arg5[%c1, %c0_66, %c0_67], %502 {strides = array<i32>} : memref<4x8x128xf32, #tpu.memory_space<vmem>>, vector<1x8x128xf32>,
    %503 = tpu.concatenate %48, %496 in 1 : vector<8x128xf32>, vector<8x128xf32> -> vector<8x256xf32>
    %504 = tpu.concatenate %108, %436 in 1 : vector<8x128xf32>, vector<8x128xf32> -> vector<8x256xf32>
    %505 = tpu.concatenate %168, %376 in 1 : vector<8x128xf32>, vector<8x128xf32> -> vector<8x256xf32>
    %506 = tpu.concatenate %228, %316 in 1 : vector<8x128xf32>, vector<8x128xf32> -> vector<8x256xf32>
    %507 = tpu.concatenate %288, %256 in 1 : vector<8x128xf32>, vector<8x128xf32> -> vector<8x256xf32>
    %508 = tpu.concatenate %348, %196 in 1 : vector<8x128xf32>, vector<8x128xf32> -> vector<8x256xf32>
    %509 = tpu.concatenate %408, %136 in 1 : vector<8x128xf32>, vector<8x128xf32> -> vector<8x256xf32>
    %510 = tpu.concatenate %468, %76 in 1 : vector<8x128xf32>, vector<8x128xf32> -> vector<8x256xf32>
    %511 = tpu.concatenate %503, %504, %505, %506, %507, %508, %509, %510 in 0 : vector<8x256xf32>, vector<8x256xf32>, vector<8x256xf32>, vector<8x256xf32>, vector<8x256xf32>, vector<8x256xf32>, vector<8x256xf32>, vector<8x256xf32> -> vector<64x256xf32>
    %c0_68 = arith.constant 0 : index
    %c0_69 = arith.constant 0 : index
    %512 = vector.load %arg2[%c0_68, %c0_69] : memref<256x896xf32, #tpu.memory_space<vmem>>, vector<256x768xf32>
    %cst_70 = arith.constant dense<0.000000e+00> : vector<64x768xf32>
    %513 = tpu.matmul %511, %512, %cst_70 {dimension_numbers = #tpu.dot_dimension_numbers<[1], [0], [0], [1], [0, 0, 1, 1], [], []>} : vector<64x256xf32>, vector<256x768xf32>, vector<64x768xf32> -> vector<64x768xf32>
    %514 = vector.extract_strided_slice %1 {offsets = [1, 0], sizes = [1, 768], strides = [1, 1]} : vector<8x768xf32> to vector<1x768xf32>
    %515 = vector.broadcast %514 : vector<1x768xf32> to vector<64x768xf32>
    %516 = arith.addf %513, %515 : vector<64x768xf32>
    %c1_71 = arith.constant 1 : index
    %c0_72 = arith.constant 0 : index
    %c0_73 = arith.constant 0 : index
    %517 = vector.load %arg1[%c1_71, %c0_72, %c0_73] : memref<2x256x768xf32, #tpu.memory_space<vmem>>, vector<1x256x768xf32>
    %518 = vector.shape_cast %517 : vector<1x256x768xf32> to vector<256x768xf32>
    %cst_74 = arith.constant 0.000000e+00 : f32
    %519 = vector.broadcast %cst_74 : f32 to vector<8x128xf32>
    %cst_75 = arith.constant 0.000000e+00 : f32
    %520 = vector.broadcast %cst_75 : f32 to vector<8x128xf32>
    %cst_76 = arith.constant 0.000000e+00 : f32
    %521 = vector.broadcast %cst_76 : f32 to vector<8x128xf32>
    %cst_77 = arith.constant 0.000000e+00 : f32
    %522 = vector.broadcast %cst_77 : f32 to vector<8x128xf32>
    %523 = vector.extract_strided_slice %516 {offsets = [0, 0], sizes = [8, 384], strides = [1, 1]} : vector<64x768xf32> to vector<8x384xf32>
    %524 = vector.extract_strided_slice %516 {offsets = [56, 384], sizes = [8, 384], strides = [1, 1]} : vector<64x768xf32> to vector<8x384xf32>
    %525 = tpu.concatenate %519, %520 in 1 : vector<8x128xf32>, vector<8x128xf32> -> vector<8x256xf32>
    %cst_78 = arith.constant dense<0.000000e+00> : vector<8x768xf32>
    %526 = tpu.matmul %525, %518, %cst_78 {dimension_numbers = #tpu.dot_dimension_numbers<[1], [0], [0], [1], [0, 0, 1, 1], [], []>} : vector<8x256xf32>, vector<256x768xf32>, vector<8x768xf32> -> vector<8x768xf32>
    %527 = vector.extract_strided_slice %523 {offsets = [0, 0], sizes = [8, 128], strides = [1, 1]} : vector<8x384xf32> to vector<8x128xf32>
    %528 = vector.extract_strided_slice %526 {offsets = [0, 0], sizes = [8, 128], strides = [1, 1]} : vector<8x768xf32> to vector<8x128xf32>
    %529 = arith.addf %527, %528 : vector<8x128xf32>
    %530 = arith.negf %529 : vector<8x128xf32>
    %531 = math.exp %530 : vector<8x128xf32>
    %cst_79 = arith.constant 1.000000e+00 : f32
    %532 = vector.broadcast %cst_79 : f32 to vector<8x128xf32>
    %533 = arith.addf %532, %531 : vector<8x128xf32>
    %534 = arith.divf %532, %533 : vector<8x128xf32>
    %535 = vector.extract_strided_slice %523 {offsets = [0, 128], sizes = [8, 128], strides = [1, 1]} : vector<8x384xf32> to vector<8x128xf32>
    %536 = vector.extract_strided_slice %526 {offsets = [0, 128], sizes = [8, 128], strides = [1, 1]} : vector<8x768xf32> to vector<8x128xf32>
    %537 = arith.addf %535, %536 : vector<8x128xf32>
    %538 = arith.negf %537 : vector<8x128xf32>
    %539 = math.exp %538 : vector<8x128xf32>
    %cst_80 = arith.constant 1.000000e+00 : f32
    %540 = vector.broadcast %cst_80 : f32 to vector<8x128xf32>
    %541 = arith.addf %540, %539 : vector<8x128xf32>
    %542 = arith.divf %540, %541 : vector<8x128xf32>
    %543 = vector.extract_strided_slice %523 {offsets = [0, 256], sizes = [8, 128], strides = [1, 1]} : vector<8x384xf32> to vector<8x128xf32>
    %544 = vector.extract_strided_slice %526 {offsets = [0, 256], sizes = [8, 128], strides = [1, 1]} : vector<8x768xf32> to vector<8x128xf32>
    %545 = vector.broadcast %11 : vector<1x128xf32> to vector<8x128xf32>
    %546 = arith.addf %544, %545 : vector<8x128xf32>
    %547 = arith.mulf %534, %546 : vector<8x128xf32>
    %548 = arith.addf %543, %547 : vector<8x128xf32>
    %549 = math.tanh %548 : vector<8x128xf32>
    %cst_81 = arith.constant 1.000000e+00 : f32
    %550 = vector.broadcast %cst_81 : f32 to vector<8x128xf32>
    %551 = arith.subf %550, %542 : vector<8x128xf32>
    %552 = arith.mulf %551, %549 : vector<8x128xf32>
    %553 = arith.mulf %542, %519 : vector<8x128xf32>
    %554 = arith.addf %552, %553 : vector<8x128xf32>
    %555 = vector.extract_strided_slice %524 {offsets = [0, 0], sizes = [8, 128], strides = [1, 1]} : vector<8x384xf32> to vector<8x128xf32>
    %556 = vector.extract_strided_slice %526 {offsets = [0, 384], sizes = [8, 128], strides = [1, 1]} : vector<8x768xf32> to vector<8x128xf32>
    %557 = arith.addf %555, %556 : vector<8x128xf32>
    %558 = arith.negf %557 : vector<8x128xf32>
    %559 = math.exp %558 : vector<8x128xf32>
    %cst_82 = arith.constant 1.000000e+00 : f32
    %560 = vector.broadcast %cst_82 : f32 to vector<8x128xf32>
    %561 = arith.addf %560, %559 : vector<8x128xf32>
    %562 = arith.divf %560, %561 : vector<8x128xf32>
    %563 = vector.extract_strided_slice %524 {offsets = [0, 128], sizes = [8, 128], strides = [1, 1]} : vector<8x384xf32> to vector<8x128xf32>
    %564 = vector.extract_strided_slice %526 {offsets = [0, 512], sizes = [8, 128], strides = [1, 1]} : vector<8x768xf32> to vector<8x128xf32>
    %565 = arith.addf %563, %564 : vector<8x128xf32>
    %566 = arith.negf %565 : vector<8x128xf32>
    %567 = math.exp %566 : vector<8x128xf32>
    %cst_83 = arith.constant 1.000000e+00 : f32
    %568 = vector.broadcast %cst_83 : f32 to vector<8x128xf32>
    %569 = arith.addf %568, %567 : vector<8x128xf32>
    %570 = arith.divf %568, %569 : vector<8x128xf32>
    %571 = vector.extract_strided_slice %524 {offsets = [0, 256], sizes = [8, 128], strides = [1, 1]} : vector<8x384xf32> to vector<8x128xf32>
    %572 = vector.extract_strided_slice %526 {offsets = [0, 640], sizes = [8, 128], strides = [1, 1]} : vector<8x768xf32> to vector<8x128xf32>
    %573 = vector.broadcast %12 : vector<1x128xf32> to vector<8x128xf32>
    %574 = arith.addf %572, %573 : vector<8x128xf32>
    %575 = arith.mulf %562, %574 : vector<8x128xf32>
    %576 = arith.addf %571, %575 : vector<8x128xf32>
    %577 = math.tanh %576 : vector<8x128xf32>
    %cst_84 = arith.constant 1.000000e+00 : f32
    %578 = vector.broadcast %cst_84 : f32 to vector<8x128xf32>
    %579 = arith.subf %578, %570 : vector<8x128xf32>
    %580 = arith.mulf %579, %577 : vector<8x128xf32>
    %581 = arith.mulf %570, %520 : vector<8x128xf32>
    %582 = arith.addf %580, %581 : vector<8x128xf32>
    %583 = arith.addf %521, %554 : vector<8x128xf32>
    %584 = arith.addf %522, %582 : vector<8x128xf32>
    %585 = vector.extract_strided_slice %516 {offsets = [8, 0], sizes = [8, 384], strides = [1, 1]} : vector<64x768xf32> to vector<8x384xf32>
    %586 = vector.extract_strided_slice %516 {offsets = [48, 384], sizes = [8, 384], strides = [1, 1]} : vector<64x768xf32> to vector<8x384xf32>
    %587 = tpu.concatenate %554, %582 in 1 : vector<8x128xf32>, vector<8x128xf32> -> vector<8x256xf32>
    %cst_85 = arith.constant dense<0.000000e+00> : vector<8x768xf32>
    %588 = tpu.matmul %587, %518, %cst_85 {dimension_numbers = #tpu.dot_dimension_numbers<[1], [0], [0], [1], [0, 0, 1, 1], [], []>} : vector<8x256xf32>, vector<256x768xf32>, vector<8x768xf32> -> vector<8x768xf32>
    %589 = vector.extract_strided_slice %585 {offsets = [0, 0], sizes = [8, 128], strides = [1, 1]} : vector<8x384xf32> to vector<8x128xf32>
    %590 = vector.extract_strided_slice %588 {offsets = [0, 0], sizes = [8, 128], strides = [1, 1]} : vector<8x768xf32> to vector<8x128xf32>
    %591 = arith.addf %589, %590 : vector<8x128xf32>
    %592 = arith.negf %591 : vector<8x128xf32>
    %593 = math.exp %592 : vector<8x128xf32>
    %cst_86 = arith.constant 1.000000e+00 : f32
    %594 = vector.broadcast %cst_86 : f32 to vector<8x128xf32>
    %595 = arith.addf %594, %593 : vector<8x128xf32>
    %596 = arith.divf %594, %595 : vector<8x128xf32>
    %597 = vector.extract_strided_slice %585 {offsets = [0, 128], sizes = [8, 128], strides = [1, 1]} : vector<8x384xf32> to vector<8x128xf32>
    %598 = vector.extract_strided_slice %588 {offsets = [0, 128], sizes = [8, 128], strides = [1, 1]} : vector<8x768xf32> to vector<8x128xf32>
    %599 = arith.addf %597, %598 : vector<8x128xf32>
    %600 = arith.negf %599 : vector<8x128xf32>
    %601 = math.exp %600 : vector<8x128xf32>
    %cst_87 = arith.constant 1.000000e+00 : f32
    %602 = vector.broadcast %cst_87 : f32 to vector<8x128xf32>
    %603 = arith.addf %602, %601 : vector<8x128xf32>
    %604 = arith.divf %602, %603 : vector<8x128xf32>
    %605 = vector.extract_strided_slice %585 {offsets = [0, 256], sizes = [8, 128], strides = [1, 1]} : vector<8x384xf32> to vector<8x128xf32>
    %606 = vector.extract_strided_slice %588 {offsets = [0, 256], sizes = [8, 128], strides = [1, 1]} : vector<8x768xf32> to vector<8x128xf32>
    %607 = vector.broadcast %11 : vector<1x128xf32> to vector<8x128xf32>
    %608 = arith.addf %606, %607 : vector<8x128xf32>
    %609 = arith.mulf %596, %608 : vector<8x128xf32>
    %610 = arith.addf %605, %609 : vector<8x128xf32>
    %611 = math.tanh %610 : vector<8x128xf32>
    %cst_88 = arith.constant 1.000000e+00 : f32
    %612 = vector.broadcast %cst_88 : f32 to vector<8x128xf32>
    %613 = arith.subf %612, %604 : vector<8x128xf32>
    %614 = arith.mulf %613, %611 : vector<8x128xf32>
    %615 = arith.mulf %604, %554 : vector<8x128xf32>
    %616 = arith.addf %614, %615 : vector<8x128xf32>
    %617 = vector.extract_strided_slice %586 {offsets = [0, 0], sizes = [8, 128], strides = [1, 1]} : vector<8x384xf32> to vector<8x128xf32>
    %618 = vector.extract_strided_slice %588 {offsets = [0, 384], sizes = [8, 128], strides = [1, 1]} : vector<8x768xf32> to vector<8x128xf32>
    %619 = arith.addf %617, %618 : vector<8x128xf32>
    %620 = arith.negf %619 : vector<8x128xf32>
    %621 = math.exp %620 : vector<8x128xf32>
    %cst_89 = arith.constant 1.000000e+00 : f32
    %622 = vector.broadcast %cst_89 : f32 to vector<8x128xf32>
    %623 = arith.addf %622, %621 : vector<8x128xf32>
    %624 = arith.divf %622, %623 : vector<8x128xf32>
    %625 = vector.extract_strided_slice %586 {offsets = [0, 128], sizes = [8, 128], strides = [1, 1]} : vector<8x384xf32> to vector<8x128xf32>
    %626 = vector.extract_strided_slice %588 {offsets = [0, 512], sizes = [8, 128], strides = [1, 1]} : vector<8x768xf32> to vector<8x128xf32>
    %627 = arith.addf %625, %626 : vector<8x128xf32>
    %628 = arith.negf %627 : vector<8x128xf32>
    %629 = math.exp %628 : vector<8x128xf32>
    %cst_90 = arith.constant 1.000000e+00 : f32
    %630 = vector.broadcast %cst_90 : f32 to vector<8x128xf32>
    %631 = arith.addf %630, %629 : vector<8x128xf32>
    %632 = arith.divf %630, %631 : vector<8x128xf32>
    %633 = vector.extract_strided_slice %586 {offsets = [0, 256], sizes = [8, 128], strides = [1, 1]} : vector<8x384xf32> to vector<8x128xf32>
    %634 = vector.extract_strided_slice %588 {offsets = [0, 640], sizes = [8, 128], strides = [1, 1]} : vector<8x768xf32> to vector<8x128xf32>
    %635 = vector.broadcast %12 : vector<1x128xf32> to vector<8x128xf32>
    %636 = arith.addf %634, %635 : vector<8x128xf32>
    %637 = arith.mulf %624, %636 : vector<8x128xf32>
    %638 = arith.addf %633, %637 : vector<8x128xf32>
    %639 = math.tanh %638 : vector<8x128xf32>
    %cst_91 = arith.constant 1.000000e+00 : f32
    %640 = vector.broadcast %cst_91 : f32 to vector<8x128xf32>
    %641 = arith.subf %640, %632 : vector<8x128xf32>
    %642 = arith.mulf %641, %639 : vector<8x128xf32>
    %643 = arith.mulf %632, %582 : vector<8x128xf32>
    %644 = arith.addf %642, %643 : vector<8x128xf32>
    %645 = arith.addf %583, %616 : vector<8x128xf32>
    %646 = arith.addf %584, %644 : vector<8x128xf32>
    %647 = vector.extract_strided_slice %516 {offsets = [16, 0], sizes = [8, 384], strides = [1, 1]} : vector<64x768xf32> to vector<8x384xf32>
    %648 = vector.extract_strided_slice %516 {offsets = [40, 384], sizes = [8, 384], strides = [1, 1]} : vector<64x768xf32> to vector<8x384xf32>
    %649 = tpu.concatenate %616, %644 in 1 : vector<8x128xf32>, vector<8x128xf32> -> vector<8x256xf32>
    %cst_92 = arith.constant dense<0.000000e+00> : vector<8x768xf32>
    %650 = tpu.matmul %649, %518, %cst_92 {dimension_numbers = #tpu.dot_dimension_numbers<[1], [0], [0], [1], [0, 0, 1, 1], [], []>} : vector<8x256xf32>, vector<256x768xf32>, vector<8x768xf32> -> vector<8x768xf32>
    %651 = vector.extract_strided_slice %647 {offsets = [0, 0], sizes = [8, 128], strides = [1, 1]} : vector<8x384xf32> to vector<8x128xf32>
    %652 = vector.extract_strided_slice %650 {offsets = [0, 0], sizes = [8, 128], strides = [1, 1]} : vector<8x768xf32> to vector<8x128xf32>
    %653 = arith.addf %651, %652 : vector<8x128xf32>
    %654 = arith.negf %653 : vector<8x128xf32>
    %655 = math.exp %654 : vector<8x128xf32>
    %cst_93 = arith.constant 1.000000e+00 : f32
    %656 = vector.broadcast %cst_93 : f32 to vector<8x128xf32>
    %657 = arith.addf %656, %655 : vector<8x128xf32>
    %658 = arith.divf %656, %657 : vector<8x128xf32>
    %659 = vector.extract_strided_slice %647 {offsets = [0, 128], sizes = [8, 128], strides = [1, 1]} : vector<8x384xf32> to vector<8x128xf32>
    %660 = vector.extract_strided_slice %650 {offsets = [0, 128], sizes = [8, 128], strides = [1, 1]} : vector<8x768xf32> to vector<8x128xf32>
    %661 = arith.addf %659, %660 : vector<8x128xf32>
    %662 = arith.negf %661 : vector<8x128xf32>
    %663 = math.exp %662 : vector<8x128xf32>
    %cst_94 = arith.constant 1.000000e+00 : f32
    %664 = vector.broadcast %cst_94 : f32 to vector<8x128xf32>
    %665 = arith.addf %664, %663 : vector<8x128xf32>
    %666 = arith.divf %664, %665 : vector<8x128xf32>
    %667 = vector.extract_strided_slice %647 {offsets = [0, 256], sizes = [8, 128], strides = [1, 1]} : vector<8x384xf32> to vector<8x128xf32>
    %668 = vector.extract_strided_slice %650 {offsets = [0, 256], sizes = [8, 128], strides = [1, 1]} : vector<8x768xf32> to vector<8x128xf32>
    %669 = vector.broadcast %11 : vector<1x128xf32> to vector<8x128xf32>
    %670 = arith.addf %668, %669 : vector<8x128xf32>
    %671 = arith.mulf %658, %670 : vector<8x128xf32>
    %672 = arith.addf %667, %671 : vector<8x128xf32>
    %673 = math.tanh %672 : vector<8x128xf32>
    %cst_95 = arith.constant 1.000000e+00 : f32
    %674 = vector.broadcast %cst_95 : f32 to vector<8x128xf32>
    %675 = arith.subf %674, %666 : vector<8x128xf32>
    %676 = arith.mulf %675, %673 : vector<8x128xf32>
    %677 = arith.mulf %666, %616 : vector<8x128xf32>
    %678 = arith.addf %676, %677 : vector<8x128xf32>
    %679 = vector.extract_strided_slice %648 {offsets = [0, 0], sizes = [8, 128], strides = [1, 1]} : vector<8x384xf32> to vector<8x128xf32>
    %680 = vector.extract_strided_slice %650 {offsets = [0, 384], sizes = [8, 128], strides = [1, 1]} : vector<8x768xf32> to vector<8x128xf32>
    %681 = arith.addf %679, %680 : vector<8x128xf32>
    %682 = arith.negf %681 : vector<8x128xf32>
    %683 = math.exp %682 : vector<8x128xf32>
    %cst_96 = arith.constant 1.000000e+00 : f32
    %684 = vector.broadcast %cst_96 : f32 to vector<8x128xf32>
    %685 = arith.addf %684, %683 : vector<8x128xf32>
    %686 = arith.divf %684, %685 : vector<8x128xf32>
    %687 = vector.extract_strided_slice %648 {offsets = [0, 128], sizes = [8, 128], strides = [1, 1]} : vector<8x384xf32> to vector<8x128xf32>
    %688 = vector.extract_strided_slice %650 {offsets = [0, 512], sizes = [8, 128], strides = [1, 1]} : vector<8x768xf32> to vector<8x128xf32>
    %689 = arith.addf %687, %688 : vector<8x128xf32>
    %690 = arith.negf %689 : vector<8x128xf32>
    %691 = math.exp %690 : vector<8x128xf32>
    %cst_97 = arith.constant 1.000000e+00 : f32
    %692 = vector.broadcast %cst_97 : f32 to vector<8x128xf32>
    %693 = arith.addf %692, %691 : vector<8x128xf32>
    %694 = arith.divf %692, %693 : vector<8x128xf32>
    %695 = vector.extract_strided_slice %648 {offsets = [0, 256], sizes = [8, 128], strides = [1, 1]} : vector<8x384xf32> to vector<8x128xf32>
    %696 = vector.extract_strided_slice %650 {offsets = [0, 640], sizes = [8, 128], strides = [1, 1]} : vector<8x768xf32> to vector<8x128xf32>
    %697 = vector.broadcast %12 : vector<1x128xf32> to vector<8x128xf32>
    %698 = arith.addf %696, %697 : vector<8x128xf32>
    %699 = arith.mulf %686, %698 : vector<8x128xf32>
    %700 = arith.addf %695, %699 : vector<8x128xf32>
    %701 = math.tanh %700 : vector<8x128xf32>
    %cst_98 = arith.constant 1.000000e+00 : f32
    %702 = vector.broadcast %cst_98 : f32 to vector<8x128xf32>
    %703 = arith.subf %702, %694 : vector<8x128xf32>
    %704 = arith.mulf %703, %701 : vector<8x128xf32>
    %705 = arith.mulf %694, %644 : vector<8x128xf32>
    %706 = arith.addf %704, %705 : vector<8x128xf32>
    %707 = arith.addf %645, %678 : vector<8x128xf32>
    %708 = arith.addf %646, %706 : vector<8x128xf32>
    %709 = vector.extract_strided_slice %516 {offsets = [24, 0], sizes = [8, 384], strides = [1, 1]} : vector<64x768xf32> to vector<8x384xf32>
    %710 = vector.extract_strided_slice %516 {offsets = [32, 384], sizes = [8, 384], strides = [1, 1]} : vector<64x768xf32> to vector<8x384xf32>
    %711 = tpu.concatenate %678, %706 in 1 : vector<8x128xf32>, vector<8x128xf32> -> vector<8x256xf32>
    %cst_99 = arith.constant dense<0.000000e+00> : vector<8x768xf32>
    %712 = tpu.matmul %711, %518, %cst_99 {dimension_numbers = #tpu.dot_dimension_numbers<[1], [0], [0], [1], [0, 0, 1, 1], [], []>} : vector<8x256xf32>, vector<256x768xf32>, vector<8x768xf32> -> vector<8x768xf32>
    %713 = vector.extract_strided_slice %709 {offsets = [0, 0], sizes = [8, 128], strides = [1, 1]} : vector<8x384xf32> to vector<8x128xf32>
    %714 = vector.extract_strided_slice %712 {offsets = [0, 0], sizes = [8, 128], strides = [1, 1]} : vector<8x768xf32> to vector<8x128xf32>
    %715 = arith.addf %713, %714 : vector<8x128xf32>
    %716 = arith.negf %715 : vector<8x128xf32>
    %717 = math.exp %716 : vector<8x128xf32>
    %cst_100 = arith.constant 1.000000e+00 : f32
    %718 = vector.broadcast %cst_100 : f32 to vector<8x128xf32>
    %719 = arith.addf %718, %717 : vector<8x128xf32>
    %720 = arith.divf %718, %719 : vector<8x128xf32>
    %721 = vector.extract_strided_slice %709 {offsets = [0, 128], sizes = [8, 128], strides = [1, 1]} : vector<8x384xf32> to vector<8x128xf32>
    %722 = vector.extract_strided_slice %712 {offsets = [0, 128], sizes = [8, 128], strides = [1, 1]} : vector<8x768xf32> to vector<8x128xf32>
    %723 = arith.addf %721, %722 : vector<8x128xf32>
    %724 = arith.negf %723 : vector<8x128xf32>
    %725 = math.exp %724 : vector<8x128xf32>
    %cst_101 = arith.constant 1.000000e+00 : f32
    %726 = vector.broadcast %cst_101 : f32 to vector<8x128xf32>
    %727 = arith.addf %726, %725 : vector<8x128xf32>
    %728 = arith.divf %726, %727 : vector<8x128xf32>
    %729 = vector.extract_strided_slice %709 {offsets = [0, 256], sizes = [8, 128], strides = [1, 1]} : vector<8x384xf32> to vector<8x128xf32>
    %730 = vector.extract_strided_slice %712 {offsets = [0, 256], sizes = [8, 128], strides = [1, 1]} : vector<8x768xf32> to vector<8x128xf32>
    %731 = vector.broadcast %11 : vector<1x128xf32> to vector<8x128xf32>
    %732 = arith.addf %730, %731 : vector<8x128xf32>
    %733 = arith.mulf %720, %732 : vector<8x128xf32>
    %734 = arith.addf %729, %733 : vector<8x128xf32>
    %735 = math.tanh %734 : vector<8x128xf32>
    %cst_102 = arith.constant 1.000000e+00 : f32
    %736 = vector.broadcast %cst_102 : f32 to vector<8x128xf32>
    %737 = arith.subf %736, %728 : vector<8x128xf32>
    %738 = arith.mulf %737, %735 : vector<8x128xf32>
    %739 = arith.mulf %728, %678 : vector<8x128xf32>
    %740 = arith.addf %738, %739 : vector<8x128xf32>
    %741 = vector.extract_strided_slice %710 {offsets = [0, 0], sizes = [8, 128], strides = [1, 1]} : vector<8x384xf32> to vector<8x128xf32>
    %742 = vector.extract_strided_slice %712 {offsets = [0, 384], sizes = [8, 128], strides = [1, 1]} : vector<8x768xf32> to vector<8x128xf32>
    %743 = arith.addf %741, %742 : vector<8x128xf32>
    %744 = arith.negf %743 : vector<8x128xf32>
    %745 = math.exp %744 : vector<8x128xf32>
    %cst_103 = arith.constant 1.000000e+00 : f32
    %746 = vector.broadcast %cst_103 : f32 to vector<8x128xf32>
    %747 = arith.addf %746, %745 : vector<8x128xf32>
    %748 = arith.divf %746, %747 : vector<8x128xf32>
    %749 = vector.extract_strided_slice %710 {offsets = [0, 128], sizes = [8, 128], strides = [1, 1]} : vector<8x384xf32> to vector<8x128xf32>
    %750 = vector.extract_strided_slice %712 {offsets = [0, 512], sizes = [8, 128], strides = [1, 1]} : vector<8x768xf32> to vector<8x128xf32>
    %751 = arith.addf %749, %750 : vector<8x128xf32>
    %752 = arith.negf %751 : vector<8x128xf32>
    %753 = math.exp %752 : vector<8x128xf32>
    %cst_104 = arith.constant 1.000000e+00 : f32
    %754 = vector.broadcast %cst_104 : f32 to vector<8x128xf32>
    %755 = arith.addf %754, %753 : vector<8x128xf32>
    %756 = arith.divf %754, %755 : vector<8x128xf32>
    %757 = vector.extract_strided_slice %710 {offsets = [0, 256], sizes = [8, 128], strides = [1, 1]} : vector<8x384xf32> to vector<8x128xf32>
    %758 = vector.extract_strided_slice %712 {offsets = [0, 640], sizes = [8, 128], strides = [1, 1]} : vector<8x768xf32> to vector<8x128xf32>
    %759 = vector.broadcast %12 : vector<1x128xf32> to vector<8x128xf32>
    %760 = arith.addf %758, %759 : vector<8x128xf32>
    %761 = arith.mulf %748, %760 : vector<8x128xf32>
    %762 = arith.addf %757, %761 : vector<8x128xf32>
    %763 = math.tanh %762 : vector<8x128xf32>
    %cst_105 = arith.constant 1.000000e+00 : f32
    %764 = vector.broadcast %cst_105 : f32 to vector<8x128xf32>
    %765 = arith.subf %764, %756 : vector<8x128xf32>
    %766 = arith.mulf %765, %763 : vector<8x128xf32>
    %767 = arith.mulf %756, %706 : vector<8x128xf32>
    %768 = arith.addf %766, %767 : vector<8x128xf32>
    %769 = arith.addf %707, %740 : vector<8x128xf32>
    %770 = arith.addf %708, %768 : vector<8x128xf32>
    %771 = vector.extract_strided_slice %516 {offsets = [32, 0], sizes = [8, 384], strides = [1, 1]} : vector<64x768xf32> to vector<8x384xf32>
    %772 = vector.extract_strided_slice %516 {offsets = [24, 384], sizes = [8, 384], strides = [1, 1]} : vector<64x768xf32> to vector<8x384xf32>
    %773 = tpu.concatenate %740, %768 in 1 : vector<8x128xf32>, vector<8x128xf32> -> vector<8x256xf32>
    %cst_106 = arith.constant dense<0.000000e+00> : vector<8x768xf32>
    %774 = tpu.matmul %773, %518, %cst_106 {dimension_numbers = #tpu.dot_dimension_numbers<[1], [0], [0], [1], [0, 0, 1, 1], [], []>} : vector<8x256xf32>, vector<256x768xf32>, vector<8x768xf32> -> vector<8x768xf32>
    %775 = vector.extract_strided_slice %771 {offsets = [0, 0], sizes = [8, 128], strides = [1, 1]} : vector<8x384xf32> to vector<8x128xf32>
    %776 = vector.extract_strided_slice %774 {offsets = [0, 0], sizes = [8, 128], strides = [1, 1]} : vector<8x768xf32> to vector<8x128xf32>
    %777 = arith.addf %775, %776 : vector<8x128xf32>
    %778 = arith.negf %777 : vector<8x128xf32>
    %779 = math.exp %778 : vector<8x128xf32>
    %cst_107 = arith.constant 1.000000e+00 : f32
    %780 = vector.broadcast %cst_107 : f32 to vector<8x128xf32>
    %781 = arith.addf %780, %779 : vector<8x128xf32>
    %782 = arith.divf %780, %781 : vector<8x128xf32>
    %783 = vector.extract_strided_slice %771 {offsets = [0, 128], sizes = [8, 128], strides = [1, 1]} : vector<8x384xf32> to vector<8x128xf32>
    %784 = vector.extract_strided_slice %774 {offsets = [0, 128], sizes = [8, 128], strides = [1, 1]} : vector<8x768xf32> to vector<8x128xf32>
    %785 = arith.addf %783, %784 : vector<8x128xf32>
    %786 = arith.negf %785 : vector<8x128xf32>
    %787 = math.exp %786 : vector<8x128xf32>
    %cst_108 = arith.constant 1.000000e+00 : f32
    %788 = vector.broadcast %cst_108 : f32 to vector<8x128xf32>
    %789 = arith.addf %788, %787 : vector<8x128xf32>
    %790 = arith.divf %788, %789 : vector<8x128xf32>
    %791 = vector.extract_strided_slice %771 {offsets = [0, 256], sizes = [8, 128], strides = [1, 1]} : vector<8x384xf32> to vector<8x128xf32>
    %792 = vector.extract_strided_slice %774 {offsets = [0, 256], sizes = [8, 128], strides = [1, 1]} : vector<8x768xf32> to vector<8x128xf32>
    %793 = vector.broadcast %11 : vector<1x128xf32> to vector<8x128xf32>
    %794 = arith.addf %792, %793 : vector<8x128xf32>
    %795 = arith.mulf %782, %794 : vector<8x128xf32>
    %796 = arith.addf %791, %795 : vector<8x128xf32>
    %797 = math.tanh %796 : vector<8x128xf32>
    %cst_109 = arith.constant 1.000000e+00 : f32
    %798 = vector.broadcast %cst_109 : f32 to vector<8x128xf32>
    %799 = arith.subf %798, %790 : vector<8x128xf32>
    %800 = arith.mulf %799, %797 : vector<8x128xf32>
    %801 = arith.mulf %790, %740 : vector<8x128xf32>
    %802 = arith.addf %800, %801 : vector<8x128xf32>
    %803 = vector.extract_strided_slice %772 {offsets = [0, 0], sizes = [8, 128], strides = [1, 1]} : vector<8x384xf32> to vector<8x128xf32>
    %804 = vector.extract_strided_slice %774 {offsets = [0, 384], sizes = [8, 128], strides = [1, 1]} : vector<8x768xf32> to vector<8x128xf32>
    %805 = arith.addf %803, %804 : vector<8x128xf32>
    %806 = arith.negf %805 : vector<8x128xf32>
    %807 = math.exp %806 : vector<8x128xf32>
    %cst_110 = arith.constant 1.000000e+00 : f32
    %808 = vector.broadcast %cst_110 : f32 to vector<8x128xf32>
    %809 = arith.addf %808, %807 : vector<8x128xf32>
    %810 = arith.divf %808, %809 : vector<8x128xf32>
    %811 = vector.extract_strided_slice %772 {offsets = [0, 128], sizes = [8, 128], strides = [1, 1]} : vector<8x384xf32> to vector<8x128xf32>
    %812 = vector.extract_strided_slice %774 {offsets = [0, 512], sizes = [8, 128], strides = [1, 1]} : vector<8x768xf32> to vector<8x128xf32>
    %813 = arith.addf %811, %812 : vector<8x128xf32>
    %814 = arith.negf %813 : vector<8x128xf32>
    %815 = math.exp %814 : vector<8x128xf32>
    %cst_111 = arith.constant 1.000000e+00 : f32
    %816 = vector.broadcast %cst_111 : f32 to vector<8x128xf32>
    %817 = arith.addf %816, %815 : vector<8x128xf32>
    %818 = arith.divf %816, %817 : vector<8x128xf32>
    %819 = vector.extract_strided_slice %772 {offsets = [0, 256], sizes = [8, 128], strides = [1, 1]} : vector<8x384xf32> to vector<8x128xf32>
    %820 = vector.extract_strided_slice %774 {offsets = [0, 640], sizes = [8, 128], strides = [1, 1]} : vector<8x768xf32> to vector<8x128xf32>
    %821 = vector.broadcast %12 : vector<1x128xf32> to vector<8x128xf32>
    %822 = arith.addf %820, %821 : vector<8x128xf32>
    %823 = arith.mulf %810, %822 : vector<8x128xf32>
    %824 = arith.addf %819, %823 : vector<8x128xf32>
    %825 = math.tanh %824 : vector<8x128xf32>
    %cst_112 = arith.constant 1.000000e+00 : f32
    %826 = vector.broadcast %cst_112 : f32 to vector<8x128xf32>
    %827 = arith.subf %826, %818 : vector<8x128xf32>
    %828 = arith.mulf %827, %825 : vector<8x128xf32>
    %829 = arith.mulf %818, %768 : vector<8x128xf32>
    %830 = arith.addf %828, %829 : vector<8x128xf32>
    %831 = arith.addf %769, %802 : vector<8x128xf32>
    %832 = arith.addf %770, %830 : vector<8x128xf32>
    %833 = vector.extract_strided_slice %516 {offsets = [40, 0], sizes = [8, 384], strides = [1, 1]} : vector<64x768xf32> to vector<8x384xf32>
    %834 = vector.extract_strided_slice %516 {offsets = [16, 384], sizes = [8, 384], strides = [1, 1]} : vector<64x768xf32> to vector<8x384xf32>
    %835 = tpu.concatenate %802, %830 in 1 : vector<8x128xf32>, vector<8x128xf32> -> vector<8x256xf32>
    %cst_113 = arith.constant dense<0.000000e+00> : vector<8x768xf32>
    %836 = tpu.matmul %835, %518, %cst_113 {dimension_numbers = #tpu.dot_dimension_numbers<[1], [0], [0], [1], [0, 0, 1, 1], [], []>} : vector<8x256xf32>, vector<256x768xf32>, vector<8x768xf32> -> vector<8x768xf32>
    %837 = vector.extract_strided_slice %833 {offsets = [0, 0], sizes = [8, 128], strides = [1, 1]} : vector<8x384xf32> to vector<8x128xf32>
    %838 = vector.extract_strided_slice %836 {offsets = [0, 0], sizes = [8, 128], strides = [1, 1]} : vector<8x768xf32> to vector<8x128xf32>
    %839 = arith.addf %837, %838 : vector<8x128xf32>
    %840 = arith.negf %839 : vector<8x128xf32>
    %841 = math.exp %840 : vector<8x128xf32>
    %cst_114 = arith.constant 1.000000e+00 : f32
    %842 = vector.broadcast %cst_114 : f32 to vector<8x128xf32>
    %843 = arith.addf %842, %841 : vector<8x128xf32>
    %844 = arith.divf %842, %843 : vector<8x128xf32>
    %845 = vector.extract_strided_slice %833 {offsets = [0, 128], sizes = [8, 128], strides = [1, 1]} : vector<8x384xf32> to vector<8x128xf32>
    %846 = vector.extract_strided_slice %836 {offsets = [0, 128], sizes = [8, 128], strides = [1, 1]} : vector<8x768xf32> to vector<8x128xf32>
    %847 = arith.addf %845, %846 : vector<8x128xf32>
    %848 = arith.negf %847 : vector<8x128xf32>
    %849 = math.exp %848 : vector<8x128xf32>
    %cst_115 = arith.constant 1.000000e+00 : f32
    %850 = vector.broadcast %cst_115 : f32 to vector<8x128xf32>
    %851 = arith.addf %850, %849 : vector<8x128xf32>
    %852 = arith.divf %850, %851 : vector<8x128xf32>
    %853 = vector.extract_strided_slice %833 {offsets = [0, 256], sizes = [8, 128], strides = [1, 1]} : vector<8x384xf32> to vector<8x128xf32>
    %854 = vector.extract_strided_slice %836 {offsets = [0, 256], sizes = [8, 128], strides = [1, 1]} : vector<8x768xf32> to vector<8x128xf32>
    %855 = vector.broadcast %11 : vector<1x128xf32> to vector<8x128xf32>
    %856 = arith.addf %854, %855 : vector<8x128xf32>
    %857 = arith.mulf %844, %856 : vector<8x128xf32>
    %858 = arith.addf %853, %857 : vector<8x128xf32>
    %859 = math.tanh %858 : vector<8x128xf32>
    %cst_116 = arith.constant 1.000000e+00 : f32
    %860 = vector.broadcast %cst_116 : f32 to vector<8x128xf32>
    %861 = arith.subf %860, %852 : vector<8x128xf32>
    %862 = arith.mulf %861, %859 : vector<8x128xf32>
    %863 = arith.mulf %852, %802 : vector<8x128xf32>
    %864 = arith.addf %862, %863 : vector<8x128xf32>
    %865 = vector.extract_strided_slice %834 {offsets = [0, 0], sizes = [8, 128], strides = [1, 1]} : vector<8x384xf32> to vector<8x128xf32>
    %866 = vector.extract_strided_slice %836 {offsets = [0, 384], sizes = [8, 128], strides = [1, 1]} : vector<8x768xf32> to vector<8x128xf32>
    %867 = arith.addf %865, %866 : vector<8x128xf32>
    %868 = arith.negf %867 : vector<8x128xf32>
    %869 = math.exp %868 : vector<8x128xf32>
    %cst_117 = arith.constant 1.000000e+00 : f32
    %870 = vector.broadcast %cst_117 : f32 to vector<8x128xf32>
    %871 = arith.addf %870, %869 : vector<8x128xf32>
    %872 = arith.divf %870, %871 : vector<8x128xf32>
    %873 = vector.extract_strided_slice %834 {offsets = [0, 128], sizes = [8, 128], strides = [1, 1]} : vector<8x384xf32> to vector<8x128xf32>
    %874 = vector.extract_strided_slice %836 {offsets = [0, 512], sizes = [8, 128], strides = [1, 1]} : vector<8x768xf32> to vector<8x128xf32>
    %875 = arith.addf %873, %874 : vector<8x128xf32>
    %876 = arith.negf %875 : vector<8x128xf32>
    %877 = math.exp %876 : vector<8x128xf32>
    %cst_118 = arith.constant 1.000000e+00 : f32
    %878 = vector.broadcast %cst_118 : f32 to vector<8x128xf32>
    %879 = arith.addf %878, %877 : vector<8x128xf32>
    %880 = arith.divf %878, %879 : vector<8x128xf32>
    %881 = vector.extract_strided_slice %834 {offsets = [0, 256], sizes = [8, 128], strides = [1, 1]} : vector<8x384xf32> to vector<8x128xf32>
    %882 = vector.extract_strided_slice %836 {offsets = [0, 640], sizes = [8, 128], strides = [1, 1]} : vector<8x768xf32> to vector<8x128xf32>
    %883 = vector.broadcast %12 : vector<1x128xf32> to vector<8x128xf32>
    %884 = arith.addf %882, %883 : vector<8x128xf32>
    %885 = arith.mulf %872, %884 : vector<8x128xf32>
    %886 = arith.addf %881, %885 : vector<8x128xf32>
    %887 = math.tanh %886 : vector<8x128xf32>
    %cst_119 = arith.constant 1.000000e+00 : f32
    %888 = vector.broadcast %cst_119 : f32 to vector<8x128xf32>
    %889 = arith.subf %888, %880 : vector<8x128xf32>
    %890 = arith.mulf %889, %887 : vector<8x128xf32>
    %891 = arith.mulf %880, %830 : vector<8x128xf32>
    %892 = arith.addf %890, %891 : vector<8x128xf32>
    %893 = arith.addf %831, %864 : vector<8x128xf32>
    %894 = arith.addf %832, %892 : vector<8x128xf32>
    %895 = vector.extract_strided_slice %516 {offsets = [48, 0], sizes = [8, 384], strides = [1, 1]} : vector<64x768xf32> to vector<8x384xf32>
    %896 = vector.extract_strided_slice %516 {offsets = [8, 384], sizes = [8, 384], strides = [1, 1]} : vector<64x768xf32> to vector<8x384xf32>
    %897 = tpu.concatenate %864, %892 in 1 : vector<8x128xf32>, vector<8x128xf32> -> vector<8x256xf32>
    %cst_120 = arith.constant dense<0.000000e+00> : vector<8x768xf32>
    %898 = tpu.matmul %897, %518, %cst_120 {dimension_numbers = #tpu.dot_dimension_numbers<[1], [0], [0], [1], [0, 0, 1, 1], [], []>} : vector<8x256xf32>, vector<256x768xf32>, vector<8x768xf32> -> vector<8x768xf32>
    %899 = vector.extract_strided_slice %895 {offsets = [0, 0], sizes = [8, 128], strides = [1, 1]} : vector<8x384xf32> to vector<8x128xf32>
    %900 = vector.extract_strided_slice %898 {offsets = [0, 0], sizes = [8, 128], strides = [1, 1]} : vector<8x768xf32> to vector<8x128xf32>
    %901 = arith.addf %899, %900 : vector<8x128xf32>
    %902 = arith.negf %901 : vector<8x128xf32>
    %903 = math.exp %902 : vector<8x128xf32>
    %cst_121 = arith.constant 1.000000e+00 : f32
    %904 = vector.broadcast %cst_121 : f32 to vector<8x128xf32>
    %905 = arith.addf %904, %903 : vector<8x128xf32>
    %906 = arith.divf %904, %905 : vector<8x128xf32>
    %907 = vector.extract_strided_slice %895 {offsets = [0, 128], sizes = [8, 128], strides = [1, 1]} : vector<8x384xf32> to vector<8x128xf32>
    %908 = vector.extract_strided_slice %898 {offsets = [0, 128], sizes = [8, 128], strides = [1, 1]} : vector<8x768xf32> to vector<8x128xf32>
    %909 = arith.addf %907, %908 : vector<8x128xf32>
    %910 = arith.negf %909 : vector<8x128xf32>
    %911 = math.exp %910 : vector<8x128xf32>
    %cst_122 = arith.constant 1.000000e+00 : f32
    %912 = vector.broadcast %cst_122 : f32 to vector<8x128xf32>
    %913 = arith.addf %912, %911 : vector<8x128xf32>
    %914 = arith.divf %912, %913 : vector<8x128xf32>
    %915 = vector.extract_strided_slice %895 {offsets = [0, 256], sizes = [8, 128], strides = [1, 1]} : vector<8x384xf32> to vector<8x128xf32>
    %916 = vector.extract_strided_slice %898 {offsets = [0, 256], sizes = [8, 128], strides = [1, 1]} : vector<8x768xf32> to vector<8x128xf32>
    %917 = vector.broadcast %11 : vector<1x128xf32> to vector<8x128xf32>
    %918 = arith.addf %916, %917 : vector<8x128xf32>
    %919 = arith.mulf %906, %918 : vector<8x128xf32>
    %920 = arith.addf %915, %919 : vector<8x128xf32>
    %921 = math.tanh %920 : vector<8x128xf32>
    %cst_123 = arith.constant 1.000000e+00 : f32
    %922 = vector.broadcast %cst_123 : f32 to vector<8x128xf32>
    %923 = arith.subf %922, %914 : vector<8x128xf32>
    %924 = arith.mulf %923, %921 : vector<8x128xf32>
    %925 = arith.mulf %914, %864 : vector<8x128xf32>
    %926 = arith.addf %924, %925 : vector<8x128xf32>
    %927 = vector.extract_strided_slice %896 {offsets = [0, 0], sizes = [8, 128], strides = [1, 1]} : vector<8x384xf32> to vector<8x128xf32>
    %928 = vector.extract_strided_slice %898 {offsets = [0, 384], sizes = [8, 128], strides = [1, 1]} : vector<8x768xf32> to vector<8x128xf32>
    %929 = arith.addf %927, %928 : vector<8x128xf32>
    %930 = arith.negf %929 : vector<8x128xf32>
    %931 = math.exp %930 : vector<8x128xf32>
    %cst_124 = arith.constant 1.000000e+00 : f32
    %932 = vector.broadcast %cst_124 : f32 to vector<8x128xf32>
    %933 = arith.addf %932, %931 : vector<8x128xf32>
    %934 = arith.divf %932, %933 : vector<8x128xf32>
    %935 = vector.extract_strided_slice %896 {offsets = [0, 128], sizes = [8, 128], strides = [1, 1]} : vector<8x384xf32> to vector<8x128xf32>
    %936 = vector.extract_strided_slice %898 {offsets = [0, 512], sizes = [8, 128], strides = [1, 1]} : vector<8x768xf32> to vector<8x128xf32>
    %937 = arith.addf %935, %936 : vector<8x128xf32>
    %938 = arith.negf %937 : vector<8x128xf32>
    %939 = math.exp %938 : vector<8x128xf32>
    %cst_125 = arith.constant 1.000000e+00 : f32
    %940 = vector.broadcast %cst_125 : f32 to vector<8x128xf32>
    %941 = arith.addf %940, %939 : vector<8x128xf32>
    %942 = arith.divf %940, %941 : vector<8x128xf32>
    %943 = vector.extract_strided_slice %896 {offsets = [0, 256], sizes = [8, 128], strides = [1, 1]} : vector<8x384xf32> to vector<8x128xf32>
    %944 = vector.extract_strided_slice %898 {offsets = [0, 640], sizes = [8, 128], strides = [1, 1]} : vector<8x768xf32> to vector<8x128xf32>
    %945 = vector.broadcast %12 : vector<1x128xf32> to vector<8x128xf32>
    %946 = arith.addf %944, %945 : vector<8x128xf32>
    %947 = arith.mulf %934, %946 : vector<8x128xf32>
    %948 = arith.addf %943, %947 : vector<8x128xf32>
    %949 = math.tanh %948 : vector<8x128xf32>
    %cst_126 = arith.constant 1.000000e+00 : f32
    %950 = vector.broadcast %cst_126 : f32 to vector<8x128xf32>
    %951 = arith.subf %950, %942 : vector<8x128xf32>
    %952 = arith.mulf %951, %949 : vector<8x128xf32>
    %953 = arith.mulf %942, %892 : vector<8x128xf32>
    %954 = arith.addf %952, %953 : vector<8x128xf32>
    %955 = arith.addf %893, %926 : vector<8x128xf32>
    %956 = arith.addf %894, %954 : vector<8x128xf32>
    %957 = vector.extract_strided_slice %516 {offsets = [56, 0], sizes = [8, 384], strides = [1, 1]} : vector<64x768xf32> to vector<8x384xf32>
    %958 = vector.extract_strided_slice %516 {offsets = [0, 384], sizes = [8, 384], strides = [1, 1]} : vector<64x768xf32> to vector<8x384xf32>
    %959 = tpu.concatenate %926, %954 in 1 : vector<8x128xf32>, vector<8x128xf32> -> vector<8x256xf32>
    %cst_127 = arith.constant dense<0.000000e+00> : vector<8x768xf32>
    %960 = tpu.matmul %959, %518, %cst_127 {dimension_numbers = #tpu.dot_dimension_numbers<[1], [0], [0], [1], [0, 0, 1, 1], [], []>} : vector<8x256xf32>, vector<256x768xf32>, vector<8x768xf32> -> vector<8x768xf32>
    %961 = vector.extract_strided_slice %957 {offsets = [0, 0], sizes = [8, 128], strides = [1, 1]} : vector<8x384xf32> to vector<8x128xf32>
    %962 = vector.extract_strided_slice %960 {offsets = [0, 0], sizes = [8, 128], strides = [1, 1]} : vector<8x768xf32> to vector<8x128xf32>
    %963 = arith.addf %961, %962 : vector<8x128xf32>
    %964 = arith.negf %963 : vector<8x128xf32>
    %965 = math.exp %964 : vector<8x128xf32>
    %cst_128 = arith.constant 1.000000e+00 : f32
    %966 = vector.broadcast %cst_128 : f32 to vector<8x128xf32>
    %967 = arith.addf %966, %965 : vector<8x128xf32>
    %968 = arith.divf %966, %967 : vector<8x128xf32>
    %969 = vector.extract_strided_slice %957 {offsets = [0, 128], sizes = [8, 128], strides = [1, 1]} : vector<8x384xf32> to vector<8x128xf32>
    %970 = vector.extract_strided_slice %960 {offsets = [0, 128], sizes = [8, 128], strides = [1, 1]} : vector<8x768xf32> to vector<8x128xf32>
    %971 = arith.addf %969, %970 : vector<8x128xf32>
    %972 = arith.negf %971 : vector<8x128xf32>
    %973 = math.exp %972 : vector<8x128xf32>
    %cst_129 = arith.constant 1.000000e+00 : f32
    %974 = vector.broadcast %cst_129 : f32 to vector<8x128xf32>
    %975 = arith.addf %974, %973 : vector<8x128xf32>
    %976 = arith.divf %974, %975 : vector<8x128xf32>
    %977 = vector.extract_strided_slice %957 {offsets = [0, 256], sizes = [8, 128], strides = [1, 1]} : vector<8x384xf32> to vector<8x128xf32>
    %978 = vector.extract_strided_slice %960 {offsets = [0, 256], sizes = [8, 128], strides = [1, 1]} : vector<8x768xf32> to vector<8x128xf32>
    %979 = vector.broadcast %11 : vector<1x128xf32> to vector<8x128xf32>
    %980 = arith.addf %978, %979 : vector<8x128xf32>
    %981 = arith.mulf %968, %980 : vector<8x128xf32>
    %982 = arith.addf %977, %981 : vector<8x128xf32>
    %983 = math.tanh %982 : vector<8x128xf32>
    %cst_130 = arith.constant 1.000000e+00 : f32
    %984 = vector.broadcast %cst_130 : f32 to vector<8x128xf32>
    %985 = arith.subf %984, %976 : vector<8x128xf32>
    %986 = arith.mulf %985, %983 : vector<8x128xf32>
    %987 = arith.mulf %976, %926 : vector<8x128xf32>
    %988 = arith.addf %986, %987 : vector<8x128xf32>
    %989 = vector.extract_strided_slice %958 {offsets = [0, 0], sizes = [8, 128], strides = [1, 1]} : vector<8x384xf32> to vector<8x128xf32>
    %990 = vector.extract_strided_slice %960 {offsets = [0, 384], sizes = [8, 128], strides = [1, 1]} : vector<8x768xf32> to vector<8x128xf32>
    %991 = arith.addf %989, %990 : vector<8x128xf32>
    %992 = arith.negf %991 : vector<8x128xf32>
    %993 = math.exp %992 : vector<8x128xf32>
    %cst_131 = arith.constant 1.000000e+00 : f32
    %994 = vector.broadcast %cst_131 : f32 to vector<8x128xf32>
    %995 = arith.addf %994, %993 : vector<8x128xf32>
    %996 = arith.divf %994, %995 : vector<8x128xf32>
    %997 = vector.extract_strided_slice %958 {offsets = [0, 128], sizes = [8, 128], strides = [1, 1]} : vector<8x384xf32> to vector<8x128xf32>
    %998 = vector.extract_strided_slice %960 {offsets = [0, 512], sizes = [8, 128], strides = [1, 1]} : vector<8x768xf32> to vector<8x128xf32>
    %999 = arith.addf %997, %998 : vector<8x128xf32>
    %1000 = arith.negf %999 : vector<8x128xf32>
    %1001 = math.exp %1000 : vector<8x128xf32>
    %cst_132 = arith.constant 1.000000e+00 : f32
    %1002 = vector.broadcast %cst_132 : f32 to vector<8x128xf32>
    %1003 = arith.addf %1002, %1001 : vector<8x128xf32>
    %1004 = arith.divf %1002, %1003 : vector<8x128xf32>
    %1005 = vector.extract_strided_slice %958 {offsets = [0, 256], sizes = [8, 128], strides = [1, 1]} : vector<8x384xf32> to vector<8x128xf32>
    %1006 = vector.extract_strided_slice %960 {offsets = [0, 640], sizes = [8, 128], strides = [1, 1]} : vector<8x768xf32> to vector<8x128xf32>
    %1007 = vector.broadcast %12 : vector<1x128xf32> to vector<8x128xf32>
    %1008 = arith.addf %1006, %1007 : vector<8x128xf32>
    %1009 = arith.mulf %996, %1008 : vector<8x128xf32>
    %1010 = arith.addf %1005, %1009 : vector<8x128xf32>
    %1011 = math.tanh %1010 : vector<8x128xf32>
    %cst_133 = arith.constant 1.000000e+00 : f32
    %1012 = vector.broadcast %cst_133 : f32 to vector<8x128xf32>
    %1013 = arith.subf %1012, %1004 : vector<8x128xf32>
    %1014 = arith.mulf %1013, %1011 : vector<8x128xf32>
    %1015 = arith.mulf %1004, %954 : vector<8x128xf32>
    %1016 = arith.addf %1014, %1015 : vector<8x128xf32>
    %1017 = arith.addf %955, %988 : vector<8x128xf32>
    %1018 = arith.addf %956, %1016 : vector<8x128xf32>
    %c2 = arith.constant 2 : index
    %c0_134 = arith.constant 0 : index
    %c0_135 = arith.constant 0 : index
    %1019 = vector.load %arg5[%c2, %c0_134, %c0_135] : memref<4x8x128xf32, #tpu.memory_space<vmem>>, vector<1x8x128xf32>
    %1020 = vector.shape_cast %1019 : vector<1x8x128xf32> to vector<8x128xf32>
    %1021 = vector.shape_cast %988 : vector<8x128xf32> to vector<1x8x128xf32>
    tpu.vector_store %arg5[%c2, %c0_134, %c0_135], %1021 {strides = array<i32>} : memref<4x8x128xf32, #tpu.memory_space<vmem>>, vector<1x8x128xf32>,
    %c3 = arith.constant 3 : index
    %c0_136 = arith.constant 0 : index
    %c0_137 = arith.constant 0 : index
    %1022 = vector.load %arg5[%c3, %c0_136, %c0_137] : memref<4x8x128xf32, #tpu.memory_space<vmem>>, vector<1x8x128xf32>
    %1023 = vector.shape_cast %1022 : vector<1x8x128xf32> to vector<8x128xf32>
    %1024 = vector.shape_cast %1016 : vector<8x128xf32> to vector<1x8x128xf32>
    tpu.vector_store %arg5[%c3, %c0_136, %c0_137], %1024 {strides = array<i32>} : memref<4x8x128xf32, #tpu.memory_space<vmem>>, vector<1x8x128xf32>,
    %1025 = tpu.concatenate %1017, %1018 in 1 : vector<8x128xf32>, vector<8x128xf32> -> vector<8x256xf32>
    %cst_138 = arith.constant 1.250000e-01 : f32
    %1026 = vector.broadcast %cst_138 : f32 to vector<8x256xf32>
    %1027 = arith.mulf %1025, %1026 : vector<8x256xf32>
    %c0_139 = arith.constant 0 : index
    %c768 = arith.constant 768 : index
    %1028 = vector.load %arg2[%c0_139, %c768] : memref<256x896xf32, #tpu.memory_space<vmem>>, vector<256x128xf32>
    %cst_140 = arith.constant dense<0.000000e+00> : vector<8x128xf32>
    %1029 = tpu.matmul %1027, %1028, %cst_140 {dimension_numbers = #tpu.dot_dimension_numbers<[1], [0], [0], [1], [0, 0, 1, 1], [], []>} : vector<8x256xf32>, vector<256x128xf32>, vector<8x128xf32> -> vector<8x128xf32>
    %1030 = vector.extract_strided_slice %1 {offsets = [4, 0], sizes = [1, 128], strides = [1, 1]} : vector<8x768xf32> to vector<1x128xf32>
    %1031 = vector.broadcast %1030 : vector<1x128xf32> to vector<8x128xf32>
    %1032 = arith.addf %1029, %1031 : vector<8x128xf32>
    %c0_141 = arith.constant 0 : index
    %c0_142 = arith.constant 0 : index
    %1033 = vector.load %arg4[%c0_141, %c0_142] : memref<8x128xf32, #tpu.memory_space<vmem>>, vector<8x128xf32>
    tpu.vector_store %arg4[%c0_141, %c0_142], %1032 {strides = array<i32>} : memref<8x128xf32, #tpu.memory_space<vmem>>, vector<8x128xf32>,
    return
  }
}

</mosaic_0001>

<bundles_post_ra>
// kernel: _lambda_.1
= control target key start
LH: loop header
LB: loop body
LE: loop exit
PB: predicated region body
PF: predicated region fallthrough
CT: control target
= control target key end

     0   :  { %11 = vsyncpa [#allocation3], 0  ;;  %s11980_s0 = inlined_call_operand.vmem [shape: f32[64,1], index: 0, kind: input, shape index: {}]   ;;  %s11981_s1 = inlined_call_operand.hbm [shape: f32[2,256,768], index: 1, kind: input, shape index: {}]   ;;  %s11982_s2 = inlined_call_operand.hbm [shape: f32[256,896], index: 2, kind: input, shape index: {}]   ;;  %s11983_s3 = inlined_call_operand.hbm [shape: f32[8,768], index: 3, kind: input, shape index: {}]   ;;  %s11984_s4 = inlined_call_operand.vmem [shape: f32[8,128], index: 4, kind: output, shape index: {0}]   ;;  %s11985_s5 = inlined_call_operand.vmem [shape: f32[4,8,128], index: 5, kind: output, shape index: {1}]  }
   0x1   :  { %12 = vsyncpa [#allocation5], 0  ;;  %s9304_s18 = smov [#allocation4]   ;;  %s9234_s22 = scalar_lea.hbm %s11982_s2, 28672 }
   0x2   :  { %s32_s19 = sshll.u32 %s9304_s18, 4  ;;  %p9235_p0 = scmp.ne.s32.totalorder %s11982_s2, %s9234_s22  ;;  %s33_s19 = int_to_ptr.vmem [resolvable:$true] %s32_s19 }
   0x3   :  { %p9238_p1 = scmp.lt.u32.totalorder %s9234_s22, %s11982_s2 }
   0x5   :  { %p9240_p2 = pnand %p9238_p1, %p9235_p0 }
   0x7   :  { %9243 = shalt.err (!%p9240_p2)
}
   0x8   :  { %s9244_s27 = scalar_lea.vmem %s33_s19, 28672  ;;  %p9249_p4 = scmp.lt.s32.totalorder %s33_s19, %s33_s19 }
   0x9   :  { %p9245_p3 = scmp.ne.s32.totalorder %s33_s19, %s9244_s27  ;;  %p9250_p5 = scmp.lt.s32.totalorder %s9244_s27, %s9244_s27 }
   0xb   :  { %p9251_p6 = por %p9250_p5, %p9249_p4 }
   0xd   :  { %p9252_p7 = pnand %p9251_p6, %p9245_p3 }
   0xf   :  { %9255 = shalt.err (!%p9252_p7)
}
  0x10   :  { %s9305_s28 = smov 896   ;;  %s9306_s29 = smov 56  }
  0x11   :  { %38 = dma.hbm_to_vmem [thread:$0]  %s11982_s2, 28672, %s33_s19, [#allocation5], %s9305_s28, %s9305_s28, %s9306_s29  }
  0x12   :  { %s9307_s7 = smov [#allocation2]   ;;  %s9256_s11 = scalar_lea.hbm %s11981_s1, 49152 }
  0x13   :  { %s20_s8 = sshll.u32 %s9307_s7, 4  ;;  %p9257_p8 = scmp.ne.s32.totalorder %s11981_s1, %s9256_s11  ;;  %s21_s8 = int_to_ptr.vmem [resolvable:$true] %s20_s8 }
  0x14   :  { %p9260_p9 = scmp.lt.u32.totalorder %s9256_s11, %s11981_s1 }
  0x16   :  { %p9262_p10 = pnand %p9260_p9, %p9257_p8 }
  0x18   :  { %9265 = shalt.err (!%p9262_p10)
}
  0x19   :  { %s9266_s16 = scalar_lea.vmem %s21_s8, 49152  ;;  %p9271_p12 = scmp.lt.s32.totalorder %s21_s8, %s21_s8 }
  0x1a   :  { %p9267_p11 = scmp.ne.s32.totalorder %s21_s8, %s9266_s16  ;;  %p9272_p13 = scmp.lt.s32.totalorder %s9266_s16, %s9266_s16 }
  0x1c   :  { %p9273_p0 = por %p9272_p13, %p9271_p12 }
  0x1e   :  { %p9274_p1 = pnand %p9273_p0, %p9267_p11 }
  0x20   :  { %9277 = shalt.err (!%p9274_p1)
}
  0x21   :  { %s9308_s2 = smov 768   ;;  %s9309_s17 = smov 48  }
  0x22   :  { %26 = dma.hbm_to_vmem [thread:$0]  %s11981_s1, 49152, %s21_s8, [#allocation3], %s9308_s2, %s9308_s2, %s9309_s17  }
  0x23   :  { %s9310_s20 = smov [#allocation6]   ;;  %s9278_s24 = scalar_lea.hbm %s11983_s3, 768 }
  0x24   :  { %s45_s21 = sshll.u32 %s9310_s20, 4  ;;  %p9279_p2 = scmp.ne.s32.totalorder %s11983_s3, %s9278_s24  ;;  %s46_s21 = int_to_ptr.vmem [resolvable:$true] %s45_s21 }
  0x25   :  { %p9282_p3 = scmp.lt.u32.totalorder %s9278_s24, %s11983_s3 }
  0x27   :  { %p9284_p4 = pnand %p9282_p3, %p9279_p2 }
  0x29   :  { %9287 = shalt.err (!%p9284_p4)
}
  0x2a   :  { %s9288_s29 = scalar_lea.vmem %s46_s21, 768  ;;  %p9293_p6 = scmp.lt.s32.totalorder %s46_s21, %s46_s21 }
  0x2b   :  { %p9289_p5 = scmp.ne.s32.totalorder %s46_s21, %s9288_s29  ;;  %p9294_p7 = scmp.lt.s32.totalorder %s9288_s29, %s9288_s29 }
  0x2d   :  { %p9295_p8 = por %p9294_p7, %p9293_p6 }
  0x2f   :  { %p9296_p9 = pnand %p9295_p8, %p9289_p5 }
  0x31   :  { %9299 = shalt.err (!%p9296_p9)
}
  0x32   :  { %48 = dma.hbm_to_vmem [thread:$0]  %s11983_s3, 768, %s46_s21, [#allocation5]  }
  0x33   :  { %9300 = dma.done.wait [#allocation3], 49152  }
  0x34   :  { %9301 = vsyncadd [#allocation3], 4294918144 }
  0x35   :  { %9302 = dma.done.wait [#allocation5], 29440  }
  0x36   :  { %9303 = vsyncadd [#allocation5], 4294937856  ;;  %v11986_v0 = vmov 0.0   ;;  %v257_v1 = vld [vmem:[#allocation2 + $0x8] sm:$0xff]  ;;  %v263_v2 = vld [vmem:[#allocation2 + $0x38] sm:$0xff]  ;;  %v9312_v15 = vmov 0  }
  0x37   :  { %512 = vmatprep.mubr.f32.mxu0 %v11986_v0  ;;  %583 = vmatprep.mubr.f32.mxu1 %v11986_v0  ;;  %v256_v3 = vld [vmem:[#allocation2] sm:$0xff]  ;;  %v9381_v4 = vpack.c.bf16 %v263_v2, %v257_v1  ;;  %v262_v5 = vld [vmem:[#allocation2 + $0x30] sm:$0xff]  ;;  %v269_v6 = vld [vmem:[#allocation2 + $0x68] sm:$0xff] }
  0x38   :  { %v275_v7 = vld [vmem:[#allocation2 + $0x98] sm:$0xff]  ;;  %v9383_v8 = vpack.c.bf16 %v262_v5, %v256_v3  ;;  %v268_v10 = vld [vmem:[#allocation2 + $0x60] sm:$0xff]  ;;  %v274_v11 = vld [vmem:[#allocation2 + $0x90] sm:$0xff]  ;;  %8905 = vset.pattern.permute.xlu0 %v9312_v15  ;;  %8906 = vset.pattern.permute.xlu1 %v9312_v15 }
  0x39   :  { %12508 = vst [vmem:[#allocation9_spill] sm:$0xff] %v9381_v4  ;;  %v9385_v9 = vpack.c.bf16 %v275_v7, %v269_v6  ;;  %v281_v12 = vld [vmem:[#allocation2 + $0xc8] sm:$0xff]  ;;  %5569 = vmatprep.subr.bf16.mxu0 %v9381_v4  ;;  %v287_v13 = vld [vmem:[#allocation2 + $0xf8] sm:$0xff]  ;;  %v9389_v14 = vpack.c.bf16 %v274_v11, %v268_v10  ;;  %v280_v17 = vld [vmem:[#allocation2 + $0xc0] sm:$0xff] }
  0x3a   :  { %5571 = vmatpush1.bf16.msra.mxu0 %v9383_v8  ;;  %v9392_v16 = vpack.c.bf16 %v287_v13, %v281_v12  ;;  %v286_v18 = vld [vmem:[#allocation2 + $0xf0] sm:$0xff]  ;;  %v293_v19 = vld [vmem:[#allocation2 + $0x128] sm:$0xff]  ;;  %v299_v20 = vld [vmem:[#allocation2 + $0x158] sm:$0xff] }
  0x3b   :  { %5573 = vmatprep.subr.bf16.mxu0 %v9385_v9  ;;  %v9395_v21 = vpack.c.bf16 %v286_v18, %v280_v17  ;;  %v292_v22 = vld [vmem:[#allocation2 + $0x120] sm:$0xff]  ;;  %v298_v23 = vld [vmem:[#allocation2 + $0x150] sm:$0xff]  ;;  %v9398_v24 = vpack.c.bf16 %v299_v20, %v293_v19  ;;  %v305_v25 = vld [vmem:[#allocation2 + $0x188] sm:$0xff] }
  0x3c   :  { %v259_v26 = vld [vmem:[#allocation2 + $0x18] sm:$0xff]  ;;  %v265_v27 = vld [vmem:[#allocation2 + $0x48] sm:$0xff]  ;;  %v258_v30 = vld [vmem:[#allocation2 + $0x10] sm:$0xff]  ;;  %v9405_v33 = vpack.c.bf16 %v298_v23, %v292_v22 }
  0x3d   :  { %v311_v28 = vld [vmem:[#allocation2 + $0x1b8] sm:$0xff]  ;;  %v9400_v29 = vpack.c.bf16 %v265_v27, %v259_v26  ;;  %v264_v31 = vld [vmem:[#allocation2 + $0x40] sm:$0xff]  ;;  %v277_v35 = vld [vmem:[#allocation2 + $0xa8] sm:$0xff] }
  0x3e   :  { %5575 = vmatpush1.bf16.msra.mxu0 %v9389_v14  ;;  %v9402_v32 = vpack.c.bf16 %v264_v31, %v258_v30  ;;  %v271_v34 = vld [vmem:[#allocation2 + $0x78] sm:$0xff]  ;;  %v270_v36 = vld [vmem:[#allocation2 + $0x70] sm:$0xff]  ;;  %v9409_v37 = vpack.c.bf16 %v311_v28, %v305_v25  ;;  %v304_v38 = vld [vmem:[#allocation2 + $0x180] sm:$0xff] }
  0x3f   :  { %5577 = vmatprep.subr.bf16.mxu0 %v9392_v16  ;;  %12509 = vst [vmem:[#allocation10_spill] sm:$0xff] %v9400_v29  ;;  %5633 = vmatprep.subr.bf16.mxu1 %v9400_v29  ;;  %v310_v39 = vld [vmem:[#allocation2 + $0x1b0] sm:$0xff]  ;;  %v9412_v40 = vpack.c.bf16 %v277_v35, %v271_v34  ;;  %v276_v41 = vld [vmem:[#allocation2 + $0xa0] sm:$0xff]  ;;  %v317_v42 = vld [vmem:[#allocation2 + $0x1e8] sm:$0xff] }
  0x40   :  { %12510 = vst [vmem:[#allocation11_spill] sm:$0xff] %v9402_v32  ;;  %5635 = vmatpush1.bf16.msra.mxu1 %v9402_v32  ;;  %v323_v43 = vld [vmem:[#allocation2 + $0x218] sm:$0xff]  ;;  %v9414_v44 = vpack.c.bf16 %v276_v41, %v270_v36  ;;  %v289_v46 = vld [vmem:[#allocation2 + $0x108] sm:$0xff]  ;;  %v282_v47 = vld [vmem:[#allocation2 + $0xd0] sm:$0xff]  ;;  %v9418_v49 = vpack.c.bf16 %v310_v39, %v304_v38 }
  0x41   :  { %12511 = vst [vmem:[#allocation12_spill] sm:$0xff] %v9412_v40  ;;  %v283_v45 = vld [vmem:[#allocation2 + $0xd8] sm:$0xff]  ;;  %5637 = vmatprep.subr.bf16.mxu1 %v9412_v40  ;;  %v288_v48 = vld [vmem:[#allocation2 + $0x100] sm:$0xff]  ;;  %v322_v51 = vld [vmem:[#allocation2 + $0x210] sm:$0xff]  ;;  %v9423_v53 = vpack.c.bf16 %v323_v43, %v317_v42 }
  0x42   :  { %5579 = vmatpush1.bf16.msra.mxu0 %v9395_v21  ;;  %12512 = vst [vmem:[#allocation13_spill] sm:$0xff] %v9414_v44  ;;  %v316_v50 = vld [vmem:[#allocation2 + $0x1e0] sm:$0xff]  ;;  %v9420_v52 = vpack.c.bf16 %v289_v46, %v283_v45  ;;  %v329_v54 = vld [vmem:[#allocation2 + $0x248] sm:$0xff]  ;;  %v9426_v55 = vpack.c.bf16 %v288_v48, %v282_v47  ;;  %v295_v56 = vld [vmem:[#allocation2 + $0x138] sm:$0xff] }
  0x43   :  { %5581 = vmatprep.subr.bf16.mxu0 %v9398_v24  ;;  %v301_v57 = vld [vmem:[#allocation2 + $0x168] sm:$0xff]  ;;  %v335_v58 = vld [vmem:[#allocation2 + $0x278] sm:$0xff]  ;;  %v294_v60 = vld [vmem:[#allocation2 + $0x130] sm:$0xff]  ;;  %v9432_v62 = vpack.c.bf16 %v322_v51, %v316_v50 }
  0x44   :  { %12513 = vst [vmem:[#allocation14_spill] sm:$0xff] %v9420_v52  ;;  %5639 = vmatpush1.bf16.msra.mxu1 %v9414_v44  ;;  %12514 = vst [vmem:[#allocation15_spill] sm:$0xff] %v9426_v55  ;;  %v9429_v59 = vpack.c.bf16 %v301_v57, %v295_v56  ;;  %v300_v61 = vld [vmem:[#allocation2 + $0x160] sm:$0xff]  ;;  %v307_v63 = vld [vmem:[#allocation2 + $0x198] sm:$0xff]  ;;  %v9435_v2 = vpack.c.bf16 %v335_v58, %v329_v54 }
  0x45   :  { %5641 = vmatprep.subr.bf16.mxu1 %v9420_v52  ;;  %12516 = vst [vmem:[#allocation17_spill] sm:$0xff] %v9432_v62  ;;  %v313_v1 = vld [vmem:[#allocation2 + $0x1c8] sm:$0xff]  ;;  %v328_v3 = vld [vmem:[#allocation2 + $0x240] sm:$0xff]  ;;  %v334_v5 = vld [vmem:[#allocation2 + $0x270] sm:$0xff]  ;;  %v9438_v7 = vpack.c.bf16 %v300_v61, %v294_v60 }
  0x46   :  { %5583 = vmatpush1.bf16.msra.mxu0 %v9405_v33  ;;  %12515 = vst [vmem:[#allocation16_spill] sm:$0xff] %v9429_v59  ;;  %v341_v6 = vld [vmem:[#allocation2 + $0x2a8] sm:$0xff]  ;;  %v347_v10 = vld [vmem:[#allocation2 + $0x2d8] sm:$0xff]  ;;  %v9441_v11 = vpack.c.bf16 %v313_v1, %v307_v63  ;;  %v306_v12 = vld [vmem:[#allocation2 + $0x190] sm:$0xff]  ;;  %v9444_v18 = vpack.c.bf16 %v334_v5, %v328_v3 }
  0x47   :  { %5585 = vmatprep.subr.bf16.mxu0 %v9409_v37  ;;  %12517 = vst [vmem:[#allocation18_spill] sm:$0xff] %v9438_v7  ;;  %v312_v13 = vld [vmem:[#allocation2 + $0x1c0] sm:$0xff]  ;;  %v319_v15 = vld [vmem:[#allocation2 + $0x1f8] sm:$0xff]  ;;  %v325_v17 = vld [vmem:[#allocation2 + $0x228] sm:$0xff]  ;;  %v9447_v19 = vpack.c.bf16 %v347_v10, %v341_v6 }
  0x48   :  { %5643 = vmatpush1.bf16.msra.mxu1 %v9426_v55  ;;  %12518 = vst [vmem:[#allocation19_spill] sm:$0xff] %v9441_v11  ;;  %12519 = vst [vmem:[#allocation20_spill] sm:$0xff] %v9444_v18  ;;  %v340_v20 = vld [vmem:[#allocation2 + $0x2a0] sm:$0xff]  ;;  %v346_v22 = vld [vmem:[#allocation2 + $0x2d0] sm:$0xff]  ;;  %v9450_v25 = vpack.c.bf16 %v312_v13, %v306_v12  ;;  %v9453_v27 = vpack.c.bf16 %v325_v17, %v319_v15 }
  0x49   :  { %5645 = vmatprep.subr.bf16.mxu1 %v9429_v59  ;;  %v353_v23 = vld [vmem:[#allocation2 + $0x308] sm:$0xff]  ;;  %v359_v26 = vld [vmem:[#allocation2 + $0x338] sm:$0xff]  ;;  %v318_v28 = vld [vmem:[#allocation2 + $0x1f0] sm:$0xff]  ;;  %v9456_v35 = vpack.c.bf16 %v346_v22, %v340_v20 }
  0x4a   :  { %5587 = vmatpush1.bf16.msra.mxu0 %v9418_v49  ;;  %12520 = vst [vmem:[#allocation21_spill] sm:$0xff] %v9450_v25  ;;  %12521 = vst [vmem:[#allocation22_spill] sm:$0xff] %v9453_v27  ;;  %v324_v30 = vld [vmem:[#allocation2 + $0x220] sm:$0xff]  ;;  %v331_v31 = vld [vmem:[#allocation2 + $0x258] sm:$0xff]  ;;  %v9459_v36 = vpack.c.bf16 %v359_v26, %v353_v23 }
  0x4b   :  { %5589 = vmatprep.subr.bf16.mxu0 %v9423_v53  ;;  %v337_v34 = vld [vmem:[#allocation2 + $0x288] sm:$0xff]  ;;  %12522 = vst [vmem:[#allocation23_spill] sm:$0xff] %v9456_v35  ;;  %v352_v38 = vld [vmem:[#allocation2 + $0x300] sm:$0xff]  ;;  %v358_v39 = vld [vmem:[#allocation2 + $0x330] sm:$0xff]  ;;  %v9462_v42 = vpack.c.bf16 %v324_v30, %v318_v28 }
  0x4c   :  { %5647 = vmatpush1.bf16.msra.mxu1 %v9438_v7  ;;  %12523 = vst [vmem:[#allocation24_spill] sm:$0xff] %v9459_v36  ;;  %v365_v41 = vld [vmem:[#allocation2 + $0x368] sm:$0xff]  ;;  %v371_v43 = vld [vmem:[#allocation2 + $0x398] sm:$0xff]  ;;  %v9465_v45 = vpack.c.bf16 %v337_v34, %v331_v31  ;;  %v330_v46 = vld [vmem:[#allocation2 + $0x250] sm:$0xff]  ;;  %v9468_v51 = vpack.c.bf16 %v358_v39, %v352_v38 }
  0x4d   :  { %5649 = vmatprep.subr.bf16.mxu1 %v9441_v11  ;;  %12524 = vst [vmem:[#allocation25_spill] sm:$0xff] %v9462_v42  ;;  %v336_v47 = vld [vmem:[#allocation2 + $0x280] sm:$0xff]  ;;  %v343_v48 = vld [vmem:[#allocation2 + $0x2b8] sm:$0xff]  ;;  %v349_v50 = vld [vmem:[#allocation2 + $0x2e8] sm:$0xff]  ;;  %v9471_v54 = vpack.c.bf16 %v371_v43, %v365_v41 }
  0x4e   :  { %5591 = vmatpush1.bf16.msra.mxu0 %v9432_v62  ;;  %12525 = vst [vmem:[#allocation26_spill] sm:$0xff] %v9465_v45  ;;  %12526 = vst [vmem:[#allocation27_spill] sm:$0xff] %v9468_v51  ;;  %v364_v56 = vld [vmem:[#allocation2 + $0x360] sm:$0xff]  ;;  %v370_v57 = vld [vmem:[#allocation2 + $0x390] sm:$0xff]  ;;  %v9474_v60 = vpack.c.bf16 %v336_v47, %v330_v46  ;;  %v9477_v63 = vpack.c.bf16 %v349_v50, %v343_v48 }
  0x4f   :  { %5593 = vmatprep.subr.bf16.mxu0 %v9435_v2  ;;  %12527 = vst [vmem:[#allocation28_spill] sm:$0xff] %v9471_v54  ;;  %v377_v58 = vld [vmem:[#allocation2 + $0x3c8] sm:$0xff]  ;;  %v383_v61 = vld [vmem:[#allocation2 + $0x3f8] sm:$0xff]  ;;  %v342_v1 = vld [vmem:[#allocation2 + $0x2b0] sm:$0xff]  ;;  %v9480_v10 = vpack.c.bf16 %v370_v57, %v364_v56 }
  0x50   :  { %5651 = vmatpush1.bf16.msra.mxu1 %v9450_v25  ;;  %12528 = vst [vmem:[#allocation29_spill] sm:$0xff] %v9474_v60  ;;  %12529 = vst [vmem:[#allocation30_spill] sm:$0xff] %v9477_v63  ;;  %v348_v3 = vld [vmem:[#allocation2 + $0x2e0] sm:$0xff]  ;;  %v355_v5 = vld [vmem:[#allocation2 + $0x318] sm:$0xff]  ;;  %v9483_v12 = vpack.c.bf16 %v383_v61, %v377_v58 }
  0x51   :  { %5653 = vmatprep.subr.bf16.mxu1 %v9453_v27  ;;  %v361_v6 = vld [vmem:[#allocation2 + $0x348] sm:$0xff]  ;;  %12530 = vst [vmem:[#allocation31_spill] sm:$0xff] %v9480_v10  ;;  %v376_v13 = vld [vmem:[#allocation2 + $0x3c0] sm:$0xff]  ;;  %v382_v15 = vld [vmem:[#allocation2 + $0x3f0] sm:$0xff]  ;;  %v9486_v20 = vpack.c.bf16 %v348_v3, %v342_v1 }
  0x52   :  { %5595 = vmatpush1.bf16.msra.mxu0 %v9444_v18  ;;  %12531 = vst [vmem:[#allocation32_spill] sm:$0xff] %v9483_v12  ;;  %v389_v17 = vld [vmem:[#allocation2 + $0x428] sm:$0xff]  ;;  %v395_v22 = vld [vmem:[#allocation2 + $0x458] sm:$0xff]  ;;  %v9489_v23 = vpack.c.bf16 %v361_v6, %v355_v5  ;;  %v354_v26 = vld [vmem:[#allocation2 + $0x310] sm:$0xff]  ;;  %v9492_v34 = vpack.c.bf16 %v382_v15, %v376_v13 }
  0x53   :  { %5597 = vmatprep.subr.bf16.mxu0 %v9447_v19  ;;  %12532 = vst [vmem:[#allocation33_spill] sm:$0xff] %v9486_v20  ;;  %v360_v28 = vld [vmem:[#allocation2 + $0x340] sm:$0xff]  ;;  %v367_v30 = vld [vmem:[#allocation2 + $0x378] sm:$0xff]  ;;  %v373_v31 = vld [vmem:[#allocation2 + $0x3a8] sm:$0xff]  ;;  %v9495_v38 = vpack.c.bf16 %v395_v22, %v389_v17 }
  0x54   :  { %5655 = vmatpush1.bf16.msra.mxu1 %v9462_v42  ;;  %12533 = vst [vmem:[#allocation34_spill] sm:$0xff] %v9489_v23  ;;  %12534 = vst [vmem:[#allocation35_spill] sm:$0xff] %v9492_v34  ;;  %v388_v39 = vld [vmem:[#allocation2 + $0x420] sm:$0xff]  ;;  %v394_v41 = vld [vmem:[#allocation2 + $0x450] sm:$0xff]  ;;  %v9498_v46 = vpack.c.bf16 %v360_v28, %v354_v26  ;;  %v9501_v48 = vpack.c.bf16 %v373_v31, %v367_v30  ;;  %v12561_v42 = vmov 0.0  }
  0x55   :  { %5657 = vmatprep.subr.bf16.mxu1 %v9465_v45  ;;  %12535 = vst [vmem:[#allocation36_spill] sm:$0xff] %v9495_v38  ;;  %v401_v43 = vld [vmem:[#allocation2 + $0x488] sm:$0xff]  ;;  %v407_v47 = vld [vmem:[#allocation2 + $0x4b8] sm:$0xff]  ;;  %v366_v50 = vld [vmem:[#allocation2 + $0x370] sm:$0xff]  ;;  %v9504_v61 = vpack.c.bf16 %v394_v41, %v388_v39 }
  0x56   :  { %5599 = vmatpush1.bf16.msra.mxu0 %v9456_v35  ;;  %12536 = vst [vmem:[#allocation37_spill] sm:$0xff] %v9498_v46  ;;  %12537 = vst [vmem:[#allocation38_spill] sm:$0xff] %v9501_v48  ;;  %v372_v56 = vld [vmem:[#allocation2 + $0x3a0] sm:$0xff]  ;;  %v379_v57 = vld [vmem:[#allocation2 + $0x3d8] sm:$0xff]  ;;  %v9507_v1 = vpack.c.bf16 %v407_v47, %v401_v43 }
  0x57   :  { %5601 = vmatprep.subr.bf16.mxu0 %v9459_v36  ;;  %v385_v58 = vld [vmem:[#allocation2 + $0x408] sm:$0xff]  ;;  %12538 = vst [vmem:[#allocation39_spill] sm:$0xff] %v9504_v61  ;;  %v400_v3 = vld [vmem:[#allocation2 + $0x480] sm:$0xff]  ;;  %v406_v5 = vld [vmem:[#allocation2 + $0x4b0] sm:$0xff]  ;;  %v9510_v13 = vpack.c.bf16 %v372_v56, %v366_v50 }
  0x58   :  { %5659 = vmatpush1.bf16.msra.mxu1 %v9474_v60  ;;  %12539 = vst [vmem:[#allocation40_spill] sm:$0xff] %v9507_v1  ;;  %v413_v6 = vld [vmem:[#allocation2 + $0x4e8] sm:$0xff]  ;;  %v419_v15 = vld [vmem:[#allocation2 + $0x518] sm:$0xff]  ;;  %v9513_v17 = vpack.c.bf16 %v385_v58, %v379_v57  ;;  %v378_v22 = vld [vmem:[#allocation2 + $0x3d0] sm:$0xff]  ;;  %v9516_v31 = vpack.c.bf16 %v406_v5, %v400_v3 }
  0x59   :  { %5661 = vmatprep.subr.bf16.mxu1 %v9477_v63  ;;  %12540 = vst [vmem:[#allocation41_spill] sm:$0xff] %v9510_v13  ;;  %v384_v26 = vld [vmem:[#allocation2 + $0x400] sm:$0xff]  ;;  %v391_v28 = vld [vmem:[#allocation2 + $0x438] sm:$0xff]  ;;  %v397_v30 = vld [vmem:[#allocation2 + $0x468] sm:$0xff]  ;;  %v9519_v39 = vpack.c.bf16 %v419_v15, %v413_v6 }
  0x5a   :  { %5603 = vmatpush1.bf16.msra.mxu0 %v9468_v51  ;;  %12541 = vst [vmem:[#allocation42_spill] sm:$0xff] %v9513_v17  ;;  %12542 = vst [vmem:[#allocation43_spill] sm:$0xff] %v9516_v31  ;;  %v412_v41 = vld [vmem:[#allocation2 + $0x4e0] sm:$0xff]  ;;  %v418_v43 = vld [vmem:[#allocation2 + $0x510] sm:$0xff]  ;;  %v9522_v50 = vpack.c.bf16 %v384_v26, %v378_v22  ;;  %v9525_v57 = vpack.c.bf16 %v397_v30, %v391_v28 }
  0x5b   :  { %5605 = vmatprep.subr.bf16.mxu0 %v9471_v54  ;;  %12543 = vst [vmem:[#allocation44_spill] sm:$0xff] %v9519_v39  ;;  %v425_v47 = vld [vmem:[#allocation2 + $0x548] sm:$0xff]  ;;  %v431_v56 = vld [vmem:[#allocation2 + $0x578] sm:$0xff]  ;;  %v390_v58 = vld [vmem:[#allocation2 + $0x430] sm:$0xff]  ;;  %v9528_v6 = vpack.c.bf16 %v418_v43, %v412_v41 }
  0x5c   :  { %5663 = vmatpush1.bf16.msra.mxu1 %v9486_v20  ;;  %12544 = vst [vmem:[#allocation45_spill] sm:$0xff] %v9522_v50  ;;  %12545 = vst [vmem:[#allocation46_spill] sm:$0xff] %v9525_v57  ;;  %v396_v0 = vld [vmem:[#allocation2 + $0x460] sm:$0xff]  ;;  %v403_v3 = vld [vmem:[#allocation2 + $0x498] sm:$0xff]  ;;  %v9531_v15 = vpack.c.bf16 %v431_v56, %v425_v47 }
  0x5d   :  { %5665 = vmatprep.subr.bf16.mxu1 %v9489_v23  ;;  %v409_v5 = vld [vmem:[#allocation2 + $0x4c8] sm:$0xff]  ;;  %12546 = vst [vmem:[#allocation47_spill] sm:$0xff] %v9528_v6  ;;  %v430_v22 = vld [vmem:[#allocation2 + $0x570] sm:$0xff]  ;;  %v443_v28 = vld [vmem:[#allocation2 + $0x5d8] sm:$0xff] }
  0x5e   :  { %5607 = vmatpush1.bf16.msra.mxu0 %v9480_v10  ;;  %12547 = vst [vmem:[#allocation48_spill] sm:$0xff] %v9531_v15  ;;  %v437_v26 = vld [vmem:[#allocation2 + $0x5a8] sm:$0xff]  ;;  %v9537_v30 = vpack.c.bf16 %v409_v5, %v403_v3  ;;  %v415_v41 = vld [vmem:[#allocation2 + $0x4f8] sm:$0xff]  ;;  %v414_v23 = vld [vmem:[#allocation2 + $0x4f0] sm:$0xff] }
  0x5f   :  { %5609 = vmatprep.subr.bf16.mxu0 %v9483_v12  ;;  %v421_v43 = vld [vmem:[#allocation2 + $0x528] sm:$0xff]  ;;  %v9543_v56 = vpack.c.bf16 %v443_v28, %v437_v26  ;;  %v267_v3 = vld [vmem:[#allocation2 + $0x58] sm:$0xff]  ;;  %v420_v20 = vld [vmem:[#allocation2 + $0x520] sm:$0xff] }
  0x60   :  { %5667 = vmatpush1.bf16.msra.mxu1 %v9498_v46  ;;  %12549 = vst [vmem:[#allocation50_spill] sm:$0xff] %v9537_v30  ;;  %v408_v46 = vld [vmem:[#allocation2 + $0x4c0] sm:$0xff]  ;;  %v9549_v5 = vpack.c.bf16 %v421_v43, %v415_v41  ;;  %v279_v41 = vld [vmem:[#allocation2 + $0xb8] sm:$0xff]  ;;  %v426_v63 = vld [vmem:[#allocation2 + $0x550] sm:$0xff] }
  0x61   :  { %5669 = vmatprep.subr.bf16.mxu1 %v9501_v48  ;;  %v402_v48 = vld [vmem:[#allocation2 + $0x490] sm:$0xff]  ;;  %12551 = vst [vmem:[#allocation52_spill] sm:$0xff] %v9543_v56  ;;  %v432_v60 = vld [vmem:[#allocation2 + $0x580] sm:$0xff] }
  0x62   :  { %5611 = vmatpush1.bf16.msra.mxu0 %v9492_v34  ;;  %12553 = vst [vmem:[#allocation54_spill] sm:$0xff] %v9549_v5  ;;  %v444_v45 = vld [vmem:[#allocation2 + $0x5e0] sm:$0xff] }
  0x63   :  { %5613 = vmatprep.subr.bf16.mxu0 %v9495_v38 }
  0x64   :  { %5671 = vmatpush1.bf16.msra.mxu1 %v9510_v13  ;;  %v424_v13 = vld [vmem:[#allocation2 + $0x540] sm:$0xff] }
  0x65   :  { %5673 = vmatprep.subr.bf16.mxu1 %v9513_v17  ;;  %v9534_v17 = vpack.c.bf16 %v396_v0, %v390_v58  ;;  %v9540_v47 = vpack.c.bf16 %v430_v22, %v424_v13  ;;  %v442_v0 = vld [vmem:[#allocation2 + $0x5d0] sm:$0xff]  ;;  %v261_v58 = vld [vmem:[#allocation2 + $0x28] sm:$0xff]  ;;  %v427_v13 = vld [vmem:[#allocation2 + $0x558] sm:$0xff] }
  0x66   :  { %5615 = vmatpush1.bf16.msra.mxu0 %v9504_v61  ;;  %v433_v22 = vld [vmem:[#allocation2 + $0x588] sm:$0xff]  ;;  %v9555_v28 = vpack.c.bf16 %v267_v3, %v261_v58  ;;  %v65_v3 = vld [vmem:[%s11980_s0 + $0x38] sm:$0xff] }
  0x67   :  { %5617 = vmatprep.subr.bf16.mxu0 %v9507_v1  ;;  %12548 = vst [vmem:[#allocation49_spill] sm:$0xff] %v9534_v17  ;;  %12550 = vst [vmem:[#allocation51_spill] sm:$0xff] %v9540_v47  ;;  %v9561_v43 = vpack.c.bf16 %v433_v22, %v427_v13  ;;  %v285_v13 = vld [vmem:[#allocation2 + $0xe8] sm:$0xff]  ;;  %v9573_v22 = vpack.c.bf16 %v432_v60, %v426_v63  ;;  %109 = vperm.xlu0 %8905, %v65_v3   ;;  %v284_v63 = vld [vmem:[#allocation2 + $0xe0] sm:$0xff] }
  0x68   :  { %5675 = vmatpush1.bf16.msra.mxu1 %v9522_v50  ;;  %v436_v50 = vld [vmem:[#allocation2 + $0x5a0] sm:$0xff]  ;;  %12555 = vst [vmem:[#allocation56_spill] sm:$0xff] %v9555_v28  ;;  %v297_v3 = vld [vmem:[#allocation2 + $0x148] sm:$0xff] }
  0x69   :  { %5677 = vmatprep.subr.bf16.mxu1 %v9525_v57  ;;  %v9546_v57 = vpack.c.bf16 %v408_v46, %v402_v48  ;;  %v9552_v26 = vpack.c.bf16 %v442_v0, %v436_v50  ;;  %v266_v46 = vld [vmem:[#allocation2 + $0x50] sm:$0xff]  ;;  %v273_v48 = vld [vmem:[#allocation2 + $0x88] sm:$0xff]  ;;  %12557 = vst [vmem:[#allocation58_spill] sm:$0xff] %v9561_v43  ;;  %v439_v50 = vld [vmem:[#allocation2 + $0x5b8] sm:$0xff] }
  0x6a   :  { %5619 = vmatpush1.bf16.msra.mxu0 %v9516_v31  ;;  %v445_v0 = vld [vmem:[#allocation2 + $0x5e8] sm:$0xff]  ;;  %12559 = vst [vmem:[#allocation60_spill] sm:$0xff] %v9573_v22 }
  0x6b   :  { %5621 = vmatprep.subr.bf16.mxu0 %v9519_v39  ;;  %12552 = vst [vmem:[#allocation53_spill] sm:$0xff] %v9546_v57  ;;  %12554 = vst [vmem:[#allocation55_spill] sm:$0xff] %v9552_v26 }
  0x6c   :  { %5679 = vmatpush1.bf16.msra.mxu1 %v9534_v17  ;;  %v260_v17 = vld [vmem:[#allocation2 + $0x20] sm:$0xff] }
  0x6d   :  { %5681 = vmatprep.subr.bf16.mxu1 %v9537_v30  ;;  %v9558_v30 = vpack.c.bf16 %v420_v20, %v414_v23  ;;  %v9564_v58 = vpack.c.bf16 %v266_v46, %v260_v17  ;;  %v9570_v20 = vpack.c.bf16 %v279_v41, %v273_v48  ;;  %v272_v23 = vld [vmem:[#allocation2 + $0x80] sm:$0xff]  ;;  %v9576_v17 = vpack.c.bf16 %v445_v0, %v439_v50  ;;  %v438_v46 = vld [vmem:[#allocation2 + $0x5b0] sm:$0xff] }
  0x6e   :  { %5623 = vmatpush1.bf16.msra.mxu0 %v9528_v6  ;;  %v58_v48 = vld [vmem:[%s11980_s0] sm:$0xff]  ;;  %v290_v50 = vld [vmem:[#allocation2 + $0x110] sm:$0xff]  ;;  %v9590_v0 = vpack.c.bf16 %v444_v45, %v438_v46  ;;  %v309_v46 = vld [vmem:[#allocation2 + $0x1a8] sm:$0xff] }
  0x6f   :  { %5625 = vmatprep.subr.bf16.mxu0 %v9531_v15  ;;  %12556 = vst [vmem:[#allocation57_spill] sm:$0xff] %v9558_v30  ;;  %12558 = vst [vmem:[#allocation59_spill] sm:$0xff] %v9570_v20  ;;  %74 = vperm.xlu0 %8905, %v58_v48   ;;  %v302_v45 = vld [vmem:[#allocation2 + $0x170] sm:$0xff]  ;;  %v62_v48 = vld [vmem:[%s11980_s0 + $0x20] sm:$0xff] }
  0x70   :  { %5683 = vmatpush1.bf16.msra.mxu1 %v9546_v57  ;;  %v291_v57 = vld [vmem:[#allocation2 + $0x118] sm:$0xff]  ;;  %12560 = vst [vmem:[#allocation61_spill] sm:$0xff] %v9576_v17  ;;  %12563 = vst [vmem:[#allocation63_spill] sm:$0xff] %v9590_v0 }
  0x71   :  { %5685 = vmatprep.subr.bf16.mxu1 %v9549_v5  ;;  %v278_v5 = vld [vmem:[#allocation2 + $0xb0] sm:$0xff]  ;;  %v9587_v60 = vpack.c.bf16 %v291_v57, %v285_v13  ;;  %v296_v13 = vld [vmem:[#allocation2 + $0x140] sm:$0xff] }
  0x72   :  { %5627 = vmatpush1.bf16.msra.mxu0 %v9540_v47  ;;  %v9583_v41 = vpack.c.bf16 %v278_v5, %v272_v23  ;;  %v63_v5 = vld [vmem:[%s11980_s0 + $0x28] sm:$0xff]  ;;  %v9597_v23 = vpack.c.bf16 %v290_v50, %v284_v63  ;;  %v9608_v63 = vpack.c.bf16 %v302_v45, %v296_v13  ;;  %v308_v50 = vld [vmem:[#allocation2 + $0x1a0] sm:$0xff] }
  0x73   :  { %5629 = vmatprep.subr.bf16.mxu0 %v9543_v56  ;;  %12562 = vst [vmem:[#allocation62_spill] sm:$0xff] %v9587_v60  ;;  %99 = vperm.xlu0 %8905, %v63_v5   ;;  %v321_v5 = vld [vmem:[#allocation2 + $0x208] sm:$0xff]  ;;  %v320_v45 = vld [vmem:[#allocation2 + $0x200] sm:$0xff] }
  0x74   :  { %5687 = vmatpush1.bf16.msra.mxu1 %v9558_v30  ;;  %12564 = vst [vmem:[#allocation64_spill] sm:$0xff] %v9597_v23  ;;  %12566 = vst [vmem:[#allocation66_spill] sm:$0xff] %v9608_v63 }
  0x75   :  { %5689 = vmatprep.subr.bf16.mxu1 %v9561_v43  ;;  %v303_v43 = vld [vmem:[#allocation2 + $0x178] sm:$0xff] }
  0x76   :  { %5631 = vmatpush1.bf16.msra.mxu0 %v9552_v26  ;;  %v9600_v57 = vpack.c.bf16 %v303_v43, %v297_v3  ;;  %v314_v3 = vld [vmem:[#allocation2 + $0x1d0] sm:$0xff] }
  0x77   :  { %5697 = vmatprep.subr.bf16.mxu0 %v9555_v28  ;;  %94 = vperm.xlu0 %8905, %v62_v48  }
  0x78   :  { %5691 = vmatpush1.bf16.msra.mxu1 %v9573_v22  ;;  %12565 = vst [vmem:[#allocation65_spill] sm:$0xff] %v9600_v57 }
  0x79   :  { %513 = vmatmul.mubr.f32.vlgmr.msra.gmra.mrb[0].mxu0 %v12561_v42  ;;  %5693 = vmatprep.subr.bf16.mxu1 %v9576_v17 }
  0x7a   :  { %5699 = vmatpush1.bf16.msra.mxu0 %v9564_v58  ;;  %654 = vmatprep.mubr.f32.mxu0 %v12561_v42 }
  0x7b   :  { %5701 = vmatprep.subr.bf16.mxu0 %v9570_v20  ;;  %v315_v20 = vld [vmem:[#allocation2 + $0x1d8] sm:$0xff] }
  0x7c   :  { %5695 = vmatpush1.bf16.msra.mxu1 %v9590_v0  ;;  %v9612_v43 = vpack.c.bf16 %v315_v20, %v309_v46  ;;  %v326_v20 = vld [vmem:[#allocation2 + $0x230] sm:$0xff]  ;;  %v333_v46 = vld [vmem:[#allocation2 + $0x268] sm:$0xff] }
  0x7d   :  { %5761 = vmatprep.subr.bf16.mxu1 %v9381_v4  ;;  %v9625_v48 = vpack.c.bf16 %v326_v20, %v320_v45  ;;  %v344_v20 = vld [vmem:[#allocation2 + $0x2c0] sm:$0xff] }
  0x7e   :  { %5703 = vmatpush1.bf16.msra.mxu0 %v9583_v41  ;;  %12567 = vst [vmem:[#allocation67_spill] sm:$0xff] %v9612_v43 }
  0x7f   :  { %5705 = vmatprep.subr.bf16.mxu0 %v9587_v60  ;;  %584 = vmatmul.mubr.f32.vlgmr.msra.gmra.mrb[0].mxu1 %v12561_v42  ;;  %v327_v60 = vld [vmem:[#allocation2 + $0x238] sm:$0xff]  ;;  %12570 = vst [vmem:[#allocation70_spill] sm:$0xff] %v9625_v48 }
  0x80   :  { %5763 = vmatpush1.bf16.msra.mxu1 %v9383_v8  ;;  %v9620_v13 = vpack.c.bf16 %v327_v60, %v321_v5  ;;  %v345_v60 = vld [vmem:[#allocation2 + $0x2c8] sm:$0xff]  ;;  %v351_v5 = vld [vmem:[#allocation2 + $0x2f8] sm:$0xff] }
  0x81   :  { %5765 = vmatprep.subr.bf16.mxu1 %v9385_v9  ;;  %v9636_v45 = vpack.c.bf16 %v351_v5, %v345_v60  ;;  %v369_v60 = vld [vmem:[#allocation2 + $0x388] sm:$0xff]  ;;  %v375_v5 = vld [vmem:[#allocation2 + $0x3b8] sm:$0xff] }
  0x82   :  { %5707 = vmatpush1.bf16.msra.mxu0 %v9597_v23  ;;  %v9617_v23 = vpack.c.bf16 %v314_v3, %v308_v50  ;;  %12569 = vst [vmem:[#allocation69_spill] sm:$0xff] %v9620_v13  ;;  %v332_v3 = vld [vmem:[#allocation2 + $0x260] sm:$0xff] }
  0x83   :  { %5709 = vmatprep.subr.bf16.mxu0 %v9600_v57  ;;  %v339_v57 = vld [vmem:[#allocation2 + $0x298] sm:$0xff]  ;;  %12573 = vst [vmem:[#allocation73_spill] sm:$0xff] %v9636_v45 }
  0x84   :  { %12568 = vst [vmem:[#allocation68_spill] sm:$0xff] %v9617_v23  ;;  %5767 = vmatpush1.bf16.msra.mxu1 %v9389_v14  ;;  %v9628_v50 = vpack.c.bf16 %v339_v57, %v333_v46  ;;  %v357_v57 = vld [vmem:[#allocation2 + $0x328] sm:$0xff]  ;;  %v363_v46 = vld [vmem:[#allocation2 + $0x358] sm:$0xff] }
  0x85   :  { %5769 = vmatprep.subr.bf16.mxu1 %v9392_v16 }
  0x86   :  { %5711 = vmatpush1.bf16.msra.mxu0 %v9608_v63  ;;  %12571 = vst [vmem:[#allocation71_spill] sm:$0xff] %v9628_v50 }
  0x87   :  { %5713 = vmatprep.subr.bf16.mxu0 %v9612_v43  ;;  %v338_v43 = vld [vmem:[#allocation2 + $0x290] sm:$0xff] }
  0x88   :  { %5771 = vmatpush1.bf16.msra.mxu1 %v9395_v21  ;;  %v9633_v63 = vpack.c.bf16 %v338_v43, %v332_v3  ;;  %v9644_v43 = vpack.c.bf16 %v363_v46, %v357_v57  ;;  %v356_v3 = vld [vmem:[#allocation2 + $0x320] sm:$0xff]  ;;  %v381_v57 = vld [vmem:[#allocation2 + $0x3e8] sm:$0xff]  ;;  %v387_v46 = vld [vmem:[#allocation2 + $0x418] sm:$0xff] }
  0x89   :  { %5773 = vmatprep.subr.bf16.mxu1 %v9398_v24 }
  0x8a   :  { %5715 = vmatpush1.bf16.msra.mxu0 %v9617_v23  ;;  %12572 = vst [vmem:[#allocation72_spill] sm:$0xff] %v9633_v63  ;;  %12575 = vst [vmem:[#allocation75_spill] sm:$0xff] %v9644_v43 }
  0x8b   :  { %5717 = vmatprep.subr.bf16.mxu0 %v9620_v13  ;;  %v350_v13 = vld [vmem:[#allocation2 + $0x2f0] sm:$0xff] }
  0x8c   :  { %5775 = vmatpush1.bf16.msra.mxu1 %v9405_v33  ;;  %v9641_v23 = vpack.c.bf16 %v350_v13, %v344_v20  ;;  %v9652_v13 = vpack.c.bf16 %v375_v5, %v369_v60  ;;  %v368_v20 = vld [vmem:[#allocation2 + $0x380] sm:$0xff]  ;;  %v393_v60 = vld [vmem:[#allocation2 + $0x448] sm:$0xff]  ;;  %v399_v5 = vld [vmem:[#allocation2 + $0x478] sm:$0xff] }
  0x8d   :  { %5777 = vmatprep.subr.bf16.mxu1 %v9409_v37 }
  0x8e   :  { %5719 = vmatpush1.bf16.msra.mxu0 %v9625_v48  ;;  %12574 = vst [vmem:[#allocation74_spill] sm:$0xff] %v9641_v23  ;;  %12577 = vst [vmem:[#allocation77_spill] sm:$0xff] %v9652_v13 }
  0x8f   :  { %5721 = vmatprep.subr.bf16.mxu0 %v9628_v50  ;;  %v362_v50 = vld [vmem:[#allocation2 + $0x350] sm:$0xff] }
  0x90   :  { %5779 = vmatpush1.bf16.msra.mxu1 %v9418_v49  ;;  %v9649_v48 = vpack.c.bf16 %v362_v50, %v356_v3  ;;  %v9660_v50 = vpack.c.bf16 %v387_v46, %v381_v57  ;;  %v380_v3 = vld [vmem:[#allocation2 + $0x3e0] sm:$0xff]  ;;  %v405_v57 = vld [vmem:[#allocation2 + $0x4a8] sm:$0xff]  ;;  %v411_v46 = vld [vmem:[#allocation2 + $0x4d8] sm:$0xff] }
  0x91   :  { %5781 = vmatprep.subr.bf16.mxu1 %v9423_v53 }
  0x92   :  { %5723 = vmatpush1.bf16.msra.mxu0 %v9633_v63  ;;  %12576 = vst [vmem:[#allocation76_spill] sm:$0xff] %v9649_v48  ;;  %12579 = vst [vmem:[#allocation79_spill] sm:$0xff] %v9660_v50 }
  0x93   :  { %5725 = vmatprep.subr.bf16.mxu0 %v9636_v45  ;;  %v374_v45 = vld [vmem:[#allocation2 + $0x3b0] sm:$0xff] }
  0x94   :  { %5783 = vmatpush1.bf16.msra.mxu1 %v9432_v62  ;;  %v9657_v63 = vpack.c.bf16 %v374_v45, %v368_v20  ;;  %v9668_v45 = vpack.c.bf16 %v399_v5, %v393_v60  ;;  %v392_v20 = vld [vmem:[#allocation2 + $0x440] sm:$0xff]  ;;  %v417_v60 = vld [vmem:[#allocation2 + $0x508] sm:$0xff]  ;;  %v423_v5 = vld [vmem:[#allocation2 + $0x538] sm:$0xff] }
  0x95   :  { %5785 = vmatprep.subr.bf16.mxu1 %v9435_v2 }
  0x96   :  { %5727 = vmatpush1.bf16.msra.mxu0 %v9641_v23  ;;  %12578 = vst [vmem:[#allocation78_spill] sm:$0xff] %v9657_v63  ;;  %12581 = vst [vmem:[#allocation81_spill] sm:$0xff] %v9668_v45 }
  0x97   :  { %5729 = vmatprep.subr.bf16.mxu0 %v9644_v43  ;;  %v386_v43 = vld [vmem:[#allocation2 + $0x410] sm:$0xff] }
  0x98   :  { %5787 = vmatpush1.bf16.msra.mxu1 %v9444_v18  ;;  %v9665_v23 = vpack.c.bf16 %v386_v43, %v380_v3  ;;  %v9676_v43 = vpack.c.bf16 %v411_v46, %v405_v57  ;;  %v404_v3 = vld [vmem:[#allocation2 + $0x4a0] sm:$0xff]  ;;  %v429_v57 = vld [vmem:[#allocation2 + $0x568] sm:$0xff]  ;;  %v435_v46 = vld [vmem:[#allocation2 + $0x598] sm:$0xff] }
  0x99   :  { %5789 = vmatprep.subr.bf16.mxu1 %v9447_v19 }
  0x9a   :  { %5731 = vmatpush1.bf16.msra.mxu0 %v9649_v48  ;;  %12580 = vst [vmem:[#allocation80_spill] sm:$0xff] %v9665_v23  ;;  %12583 = vst [vmem:[#allocation83_spill] sm:$0xff] %v9676_v43 }
  0x9b   :  { %5733 = vmatprep.subr.bf16.mxu0 %v9652_v13  ;;  %v398_v13 = vld [vmem:[#allocation2 + $0x470] sm:$0xff] }
  0x9c   :  { %5791 = vmatpush1.bf16.msra.mxu1 %v9456_v35  ;;  %v9673_v48 = vpack.c.bf16 %v398_v13, %v392_v20  ;;  %v9684_v13 = vpack.c.bf16 %v423_v5, %v417_v60  ;;  %v416_v20 = vld [vmem:[#allocation2 + $0x500] sm:$0xff]  ;;  %v441_v60 = vld [vmem:[#allocation2 + $0x5c8] sm:$0xff]  ;;  %v447_v5 = vld [vmem:[#allocation2 + $0x5f8] sm:$0xff] }
  0x9d   :  { %5793 = vmatprep.subr.bf16.mxu1 %v9459_v36 }
  0x9e   :  { %5735 = vmatpush1.bf16.msra.mxu0 %v9657_v63  ;;  %12582 = vst [vmem:[#allocation82_spill] sm:$0xff] %v9673_v48  ;;  %12585 = vst [vmem:[#allocation85_spill] sm:$0xff] %v9684_v13 }
  0x9f   :  { %5737 = vmatprep.subr.bf16.mxu0 %v9660_v50  ;;  %v410_v50 = vld [vmem:[#allocation2 + $0x4d0] sm:$0xff] }
  0xa0   :  { %5795 = vmatpush1.bf16.msra.mxu1 %v9468_v51  ;;  %v9681_v63 = vpack.c.bf16 %v410_v50, %v404_v3  ;;  %v9692_v50 = vpack.c.bf16 %v435_v46, %v429_v57  ;;  %v428_v3 = vld [vmem:[#allocation2 + $0x560] sm:$0xff]  ;;  %v12593_v46 = vld [vmem:[#allocation29_spill] sm:$0xff] }
  0xa1   :  { %5797 = vmatprep.subr.bf16.mxu1 %v9471_v54 }
  0xa2   :  { %5739 = vmatpush1.bf16.msra.mxu0 %v9665_v23  ;;  %12584 = vst [vmem:[#allocation84_spill] sm:$0xff] %v9681_v63  ;;  %12587 = vst [vmem:[#allocation87_spill] sm:$0xff] %v9692_v50 }
  0xa3   :  { %5741 = vmatprep.subr.bf16.mxu0 %v9668_v45  ;;  %v422_v45 = vld [vmem:[#allocation2 + $0x530] sm:$0xff] }
  0xa4   :  { %5799 = vmatpush1.bf16.msra.mxu1 %v9480_v10  ;;  %v9689_v23 = vpack.c.bf16 %v422_v45, %v416_v20  ;;  %v9700_v45 = vpack.c.bf16 %v447_v5, %v441_v60  ;;  %v440_v20 = vld [vmem:[#allocation2 + $0x5c0] sm:$0xff]  ;;  %v12595_v60 = vld [vmem:[#allocation33_spill] sm:$0xff]  ;;  %v12596_v5 = vld [vmem:[#allocation34_spill] sm:$0xff] }
  0xa5   :  { %5801 = vmatprep.subr.bf16.mxu1 %v9483_v12 }
  0xa6   :  { %5743 = vmatpush1.bf16.msra.mxu0 %v9673_v48  ;;  %12586 = vst [vmem:[#allocation86_spill] sm:$0xff] %v9689_v23  ;;  %12589 = vst [vmem:[#allocation89_spill] sm:$0xff] %v9700_v45 }
  0xa7   :  { %5745 = vmatprep.subr.bf16.mxu0 %v9676_v43  ;;  %v434_v43 = vld [vmem:[#allocation2 + $0x590] sm:$0xff] }
  0xa8   :  { %5803 = vmatpush1.bf16.msra.mxu1 %v9492_v34  ;;  %v9697_v48 = vpack.c.bf16 %v434_v43, %v428_v3  ;;  %v12591_v43 = vld [vmem:[#allocation25_spill] sm:$0xff]  ;;  %v12594_v3 = vld [vmem:[#allocation30_spill] sm:$0xff] }
  0xa9   :  { %5805 = vmatprep.subr.bf16.mxu1 %v9495_v38 }
  0xaa   :  { %5747 = vmatpush1.bf16.msra.mxu0 %v9681_v63  ;;  %12588 = vst [vmem:[#allocation88_spill] sm:$0xff] %v9697_v48 }
  0xab   :  { %5749 = vmatprep.subr.bf16.mxu0 %v9684_v13  ;;  %v446_v13 = vld [vmem:[#allocation2 + $0x5f0] sm:$0xff] }
  0xac   :  { %5807 = vmatpush1.bf16.msra.mxu1 %v9504_v61  ;;  %v9705_v57 = vpack.c.bf16 %v446_v13, %v440_v20  ;;  %v12592_v13 = vld [vmem:[#allocation26_spill] sm:$0xff]  ;;  %v12597_v20 = vld [vmem:[#allocation37_spill] sm:$0xff] }
  0xad   :  { %5809 = vmatprep.subr.bf16.mxu1 %v9507_v1 }
  0xae   :  { %5751 = vmatpush1.bf16.msra.mxu0 %v9689_v23  ;;  %12590 = vst [vmem:[#allocation90_spill] sm:$0xff] %v9705_v57 }
  0xaf   :  { %5753 = vmatprep.subr.bf16.mxu0 %v9692_v50 }
  0xb0   :  { %5811 = vmatpush1.bf16.msra.mxu1 %v9516_v31 }
  0xb1   :  { %5813 = vmatprep.subr.bf16.mxu1 %v9519_v39 }
  0xb2   :  { %5755 = vmatpush1.bf16.msra.mxu0 %v9697_v48 }
  0xb3   :  { %5757 = vmatprep.subr.bf16.mxu0 %v9700_v45 }
  0xb4   :  { %5815 = vmatpush1.bf16.msra.mxu1 %v9528_v6 }
  0xb5   :  { %5817 = vmatprep.subr.bf16.mxu1 %v9531_v15 }
  0xb6   :  { %5759 = vmatpush1.bf16.msra.mxu0 %v9705_v57 }
  0xb7   :  { %5825 = vmatprep.subr.bf16.mxu0 %v9400_v29 }
  0xb8   :  { %5819 = vmatpush1.bf16.msra.mxu1 %v9540_v47 }
  0xb9   :  { %655 = vmatmul.mubr.f32.vlgmr.msra.gmra.mrb[2].mxu0 %v12561_v42  ;;  %5821 = vmatprep.subr.bf16.mxu1 %v9543_v56  ;;  %v12598_v42 = vld [vmem:[#allocation38_spill] sm:$0xff] }
  0xba   :  { %5827 = vmatpush1.bf16.msra.mxu0 %v9402_v32 }
  0xbb   :  { %5829 = vmatprep.subr.bf16.mxu0 %v9412_v40 }
  0xbc   :  { %5823 = vmatpush1.bf16.msra.mxu1 %v9552_v26  ;;  %v68_v26 = vld [vmem:[#allocation6 + $0x10] sm:$0xff] }
  0xbd   :  { %5889 = vmatprep.subr.bf16.mxu1 %v9555_v28 }
  0xbe   :  { %5831 = vmatpush1.bf16.msra.mxu0 %v9414_v44 }
  0xbf   :  { %5833 = vmatprep.subr.bf16.mxu0 %v9420_v52 }
  0xc2   :  { %5835 = vmatpush1.bf16.msra.mxu0 %v9426_v55 }
  0xc3   :  { %5837 = vmatprep.subr.bf16.mxu0 %v9429_v59 }
  0xc6   :  { %5839 = vmatpush1.bf16.msra.mxu0 %v9438_v7 }
  0xc7   :  { %5841 = vmatprep.subr.bf16.mxu0 %v9441_v11  ;;  %v12599_v11 = vld [vmem:[#allocation41_spill] sm:$0xff] }
  0xca   :  { %5843 = vmatpush1.bf16.msra.mxu0 %v9450_v25  ;;  %v12600_v25 = vld [vmem:[#allocation42_spill] sm:$0xff] }
  0xcb   :  { %5845 = vmatprep.subr.bf16.mxu0 %v9453_v27  ;;  %v12601_v27 = vld [vmem:[#allocation45_spill] sm:$0xff] }
  0xce   :  { %5847 = vmatpush1.bf16.msra.mxu0 %v12591_v43  ;;  %v12602_v43 = vld [vmem:[#allocation46_spill] sm:$0xff] }
  0xcf   :  { %5849 = vmatprep.subr.bf16.mxu0 %v12592_v13  ;;  %v12603_v13 = vld [vmem:[#allocation49_spill] sm:$0xff] }
  0xd2   :  { %5851 = vmatpush1.bf16.msra.mxu0 %v12593_v46  ;;  %v12604_v46 = vld [vmem:[#allocation50_spill] sm:$0xff] }
  0xd3   :  { %5853 = vmatprep.subr.bf16.mxu0 %v12594_v3  ;;  %v12605_v3 = vld [vmem:[#allocation53_spill] sm:$0xff] }
  0xd6   :  { %5855 = vmatpush1.bf16.msra.mxu0 %v12595_v60  ;;  %v12606_v60 = vld [vmem:[#allocation54_spill] sm:$0xff] }
  0xd7   :  { %5857 = vmatprep.subr.bf16.mxu0 %v12596_v5 }
  0xda   :  { %5859 = vmatpush1.bf16.msra.mxu0 %v12597_v20  ;;  %v12607_v20 = vld [vmem:[#allocation58_spill] sm:$0xff] }
  0xdb   :  { %5861 = vmatprep.subr.bf16.mxu0 %v12598_v42 }
  0xde   :  { %5863 = vmatpush1.bf16.msra.mxu0 %v12599_v11 }
  0xdf   :  { %5865 = vmatprep.subr.bf16.mxu0 %v12600_v25 }
  0xe2   :  { %5867 = vmatpush1.bf16.msra.mxu0 %v12601_v27 }
  0xe3   :  { %5869 = vmatprep.subr.bf16.mxu0 %v12602_v43  ;;  %v112_v43 = vlaneseq }
  0xe6   :  { %5871 = vmatpush1.bf16.msra.mxu0 %v12603_v13  ;;  %v9751_v13 = vshrl.u32 %v112_v43, 7 }
  0xe7   :  { %5873 = vmatprep.subr.bf16.mxu0 %v12604_v46  ;;  %v9753_v46 = vpop.permute.xlu0 %109 }
  0xe8   :  { %12608 = vst [vmem:[#allocation91_spill] sm:$0xff] %v9751_v13  ;;  %12609 = vst [vmem:[#allocation92_spill] sm:$0xff] %v9753_v46  ;;  %v9786_v29 = vsub.s32 2, %v9751_v13 }
  0xea   :  { %5875 = vmatpush1.bf16.msra.mxu0 %v12605_v3  ;;  %v9756_v3 = vsub.s32 3, %v9751_v13  ;;  %12615 = vst [vmem:[#allocation98_spill] sm:$0xff] %v9786_v29 }
  0xeb   :  { %5877 = vmatprep.subr.bf16.mxu0 %v12606_v60  ;;  %v66_v60 = vld [vmem:[#allocation6] sm:$0xff] }
  0xee   :  { %5879 = vmatpush1.bf16.msra.mxu0 %v9558_v30  ;;  %v9759_v30 = vrot.slane %v66_v60, %v9756_v3 }
  0xef   :  { %5881 = vmatprep.subr.bf16.mxu0 %v12607_v20 }
  0xf0   :  { %12610 = vst [vmem:[#allocation93_spill] sm:$0xff] %v9759_v30 }
  0xf2   :  { %5883 = vmatpush1.bf16.msra.mxu0 %v9573_v22  ;;  %v9762_v22 = vsub.s32 0, %v9751_v13 }
  0xf3   :  { %5885 = vmatprep.subr.bf16.mxu0 %v9576_v17  ;;  %v9764_v17 = vld [vmem:[#allocation6 + $0x8] sm:$0xff] }
  0xf4   :  { %v9770_v43 = vrot.slane %v9764_v17, %v9756_v3  ;;  %v9775_v20 = vrot.slane %v66_v60, %v9762_v22  ;;  %v9781_v25 = vrot.slane %v9764_v17, %v9762_v22 }
  0xf6   :  { %5887 = vmatpush1.bf16.msra.mxu0 %v9590_v0  ;;  %v9766_v0 = vpop.permute.xlu0 %74  ;;  %12612 = vst [vmem:[#allocation95_spill] sm:$0xff] %v9770_v43  ;;  %12613 = vst [vmem:[#allocation96_spill] sm:$0xff] %v9775_v20 }
  0xf7   :  { %5953 = vmatprep.subr.bf16.mxu0 %v9381_v4  ;;  %12611 = vst [vmem:[#allocation94_spill] sm:$0xff] %v9766_v0  ;;  %v136_v4 = vmul.f32 %v9759_v30, %v9766_v0  ;;  %v137_v27 = vmul.f32 %v9770_v43, %v9766_v0  ;;  %12614 = vst [vmem:[#allocation97_spill] sm:$0xff] %v9781_v25  ;;  %v69_v43 = vld [vmem:[#allocation6 + $0x18] sm:$0xff] }
  0xf9   :  { %v208_v11 = vadd.f32 %v9775_v20, %v136_v4  ;;  %v209_v5 = vadd.f32 %v9781_v25, %v137_v27  ;;  %v9789_v4 = vrot.slane %v69_v43, %v9756_v3  ;;  %v9805_v27 = vrot.slane %v68_v26, %v9762_v22 }
  0xfb   :  { %12616 = vst [vmem:[#allocation99_spill] sm:$0xff] %v9789_v4 }
 0x14c   :  { %v514_v42 = vpop.f32.mrb[0].mxu0 }
 0x14d   :  { %v661_v7 = vadd.f32 %v514_v42, %v208_v11  ;;  %v516_v59 = vpop.f32.mrb[1].mxu0  ;;  %v9792_v11 = vrot.slane %v68_v26, %v9756_v3 }
 0x14e   :  { %v668_v52 = vadd.f32 %v516_v59, %v209_v5  ;;  %v181_v59 = vmul.f32 %v9789_v4, %v9753_v46 }
 0x14f   :  { %v5466_v55 = vmul.f32 -1.442695, %v661_v7  ;;  %12617 = vst [vmem:[#allocation100_spill] sm:$0xff] %v9792_v11  ;;  %v138_v7 = vmul.f32 %v9792_v11, %v9766_v0  ;;  %v64_v0 = vld [vmem:[%s11980_s0 + $0x30] sm:$0xff] }
 0x150   :  { %v5467_v30 = vmul.f32 -1.442695, %v668_v52  ;;  %104 = vperm.xlu1 %8906, %v64_v0   ;;  %v61_v0 = vld [vmem:[%s11980_s0 + $0x18] sm:$0xff] }
 0x151   :  { %8907 = vpow2.f32 %v5466_v55  ;;  %v9795_v55 = vrot.slane %v66_v60, %v9786_v29  ;;  %v210_v60 = vadd.f32 %v9805_v27, %v138_v7 }
 0x152   :  { %v585_v44 = vpop.f32.mrb[0].mxu1  ;;  %8909 = vpow2.f32 %v5467_v30 }
 0x153   :  { %v587_v40 = vpop.f32.mrb[1].mxu1  ;;  %12618 = vst [vmem:[#allocation101_spill] sm:$0xff] %v9795_v55  ;;  %v679_v30 = vadd.f32 %v9795_v55, %v585_v44  ;;  %v59_v44 = vld [vmem:[%s11980_s0 + $0x8] sm:$0xff] }
 0x154   :  { %79 = vperm.xlu1 %8906, %v59_v44  }
 0x15b   :  { %v8908_v32 = vpop.eup %8907 }
 0x15c   :  { %v665_v28 = vadd.f32 1.0, %v8908_v32  ;;  %v8910_v52 = vpop.eup %8909  ;;  %v9800_v32 = vrot.slane %v69_v43, %v9762_v22 }
 0x15d   :  { %v672_v42 = vadd.f32 1.0, %v8910_v52 }
 0x15e   :  { %8911 = vrcp.f32 %v665_v28  ;;  %v253_v28 = vadd.f32 %v9800_v32, %v181_v59 }
 0x15f   :  { %8913 = vrcp.f32 %v672_v42 }
 0x160   :  { %v687_v4 = vadd.f32 %v587_v40, %v253_v28  ;;  %v60_v40 = vld [vmem:[%s11980_s0 + $0x10] sm:$0xff] }
 0x161   :  { %84 = vperm.xlu1 %8906, %v60_v40  }
 0x162   :  { %v5468_v43 = vmul.f32 -1.442695, %v687_v4 }
 0x165   :  { %89 = vperm.xlu1 %8906, %v61_v0   ;;  %v71_v0 = vld [vmem:[#allocation6 + $0x28] sm:$0xff] }
 0x168   :  { %v8912_v5 = vpop.eup %8911 }
 0x169   :  { %v680_v13 = vmul.f32 %v8912_v5, %v679_v30  ;;  %v8914_v26 = vpop.eup %8913  ;;  %v70_v30 = vld [vmem:[#allocation6 + $0x20] sm:$0xff] }
 0x16a   :  { %v683_v52 = vsub.f32 1.0, %v8914_v26  ;;  %v9825_v28 = vrot.slane %v70_v30, %v9756_v3  ;;  %v9830_v5 = vrot.slane %v70_v30, %v9762_v22 }
 0x16b   :  { %v681_v25 = vadd.f32 %v680_v13, %v210_v60 }
 0x16c   :  { %v182_v60 = vmul.f32 %v9825_v28, %v9753_v46 }
 0x16d   :  { %8915 = vtanh.f32 %v681_v25  ;;  %v685_v25 = vmul.f32 0.0, %v8914_v26 }
 0x16e   :  { %8917 = vpow2.f32 %v5468_v43  ;;  %v9834_v43 = vrot.slane %v9764_v17, %v9786_v29  ;;  %v254_v44 = vadd.f32 %v9830_v5, %v182_v60  ;;  %v9844_v17 = vrot.slane %v71_v0, %v9762_v22  ;;  %v12622_v22 = vld [vmem:[#allocation62_spill] sm:$0xff] }
 0x177   :  { %v8916_v13 = vpop.eup %8915 }
 0x178   :  { %v684_v4 = vmul.f32 %v8916_v13, %v683_v52  ;;  %v8918_v7 = vpop.eup %8917 }
 0x179   :  { %v691_v42 = vadd.f32 1.0, %v8918_v7 }
 0x17a   :  { %v9819_v59 = vadd.f32 %v685_v25, %v684_v4 }
 0x17b   :  { %8919 = vrcp.f32 %v691_v42  ;;  %v9839_v42 = vrot.slane %v71_v0, %v9756_v3  ;;  %v12623_v0 = vld [vmem:[#allocation64_spill] sm:$0xff] }
 0x17c   :  { %12619 = vst [vmem:[#allocation102_spill] sm:$0xff] %v9819_v59 }
 0x17d   :  { %v183_v30 = vmul.f32 %v9839_v42, %v9753_v46  ;;  %v12634_v46 = vld [vmem:[#allocation75_spill] sm:$0xff] }
 0x17f   :  { %v255_v60 = vadd.f32 %v9844_v17, %v183_v30  ;;  %v12625_v30 = vld [vmem:[#allocation66_spill] sm:$0xff] }
 0x185   :  { %v8920_v52 = vpop.eup %8919 }
 0x18c   :  { %v656_v26 = vpop.f32.mrb[2].mxu0 }
 0x18d   :  { %v694_v40 = vadd.f32 %v656_v26, %v254_v44  ;;  %v658_v13 = vpop.f32.mrb[3].mxu0 }
 0x18e   :  { %v705_v25 = vadd.f32 %v9834_v43, %v658_v13 }
 0x18f   :  { %v5469_v4 = vmul.f32 -1.442695, %v694_v40 }
 0x190   :  { %v706_v7 = vmul.f32 %v8920_v52, %v705_v25 }
 0x191   :  { %8921 = vpow2.f32 %v5469_v4 }
 0x192   :  { %v707_v26 = vadd.f32 %v706_v7, %v255_v60  ;;  %v12624_v7 = vld [vmem:[#allocation65_spill] sm:$0xff]  ;;  %v12626_v60 = vld [vmem:[#allocation67_spill] sm:$0xff] }
 0x19b   :  { %v8922_v29 = vpop.eup %8921 }
 0x19c   :  { %v698_v44 = vadd.f32 1.0, %v8922_v29  ;;  %v12621_v29 = vld [vmem:[#allocation59_spill] sm:$0xff] }
 0x19e   :  { %8923 = vrcp.f32 %v698_v44  ;;  %v12627_v44 = vld [vmem:[#allocation68_spill] sm:$0xff] }
 0x19f   :  { %8925 = vtanh.f32 %v707_v26  ;;  %v12628_v26 = vld [vmem:[#allocation69_spill] sm:$0xff] }
 0x1a8   :  { %v8924_v40 = vpop.eup %8923 }
 0x1a9   :  { %v709_v13 = vsub.f32 1.0, %v8924_v40  ;;  %v8926_v52 = vpop.eup %8925  ;;  %v711_v25 = vmul.f32 0.0, %v8924_v40  ;;  %v12629_v40 = vld [vmem:[#allocation70_spill] sm:$0xff] }
 0x1ab   :  { %v710_v4 = vmul.f32 %v8926_v52, %v709_v13  ;;  %v12630_v13 = vld [vmem:[#allocation71_spill] sm:$0xff]  ;;  %v12631_v52 = vld [vmem:[#allocation72_spill] sm:$0xff] }
 0x1ad   :  { %v9847_v3 = vadd.f32 %v711_v25, %v710_v4  ;;  %v12632_v25 = vld [vmem:[#allocation73_spill] sm:$0xff]  ;;  %v12633_v4 = vld [vmem:[#allocation74_spill] sm:$0xff] }
 0x1af   :  { %12620 = vst [vmem:[#allocation103_spill] sm:$0xff] %v9847_v3  ;;  %777 = vmatprep.mubr.f32.mxu1 %v9847_v3  ;;  %848 = vmatprep.mubr.f32.mxu0 %v9847_v3 }
 0x1b0   :  { %778 = vmatmul.mubr.f32.vlgmr.msra.gmra.mrb[2].mxu1 %v9819_v59  ;;  %849 = vmatmul.mubr.f32.vlgmr.msra.gmra.mrb[4].mxu0 %v9819_v59 }
 0x1b1   :  { %5891 = vmatpush1.bf16.msra.mxu1 %v9564_v58  ;;  %919 = vmatprep.mubr.f32.mxu1 %v9847_v3 }
 0x1b2   :  { %5893 = vmatprep.subr.bf16.mxu1 %v12621_v29  ;;  %5955 = vmatpush1.bf16.msra.mxu0 %v9383_v8 }
 0x1b3   :  { %5957 = vmatprep.subr.bf16.mxu0 %v9385_v9 }
 0x1b5   :  { %5895 = vmatpush1.bf16.msra.mxu1 %v9583_v41 }
 0x1b6   :  { %5897 = vmatprep.subr.bf16.mxu1 %v12622_v22  ;;  %5959 = vmatpush1.bf16.msra.mxu0 %v9389_v14 }
 0x1b7   :  { %5961 = vmatprep.subr.bf16.mxu0 %v9392_v16 }
 0x1b9   :  { %5899 = vmatpush1.bf16.msra.mxu1 %v12623_v0 }
 0x1ba   :  { %5901 = vmatprep.subr.bf16.mxu1 %v12624_v7  ;;  %5963 = vmatpush1.bf16.msra.mxu0 %v9395_v21 }
 0x1bb   :  { %5965 = vmatprep.subr.bf16.mxu0 %v9398_v24 }
 0x1bd   :  { %5903 = vmatpush1.bf16.msra.mxu1 %v12625_v30 }
 0x1be   :  { %5905 = vmatprep.subr.bf16.mxu1 %v12626_v60  ;;  %5967 = vmatpush1.bf16.msra.mxu0 %v9405_v33 }
 0x1bf   :  { %5969 = vmatprep.subr.bf16.mxu0 %v9409_v37 }
 0x1c1   :  { %5907 = vmatpush1.bf16.msra.mxu1 %v12627_v44 }
 0x1c2   :  { %5909 = vmatprep.subr.bf16.mxu1 %v12628_v26  ;;  %5971 = vmatpush1.bf16.msra.mxu0 %v9418_v49 }
 0x1c3   :  { %5973 = vmatprep.subr.bf16.mxu0 %v9423_v53 }
 0x1c5   :  { %5911 = vmatpush1.bf16.msra.mxu1 %v12629_v40 }
 0x1c6   :  { %5913 = vmatprep.subr.bf16.mxu1 %v12630_v13  ;;  %5975 = vmatpush1.bf16.msra.mxu0 %v9432_v62  ;;  %v12635_v13 = vld [vmem:[#allocation76_spill] sm:$0xff]  ;;  %v12636_v62 = vld [vmem:[#allocation77_spill] sm:$0xff] }
 0x1c7   :  { %5977 = vmatprep.subr.bf16.mxu0 %v9435_v2 }
 0x1c9   :  { %5915 = vmatpush1.bf16.msra.mxu1 %v12631_v52 }
 0x1ca   :  { %5917 = vmatprep.subr.bf16.mxu1 %v12632_v25  ;;  %5979 = vmatpush1.bf16.msra.mxu0 %v9444_v18  ;;  %v12637_v25 = vld [vmem:[#allocation78_spill] sm:$0xff]  ;;  %v12638_v18 = vld [vmem:[#allocation79_spill] sm:$0xff] }
 0x1cb   :  { %5981 = vmatprep.subr.bf16.mxu0 %v9447_v19 }
 0x1cd   :  { %5919 = vmatpush1.bf16.msra.mxu1 %v12633_v4 }
 0x1ce   :  { %5921 = vmatprep.subr.bf16.mxu1 %v12634_v46  ;;  %5983 = vmatpush1.bf16.msra.mxu0 %v9456_v35  ;;  %v12639_v46 = vld [vmem:[#allocation80_spill] sm:$0xff]  ;;  %v12640_v35 = vld [vmem:[#allocation81_spill] sm:$0xff] }
 0x1cf   :  { %5985 = vmatprep.subr.bf16.mxu0 %v9459_v36 }
 0x1d1   :  { %5923 = vmatpush1.bf16.msra.mxu1 %v12635_v13 }
 0x1d2   :  { %5925 = vmatprep.subr.bf16.mxu1 %v12636_v62  ;;  %5987 = vmatpush1.bf16.msra.mxu0 %v9468_v51  ;;  %v12641_v62 = vld [vmem:[#allocation82_spill] sm:$0xff]  ;;  %v12642_v51 = vld [vmem:[#allocation83_spill] sm:$0xff] }
 0x1d3   :  { %5989 = vmatprep.subr.bf16.mxu0 %v9471_v54 }
 0x1d5   :  { %5927 = vmatpush1.bf16.msra.mxu1 %v12637_v25 }
 0x1d6   :  { %5929 = vmatprep.subr.bf16.mxu1 %v12638_v18  ;;  %5991 = vmatpush1.bf16.msra.mxu0 %v9480_v10  ;;  %v12643_v10 = vld [vmem:[#allocation85_spill] sm:$0xff] }
 0x1d7   :  { %5993 = vmatprep.subr.bf16.mxu0 %v9483_v12 }
 0x1d9   :  { %5931 = vmatpush1.bf16.msra.mxu1 %v12639_v46 }
 0x1da   :  { %5933 = vmatprep.subr.bf16.mxu1 %v12640_v35  ;;  %5995 = vmatpush1.bf16.msra.mxu0 %v9492_v34 }
 0x1db   :  { %5997 = vmatprep.subr.bf16.mxu0 %v9495_v38 }
 0x1dd   :  { %5935 = vmatpush1.bf16.msra.mxu1 %v12641_v62 }
 0x1de   :  { %5937 = vmatprep.subr.bf16.mxu1 %v12642_v51  ;;  %5999 = vmatpush1.bf16.msra.mxu0 %v9504_v61 }
 0x1df   :  { %6001 = vmatprep.subr.bf16.mxu0 %v9507_v1 }
 0x1e1   :  { %5939 = vmatpush1.bf16.msra.mxu1 %v9681_v63  ;;  %v12683_v63 = vld [vmem:[#allocation97_spill] sm:$0xff] }
 0x1e2   :  { %5941 = vmatprep.subr.bf16.mxu1 %v12643_v10  ;;  %6003 = vmatpush1.bf16.msra.mxu0 %v9516_v31  ;;  %v12644_v31 = vld [vmem:[#allocation10_spill] sm:$0xff] }
 0x1e3   :  { %6005 = vmatprep.subr.bf16.mxu0 %v9519_v39  ;;  %v12645_v39 = vld [vmem:[#allocation55_spill] sm:$0xff] }
 0x1e5   :  { %5943 = vmatpush1.bf16.msra.mxu1 %v9689_v23  ;;  %v12646_v23 = vld [vmem:[#allocation56_spill] sm:$0xff] }
 0x1e6   :  { %5945 = vmatprep.subr.bf16.mxu1 %v9692_v50  ;;  %6007 = vmatpush1.bf16.msra.mxu0 %v9528_v6  ;;  %v12647_v6 = vld [vmem:[#allocation11_spill] sm:$0xff]  ;;  %v12657_v50 = vld [vmem:[#allocation25_spill] sm:$0xff] }
 0x1e7   :  { %6009 = vmatprep.subr.bf16.mxu0 %v9531_v15  ;;  %v12648_v15 = vld [vmem:[#allocation12_spill] sm:$0xff] }
 0x1e9   :  { %5947 = vmatpush1.bf16.msra.mxu1 %v9697_v48  ;;  %v12649_v48 = vld [vmem:[#allocation13_spill] sm:$0xff] }
 0x1ea   :  { %5949 = vmatprep.subr.bf16.mxu1 %v9700_v45  ;;  %6011 = vmatpush1.bf16.msra.mxu0 %v9540_v47  ;;  %v12650_v45 = vld [vmem:[#allocation14_spill] sm:$0xff]  ;;  %v12651_v47 = vld [vmem:[#allocation15_spill] sm:$0xff] }
 0x1eb   :  { %6013 = vmatprep.subr.bf16.mxu0 %v9543_v56  ;;  %v12652_v56 = vld [vmem:[#allocation16_spill] sm:$0xff] }
 0x1ed   :  { %5951 = vmatpush1.bf16.msra.mxu1 %v9705_v57  ;;  %v12653_v57 = vld [vmem:[#allocation18_spill] sm:$0xff] }
 0x1ee   :  { %6017 = vmatprep.subr.bf16.mxu1 %v12644_v31  ;;  %6015 = vmatpush1.bf16.msra.mxu0 %v12645_v39  ;;  %v12654_v31 = vld [vmem:[#allocation19_spill] sm:$0xff]  ;;  %v12655_v39 = vld [vmem:[#allocation21_spill] sm:$0xff] }
 0x1ef   :  { %6081 = vmatprep.subr.bf16.mxu0 %v12646_v23  ;;  %v12656_v23 = vld [vmem:[#allocation22_spill] sm:$0xff] }
 0x1f0   :  { %920 = vmatmul.mubr.f32.vlgmr.msra.gmra.mrb[4].mxu1 %v9819_v59 }
 0x1f1   :  { %6019 = vmatpush1.bf16.msra.mxu1 %v12647_v6  ;;  %v12658_v6 = vld [vmem:[#allocation26_spill] sm:$0xff] }
 0x1f2   :  { %6021 = vmatprep.subr.bf16.mxu1 %v12648_v15  ;;  %v12659_v15 = vld [vmem:[#allocation29_spill] sm:$0xff] }
 0x1f5   :  { %6023 = vmatpush1.bf16.msra.mxu1 %v12649_v48  ;;  %v12660_v48 = vld [vmem:[#allocation30_spill] sm:$0xff] }
 0x1f6   :  { %6025 = vmatprep.subr.bf16.mxu1 %v12650_v45  ;;  %v12661_v45 = vld [vmem:[#allocation33_spill] sm:$0xff] }
 0x1f9   :  { %6027 = vmatpush1.bf16.msra.mxu1 %v12651_v47  ;;  %v12662_v47 = vld [vmem:[#allocation34_spill] sm:$0xff] }
 0x1fa   :  { %6029 = vmatprep.subr.bf16.mxu1 %v12652_v56  ;;  %v12663_v56 = vld [vmem:[#allocation37_spill] sm:$0xff] }
 0x1fd   :  { %6031 = vmatpush1.bf16.msra.mxu1 %v12653_v57  ;;  %v12664_v57 = vld [vmem:[#allocation38_spill] sm:$0xff] }
 0x1fe   :  { %6033 = vmatprep.subr.bf16.mxu1 %v12654_v31  ;;  %v12665_v31 = vld [vmem:[#allocation41_spill] sm:$0xff] }
 0x201   :  { %6035 = vmatpush1.bf16.msra.mxu1 %v12655_v39  ;;  %v12666_v39 = vld [vmem:[#allocation42_spill] sm:$0xff] }
 0x202   :  { %6037 = vmatprep.subr.bf16.mxu1 %v12656_v23  ;;  %v12667_v23 = vld [vmem:[#allocation45_spill] sm:$0xff] }
 0x205   :  { %6039 = vmatpush1.bf16.msra.mxu1 %v12657_v50  ;;  %v12668_v50 = vld [vmem:[#allocation46_spill] sm:$0xff] }
 0x206   :  { %6041 = vmatprep.subr.bf16.mxu1 %v12658_v6  ;;  %v12669_v6 = vld [vmem:[#allocation49_spill] sm:$0xff] }
 0x209   :  { %6043 = vmatpush1.bf16.msra.mxu1 %v12659_v15  ;;  %v12670_v15 = vld [vmem:[#allocation50_spill] sm:$0xff] }
 0x20a   :  { %6045 = vmatprep.subr.bf16.mxu1 %v12660_v48  ;;  %v12671_v48 = vld [vmem:[#allocation53_spill] sm:$0xff] }
 0x20d   :  { %6047 = vmatpush1.bf16.msra.mxu1 %v12661_v45  ;;  %v12672_v45 = vld [vmem:[#allocation54_spill] sm:$0xff] }
 0x20e   :  { %6049 = vmatprep.subr.bf16.mxu1 %v12662_v47  ;;  %v12673_v47 = vld [vmem:[#allocation57_spill] sm:$0xff] }
 0x211   :  { %6051 = vmatpush1.bf16.msra.mxu1 %v12663_v56  ;;  %v12674_v56 = vld [vmem:[#allocation58_spill] sm:$0xff] }
 0x212   :  { %6053 = vmatprep.subr.bf16.mxu1 %v12664_v57  ;;  %v12675_v57 = vld [vmem:[#allocation60_spill] sm:$0xff] }
 0x215   :  { %6055 = vmatpush1.bf16.msra.mxu1 %v12665_v31  ;;  %v12676_v31 = vld [vmem:[#allocation61_spill] sm:$0xff] }
 0x216   :  { %6057 = vmatprep.subr.bf16.mxu1 %v12666_v39  ;;  %v12677_v39 = vld [vmem:[#allocation63_spill] sm:$0xff] }
 0x219   :  { %6059 = vmatpush1.bf16.msra.mxu1 %v12667_v23  ;;  %v12678_v23 = vld [vmem:[#allocation9_spill] sm:$0xff] }
 0x21a   :  { %6061 = vmatprep.subr.bf16.mxu1 %v12668_v50  ;;  %v9951_v50 = vpop.permute.xlu1 %104 }
 0x21b   :  { %12679 = vst [vmem:[#allocation59_spill] sm:$0xff] %v9951_v50 }
 0x21d   :  { %6063 = vmatpush1.bf16.msra.mxu1 %v12669_v6 }
 0x21e   :  { %6065 = vmatprep.subr.bf16.mxu1 %v12670_v15  ;;  %v9953_v6 = vpop.permute.xlu1 %79 }
 0x21f   :  { %12680 = vst [vmem:[#allocation62_spill] sm:$0xff] %v9953_v6 }
 0x221   :  { %6067 = vmatpush1.bf16.msra.mxu1 %v12671_v48  ;;  %v12681_v48 = vld [vmem:[#allocation93_spill] sm:$0xff] }
 0x222   :  { %6069 = vmatprep.subr.bf16.mxu1 %v12672_v45  ;;  %v142_v15 = vmul.f32 %v12681_v48, %v9953_v6  ;;  %v12682_v45 = vld [vmem:[#allocation95_spill] sm:$0xff] }
 0x225   :  { %6071 = vmatpush1.bf16.msra.mxu1 %v12673_v47  ;;  %v143_v47 = vmul.f32 %v12682_v45, %v9953_v6  ;;  %v144_v45 = vmul.f32 %v9792_v11, %v9953_v6 }
 0x226   :  { %6073 = vmatprep.subr.bf16.mxu1 %v12674_v56  ;;  %v214_v56 = vadd.f32 %v9775_v20, %v142_v15  ;;  %v12684_v15 = vld [vmem:[#allocation99_spill] sm:$0xff] }
 0x227   :  { %v175_v20 = vmul.f32 %v12684_v15, %v9951_v50 }
 0x229   :  { %6075 = vmatpush1.bf16.msra.mxu1 %v12675_v57 }
 0x22a   :  { %6077 = vmatprep.subr.bf16.mxu1 %v12676_v31  ;;  %v215_v31 = vadd.f32 %v12683_v63, %v143_v47 }
 0x22d   :  { %6079 = vmatpush1.bf16.msra.mxu1 %v12677_v39 }
 0x22e   :  { %6145 = vmatprep.subr.bf16.mxu1 %v12678_v23 }
 0x283   :  { %v779_v10 = vpop.f32.mrb[2].mxu1  ;;  %v850_v57 = vpop.f32.mrb[4].mxu0 }
 0x284   :  { %v926_v1 = vadd.f32 %v779_v10, %v214_v56  ;;  %v781_v39 = vpop.f32.mrb[3].mxu1  ;;  %v852_v61 = vpop.f32.mrb[5].mxu0  ;;  %v216_v10 = vadd.f32 %v9805_v27, %v144_v45  ;;  %v940_v47 = vadd.f32 %v850_v57, %v9795_v55 }
 0x285   :  { %v933_v51 = vadd.f32 %v781_v39, %v215_v31  ;;  %v247_v31 = vadd.f32 %v9800_v32, %v175_v20  ;;  %v176_v20 = vmul.f32 %v9825_v28, %v9951_v50 }
 0x286   :  { %v5470_v23 = vmul.f32 -1.442695, %v926_v1 }
 0x287   :  { %v5471_v62 = vmul.f32 -1.442695, %v933_v51 }
 0x288   :  { %8927 = vpow2.f32 %v5470_v23 }
 0x289   :  { %8929 = vpow2.f32 %v5471_v62 }
 0x292   :  { %v8928_v38 = vpop.eup %8927 }
 0x293   :  { %v930_v34 = vadd.f32 1.0, %v8928_v38  ;;  %v8930_v48 = vpop.eup %8929  ;;  %v948_v38 = vadd.f32 %v852_v61, %v247_v31 }
 0x294   :  { %v937_v35 = vadd.f32 1.0, %v8930_v48 }
 0x295   :  { %8931 = vrcp.f32 %v930_v34  ;;  %v5472_v34 = vmul.f32 -1.442695, %v948_v38 }
 0x296   :  { %8933 = vrcp.f32 %v937_v35  ;;  %v248_v35 = vadd.f32 %v9830_v5, %v176_v20 }
 0x29f   :  { %v8932_v1 = vpop.eup %8931 }
 0x2a0   :  { %v941_v51 = vmul.f32 %v8932_v1, %v940_v47  ;;  %v8934_v39 = vpop.eup %8933 }
 0x2a1   :  { %v944_v56 = vsub.f32 1.0, %v8934_v39  ;;  %v946_v48 = vmul.f32 %v8934_v39, %v9819_v59  ;;  %v12705_v59 = vld [vmem:[#allocation43_spill] sm:$0xff] }
 0x2a2   :  { %v942_v62 = vadd.f32 %v941_v51, %v216_v10 }
 0x2a4   :  { %8935 = vtanh.f32 %v942_v62 }
 0x2a5   :  { %8937 = vpow2.f32 %v5472_v34 }
 0x2ae   :  { %v8936_v23 = vpop.eup %8935 }
 0x2af   :  { %v945_v6 = vmul.f32 %v8936_v23, %v944_v56  ;;  %v8938_v45 = vpop.eup %8937 }
 0x2b0   :  { %v952_v57 = vadd.f32 1.0, %v8938_v45 }
 0x2b1   :  { %v9969_v15 = vadd.f32 %v946_v48, %v945_v6  ;;  %v177_v6 = vmul.f32 %v9839_v42, %v9951_v50  ;;  %v12706_v50 = vld [vmem:[#allocation44_spill] sm:$0xff] }
 0x2b2   :  { %8939 = vrcp.f32 %v952_v57 }
 0x2b3   :  { %12685 = vst [vmem:[#allocation64_spill] sm:$0xff] %v9969_v15  ;;  %v249_v38 = vadd.f32 %v9844_v17, %v177_v6  ;;  %v12694_v6 = vld [vmem:[#allocation27_spill] sm:$0xff] }
 0x2bc   :  { %v8940_v31 = vpop.eup %8939 }
 0x2c3   :  { %v921_v61 = vpop.f32.mrb[4].mxu1 }
 0x2c4   :  { %v955_v10 = vadd.f32 %v921_v61, %v248_v35  ;;  %v923_v47 = vpop.f32.mrb[5].mxu1  ;;  %v12687_v61 = vld [vmem:[#allocation71_spill] sm:$0xff] }
 0x2c5   :  { %v962_v1 = vadd.f32 %v923_v47, %v9834_v43  ;;  %v12689_v47 = vld [vmem:[#allocation73_spill] sm:$0xff] }
 0x2c6   :  { %v5473_v51 = vmul.f32 -1.442695, %v955_v10  ;;  %v12688_v10 = vld [vmem:[#allocation17_spill] sm:$0xff] }
 0x2c7   :  { %v963_v62 = vmul.f32 %v8940_v31, %v962_v1  ;;  %v12690_v1 = vld [vmem:[#allocation20_spill] sm:$0xff]  ;;  %v12691_v31 = vld [vmem:[#allocation75_spill] sm:$0xff] }
 0x2c8   :  { %8941 = vpow2.f32 %v5473_v51  ;;  %v12692_v51 = vld [vmem:[#allocation23_spill] sm:$0xff] }
 0x2c9   :  { %v964_v56 = vadd.f32 %v963_v62, %v249_v38  ;;  %v12693_v62 = vld [vmem:[#allocation77_spill] sm:$0xff]  ;;  %v12695_v38 = vld [vmem:[#allocation31_spill] sm:$0xff] }
 0x2d2   :  { %v8942_v34 = vpop.eup %8941 }
 0x2d3   :  { %v959_v39 = vadd.f32 1.0, %v8942_v34  ;;  %v12696_v34 = vld [vmem:[#allocation81_spill] sm:$0xff] }
 0x2d5   :  { %8943 = vrcp.f32 %v959_v39  ;;  %v12697_v39 = vld [vmem:[#allocation35_spill] sm:$0xff] }
 0x2d6   :  { %8945 = vtanh.f32 %v964_v56  ;;  %v12698_v56 = vld [vmem:[#allocation36_spill] sm:$0xff] }
 0x2df   :  { %v8944_v23 = vpop.eup %8943 }
 0x2e0   :  { %v966_v48 = vsub.f32 1.0, %v8944_v23  ;;  %v8946_v45 = vpop.eup %8945  ;;  %v968_v57 = vmul.f32 %v8944_v23, %v9847_v3  ;;  %v12699_v23 = vld [vmem:[#allocation82_spill] sm:$0xff]  ;;  %v12704_v3 = vld [vmem:[#allocation85_spill] sm:$0xff] }
 0x2e2   :  { %v967_v20 = vmul.f32 %v8946_v45, %v966_v48  ;;  %v12700_v48 = vld [vmem:[#allocation83_spill] sm:$0xff] }
 0x2e3   :  { %v12701_v45 = vld [vmem:[#allocation39_spill] sm:$0xff] }
 0x2e4   :  { %v9979_v35 = vadd.f32 %v968_v57, %v967_v20  ;;  %v12702_v57 = vld [vmem:[#allocation40_spill] sm:$0xff] }
 0x2e5   :  { %v12703_v20 = vld [vmem:[#allocation84_spill] sm:$0xff] }
 0x2e6   :  { %12686 = vst [vmem:[#allocation65_spill] sm:$0xff] %v9979_v35  ;;  %1034 = vmatprep.mubr.f32.mxu0 %v9979_v35  ;;  %1105 = vmatprep.mubr.f32.mxu1 %v9979_v35 }
 0x2e7   :  { %1035 = vmatmul.mubr.f32.vlgmr.msra.gmra.mrb[6].mxu0 %v9969_v15  ;;  %1106 = vmatmul.mubr.f32.vlgmr.msra.gmra.mrb[6].mxu1 %v9969_v15 }
 0x2e8   :  { %6083 = vmatpush1.bf16.msra.mxu0 %v9564_v58  ;;  %1176 = vmatprep.mubr.f32.mxu0 %v9979_v35 }
 0x2e9   :  { %6085 = vmatprep.subr.bf16.mxu0 %v12621_v29  ;;  %6147 = vmatpush1.bf16.msra.mxu1 %v9383_v8 }
 0x2ea   :  { %6149 = vmatprep.subr.bf16.mxu1 %v9385_v9 }
 0x2ec   :  { %6087 = vmatpush1.bf16.msra.mxu0 %v9583_v41 }
 0x2ed   :  { %6089 = vmatprep.subr.bf16.mxu0 %v12622_v22  ;;  %6151 = vmatpush1.bf16.msra.mxu1 %v9389_v14 }
 0x2ee   :  { %6153 = vmatprep.subr.bf16.mxu1 %v9392_v16 }
 0x2f0   :  { %6091 = vmatpush1.bf16.msra.mxu0 %v12623_v0 }
 0x2f1   :  { %6093 = vmatprep.subr.bf16.mxu0 %v12624_v7  ;;  %6155 = vmatpush1.bf16.msra.mxu1 %v9395_v21 }
 0x2f2   :  { %6157 = vmatprep.subr.bf16.mxu1 %v9398_v24 }
 0x2f4   :  { %6095 = vmatpush1.bf16.msra.mxu0 %v12625_v30 }
 0x2f5   :  { %6097 = vmatprep.subr.bf16.mxu0 %v12626_v60  ;;  %6159 = vmatpush1.bf16.msra.mxu1 %v9405_v33 }
 0x2f6   :  { %6161 = vmatprep.subr.bf16.mxu1 %v9409_v37 }
 0x2f8   :  { %6099 = vmatpush1.bf16.msra.mxu0 %v12627_v44 }
 0x2f9   :  { %6101 = vmatprep.subr.bf16.mxu0 %v12628_v26  ;;  %6163 = vmatpush1.bf16.msra.mxu1 %v9418_v49 }
 0x2fa   :  { %6165 = vmatprep.subr.bf16.mxu1 %v9423_v53 }
 0x2fc   :  { %6103 = vmatpush1.bf16.msra.mxu0 %v12629_v40 }
 0x2fd   :  { %6105 = vmatprep.subr.bf16.mxu0 %v12687_v61  ;;  %6167 = vmatpush1.bf16.msra.mxu1 %v12688_v10 }
 0x2fe   :  { %6169 = vmatprep.subr.bf16.mxu1 %v9435_v2 }
 0x300   :  { %6107 = vmatpush1.bf16.msra.mxu0 %v12631_v52 }
 0x301   :  { %6109 = vmatprep.subr.bf16.mxu0 %v12689_v47  ;;  %6171 = vmatpush1.bf16.msra.mxu1 %v12690_v1 }
 0x302   :  { %6173 = vmatprep.subr.bf16.mxu1 %v9447_v19 }
 0x304   :  { %6111 = vmatpush1.bf16.msra.mxu0 %v12633_v4 }
 0x305   :  { %6113 = vmatprep.subr.bf16.mxu0 %v12691_v31  ;;  %6175 = vmatpush1.bf16.msra.mxu1 %v12692_v51 }
 0x306   :  { %6177 = vmatprep.subr.bf16.mxu1 %v9459_v36 }
 0x308   :  { %6115 = vmatpush1.bf16.msra.mxu0 %v12635_v13 }
 0x309   :  { %6117 = vmatprep.subr.bf16.mxu0 %v12693_v62  ;;  %6179 = vmatpush1.bf16.msra.mxu1 %v12694_v6  ;;  %v10091_v62 = vpop.permute.xlu0 %99 }
 0x30a   :  { %6181 = vmatprep.subr.bf16.mxu1 %v9471_v54  ;;  %12755 = vst [vmem:[#allocation67_spill] sm:$0xff] %v10091_v62 }
 0x30c   :  { %6119 = vmatpush1.bf16.msra.mxu0 %v12637_v25 }
 0x30d   :  { %6121 = vmatprep.subr.bf16.mxu0 %v12638_v18  ;;  %6183 = vmatpush1.bf16.msra.mxu1 %v12695_v38 }
 0x30e   :  { %6185 = vmatprep.subr.bf16.mxu1 %v9483_v12 }
 0x310   :  { %6123 = vmatpush1.bf16.msra.mxu0 %v12639_v46  ;;  %v12754_v46 = vld [vmem:[#allocation96_spill] sm:$0xff] }
 0x311   :  { %6125 = vmatprep.subr.bf16.mxu0 %v12696_v34  ;;  %6187 = vmatpush1.bf16.msra.mxu1 %v12697_v39  ;;  %v12707_v34 = vld [vmem:[#allocation86_spill] sm:$0xff]  ;;  %v12708_v39 = vld [vmem:[#allocation87_spill] sm:$0xff] }
 0x312   :  { %6189 = vmatprep.subr.bf16.mxu1 %v12698_v56  ;;  %v12709_v56 = vld [vmem:[#allocation47_spill] sm:$0xff] }
 0x314   :  { %6127 = vmatpush1.bf16.msra.mxu0 %v12699_v23  ;;  %v12710_v23 = vld [vmem:[#allocation48_spill] sm:$0xff] }
 0x315   :  { %6129 = vmatprep.subr.bf16.mxu0 %v12700_v48  ;;  %6191 = vmatpush1.bf16.msra.mxu1 %v12701_v45  ;;  %v12711_v48 = vld [vmem:[#allocation88_spill] sm:$0xff]  ;;  %v12712_v45 = vld [vmem:[#allocation89_spill] sm:$0xff] }
 0x316   :  { %6193 = vmatprep.subr.bf16.mxu1 %v12702_v57  ;;  %v12713_v57 = vld [vmem:[#allocation51_spill] sm:$0xff] }
 0x318   :  { %6131 = vmatpush1.bf16.msra.mxu0 %v12703_v20  ;;  %v12714_v20 = vld [vmem:[#allocation52_spill] sm:$0xff] }
 0x319   :  { %6133 = vmatprep.subr.bf16.mxu0 %v12704_v3  ;;  %6195 = vmatpush1.bf16.msra.mxu1 %v12705_v59  ;;  %v12715_v3 = vld [vmem:[#allocation90_spill] sm:$0xff] }
 0x31a   :  { %6197 = vmatprep.subr.bf16.mxu1 %v12706_v50  ;;  %v12716_v59 = vld [vmem:[#allocation10_spill] sm:$0xff]  ;;  %v12717_v50 = vld [vmem:[#allocation55_spill] sm:$0xff] }
 0x31c   :  { %6135 = vmatpush1.bf16.msra.mxu0 %v12707_v34  ;;  %v12718_v34 = vld [vmem:[#allocation56_spill] sm:$0xff] }
 0x31d   :  { %6137 = vmatprep.subr.bf16.mxu0 %v12708_v39  ;;  %6199 = vmatpush1.bf16.msra.mxu1 %v12709_v56  ;;  %v12719_v56 = vld [vmem:[#allocation11_spill] sm:$0xff]  ;;  %v12729_v39 = vld [vmem:[#allocation25_spill] sm:$0xff] }
 0x31e   :  { %6201 = vmatprep.subr.bf16.mxu1 %v12710_v23  ;;  %v12720_v23 = vld [vmem:[#allocation12_spill] sm:$0xff] }
 0x320   :  { %6139 = vmatpush1.bf16.msra.mxu0 %v12711_v48  ;;  %v12721_v48 = vld [vmem:[#allocation13_spill] sm:$0xff] }
 0x321   :  { %6141 = vmatprep.subr.bf16.mxu0 %v12712_v45  ;;  %6203 = vmatpush1.bf16.msra.mxu1 %v12713_v57  ;;  %v12722_v45 = vld [vmem:[#allocation14_spill] sm:$0xff]  ;;  %v12723_v57 = vld [vmem:[#allocation15_spill] sm:$0xff] }
 0x322   :  { %6205 = vmatprep.subr.bf16.mxu1 %v12714_v20  ;;  %v12724_v20 = vld [vmem:[#allocation16_spill] sm:$0xff] }
 0x324   :  { %6143 = vmatpush1.bf16.msra.mxu0 %v12715_v3  ;;  %v12725_v3 = vld [vmem:[#allocation18_spill] sm:$0xff] }
 0x325   :  { %6209 = vmatprep.subr.bf16.mxu0 %v12716_v59  ;;  %6207 = vmatpush1.bf16.msra.mxu1 %v12717_v50  ;;  %v12726_v59 = vld [vmem:[#allocation19_spill] sm:$0xff]  ;;  %v12727_v50 = vld [vmem:[#allocation21_spill] sm:$0xff] }
 0x326   :  { %6273 = vmatprep.subr.bf16.mxu1 %v12718_v34  ;;  %v12728_v34 = vld [vmem:[#allocation22_spill] sm:$0xff] }
 0x327   :  { %1177 = vmatmul.mubr.f32.vlgmr.msra.gmra.mrb[8].mxu0 %v9969_v15 }
 0x328   :  { %6211 = vmatpush1.bf16.msra.mxu0 %v12719_v56  ;;  %v12730_v56 = vld [vmem:[#allocation26_spill] sm:$0xff] }
 0x329   :  { %6213 = vmatprep.subr.bf16.mxu0 %v12720_v23  ;;  %v12731_v23 = vld [vmem:[#allocation29_spill] sm:$0xff] }
 0x32c   :  { %6215 = vmatpush1.bf16.msra.mxu0 %v12721_v48  ;;  %v12732_v48 = vld [vmem:[#allocation30_spill] sm:$0xff] }
 0x32d   :  { %6217 = vmatprep.subr.bf16.mxu0 %v12722_v45  ;;  %v12733_v45 = vld [vmem:[#allocation33_spill] sm:$0xff] }
 0x330   :  { %6219 = vmatpush1.bf16.msra.mxu0 %v12723_v57  ;;  %v12734_v57 = vld [vmem:[#allocation34_spill] sm:$0xff] }
 0x331   :  { %6221 = vmatprep.subr.bf16.mxu0 %v12724_v20  ;;  %v12735_v20 = vld [vmem:[#allocation37_spill] sm:$0xff] }
 0x334   :  { %6223 = vmatpush1.bf16.msra.mxu0 %v12725_v3  ;;  %v12736_v3 = vld [vmem:[#allocation38_spill] sm:$0xff] }
 0x335   :  { %6225 = vmatprep.subr.bf16.mxu0 %v12726_v59  ;;  %v12737_v59 = vld [vmem:[#allocation41_spill] sm:$0xff] }
 0x338   :  { %6227 = vmatpush1.bf16.msra.mxu0 %v12727_v50  ;;  %v12738_v50 = vld [vmem:[#allocation42_spill] sm:$0xff] }
 0x339   :  { %6229 = vmatprep.subr.bf16.mxu0 %v12728_v34  ;;  %v12739_v34 = vld [vmem:[#allocation45_spill] sm:$0xff] }
 0x33c   :  { %6231 = vmatpush1.bf16.msra.mxu0 %v12729_v39  ;;  %v12740_v39 = vld [vmem:[#allocation46_spill] sm:$0xff] }
 0x33d   :  { %6233 = vmatprep.subr.bf16.mxu0 %v12730_v56  ;;  %v12741_v56 = vld [vmem:[#allocation49_spill] sm:$0xff] }
 0x340   :  { %6235 = vmatpush1.bf16.msra.mxu0 %v12731_v23  ;;  %v12742_v23 = vld [vmem:[#allocation50_spill] sm:$0xff] }
 0x341   :  { %6237 = vmatprep.subr.bf16.mxu0 %v12732_v48  ;;  %v12743_v48 = vld [vmem:[#allocation53_spill] sm:$0xff] }
 0x344   :  { %6239 = vmatpush1.bf16.msra.mxu0 %v12733_v45  ;;  %v12744_v45 = vld [vmem:[#allocation54_spill] sm:$0xff] }
 0x345   :  { %6241 = vmatprep.subr.bf16.mxu0 %v12734_v57  ;;  %v12745_v57 = vld [vmem:[#allocation57_spill] sm:$0xff] }
 0x348   :  { %6243 = vmatpush1.bf16.msra.mxu0 %v12735_v20  ;;  %v12746_v20 = vld [vmem:[#allocation58_spill] sm:$0xff] }
 0x349   :  { %6245 = vmatprep.subr.bf16.mxu0 %v12736_v3  ;;  %v12747_v3 = vld [vmem:[#allocation60_spill] sm:$0xff] }
 0x34c   :  { %6247 = vmatpush1.bf16.msra.mxu0 %v12737_v59  ;;  %v12748_v59 = vld [vmem:[#allocation61_spill] sm:$0xff] }
 0x34d   :  { %6249 = vmatprep.subr.bf16.mxu0 %v12738_v50  ;;  %v12749_v50 = vld [vmem:[#allocation63_spill] sm:$0xff] }
 0x350   :  { %6251 = vmatpush1.bf16.msra.mxu0 %v12739_v34  ;;  %v12750_v34 = vld [vmem:[#allocation9_spill] sm:$0xff] }
 0x351   :  { %6253 = vmatprep.subr.bf16.mxu0 %v12740_v39  ;;  %v10083_v39 = vpop.permute.xlu1 %84 }
 0x352   :  { %12751 = vst [vmem:[#allocation66_spill] sm:$0xff] %v10083_v39 }
 0x354   :  { %6255 = vmatpush1.bf16.msra.mxu0 %v12741_v56 }
 0x355   :  { %6257 = vmatprep.subr.bf16.mxu0 %v12742_v23  ;;  %v12752_v23 = vld [vmem:[#allocation93_spill] sm:$0xff] }
 0x356   :  { %v148_v56 = vmul.f32 %v12752_v23, %v10083_v39 }
 0x358   :  { %6259 = vmatpush1.bf16.msra.mxu0 %v12743_v48  ;;  %v12753_v48 = vld [vmem:[#allocation95_spill] sm:$0xff] }
 0x359   :  { %6261 = vmatprep.subr.bf16.mxu0 %v12744_v45  ;;  %v149_v45 = vmul.f32 %v12753_v48, %v10083_v39 }
 0x35c   :  { %6263 = vmatpush1.bf16.msra.mxu0 %v12745_v57  ;;  %v220_v57 = vadd.f32 %v12754_v46, %v148_v56  ;;  %v150_v56 = vmul.f32 %v9792_v11, %v10083_v39 }
 0x35d   :  { %6265 = vmatprep.subr.bf16.mxu0 %v12746_v20 }
 0x360   :  { %6267 = vmatpush1.bf16.msra.mxu0 %v12747_v3 }
 0x361   :  { %6269 = vmatprep.subr.bf16.mxu0 %v12748_v59  ;;  %v221_v59 = vadd.f32 %v12683_v63, %v149_v45 }
 0x364   :  { %6271 = vmatpush1.bf16.msra.mxu0 %v12749_v50 }
 0x365   :  { %6337 = vmatprep.subr.bf16.mxu0 %v12750_v34 }
 0x3ba   :  { %v1036_v12 = vpop.f32.mrb[6].mxu0  ;;  %v1107_v20 = vpop.f32.mrb[6].mxu1 }
 0x3bb   :  { %v1183_v38 = vadd.f32 %v1036_v12, %v220_v57  ;;  %v1038_v3 = vpop.f32.mrb[7].mxu0  ;;  %v1109_v18 = vpop.f32.mrb[7].mxu1  ;;  %v12756_v12 = vld [vmem:[#allocation99_spill] sm:$0xff]  ;;  %v1197_v45 = vadd.f32 %v1107_v20, %v9795_v55 }
 0x3bc   :  { %v1190_v25 = vadd.f32 %v1038_v3, %v221_v59  ;;  %v169_v57 = vmul.f32 %v12756_v12, %v10091_v62 }
 0x3bd   :  { %v5474_v50 = vmul.f32 -1.442695, %v1183_v38 }
 0x3be   :  { %v5475_v34 = vmul.f32 -1.442695, %v1190_v25 }
 0x3bf   :  { %8947 = vpow2.f32 %v5474_v50  ;;  %v222_v50 = vadd.f32 %v9805_v27, %v150_v56 }
 0x3c0   :  { %8949 = vpow2.f32 %v5475_v34 }
 0x3c9   :  { %v8948_v54 = vpop.eup %8947 }
 0x3ca   :  { %v1187_v6 = vadd.f32 1.0, %v8948_v54  ;;  %v8950_v23 = vpop.eup %8949  ;;  %v241_v54 = vadd.f32 %v9800_v32, %v169_v57 }
 0x3cb   :  { %v1194_v46 = vadd.f32 1.0, %v8950_v23 }
 0x3cc   :  { %8951 = vrcp.f32 %v1187_v6  ;;  %v1205_v25 = vadd.f32 %v1109_v18, %v241_v54 }
 0x3cd   :  { %8953 = vrcp.f32 %v1194_v46  ;;  %v170_v46 = vmul.f32 %v9825_v28, %v10091_v62 }
 0x3ce   :  { %v5476_v6 = vmul.f32 -1.442695, %v1205_v25 }
 0x3cf   :  { %v242_v56 = vadd.f32 %v9830_v5, %v170_v46 }
 0x3d6   :  { %v8952_v38 = vpop.eup %8951 }
 0x3d7   :  { %v1198_v59 = vmul.f32 %v8952_v38, %v1197_v45  ;;  %v8954_v34 = vpop.eup %8953 }
 0x3d8   :  { %v1201_v39 = vsub.f32 1.0, %v8954_v34  ;;  %v1203_v12 = vmul.f32 %v8954_v34, %v9969_v15  ;;  %v12778_v15 = vld [vmem:[#allocation86_spill] sm:$0xff] }
 0x3d9   :  { %v1199_v3 = vadd.f32 %v1198_v59, %v222_v50 }
 0x3db   :  { %8955 = vtanh.f32 %v1199_v3 }
 0x3dc   :  { %8957 = vpow2.f32 %v5476_v6 }
 0x3e5   :  { %v8956_v23 = vpop.eup %8955 }
 0x3e6   :  { %v1202_v11 = vmul.f32 %v8956_v23, %v1201_v39  ;;  %v8958_v20 = vpop.eup %8957 }
 0x3e7   :  { %v1209_v55 = vadd.f32 1.0, %v8958_v20 }
 0x3e8   :  { %v10101_v63 = vadd.f32 %v1203_v12, %v1202_v11  ;;  %v171_v11 = vmul.f32 %v9839_v42, %v10091_v62  ;;  %v12779_v62 = vld [vmem:[#allocation87_spill] sm:$0xff] }
 0x3e9   :  { %8959 = vrcp.f32 %v1209_v55 }
 0x3ea   :  { %12757 = vst [vmem:[#allocation68_spill] sm:$0xff] %v10101_v63  ;;  %v243_v12 = vadd.f32 %v9844_v17, %v171_v11  ;;  %v12767_v11 = vld [vmem:[#allocation81_spill] sm:$0xff] }
 0x3f3   :  { %v8960_v50 = vpop.eup %8959 }
 0x3fa   :  { %v1178_v18 = vpop.f32.mrb[8].mxu0 }
 0x3fb   :  { %v1212_v57 = vadd.f32 %v1178_v18, %v242_v56  ;;  %v1180_v45 = vpop.f32.mrb[9].mxu0  ;;  %v12759_v56 = vld [vmem:[#allocation77_spill] sm:$0xff]  ;;  %v12760_v18 = vld [vmem:[#allocation27_spill] sm:$0xff] }
 0x3fc   :  { %v1219_v38 = vadd.f32 %v1180_v45, %v9834_v43  ;;  %v12762_v45 = vld [vmem:[#allocation78_spill] sm:$0xff] }
 0x3fd   :  { %v5477_v59 = vmul.f32 -1.442695, %v1212_v57  ;;  %v12761_v57 = vld [vmem:[#allocation28_spill] sm:$0xff] }
 0x3fe   :  { %v1220_v39 = vmul.f32 %v8960_v50, %v1219_v38  ;;  %v12763_v38 = vld [vmem:[#allocation79_spill] sm:$0xff] }
 0x3ff   :  { %8961 = vpow2.f32 %v5477_v59  ;;  %v12764_v50 = vld [vmem:[#allocation31_spill] sm:$0xff]  ;;  %v12765_v59 = vld [vmem:[#allocation32_spill] sm:$0xff] }
 0x400   :  { %v1221_v3 = vadd.f32 %v1220_v39, %v243_v12  ;;  %v12766_v39 = vld [vmem:[#allocation80_spill] sm:$0xff]  ;;  %v12768_v12 = vld [vmem:[#allocation35_spill] sm:$0xff] }
 0x409   :  { %v8962_v55 = vpop.eup %8961 }
 0x40a   :  { %v1216_v54 = vadd.f32 1.0, %v8962_v55  ;;  %v12769_v55 = vld [vmem:[#allocation36_spill] sm:$0xff] }
 0x40c   :  { %8963 = vrcp.f32 %v1216_v54  ;;  %v12770_v54 = vld [vmem:[#allocation82_spill] sm:$0xff] }
 0x40d   :  { %8965 = vtanh.f32 %v1221_v3  ;;  %v12771_v3 = vld [vmem:[#allocation83_spill] sm:$0xff] }
 0x416   :  { %v8964_v25 = vpop.eup %8963 }
 0x417   :  { %v1223_v6 = vsub.f32 1.0, %v8964_v25  ;;  %v8966_v34 = vpop.eup %8965  ;;  %v1225_v23 = vmul.f32 %v8964_v25, %v9979_v35  ;;  %v12772_v25 = vld [vmem:[#allocation39_spill] sm:$0xff]  ;;  %v12777_v35 = vld [vmem:[#allocation44_spill] sm:$0xff] }
 0x419   :  { %v1224_v20 = vmul.f32 %v8966_v34, %v1223_v6  ;;  %v12773_v6 = vld [vmem:[#allocation40_spill] sm:$0xff] }
 0x41a   :  { %v12774_v34 = vld [vmem:[#allocation84_spill] sm:$0xff] }
 0x41b   :  { %v10111_v46 = vadd.f32 %v1225_v23, %v1224_v20  ;;  %v12775_v23 = vld [vmem:[#allocation85_spill] sm:$0xff]  ;;  %v12776_v20 = vld [vmem:[#allocation43_spill] sm:$0xff] }
 0x41d   :  { %12758 = vst [vmem:[#allocation69_spill] sm:$0xff] %v10111_v46  ;;  %1291 = vmatprep.mubr.f32.mxu1 %v10111_v46  ;;  %1362 = vmatprep.mubr.f32.mxu0 %v10111_v46 }
 0x41e   :  { %1292 = vmatmul.mubr.f32.vlgmr.msra.gmra.mrb[8].mxu1 %v10101_v63  ;;  %1363 = vmatmul.mubr.f32.vlgmr.msra.gmra.mrb[10].mxu0 %v10101_v63 }
 0x41f   :  { %6275 = vmatpush1.bf16.msra.mxu1 %v9564_v58  ;;  %1433 = vmatprep.mubr.f32.mxu1 %v10111_v46 }
 0x420   :  { %6277 = vmatprep.subr.bf16.mxu1 %v12621_v29  ;;  %6339 = vmatpush1.bf16.msra.mxu0 %v9383_v8 }
 0x421   :  { %6341 = vmatprep.subr.bf16.mxu0 %v9385_v9 }
 0x423   :  { %6279 = vmatpush1.bf16.msra.mxu1 %v9583_v41 }
 0x424   :  { %6281 = vmatprep.subr.bf16.mxu1 %v12622_v22  ;;  %6343 = vmatpush1.bf16.msra.mxu0 %v9389_v14 }
 0x425   :  { %6345 = vmatprep.subr.bf16.mxu0 %v9392_v16 }
 0x427   :  { %6283 = vmatpush1.bf16.msra.mxu1 %v12623_v0 }
 0x428   :  { %6285 = vmatprep.subr.bf16.mxu1 %v12624_v7  ;;  %6347 = vmatpush1.bf16.msra.mxu0 %v9395_v21 }
 0x429   :  { %6349 = vmatprep.subr.bf16.mxu0 %v9398_v24 }
 0x42b   :  { %6287 = vmatpush1.bf16.msra.mxu1 %v12625_v30 }
 0x42c   :  { %6289 = vmatprep.subr.bf16.mxu1 %v12626_v60  ;;  %6351 = vmatpush1.bf16.msra.mxu0 %v9405_v33 }
 0x42d   :  { %6353 = vmatprep.subr.bf16.mxu0 %v9409_v37 }
 0x42f   :  { %6291 = vmatpush1.bf16.msra.mxu1 %v12627_v44 }
 0x430   :  { %6293 = vmatprep.subr.bf16.mxu1 %v12628_v26  ;;  %6355 = vmatpush1.bf16.msra.mxu0 %v9418_v49 }
 0x431   :  { %6357 = vmatprep.subr.bf16.mxu0 %v9423_v53 }
 0x433   :  { %6295 = vmatpush1.bf16.msra.mxu1 %v12629_v40 }
 0x434   :  { %6297 = vmatprep.subr.bf16.mxu1 %v12687_v61  ;;  %6359 = vmatpush1.bf16.msra.mxu0 %v12688_v10 }
 0x435   :  { %6361 = vmatprep.subr.bf16.mxu0 %v9435_v2 }
 0x437   :  { %6299 = vmatpush1.bf16.msra.mxu1 %v12631_v52 }
 0x438   :  { %6301 = vmatprep.subr.bf16.mxu1 %v12689_v47  ;;  %6363 = vmatpush1.bf16.msra.mxu0 %v12690_v1 }
 0x439   :  { %6365 = vmatprep.subr.bf16.mxu0 %v9447_v19 }
 0x43b   :  { %6303 = vmatpush1.bf16.msra.mxu1 %v12633_v4 }
 0x43c   :  { %6305 = vmatprep.subr.bf16.mxu1 %v12691_v31  ;;  %6367 = vmatpush1.bf16.msra.mxu0 %v12692_v51 }
 0x43d   :  { %6369 = vmatprep.subr.bf16.mxu0 %v9459_v36 }
 0x43f   :  { %6307 = vmatpush1.bf16.msra.mxu1 %v12635_v13 }
 0x440   :  { %6309 = vmatprep.subr.bf16.mxu1 %v12759_v56  ;;  %6371 = vmatpush1.bf16.msra.mxu0 %v12760_v18  ;;  %v12828_v18 = vld [vmem:[#allocation101_spill] sm:$0xff] }
 0x441   :  { %6373 = vmatprep.subr.bf16.mxu0 %v12761_v57  ;;  %v10223_v57 = vpop.permute.xlu0 %94 }
 0x443   :  { %6311 = vmatpush1.bf16.msra.mxu1 %v12762_v45 }
 0x444   :  { %6313 = vmatprep.subr.bf16.mxu1 %v12763_v38  ;;  %6375 = vmatpush1.bf16.msra.mxu0 %v12764_v50 }
 0x445   :  { %6377 = vmatprep.subr.bf16.mxu0 %v12765_v59 }
 0x447   :  { %6315 = vmatpush1.bf16.msra.mxu1 %v12766_v39 }
 0x448   :  { %6317 = vmatprep.subr.bf16.mxu1 %v12767_v11  ;;  %6379 = vmatpush1.bf16.msra.mxu0 %v12768_v12 }
 0x449   :  { %6381 = vmatprep.subr.bf16.mxu0 %v12769_v55  ;;  %v12780_v55 = vld [vmem:[#allocation47_spill] sm:$0xff] }
 0x44b   :  { %6319 = vmatpush1.bf16.msra.mxu1 %v12770_v54  ;;  %v12781_v54 = vld [vmem:[#allocation48_spill] sm:$0xff] }
 0x44c   :  { %6321 = vmatprep.subr.bf16.mxu1 %v12771_v3  ;;  %6383 = vmatpush1.bf16.msra.mxu0 %v12772_v25  ;;  %v12782_v3 = vld [vmem:[#allocation88_spill] sm:$0xff]  ;;  %v12783_v25 = vld [vmem:[#allocation89_spill] sm:$0xff] }
 0x44d   :  { %6385 = vmatprep.subr.bf16.mxu0 %v12773_v6  ;;  %v12784_v6 = vld [vmem:[#allocation51_spill] sm:$0xff] }
 0x44f   :  { %6323 = vmatpush1.bf16.msra.mxu1 %v12774_v34  ;;  %v12785_v34 = vld [vmem:[#allocation52_spill] sm:$0xff] }
 0x450   :  { %6325 = vmatprep.subr.bf16.mxu1 %v12775_v23  ;;  %6387 = vmatpush1.bf16.msra.mxu0 %v12776_v20  ;;  %v12786_v23 = vld [vmem:[#allocation90_spill] sm:$0xff] }
 0x451   :  { %6389 = vmatprep.subr.bf16.mxu0 %v12777_v35  ;;  %v12787_v20 = vld [vmem:[#allocation10_spill] sm:$0xff]  ;;  %v12788_v35 = vld [vmem:[#allocation55_spill] sm:$0xff] }
 0x453   :  { %6327 = vmatpush1.bf16.msra.mxu1 %v12778_v15  ;;  %v12789_v15 = vld [vmem:[#allocation56_spill] sm:$0xff] }
 0x454   :  { %6329 = vmatprep.subr.bf16.mxu1 %v12779_v62  ;;  %6391 = vmatpush1.bf16.msra.mxu0 %v12780_v55  ;;  %v12790_v55 = vld [vmem:[#allocation11_spill] sm:$0xff]  ;;  %v12800_v62 = vld [vmem:[#allocation25_spill] sm:$0xff] }
 0x455   :  { %6393 = vmatprep.subr.bf16.mxu0 %v12781_v54  ;;  %v12791_v54 = vld [vmem:[#allocation12_spill] sm:$0xff] }
 0x457   :  { %6331 = vmatpush1.bf16.msra.mxu1 %v12782_v3  ;;  %v12792_v3 = vld [vmem:[#allocation13_spill] sm:$0xff] }
 0x458   :  { %6333 = vmatprep.subr.bf16.mxu1 %v12783_v25  ;;  %6395 = vmatpush1.bf16.msra.mxu0 %v12784_v6  ;;  %v12793_v25 = vld [vmem:[#allocation14_spill] sm:$0xff]  ;;  %v12794_v6 = vld [vmem:[#allocation15_spill] sm:$0xff] }
 0x459   :  { %6397 = vmatprep.subr.bf16.mxu0 %v12785_v34  ;;  %v12795_v34 = vld [vmem:[#allocation16_spill] sm:$0xff] }
 0x45b   :  { %6335 = vmatpush1.bf16.msra.mxu1 %v12786_v23  ;;  %v12796_v23 = vld [vmem:[#allocation18_spill] sm:$0xff] }
 0x45c   :  { %6401 = vmatprep.subr.bf16.mxu1 %v12787_v20  ;;  %6399 = vmatpush1.bf16.msra.mxu0 %v12788_v35  ;;  %v12797_v20 = vld [vmem:[#allocation19_spill] sm:$0xff]  ;;  %v12798_v35 = vld [vmem:[#allocation21_spill] sm:$0xff] }
 0x45d   :  { %6465 = vmatprep.subr.bf16.mxu0 %v12789_v15  ;;  %v12799_v15 = vld [vmem:[#allocation22_spill] sm:$0xff] }
 0x45e   :  { %1434 = vmatmul.mubr.f32.vlgmr.msra.gmra.mrb[10].mxu1 %v10101_v63 }
 0x45f   :  { %6403 = vmatpush1.bf16.msra.mxu1 %v12790_v55  ;;  %v12801_v55 = vld [vmem:[#allocation26_spill] sm:$0xff] }
 0x460   :  { %6405 = vmatprep.subr.bf16.mxu1 %v12791_v54  ;;  %v12802_v54 = vld [vmem:[#allocation29_spill] sm:$0xff] }
 0x463   :  { %6407 = vmatpush1.bf16.msra.mxu1 %v12792_v3  ;;  %v12803_v3 = vld [vmem:[#allocation30_spill] sm:$0xff] }
 0x464   :  { %6409 = vmatprep.subr.bf16.mxu1 %v12793_v25  ;;  %v12804_v25 = vld [vmem:[#allocation33_spill] sm:$0xff] }
 0x467   :  { %6411 = vmatpush1.bf16.msra.mxu1 %v12794_v6  ;;  %v12805_v6 = vld [vmem:[#allocation34_spill] sm:$0xff] }
 0x468   :  { %6413 = vmatprep.subr.bf16.mxu1 %v12795_v34  ;;  %v12806_v34 = vld [vmem:[#allocation37_spill] sm:$0xff] }
 0x46b   :  { %6415 = vmatpush1.bf16.msra.mxu1 %v12796_v23  ;;  %v12807_v23 = vld [vmem:[#allocation38_spill] sm:$0xff] }
 0x46c   :  { %6417 = vmatprep.subr.bf16.mxu1 %v12797_v20  ;;  %v12808_v20 = vld [vmem:[#allocation41_spill] sm:$0xff] }
 0x46f   :  { %6419 = vmatpush1.bf16.msra.mxu1 %v12798_v35  ;;  %v12809_v35 = vld [vmem:[#allocation42_spill] sm:$0xff] }
 0x470   :  { %6421 = vmatprep.subr.bf16.mxu1 %v12799_v15  ;;  %v12810_v15 = vld [vmem:[#allocation45_spill] sm:$0xff] }
 0x473   :  { %6423 = vmatpush1.bf16.msra.mxu1 %v12800_v62  ;;  %v12811_v62 = vld [vmem:[#allocation46_spill] sm:$0xff] }
 0x474   :  { %6425 = vmatprep.subr.bf16.mxu1 %v12801_v55  ;;  %v12812_v55 = vld [vmem:[#allocation49_spill] sm:$0xff] }
 0x477   :  { %6427 = vmatpush1.bf16.msra.mxu1 %v12802_v54  ;;  %v12813_v54 = vld [vmem:[#allocation50_spill] sm:$0xff] }
 0x478   :  { %6429 = vmatprep.subr.bf16.mxu1 %v12803_v3  ;;  %v12814_v3 = vld [vmem:[#allocation53_spill] sm:$0xff] }
 0x47b   :  { %6431 = vmatpush1.bf16.msra.mxu1 %v12804_v25  ;;  %v12815_v25 = vld [vmem:[#allocation54_spill] sm:$0xff] }
 0x47c   :  { %6433 = vmatprep.subr.bf16.mxu1 %v12805_v6  ;;  %v12816_v6 = vld [vmem:[#allocation57_spill] sm:$0xff] }
 0x47f   :  { %6435 = vmatpush1.bf16.msra.mxu1 %v12806_v34  ;;  %v12817_v34 = vld [vmem:[#allocation58_spill] sm:$0xff] }
 0x480   :  { %6437 = vmatprep.subr.bf16.mxu1 %v12807_v23  ;;  %v12818_v23 = vld [vmem:[#allocation60_spill] sm:$0xff] }
 0x483   :  { %6439 = vmatpush1.bf16.msra.mxu1 %v12808_v20  ;;  %v12819_v20 = vld [vmem:[#allocation61_spill] sm:$0xff] }
 0x484   :  { %6441 = vmatprep.subr.bf16.mxu1 %v12809_v35  ;;  %v12820_v35 = vld [vmem:[#allocation63_spill] sm:$0xff] }
 0x487   :  { %6443 = vmatpush1.bf16.msra.mxu1 %v12810_v15  ;;  %v12821_v15 = vld [vmem:[#allocation9_spill] sm:$0xff] }
 0x488   :  { %6445 = vmatprep.subr.bf16.mxu1 %v12811_v62  ;;  %v10215_v62 = vpop.permute.xlu1 %89 }
 0x489   :  { %12822 = vst [vmem:[#allocation70_spill] sm:$0xff] %v10215_v62 }
 0x48b   :  { %6447 = vmatpush1.bf16.msra.mxu1 %v12812_v55 }
 0x48c   :  { %6449 = vmatprep.subr.bf16.mxu1 %v12813_v54  ;;  %v12823_v54 = vld [vmem:[#allocation93_spill] sm:$0xff] }
 0x48d   :  { %v154_v55 = vmul.f32 %v12823_v54, %v10215_v62 }
 0x48f   :  { %6451 = vmatpush1.bf16.msra.mxu1 %v12814_v3  ;;  %v12824_v3 = vld [vmem:[#allocation96_spill] sm:$0xff] }
 0x490   :  { %6453 = vmatprep.subr.bf16.mxu1 %v12815_v25  ;;  %v155_v25 = vmul.f32 %v12753_v48, %v10215_v62 }
 0x493   :  { %6455 = vmatpush1.bf16.msra.mxu1 %v12816_v6  ;;  %v226_v6 = vadd.f32 %v12824_v3, %v154_v55  ;;  %v12826_v55 = vld [vmem:[#allocation100_spill] sm:$0xff] }
 0x494   :  { %6457 = vmatprep.subr.bf16.mxu1 %v12817_v34  ;;  %v156_v3 = vmul.f32 %v12826_v55, %v10215_v62 }
 0x497   :  { %6459 = vmatpush1.bf16.msra.mxu1 %v12818_v23 }
 0x498   :  { %6461 = vmatprep.subr.bf16.mxu1 %v12819_v20  ;;  %v12825_v20 = vld [vmem:[#allocation97_spill] sm:$0xff] }
 0x499   :  { %v227_v59 = vadd.f32 %v12825_v20, %v155_v25 }
 0x49b   :  { %6463 = vmatpush1.bf16.msra.mxu1 %v12820_v35 }
 0x49c   :  { %6529 = vmatprep.subr.bf16.mxu1 %v12821_v15 }
 0x4f1   :  { %v1293_v12 = vpop.f32.mrb[8].mxu1  ;;  %v1364_v34 = vpop.f32.mrb[10].mxu0 }
 0x4f2   :  { %v1440_v11 = vadd.f32 %v1293_v12, %v226_v6  ;;  %v1295_v23 = vpop.f32.mrb[9].mxu1  ;;  %v1366_v39 = vpop.f32.mrb[11].mxu0  ;;  %v12827_v12 = vld [vmem:[#allocation99_spill] sm:$0xff]  ;;  %v1454_v25 = vadd.f32 %v1364_v34, %v12828_v18 }
 0x4f3   :  { %v1447_v50 = vadd.f32 %v1295_v23, %v227_v59  ;;  %v163_v6 = vmul.f32 %v12827_v12, %v10223_v57 }
 0x4f4   :  { %v5478_v35 = vmul.f32 -1.442695, %v1440_v11 }
 0x4f5   :  { %v5479_v15 = vmul.f32 -1.442695, %v1447_v50 }
 0x4f6   :  { %8967 = vpow2.f32 %v5478_v35  ;;  %v228_v35 = vadd.f32 %v9805_v27, %v156_v3 }
 0x4f7   :  { %8969 = vpow2.f32 %v5479_v15  ;;  %v235_v15 = vadd.f32 %v9800_v32, %v163_v6 }
 0x500   :  { %v8968_v38 = vpop.eup %8967 }
 0x501   :  { %v1444_v45 = vadd.f32 1.0, %v8968_v38  ;;  %v8970_v54 = vpop.eup %8969  ;;  %v1462_v38 = vadd.f32 %v1366_v39, %v235_v15 }
 0x502   :  { %v1451_v48 = vadd.f32 1.0, %v8970_v54 }
 0x503   :  { %8971 = vrcp.f32 %v1444_v45  ;;  %v5480_v59 = vmul.f32 -1.442695, %v1462_v38 }
 0x504   :  { %8973 = vrcp.f32 %v1451_v48  ;;  %v164_v48 = vmul.f32 %v9825_v28, %v10223_v57 }
 0x506   :  { %v236_v3 = vadd.f32 %v9830_v5, %v164_v48 }
 0x50d   :  { %v8972_v11 = vpop.eup %8971 }
 0x50e   :  { %v1455_v50 = vmul.f32 %v8972_v11, %v1454_v25  ;;  %v8974_v23 = vpop.eup %8973 }
 0x50f   :  { %v1458_v55 = vsub.f32 1.0, %v8974_v23  ;;  %v1460_v12 = vmul.f32 %v8974_v23, %v10101_v63  ;;  %v12850_v63 = vld [vmem:[#allocation87_spill] sm:$0xff] }
 0x510   :  { %v1456_v45 = vadd.f32 %v1455_v50, %v228_v35 }
 0x512   :  { %8975 = vtanh.f32 %v1456_v45 }
 0x513   :  { %8977 = vpow2.f32 %v5480_v59 }
 0x51c   :  { %v8976_v54 = vpop.eup %8975 }
 0x51d   :  { %v1459_v20 = vmul.f32 %v8976_v54, %v1458_v55  ;;  %v8978_v34 = vpop.eup %8977 }
 0x51e   :  { %v1466_v18 = vadd.f32 1.0, %v8978_v34 }
 0x51f   :  { %v10233_v62 = vadd.f32 %v1460_v12, %v1459_v20  ;;  %v165_v20 = vmul.f32 %v9839_v42, %v10223_v57 }
 0x520   :  { %8979 = vrcp.f32 %v1466_v18 }
 0x521   :  { %12829 = vst [vmem:[#allocation72_spill] sm:$0xff] %v10233_v62  ;;  %v237_v12 = vadd.f32 %v9844_v17, %v165_v20  ;;  %v12839_v20 = vld [vmem:[#allocation35_spill] sm:$0xff] }
 0x52a   :  { %v8980_v35 = vpop.eup %8979 }
 0x531   :  { %v1435_v39 = vpop.f32.mrb[10].mxu1 }
 0x532   :  { %v1469_v6 = vadd.f32 %v1435_v39, %v236_v3  ;;  %v1437_v25 = vpop.f32.mrb[11].mxu1  ;;  %v12831_v3 = vld [vmem:[#allocation27_spill] sm:$0xff]  ;;  %v12832_v39 = vld [vmem:[#allocation28_spill] sm:$0xff] }
 0x533   :  { %v1476_v11 = vadd.f32 %v1437_v25, %v9834_v43  ;;  %v12834_v25 = vld [vmem:[#allocation79_spill] sm:$0xff] }
 0x534   :  { %v5481_v50 = vmul.f32 -1.442695, %v1469_v6  ;;  %v12833_v6 = vld [vmem:[#allocation78_spill] sm:$0xff] }
 0x535   :  { %v1477_v55 = vmul.f32 %v8980_v35, %v1476_v11  ;;  %v12835_v11 = vld [vmem:[#allocation31_spill] sm:$0xff]  ;;  %v12836_v35 = vld [vmem:[#allocation32_spill] sm:$0xff] }
 0x536   :  { %8981 = vpow2.f32 %v5481_v50  ;;  %v12837_v50 = vld [vmem:[#allocation80_spill] sm:$0xff] }
 0x537   :  { %v1478_v45 = vadd.f32 %v1477_v55, %v237_v12  ;;  %v12838_v55 = vld [vmem:[#allocation81_spill] sm:$0xff]  ;;  %v12840_v12 = vld [vmem:[#allocation36_spill] sm:$0xff] }
 0x540   :  { %v8982_v18 = vpop.eup %8981 }
 0x541   :  { %v1473_v15 = vadd.f32 1.0, %v8982_v18  ;;  %v12841_v18 = vld [vmem:[#allocation82_spill] sm:$0xff] }
 0x543   :  { %8983 = vrcp.f32 %v1473_v15  ;;  %v12842_v15 = vld [vmem:[#allocation83_spill] sm:$0xff] }
 0x544   :  { %8985 = vtanh.f32 %v1478_v45  ;;  %v12843_v45 = vld [vmem:[#allocation39_spill] sm:$0xff] }
 0x54d   :  { %v8984_v38 = vpop.eup %8983 }
 0x54e   :  { %v1480_v59 = vsub.f32 1.0, %v8984_v38  ;;  %v8986_v23 = vpop.eup %8985  ;;  %v1482_v54 = vmul.f32 %v8984_v38, %v10111_v46  ;;  %v12844_v38 = vld [vmem:[#allocation40_spill] sm:$0xff]  ;;  %v12849_v46 = vld [vmem:[#allocation86_spill] sm:$0xff] }
 0x550   :  { %v1481_v34 = vmul.f32 %v8986_v23, %v1480_v59  ;;  %v12845_v59 = vld [vmem:[#allocation84_spill] sm:$0xff]  ;;  %v12846_v23 = vld [vmem:[#allocation85_spill] sm:$0xff] }
 0x552   :  { %v10243_v48 = vadd.f32 %v1482_v54, %v1481_v34  ;;  %v12847_v54 = vld [vmem:[#allocation43_spill] sm:$0xff]  ;;  %v12848_v34 = vld [vmem:[#allocation44_spill] sm:$0xff] }
 0x554   :  { %12830 = vst [vmem:[#allocation74_spill] sm:$0xff] %v10243_v48  ;;  %1548 = vmatprep.mubr.f32.mxu0 %v10243_v48  ;;  %1619 = vmatprep.mubr.f32.mxu1 %v10243_v48 }
 0x555   :  { %1549 = vmatmul.mubr.f32.vlgmr.msra.gmra.mrb[12].mxu0 %v10233_v62  ;;  %1620 = vmatmul.mubr.f32.vlgmr.msra.gmra.mrb[12].mxu1 %v10233_v62 }
 0x556   :  { %6467 = vmatpush1.bf16.msra.mxu0 %v9564_v58  ;;  %1690 = vmatprep.mubr.f32.mxu0 %v10243_v48 }
 0x557   :  { %6469 = vmatprep.subr.bf16.mxu0 %v12621_v29  ;;  %6531 = vmatpush1.bf16.msra.mxu1 %v9383_v8 }
 0x558   :  { %6533 = vmatprep.subr.bf16.mxu1 %v9385_v9 }
 0x55a   :  { %6471 = vmatpush1.bf16.msra.mxu0 %v9583_v41 }
 0x55b   :  { %6473 = vmatprep.subr.bf16.mxu0 %v12622_v22  ;;  %6535 = vmatpush1.bf16.msra.mxu1 %v9389_v14 }
 0x55c   :  { %6537 = vmatprep.subr.bf16.mxu1 %v9392_v16 }
 0x55e   :  { %6475 = vmatpush1.bf16.msra.mxu0 %v12623_v0 }
 0x55f   :  { %6477 = vmatprep.subr.bf16.mxu0 %v12624_v7  ;;  %6539 = vmatpush1.bf16.msra.mxu1 %v9395_v21 }
 0x560   :  { %6541 = vmatprep.subr.bf16.mxu1 %v9398_v24 }
 0x562   :  { %6479 = vmatpush1.bf16.msra.mxu0 %v12625_v30 }
 0x563   :  { %6481 = vmatprep.subr.bf16.mxu0 %v12626_v60  ;;  %6543 = vmatpush1.bf16.msra.mxu1 %v9405_v33 }
 0x564   :  { %6545 = vmatprep.subr.bf16.mxu1 %v9409_v37 }
 0x566   :  { %6483 = vmatpush1.bf16.msra.mxu0 %v12627_v44 }
 0x567   :  { %6485 = vmatprep.subr.bf16.mxu0 %v12628_v26  ;;  %6547 = vmatpush1.bf16.msra.mxu1 %v9418_v49 }
 0x568   :  { %6549 = vmatprep.subr.bf16.mxu1 %v9423_v53 }
 0x56a   :  { %6487 = vmatpush1.bf16.msra.mxu0 %v12629_v40 }
 0x56b   :  { %6489 = vmatprep.subr.bf16.mxu0 %v12687_v61  ;;  %6551 = vmatpush1.bf16.msra.mxu1 %v12688_v10 }
 0x56c   :  { %6553 = vmatprep.subr.bf16.mxu1 %v9435_v2 }
 0x56e   :  { %6491 = vmatpush1.bf16.msra.mxu0 %v12631_v52 }
 0x56f   :  { %6493 = vmatprep.subr.bf16.mxu0 %v12689_v47  ;;  %6555 = vmatpush1.bf16.msra.mxu1 %v12690_v1 }
 0x570   :  { %6557 = vmatprep.subr.bf16.mxu1 %v9447_v19 }
 0x572   :  { %6495 = vmatpush1.bf16.msra.mxu0 %v12633_v4 }
 0x573   :  { %6497 = vmatprep.subr.bf16.mxu0 %v12691_v31  ;;  %6559 = vmatpush1.bf16.msra.mxu1 %v12692_v51 }
 0x574   :  { %6561 = vmatprep.subr.bf16.mxu1 %v9459_v36 }
 0x576   :  { %6499 = vmatpush1.bf16.msra.mxu0 %v12635_v13 }
 0x577   :  { %6501 = vmatprep.subr.bf16.mxu0 %v12759_v56  ;;  %6563 = vmatpush1.bf16.msra.mxu1 %v12831_v3 }
 0x578   :  { %6565 = vmatprep.subr.bf16.mxu1 %v12832_v39 }
 0x57a   :  { %6503 = vmatpush1.bf16.msra.mxu0 %v12833_v6 }
 0x57b   :  { %6505 = vmatprep.subr.bf16.mxu0 %v12834_v25  ;;  %6567 = vmatpush1.bf16.msra.mxu1 %v12835_v11 }
 0x57c   :  { %6569 = vmatprep.subr.bf16.mxu1 %v12836_v35 }
 0x57e   :  { %6507 = vmatpush1.bf16.msra.mxu0 %v12837_v50 }
 0x57f   :  { %6509 = vmatprep.subr.bf16.mxu0 %v12838_v55  ;;  %6571 = vmatpush1.bf16.msra.mxu1 %v12839_v20  ;;  %v12895_v20 = vld [vmem:[#allocation70_spill] sm:$0xff] }
 0x580   :  { %6573 = vmatprep.subr.bf16.mxu1 %v12840_v12  ;;  %v12851_v12 = vld [vmem:[#allocation47_spill] sm:$0xff] }
 0x582   :  { %6511 = vmatpush1.bf16.msra.mxu0 %v12841_v18  ;;  %v12852_v18 = vld [vmem:[#allocation48_spill] sm:$0xff] }
 0x583   :  { %6513 = vmatprep.subr.bf16.mxu0 %v12842_v15  ;;  %6575 = vmatpush1.bf16.msra.mxu1 %v12843_v45  ;;  %v12853_v15 = vld [vmem:[#allocation88_spill] sm:$0xff]  ;;  %v12854_v45 = vld [vmem:[#allocation89_spill] sm:$0xff] }
 0x584   :  { %6577 = vmatprep.subr.bf16.mxu1 %v12844_v38  ;;  %v12855_v38 = vld [vmem:[#allocation51_spill] sm:$0xff] }
 0x586   :  { %6515 = vmatpush1.bf16.msra.mxu0 %v12845_v59  ;;  %v12856_v59 = vld [vmem:[#allocation52_spill] sm:$0xff] }
 0x587   :  { %6517 = vmatprep.subr.bf16.mxu0 %v12846_v23  ;;  %6579 = vmatpush1.bf16.msra.mxu1 %v12847_v54  ;;  %v12857_v23 = vld [vmem:[#allocation90_spill] sm:$0xff] }
 0x588   :  { %6581 = vmatprep.subr.bf16.mxu1 %v12848_v34  ;;  %v12858_v54 = vld [vmem:[#allocation10_spill] sm:$0xff]  ;;  %v12859_v34 = vld [vmem:[#allocation55_spill] sm:$0xff] }
 0x58a   :  { %6519 = vmatpush1.bf16.msra.mxu0 %v12849_v46  ;;  %v12860_v46 = vld [vmem:[#allocation56_spill] sm:$0xff] }
 0x58b   :  { %6521 = vmatprep.subr.bf16.mxu0 %v12850_v63  ;;  %6583 = vmatpush1.bf16.msra.mxu1 %v12851_v12  ;;  %v12861_v12 = vld [vmem:[#allocation11_spill] sm:$0xff]  ;;  %v12871_v63 = vld [vmem:[#allocation25_spill] sm:$0xff] }
 0x58c   :  { %6585 = vmatprep.subr.bf16.mxu1 %v12852_v18  ;;  %v12862_v18 = vld [vmem:[#allocation12_spill] sm:$0xff] }
 0x58e   :  { %6523 = vmatpush1.bf16.msra.mxu0 %v12853_v15  ;;  %v12863_v15 = vld [vmem:[#allocation13_spill] sm:$0xff] }
 0x58f   :  { %6525 = vmatprep.subr.bf16.mxu0 %v12854_v45  ;;  %6587 = vmatpush1.bf16.msra.mxu1 %v12855_v38  ;;  %v12864_v45 = vld [vmem:[#allocation14_spill] sm:$0xff]  ;;  %v12865_v38 = vld [vmem:[#allocation15_spill] sm:$0xff] }
 0x590   :  { %6589 = vmatprep.subr.bf16.mxu1 %v12856_v59  ;;  %v12866_v59 = vld [vmem:[#allocation16_spill] sm:$0xff] }
 0x592   :  { %6527 = vmatpush1.bf16.msra.mxu0 %v12857_v23  ;;  %v12867_v23 = vld [vmem:[#allocation18_spill] sm:$0xff] }
 0x593   :  { %6593 = vmatprep.subr.bf16.mxu0 %v12858_v54  ;;  %6591 = vmatpush1.bf16.msra.mxu1 %v12859_v34  ;;  %v12868_v54 = vld [vmem:[#allocation19_spill] sm:$0xff]  ;;  %v12869_v34 = vld [vmem:[#allocation21_spill] sm:$0xff] }
 0x594   :  { %6657 = vmatprep.subr.bf16.mxu1 %v12860_v46  ;;  %v12870_v46 = vld [vmem:[#allocation22_spill] sm:$0xff] }
 0x595   :  { %1691 = vmatmul.mubr.f32.vlgmr.msra.gmra.mrb[14].mxu0 %v10233_v62 }
 0x596   :  { %6595 = vmatpush1.bf16.msra.mxu0 %v12861_v12  ;;  %v12872_v12 = vld [vmem:[#allocation26_spill] sm:$0xff] }
 0x597   :  { %6597 = vmatprep.subr.bf16.mxu0 %v12862_v18  ;;  %v12873_v18 = vld [vmem:[#allocation29_spill] sm:$0xff] }
 0x59a   :  { %6599 = vmatpush1.bf16.msra.mxu0 %v12863_v15  ;;  %v12874_v15 = vld [vmem:[#allocation30_spill] sm:$0xff] }
 0x59b   :  { %6601 = vmatprep.subr.bf16.mxu0 %v12864_v45  ;;  %v12875_v45 = vld [vmem:[#allocation33_spill] sm:$0xff] }
 0x59e   :  { %6603 = vmatpush1.bf16.msra.mxu0 %v12865_v38  ;;  %v12876_v38 = vld [vmem:[#allocation34_spill] sm:$0xff] }
 0x59f   :  { %6605 = vmatprep.subr.bf16.mxu0 %v12866_v59  ;;  %v12877_v59 = vld [vmem:[#allocation37_spill] sm:$0xff] }
 0x5a2   :  { %6607 = vmatpush1.bf16.msra.mxu0 %v12867_v23  ;;  %v12878_v23 = vld [vmem:[#allocation38_spill] sm:$0xff] }
 0x5a3   :  { %6609 = vmatprep.subr.bf16.mxu0 %v12868_v54  ;;  %v12879_v54 = vld [vmem:[#allocation41_spill] sm:$0xff] }
 0x5a6   :  { %6611 = vmatpush1.bf16.msra.mxu0 %v12869_v34  ;;  %v12880_v34 = vld [vmem:[#allocation42_spill] sm:$0xff] }
 0x5a7   :  { %6613 = vmatprep.subr.bf16.mxu0 %v12870_v46  ;;  %v12881_v46 = vld [vmem:[#allocation45_spill] sm:$0xff] }
 0x5aa   :  { %6615 = vmatpush1.bf16.msra.mxu0 %v12871_v63  ;;  %v12882_v63 = vld [vmem:[#allocation46_spill] sm:$0xff] }
 0x5ab   :  { %6617 = vmatprep.subr.bf16.mxu0 %v12872_v12  ;;  %v12883_v12 = vld [vmem:[#allocation49_spill] sm:$0xff] }
 0x5ae   :  { %6619 = vmatpush1.bf16.msra.mxu0 %v12873_v18  ;;  %v12884_v18 = vld [vmem:[#allocation50_spill] sm:$0xff] }
 0x5af   :  { %6621 = vmatprep.subr.bf16.mxu0 %v12874_v15  ;;  %v12885_v15 = vld [vmem:[#allocation53_spill] sm:$0xff] }
 0x5b2   :  { %6623 = vmatpush1.bf16.msra.mxu0 %v12875_v45  ;;  %v12886_v45 = vld [vmem:[#allocation54_spill] sm:$0xff] }
 0x5b3   :  { %6625 = vmatprep.subr.bf16.mxu0 %v12876_v38  ;;  %v12887_v38 = vld [vmem:[#allocation57_spill] sm:$0xff] }
 0x5b6   :  { %6627 = vmatpush1.bf16.msra.mxu0 %v12877_v59  ;;  %v12888_v59 = vld [vmem:[#allocation58_spill] sm:$0xff] }
 0x5b7   :  { %6629 = vmatprep.subr.bf16.mxu0 %v12878_v23  ;;  %v12889_v23 = vld [vmem:[#allocation60_spill] sm:$0xff] }
 0x5ba   :  { %6631 = vmatpush1.bf16.msra.mxu0 %v12879_v54  ;;  %v12890_v54 = vld [vmem:[#allocation61_spill] sm:$0xff] }
 0x5bb   :  { %6633 = vmatprep.subr.bf16.mxu0 %v12880_v34  ;;  %v12891_v34 = vld [vmem:[#allocation63_spill] sm:$0xff] }
 0x5be   :  { %6635 = vmatpush1.bf16.msra.mxu0 %v12881_v46  ;;  %v12892_v46 = vld [vmem:[#allocation9_spill] sm:$0xff] }
 0x5bf   :  { %6637 = vmatprep.subr.bf16.mxu0 %v12882_v63 }
 0x5c2   :  { %6639 = vmatpush1.bf16.msra.mxu0 %v12883_v12  ;;  %v12893_v12 = vld [vmem:[#allocation93_spill] sm:$0xff] }
 0x5c3   :  { %6641 = vmatprep.subr.bf16.mxu0 %v12884_v18  ;;  %v160_v63 = vmul.f32 %v12893_v12, %v10223_v57  ;;  %v12894_v18 = vld [vmem:[#allocation95_spill] sm:$0xff] }
 0x5c6   :  { %6643 = vmatpush1.bf16.msra.mxu0 %v12885_v15  ;;  %v161_v15 = vmul.f32 %v12894_v18, %v10223_v57 }
 0x5c7   :  { %6645 = vmatprep.subr.bf16.mxu0 %v12886_v45  ;;  %v12896_v45 = vld [vmem:[#allocation99_spill] sm:$0xff] }
 0x5c8   :  { %v157_v55 = vmul.f32 %v12896_v45, %v12895_v20 }
 0x5ca   :  { %6647 = vmatpush1.bf16.msra.mxu0 %v12887_v38  ;;  %v12897_v38 = vld [vmem:[#allocation96_spill] sm:$0xff] }
 0x5cb   :  { %6649 = vmatprep.subr.bf16.mxu0 %v12888_v59  ;;  %v232_v50 = vadd.f32 %v12897_v38, %v160_v63  ;;  %v12899_v63 = vld [vmem:[#allocation100_spill] sm:$0xff] }
 0x5cc   :  { %v162_v38 = vmul.f32 %v12899_v63, %v10223_v57 }
 0x5ce   :  { %6651 = vmatpush1.bf16.msra.mxu0 %v12889_v23  ;;  %v12898_v23 = vld [vmem:[#allocation97_spill] sm:$0xff] }
 0x5cf   :  { %6653 = vmatprep.subr.bf16.mxu0 %v12890_v54  ;;  %v233_v11 = vadd.f32 %v12898_v23, %v161_v15  ;;  %v229_v54 = vadd.f32 %v9800_v32, %v157_v55  ;;  %v12900_v15 = vld [vmem:[#allocation101_spill] sm:$0xff] }
 0x5d2   :  { %6655 = vmatpush1.bf16.msra.mxu0 %v12891_v34 }
 0x5d3   :  { %6721 = vmatprep.subr.bf16.mxu0 %v12892_v46 }
 0x628   :  { %v1550_v59 = vpop.f32.mrb[12].mxu0  ;;  %v1621_v35 = vpop.f32.mrb[12].mxu1 }
 0x629   :  { %v1697_v34 = vadd.f32 %v1550_v59, %v232_v50  ;;  %v1552_v25 = vpop.f32.mrb[13].mxu0  ;;  %v1623_v46 = vpop.f32.mrb[13].mxu1  ;;  %v1711_v23 = vadd.f32 %v1621_v35, %v12900_v15  ;;  %v234_v50 = vadd.f32 %v9805_v27, %v162_v38  ;;  %v158_v35 = vmul.f32 %v9825_v28, %v12895_v20 }
 0x62a   :  { %v1704_v6 = vadd.f32 %v1552_v25, %v233_v11  ;;  %v1719_v39 = vadd.f32 %v1623_v46, %v229_v54 }
 0x62b   :  { %v5482_v12 = vmul.f32 -1.442695, %v1697_v34 }
 0x62c   :  { %v5483_v3 = vmul.f32 -1.442695, %v1704_v6  ;;  %v5484_v25 = vmul.f32 -1.442695, %v1719_v39  ;;  %v159_v39 = vmul.f32 %v9839_v42, %v12895_v20 }
 0x62d   :  { %8987 = vpow2.f32 %v5482_v12 }
 0x62e   :  { %8989 = vpow2.f32 %v5483_v3 }
 0x637   :  { %v8988_v18 = vpop.eup %8987 }
 0x638   :  { %v1701_v56 = vadd.f32 1.0, %v8988_v18  ;;  %v8990_v45 = vpop.eup %8989 }
 0x639   :  { %v1708_v13 = vadd.f32 1.0, %v8990_v45 }
 0x63a   :  { %8991 = vrcp.f32 %v1701_v56 }
 0x63b   :  { %8993 = vrcp.f32 %v1708_v13  ;;  %v230_v13 = vadd.f32 %v9830_v5, %v158_v35  ;;  %v12903_v35 = vld [vmem:[#allocation76_spill] sm:$0xff] }
 0x644   :  { %v8992_v55 = vpop.eup %8991 }
 0x645   :  { %v1712_v59 = vmul.f32 %v8992_v55, %v1711_v23  ;;  %v8994_v6 = vpop.eup %8993 }
 0x646   :  { %v1715_v3 = vsub.f32 1.0, %v8994_v6  ;;  %v1717_v12 = vmul.f32 %v8994_v6, %v10233_v62  ;;  %v12923_v62 = vld [vmem:[#allocation86_spill] sm:$0xff] }
 0x647   :  { %v1713_v46 = vadd.f32 %v1712_v59, %v234_v50  ;;  %v231_v59 = vadd.f32 %v9844_v17, %v159_v39  ;;  %v12906_v39 = vld [vmem:[#allocation28_spill] sm:$0xff] }
 0x649   :  { %8995 = vtanh.f32 %v1713_v46 }
 0x64a   :  { %8997 = vpow2.f32 %v5484_v25 }
 0x653   :  { %v8996_v11 = vpop.eup %8995 }
 0x654   :  { %v1716_v56 = vmul.f32 %v8996_v11, %v1715_v3  ;;  %v8998_v57 = vpop.eup %8997 }
 0x655   :  { %v1723_v45 = vadd.f32 1.0, %v8998_v57 }
 0x656   :  { %v10361_v18 = vadd.f32 %v1717_v12, %v1716_v56 }
 0x657   :  { %8999 = vrcp.f32 %v1723_v45 }
 0x658   :  { %12901 = vst [vmem:[#allocation71_spill] sm:$0xff] %v10361_v18 }
 0x661   :  { %v9000_v55 = vpop.eup %8999 }
 0x668   :  { %v1692_v38 = vpop.f32.mrb[14].mxu0 }
 0x669   :  { %v1726_v23 = vadd.f32 %v1692_v38, %v230_v13  ;;  %v1694_v54 = vpop.f32.mrb[15].mxu0  ;;  %v12904_v13 = vld [vmem:[#allocation77_spill] sm:$0xff]  ;;  %v12905_v38 = vld [vmem:[#allocation27_spill] sm:$0xff] }
 0x66a   :  { %v1733_v34 = vadd.f32 %v1694_v54, %v9834_v43  ;;  %v12908_v54 = vld [vmem:[#allocation79_spill] sm:$0xff] }
 0x66b   :  { %v5485_v50 = vmul.f32 -1.442695, %v1726_v23  ;;  %v12907_v23 = vld [vmem:[#allocation78_spill] sm:$0xff] }
 0x66c   :  { %v1734_v46 = vmul.f32 %v9000_v55, %v1733_v34  ;;  %v12909_v34 = vld [vmem:[#allocation31_spill] sm:$0xff]  ;;  %v12910_v55 = vld [vmem:[#allocation32_spill] sm:$0xff] }
 0x66d   :  { %9001 = vpow2.f32 %v5485_v50  ;;  %v12911_v50 = vld [vmem:[#allocation80_spill] sm:$0xff] }
 0x66e   :  { %v1735_v25 = vadd.f32 %v1734_v46, %v231_v59  ;;  %v12912_v59 = vld [vmem:[#allocation81_spill] sm:$0xff]  ;;  %v12913_v46 = vld [vmem:[#allocation35_spill] sm:$0xff] }
 0x677   :  { %v9002_v6 = vpop.eup %9001 }
 0x678   :  { %v1730_v3 = vadd.f32 1.0, %v9002_v6  ;;  %v12915_v6 = vld [vmem:[#allocation82_spill] sm:$0xff] }
 0x67a   :  { %9003 = vrcp.f32 %v1730_v3  ;;  %v12916_v3 = vld [vmem:[#allocation83_spill] sm:$0xff] }
 0x67b   :  { %9005 = vtanh.f32 %v1735_v25  ;;  %v12914_v25 = vld [vmem:[#allocation36_spill] sm:$0xff] }
 0x684   :  { %v9004_v11 = vpop.eup %9003 }
 0x685   :  { %v1737_v56 = vsub.f32 1.0, %v9004_v11  ;;  %v9006_v12 = vpop.eup %9005  ;;  %v1739_v20 = vmul.f32 %v9004_v11, %v10243_v48  ;;  %v12917_v11 = vld [vmem:[#allocation39_spill] sm:$0xff]  ;;  %v12922_v48 = vld [vmem:[#allocation44_spill] sm:$0xff] }
 0x687   :  { %v1738_v57 = vmul.f32 %v9006_v12, %v1737_v56  ;;  %v12918_v56 = vld [vmem:[#allocation40_spill] sm:$0xff] }
 0x688   :  { %v12919_v12 = vld [vmem:[#allocation84_spill] sm:$0xff] }
 0x689   :  { %v10371_v45 = vadd.f32 %v1739_v20, %v1738_v57  ;;  %v12920_v20 = vld [vmem:[#allocation85_spill] sm:$0xff]  ;;  %v12921_v57 = vld [vmem:[#allocation43_spill] sm:$0xff] }
 0x68b   :  { %12902 = vst [vmem:[#allocation17_spill] sm:$0xff] %v10371_v45  ;;  %1805 = vmatprep.mubr.f32.mxu1 %v10371_v45  ;;  %1876 = vmatprep.mubr.f32.mxu0 %v10371_v45 }
 0x68c   :  { %1806 = vmatmul.mubr.f32.vlgmr.msra.gmra.mrb[14].mxu1 %v10361_v18  ;;  %1877 = vmatmul.mubr.f32.vlgmr.msra.gmra.mrb[16].mxu0 %v10361_v18 }
 0x68d   :  { %6659 = vmatpush1.bf16.msra.mxu1 %v9564_v58  ;;  %1947 = vmatprep.mubr.f32.mxu1 %v10371_v45 }
 0x68e   :  { %6661 = vmatprep.subr.bf16.mxu1 %v12621_v29  ;;  %6723 = vmatpush1.bf16.msra.mxu0 %v9383_v8 }
 0x68f   :  { %6725 = vmatprep.subr.bf16.mxu0 %v9385_v9 }
 0x691   :  { %6663 = vmatpush1.bf16.msra.mxu1 %v9583_v41 }
 0x692   :  { %6665 = vmatprep.subr.bf16.mxu1 %v12622_v22  ;;  %6727 = vmatpush1.bf16.msra.mxu0 %v9389_v14 }
 0x693   :  { %6729 = vmatprep.subr.bf16.mxu0 %v9392_v16 }
 0x695   :  { %6667 = vmatpush1.bf16.msra.mxu1 %v12623_v0 }
 0x696   :  { %6669 = vmatprep.subr.bf16.mxu1 %v12624_v7  ;;  %6731 = vmatpush1.bf16.msra.mxu0 %v9395_v21 }
 0x697   :  { %6733 = vmatprep.subr.bf16.mxu0 %v9398_v24 }
 0x699   :  { %6671 = vmatpush1.bf16.msra.mxu1 %v12625_v30 }
 0x69a   :  { %6673 = vmatprep.subr.bf16.mxu1 %v12626_v60  ;;  %6735 = vmatpush1.bf16.msra.mxu0 %v9405_v33 }
 0x69b   :  { %6737 = vmatprep.subr.bf16.mxu0 %v9409_v37 }
 0x69d   :  { %6675 = vmatpush1.bf16.msra.mxu1 %v12627_v44 }
 0x69e   :  { %6677 = vmatprep.subr.bf16.mxu1 %v12628_v26  ;;  %6739 = vmatpush1.bf16.msra.mxu0 %v9418_v49 }
 0x69f   :  { %6741 = vmatprep.subr.bf16.mxu0 %v9423_v53 }
 0x6a1   :  { %6679 = vmatpush1.bf16.msra.mxu1 %v12629_v40 }
 0x6a2   :  { %6681 = vmatprep.subr.bf16.mxu1 %v12687_v61  ;;  %6743 = vmatpush1.bf16.msra.mxu0 %v12688_v10 }
 0x6a3   :  { %6745 = vmatprep.subr.bf16.mxu0 %v9435_v2 }
 0x6a5   :  { %6683 = vmatpush1.bf16.msra.mxu1 %v12631_v52 }
 0x6a6   :  { %6685 = vmatprep.subr.bf16.mxu1 %v12689_v47  ;;  %6747 = vmatpush1.bf16.msra.mxu0 %v12690_v1 }
 0x6a7   :  { %6749 = vmatprep.subr.bf16.mxu0 %v9447_v19 }
 0x6a9   :  { %6687 = vmatpush1.bf16.msra.mxu1 %v12633_v4 }
 0x6aa   :  { %6689 = vmatprep.subr.bf16.mxu1 %v12691_v31  ;;  %6751 = vmatpush1.bf16.msra.mxu0 %v12692_v51 }
 0x6ab   :  { %6753 = vmatprep.subr.bf16.mxu0 %v9459_v36 }
 0x6ad   :  { %6691 = vmatpush1.bf16.msra.mxu1 %v12903_v35 }
 0x6ae   :  { %6693 = vmatprep.subr.bf16.mxu1 %v12904_v13  ;;  %6755 = vmatpush1.bf16.msra.mxu0 %v12905_v38 }
 0x6af   :  { %6757 = vmatprep.subr.bf16.mxu0 %v12906_v39 }
 0x6b1   :  { %6695 = vmatpush1.bf16.msra.mxu1 %v12907_v23 }
 0x6b2   :  { %6697 = vmatprep.subr.bf16.mxu1 %v12908_v54  ;;  %6759 = vmatpush1.bf16.msra.mxu0 %v12909_v34 }
 0x6b3   :  { %6761 = vmatprep.subr.bf16.mxu0 %v12910_v55 }
 0x6b5   :  { %6699 = vmatpush1.bf16.msra.mxu1 %v12911_v50  ;;  %v12970_v50 = vld [vmem:[#allocation66_spill] sm:$0xff] }
 0x6b6   :  { %6701 = vmatprep.subr.bf16.mxu1 %v12912_v59  ;;  %6763 = vmatpush1.bf16.msra.mxu0 %v12913_v46  ;;  %v12924_v46 = vld [vmem:[#allocation87_spill] sm:$0xff] }
 0x6b7   :  { %6765 = vmatprep.subr.bf16.mxu0 %v12914_v25  ;;  %v12925_v25 = vld [vmem:[#allocation47_spill] sm:$0xff] }
 0x6b9   :  { %6703 = vmatpush1.bf16.msra.mxu1 %v12915_v6  ;;  %v12926_v6 = vld [vmem:[#allocation48_spill] sm:$0xff] }
 0x6ba   :  { %6705 = vmatprep.subr.bf16.mxu1 %v12916_v3  ;;  %6767 = vmatpush1.bf16.msra.mxu0 %v12917_v11  ;;  %v12927_v3 = vld [vmem:[#allocation88_spill] sm:$0xff]  ;;  %v12928_v11 = vld [vmem:[#allocation89_spill] sm:$0xff] }
 0x6bb   :  { %6769 = vmatprep.subr.bf16.mxu0 %v12918_v56  ;;  %v12929_v56 = vld [vmem:[#allocation51_spill] sm:$0xff] }
 0x6bd   :  { %6707 = vmatpush1.bf16.msra.mxu1 %v12919_v12  ;;  %v12930_v12 = vld [vmem:[#allocation52_spill] sm:$0xff] }
 0x6be   :  { %6709 = vmatprep.subr.bf16.mxu1 %v12920_v20  ;;  %6771 = vmatpush1.bf16.msra.mxu0 %v12921_v57  ;;  %v12931_v20 = vld [vmem:[#allocation90_spill] sm:$0xff] }
 0x6bf   :  { %6773 = vmatprep.subr.bf16.mxu0 %v12922_v48  ;;  %v12932_v57 = vld [vmem:[#allocation10_spill] sm:$0xff]  ;;  %v12933_v48 = vld [vmem:[#allocation55_spill] sm:$0xff] }
 0x6c1   :  { %6711 = vmatpush1.bf16.msra.mxu1 %v12923_v62  ;;  %v12934_v62 = vld [vmem:[#allocation56_spill] sm:$0xff] }
 0x6c2   :  { %6713 = vmatprep.subr.bf16.mxu1 %v12924_v46  ;;  %6775 = vmatpush1.bf16.msra.mxu0 %v12925_v25  ;;  %v12935_v25 = vld [vmem:[#allocation11_spill] sm:$0xff]  ;;  %v12945_v46 = vld [vmem:[#allocation25_spill] sm:$0xff] }
 0x6c3   :  { %6777 = vmatprep.subr.bf16.mxu0 %v12926_v6  ;;  %v12936_v6 = vld [vmem:[#allocation12_spill] sm:$0xff] }
 0x6c5   :  { %6715 = vmatpush1.bf16.msra.mxu1 %v12927_v3  ;;  %v12937_v3 = vld [vmem:[#allocation13_spill] sm:$0xff] }
 0x6c6   :  { %6717 = vmatprep.subr.bf16.mxu1 %v12928_v11  ;;  %6779 = vmatpush1.bf16.msra.mxu0 %v12929_v56  ;;  %v12938_v11 = vld [vmem:[#allocation14_spill] sm:$0xff]  ;;  %v12939_v56 = vld [vmem:[#allocation15_spill] sm:$0xff] }
 0x6c7   :  { %6781 = vmatprep.subr.bf16.mxu0 %v12930_v12  ;;  %v12940_v12 = vld [vmem:[#allocation16_spill] sm:$0xff] }
 0x6c9   :  { %6719 = vmatpush1.bf16.msra.mxu1 %v12931_v20  ;;  %v12941_v20 = vld [vmem:[#allocation18_spill] sm:$0xff] }
 0x6ca   :  { %6785 = vmatprep.subr.bf16.mxu1 %v12932_v57  ;;  %6783 = vmatpush1.bf16.msra.mxu0 %v12933_v48  ;;  %v12942_v57 = vld [vmem:[#allocation19_spill] sm:$0xff]  ;;  %v12943_v48 = vld [vmem:[#allocation21_spill] sm:$0xff] }
 0x6cb   :  { %6849 = vmatprep.subr.bf16.mxu0 %v12934_v62  ;;  %v12944_v62 = vld [vmem:[#allocation22_spill] sm:$0xff] }
 0x6cc   :  { %1948 = vmatmul.mubr.f32.vlgmr.msra.gmra.mrb[16].mxu1 %v10361_v18 }
 0x6cd   :  { %6787 = vmatpush1.bf16.msra.mxu1 %v12935_v25  ;;  %v12946_v25 = vld [vmem:[#allocation26_spill] sm:$0xff] }
 0x6ce   :  { %6789 = vmatprep.subr.bf16.mxu1 %v12936_v6  ;;  %v12947_v6 = vld [vmem:[#allocation29_spill] sm:$0xff] }
 0x6d1   :  { %6791 = vmatpush1.bf16.msra.mxu1 %v12937_v3  ;;  %v12948_v3 = vld [vmem:[#allocation30_spill] sm:$0xff] }
 0x6d2   :  { %6793 = vmatprep.subr.bf16.mxu1 %v12938_v11  ;;  %v12949_v11 = vld [vmem:[#allocation33_spill] sm:$0xff] }
 0x6d5   :  { %6795 = vmatpush1.bf16.msra.mxu1 %v12939_v56  ;;  %v12950_v56 = vld [vmem:[#allocation34_spill] sm:$0xff] }
 0x6d6   :  { %6797 = vmatprep.subr.bf16.mxu1 %v12940_v12  ;;  %v12951_v12 = vld [vmem:[#allocation37_spill] sm:$0xff] }
 0x6d9   :  { %6799 = vmatpush1.bf16.msra.mxu1 %v12941_v20  ;;  %v12952_v20 = vld [vmem:[#allocation38_spill] sm:$0xff] }
 0x6da   :  { %6801 = vmatprep.subr.bf16.mxu1 %v12942_v57  ;;  %v12953_v57 = vld [vmem:[#allocation41_spill] sm:$0xff] }
 0x6dd   :  { %6803 = vmatpush1.bf16.msra.mxu1 %v12943_v48  ;;  %v12954_v48 = vld [vmem:[#allocation42_spill] sm:$0xff] }
 0x6de   :  { %6805 = vmatprep.subr.bf16.mxu1 %v12944_v62  ;;  %v12955_v62 = vld [vmem:[#allocation45_spill] sm:$0xff] }
 0x6e1   :  { %6807 = vmatpush1.bf16.msra.mxu1 %v12945_v46  ;;  %v12956_v46 = vld [vmem:[#allocation46_spill] sm:$0xff] }
 0x6e2   :  { %6809 = vmatprep.subr.bf16.mxu1 %v12946_v25  ;;  %v12957_v25 = vld [vmem:[#allocation49_spill] sm:$0xff] }
 0x6e5   :  { %6811 = vmatpush1.bf16.msra.mxu1 %v12947_v6  ;;  %v12958_v6 = vld [vmem:[#allocation50_spill] sm:$0xff] }
 0x6e6   :  { %6813 = vmatprep.subr.bf16.mxu1 %v12948_v3  ;;  %v12959_v3 = vld [vmem:[#allocation53_spill] sm:$0xff] }
 0x6e9   :  { %6815 = vmatpush1.bf16.msra.mxu1 %v12949_v11  ;;  %v12960_v11 = vld [vmem:[#allocation54_spill] sm:$0xff] }
 0x6ea   :  { %6817 = vmatprep.subr.bf16.mxu1 %v12950_v56  ;;  %v12961_v56 = vld [vmem:[#allocation57_spill] sm:$0xff] }
 0x6ed   :  { %6819 = vmatpush1.bf16.msra.mxu1 %v12951_v12  ;;  %v12962_v12 = vld [vmem:[#allocation58_spill] sm:$0xff] }
 0x6ee   :  { %6821 = vmatprep.subr.bf16.mxu1 %v12952_v20  ;;  %v12963_v20 = vld [vmem:[#allocation60_spill] sm:$0xff] }
 0x6f1   :  { %6823 = vmatpush1.bf16.msra.mxu1 %v12953_v57  ;;  %v12964_v57 = vld [vmem:[#allocation61_spill] sm:$0xff] }
 0x6f2   :  { %6825 = vmatprep.subr.bf16.mxu1 %v12954_v48  ;;  %v12965_v48 = vld [vmem:[#allocation63_spill] sm:$0xff] }
 0x6f5   :  { %6827 = vmatpush1.bf16.msra.mxu1 %v12955_v62  ;;  %v12966_v62 = vld [vmem:[#allocation9_spill] sm:$0xff] }
 0x6f6   :  { %6829 = vmatprep.subr.bf16.mxu1 %v12956_v46  ;;  %v12967_v46 = vld [vmem:[#allocation67_spill] sm:$0xff] }
 0x6f9   :  { %6831 = vmatpush1.bf16.msra.mxu1 %v12957_v25  ;;  %v12968_v25 = vld [vmem:[#allocation93_spill] sm:$0xff] }
 0x6fa   :  { %6833 = vmatprep.subr.bf16.mxu1 %v12958_v6  ;;  %v166_v59 = vmul.f32 %v12968_v25, %v12967_v46  ;;  %v12969_v6 = vld [vmem:[#allocation95_spill] sm:$0xff] }
 0x6fd   :  { %6835 = vmatpush1.bf16.msra.mxu1 %v12959_v3  ;;  %v167_v3 = vmul.f32 %v12969_v6, %v12967_v46 }
 0x6fe   :  { %6837 = vmatprep.subr.bf16.mxu1 %v12960_v11  ;;  %v12971_v11 = vld [vmem:[#allocation99_spill] sm:$0xff] }
 0x6ff   :  { %v151_v55 = vmul.f32 %v12971_v11, %v12970_v50 }
 0x701   :  { %6839 = vmatpush1.bf16.msra.mxu1 %v12961_v56  ;;  %v12972_v56 = vld [vmem:[#allocation96_spill] sm:$0xff] }
 0x702   :  { %6841 = vmatprep.subr.bf16.mxu1 %v12962_v12  ;;  %v238_v34 = vadd.f32 %v12972_v56, %v166_v59  ;;  %v168_v59 = vmul.f32 %v12899_v63, %v12967_v46 }
 0x705   :  { %6843 = vmatpush1.bf16.msra.mxu1 %v12963_v20  ;;  %v12973_v20 = vld [vmem:[#allocation97_spill] sm:$0xff] }
 0x706   :  { %6845 = vmatprep.subr.bf16.mxu1 %v12964_v57  ;;  %v239_v23 = vadd.f32 %v12973_v20, %v167_v3  ;;  %v223_v57 = vadd.f32 %v9800_v32, %v151_v55 }
 0x709   :  { %6847 = vmatpush1.bf16.msra.mxu1 %v12965_v48 }
 0x70a   :  { %6913 = vmatprep.subr.bf16.mxu1 %v12966_v62 }
 0x75f   :  { %v1807_v12 = vpop.f32.mrb[14].mxu1  ;;  %v1878_v54 = vpop.f32.mrb[16].mxu0 }
 0x760   :  { %v1954_v48 = vadd.f32 %v1807_v12, %v238_v34  ;;  %v1809_v39 = vpop.f32.mrb[15].mxu1  ;;  %v1880_v62 = vpop.f32.mrb[17].mxu0  ;;  %v1968_v3 = vadd.f32 %v1878_v54, %v12900_v15  ;;  %v240_v34 = vadd.f32 %v9805_v27, %v168_v59  ;;  %v152_v54 = vmul.f32 %v9825_v28, %v12970_v50 }
 0x761   :  { %v1961_v38 = vadd.f32 %v1809_v39, %v239_v23  ;;  %v1976_v13 = vadd.f32 %v1880_v62, %v223_v57 }
 0x762   :  { %v5486_v25 = vmul.f32 -1.442695, %v1954_v48 }
 0x763   :  { %v5487_v35 = vmul.f32 -1.442695, %v1961_v38  ;;  %v5488_v48 = vmul.f32 -1.442695, %v1976_v13  ;;  %v153_v13 = vmul.f32 %v9839_v42, %v12970_v50 }
 0x764   :  { %9007 = vpow2.f32 %v5486_v25 }
 0x765   :  { %9009 = vpow2.f32 %v5487_v35 }
 0x76e   :  { %v9008_v6 = vpop.eup %9007 }
 0x76f   :  { %v1958_v36 = vadd.f32 1.0, %v9008_v6  ;;  %v9010_v11 = vpop.eup %9009 }
 0x770   :  { %v1965_v56 = vadd.f32 1.0, %v9010_v11 }
 0x771   :  { %9011 = vrcp.f32 %v1958_v36 }
 0x772   :  { %9013 = vrcp.f32 %v1965_v56  ;;  %v224_v56 = vadd.f32 %v9830_v5, %v152_v54  ;;  %v12989_v54 = vld [vmem:[#allocation39_spill] sm:$0xff] }
 0x77b   :  { %v9012_v55 = vpop.eup %9011 }
 0x77c   :  { %v1969_v12 = vmul.f32 %v9012_v55, %v1968_v3  ;;  %v9014_v38 = vpop.eup %9013 }
 0x77d   :  { %v1972_v35 = vsub.f32 1.0, %v9014_v38  ;;  %v1974_v25 = vmul.f32 %v9014_v38, %v10361_v18 }
 0x77e   :  { %v1970_v39 = vadd.f32 %v1969_v12, %v240_v34  ;;  %v225_v12 = vadd.f32 %v9844_v17, %v153_v13  ;;  %v12992_v13 = vld [vmem:[#allocation85_spill] sm:$0xff] }
 0x780   :  { %9015 = vtanh.f32 %v1970_v39 }
 0x781   :  { %9017 = vpow2.f32 %v5488_v48 }
 0x78a   :  { %v9016_v23 = vpop.eup %9015 }
 0x78b   :  { %v1973_v36 = vmul.f32 %v9016_v23, %v1972_v35  ;;  %v9018_v46 = vpop.eup %9017 }
 0x78c   :  { %v1980_v11 = vadd.f32 1.0, %v9018_v46 }
 0x78d   :  { %v10489_v6 = vadd.f32 %v1974_v25, %v1973_v36 }
 0x78e   :  { %9019 = vrcp.f32 %v1980_v11 }
 0x798   :  { %v9020_v55 = vpop.eup %9019 }
 0x79f   :  { %v1949_v57 = vpop.f32.mrb[16].mxu1 }
 0x7a0   :  { %v1983_v62 = vadd.f32 %v1949_v57, %v224_v56  ;;  %v1951_v59 = vpop.f32.mrb[17].mxu1  ;;  %v12990_v56 = vld [vmem:[#allocation40_spill] sm:$0xff] }
 0x7a1   :  { %v1990_v3 = vadd.f32 %v1951_v59, %v9834_v43  ;;  %v12991_v57 = vld [vmem:[#allocation84_spill] sm:$0xff] }
 0x7a2   :  { %v5489_v34 = vmul.f32 -1.442695, %v1983_v62  ;;  %v12993_v62 = vld [vmem:[#allocation43_spill] sm:$0xff]  ;;  %v12994_v59 = vld [vmem:[#allocation44_spill] sm:$0xff] }
 0x7a3   :  { %v1991_v39 = vmul.f32 %v9020_v55, %v1990_v3  ;;  %v12995_v3 = vld [vmem:[#allocation86_spill] sm:$0xff]  ;;  %v12996_v55 = vld [vmem:[#allocation87_spill] sm:$0xff] }
 0x7a4   :  { %9021 = vpow2.f32 %v5489_v34  ;;  %v12997_v34 = vld [vmem:[#allocation47_spill] sm:$0xff] }
 0x7a5   :  { %v1992_v48 = vadd.f32 %v1991_v39, %v225_v12  ;;  %v12998_v12 = vld [vmem:[#allocation48_spill] sm:$0xff] }
 0x7a6   :  { %v12999_v39 = vld [vmem:[#allocation88_spill] sm:$0xff] }
 0x7ae   :  { %v9022_v38 = vpop.eup %9021 }
 0x7af   :  { %v1987_v35 = vadd.f32 1.0, %v9022_v38  ;;  %v13001_v38 = vld [vmem:[#allocation51_spill] sm:$0xff] }
 0x7b1   :  { %9023 = vrcp.f32 %v1987_v35  ;;  %v13002_v35 = vld [vmem:[#allocation52_spill] sm:$0xff] }
 0x7b2   :  { %9025 = vtanh.f32 %v1992_v48  ;;  %v13000_v48 = vld [vmem:[#allocation89_spill] sm:$0xff] }
 0x7bb   :  { %v9024_v23 = vpop.eup %9023 }
 0x7bc   :  { %v1994_v36 = vsub.f32 1.0, %v9024_v23  ;;  %v9026_v25 = vpop.eup %9025  ;;  %v1996_v50 = vmul.f32 %v9024_v23, %v10371_v45  ;;  %v13003_v23 = vld [vmem:[#allocation90_spill] sm:$0xff] }
 0x7bd   :  { %v13042_v45 = vld [vmem:[#allocation62_spill] sm:$0xff] }
 0x7be   :  { %v1995_v46 = vmul.f32 %v9026_v25, %v1994_v36  ;;  %v13004_v36 = vld [vmem:[#allocation10_spill] sm:$0xff]  ;;  %v13005_v25 = vld [vmem:[#allocation55_spill] sm:$0xff] }
 0x7c0   :  { %v10499_v11 = vadd.f32 %v1996_v50, %v1995_v46  ;;  %v13006_v50 = vld [vmem:[#allocation56_spill] sm:$0xff]  ;;  %v13007_v46 = vld [vmem:[#allocation11_spill] sm:$0xff] }
 0x7c2   :  { %2062 = vmatprep.mubr.f32.mxu0 %v10499_v11  ;;  %2133 = vmatprep.mubr.f32.mxu1 %v10499_v11 }
 0x7c3   :  { %2063 = vmatmul.mubr.f32.vlgmr.msra.gmra.mrb[18].mxu0 %v10489_v6  ;;  %2134 = vmatmul.mubr.f32.vlgmr.msra.gmra.mrb[18].mxu1 %v10489_v6 }
 0x7c4   :  { %6851 = vmatpush1.bf16.msra.mxu0 %v9564_v58  ;;  %2204 = vmatprep.mubr.f32.mxu0 %v10499_v11 }
 0x7c5   :  { %6853 = vmatprep.subr.bf16.mxu0 %v12621_v29  ;;  %6915 = vmatpush1.bf16.msra.mxu1 %v9383_v8  ;;  %v12974_v8 = vld [vmem:[#allocation24_spill] sm:$0xff] }
 0x7c6   :  { %6917 = vmatprep.subr.bf16.mxu1 %v9385_v9  ;;  %v12975_v9 = vld [vmem:[#allocation76_spill] sm:$0xff] }
 0x7c8   :  { %6855 = vmatpush1.bf16.msra.mxu0 %v9583_v41 }
 0x7c9   :  { %6857 = vmatprep.subr.bf16.mxu0 %v12622_v22  ;;  %6919 = vmatpush1.bf16.msra.mxu1 %v9389_v14  ;;  %v12976_v14 = vld [vmem:[#allocation77_spill] sm:$0xff] }
 0x7ca   :  { %6921 = vmatprep.subr.bf16.mxu1 %v9392_v16  ;;  %v12977_v16 = vld [vmem:[#allocation27_spill] sm:$0xff] }
 0x7cc   :  { %6859 = vmatpush1.bf16.msra.mxu0 %v12623_v0 }
 0x7cd   :  { %6861 = vmatprep.subr.bf16.mxu0 %v12624_v7  ;;  %6923 = vmatpush1.bf16.msra.mxu1 %v9395_v21  ;;  %v12978_v21 = vld [vmem:[#allocation28_spill] sm:$0xff] }
 0x7ce   :  { %6925 = vmatprep.subr.bf16.mxu1 %v9398_v24  ;;  %v12979_v24 = vld [vmem:[#allocation78_spill] sm:$0xff] }
 0x7d0   :  { %6863 = vmatpush1.bf16.msra.mxu0 %v12625_v30 }
 0x7d1   :  { %6865 = vmatprep.subr.bf16.mxu0 %v12626_v60  ;;  %6927 = vmatpush1.bf16.msra.mxu1 %v9405_v33  ;;  %v12980_v33 = vld [vmem:[#allocation79_spill] sm:$0xff] }
 0x7d2   :  { %6929 = vmatprep.subr.bf16.mxu1 %v9409_v37  ;;  %v12981_v37 = vld [vmem:[#allocation31_spill] sm:$0xff] }
 0x7d4   :  { %6867 = vmatpush1.bf16.msra.mxu0 %v12627_v44 }
 0x7d5   :  { %6869 = vmatprep.subr.bf16.mxu0 %v12628_v26  ;;  %6931 = vmatpush1.bf16.msra.mxu1 %v9418_v49  ;;  %v12982_v49 = vld [vmem:[#allocation32_spill] sm:$0xff] }
 0x7d6   :  { %6933 = vmatprep.subr.bf16.mxu1 %v9423_v53  ;;  %v12983_v53 = vld [vmem:[#allocation80_spill] sm:$0xff] }
 0x7d8   :  { %6871 = vmatpush1.bf16.msra.mxu0 %v12629_v40 }
 0x7d9   :  { %6873 = vmatprep.subr.bf16.mxu0 %v12687_v61  ;;  %6935 = vmatpush1.bf16.msra.mxu1 %v12688_v10  ;;  %v12986_v10 = vld [vmem:[#allocation36_spill] sm:$0xff] }
 0x7da   :  { %6937 = vmatprep.subr.bf16.mxu1 %v9435_v2  ;;  %v12984_v2 = vld [vmem:[#allocation81_spill] sm:$0xff] }
 0x7dc   :  { %6875 = vmatpush1.bf16.msra.mxu0 %v12631_v52 }
 0x7dd   :  { %6877 = vmatprep.subr.bf16.mxu0 %v12689_v47  ;;  %6939 = vmatpush1.bf16.msra.mxu1 %v12690_v1  ;;  %v12987_v1 = vld [vmem:[#allocation82_spill] sm:$0xff] }
 0x7de   :  { %6941 = vmatprep.subr.bf16.mxu1 %v9447_v19  ;;  %v12985_v19 = vld [vmem:[#allocation35_spill] sm:$0xff] }
 0x7e0   :  { %6879 = vmatpush1.bf16.msra.mxu0 %v12633_v4 }
 0x7e1   :  { %6881 = vmatprep.subr.bf16.mxu0 %v12691_v31  ;;  %6943 = vmatpush1.bf16.msra.mxu1 %v12692_v51  ;;  %v12988_v51 = vld [vmem:[#allocation83_spill] sm:$0xff] }
 0x7e2   :  { %6945 = vmatprep.subr.bf16.mxu1 %v12974_v8  ;;  %v13008_v8 = vld [vmem:[#allocation12_spill] sm:$0xff] }
 0x7e4   :  { %6883 = vmatpush1.bf16.msra.mxu0 %v12975_v9 }
 0x7e5   :  { %6885 = vmatprep.subr.bf16.mxu0 %v12976_v14  ;;  %6947 = vmatpush1.bf16.msra.mxu1 %v12977_v16  ;;  %v13009_v16 = vld [vmem:[#allocation13_spill] sm:$0xff] }
 0x7e6   :  { %6949 = vmatprep.subr.bf16.mxu1 %v12978_v21  ;;  %v13010_v21 = vld [vmem:[#allocation14_spill] sm:$0xff] }
 0x7e8   :  { %6887 = vmatpush1.bf16.msra.mxu0 %v12979_v24 }
 0x7e9   :  { %6889 = vmatprep.subr.bf16.mxu0 %v12980_v33  ;;  %6951 = vmatpush1.bf16.msra.mxu1 %v12981_v37  ;;  %v13011_v37 = vld [vmem:[#allocation15_spill] sm:$0xff] }
 0x7ea   :  { %6953 = vmatprep.subr.bf16.mxu1 %v12982_v49  ;;  %v13012_v49 = vld [vmem:[#allocation16_spill] sm:$0xff] }
 0x7ec   :  { %6891 = vmatpush1.bf16.msra.mxu0 %v12983_v53 }
 0x7ed   :  { %6893 = vmatprep.subr.bf16.mxu0 %v12984_v2  ;;  %6955 = vmatpush1.bf16.msra.mxu1 %v12985_v19  ;;  %v13013_v19 = vld [vmem:[#allocation18_spill] sm:$0xff] }
 0x7ee   :  { %6957 = vmatprep.subr.bf16.mxu1 %v12986_v10  ;;  %v13014_v10 = vld [vmem:[#allocation19_spill] sm:$0xff] }
 0x7f0   :  { %6895 = vmatpush1.bf16.msra.mxu0 %v12987_v1 }
 0x7f1   :  { %6897 = vmatprep.subr.bf16.mxu0 %v12988_v51  ;;  %6959 = vmatpush1.bf16.msra.mxu1 %v12989_v54  ;;  %v13015_v54 = vld [vmem:[#allocation21_spill] sm:$0xff] }
 0x7f2   :  { %6961 = vmatprep.subr.bf16.mxu1 %v12990_v56  ;;  %v13016_v56 = vld [vmem:[#allocation22_spill] sm:$0xff] }
 0x7f4   :  { %6899 = vmatpush1.bf16.msra.mxu0 %v12991_v57 }
 0x7f5   :  { %6901 = vmatprep.subr.bf16.mxu0 %v12992_v13  ;;  %6963 = vmatpush1.bf16.msra.mxu1 %v12993_v62  ;;  %v13017_v62 = vld [vmem:[#allocation25_spill] sm:$0xff] }
 0x7f6   :  { %6965 = vmatprep.subr.bf16.mxu1 %v12994_v59  ;;  %v13018_v59 = vld [vmem:[#allocation26_spill] sm:$0xff] }
 0x7f8   :  { %6903 = vmatpush1.bf16.msra.mxu0 %v12995_v3 }
 0x7f9   :  { %6905 = vmatprep.subr.bf16.mxu0 %v12996_v55  ;;  %6967 = vmatpush1.bf16.msra.mxu1 %v12997_v34  ;;  %v13019_v34 = vld [vmem:[#allocation29_spill] sm:$0xff] }
 0x7fa   :  { %6969 = vmatprep.subr.bf16.mxu1 %v12998_v12  ;;  %v13020_v12 = vld [vmem:[#allocation30_spill] sm:$0xff] }
 0x7fc   :  { %6907 = vmatpush1.bf16.msra.mxu0 %v12999_v39 }
 0x7fd   :  { %6909 = vmatprep.subr.bf16.mxu0 %v13000_v48  ;;  %6971 = vmatpush1.bf16.msra.mxu1 %v13001_v38  ;;  %v13021_v38 = vld [vmem:[#allocation33_spill] sm:$0xff] }
 0x7fe   :  { %6973 = vmatprep.subr.bf16.mxu1 %v13002_v35  ;;  %v13022_v35 = vld [vmem:[#allocation34_spill] sm:$0xff] }
 0x800   :  { %6911 = vmatpush1.bf16.msra.mxu0 %v13003_v23 }
 0x801   :  { %6977 = vmatprep.subr.bf16.mxu0 %v13004_v36  ;;  %6975 = vmatpush1.bf16.msra.mxu1 %v13005_v25  ;;  %v13023_v36 = vld [vmem:[#allocation37_spill] sm:$0xff]  ;;  %v13024_v25 = vld [vmem:[#allocation38_spill] sm:$0xff] }
 0x802   :  { %7041 = vmatprep.subr.bf16.mxu1 %v13006_v50  ;;  %v13025_v50 = vld [vmem:[#allocation41_spill] sm:$0xff] }
 0x803   :  { %2205 = vmatmul.mubr.f32.vlgmr.msra.gmra.mrb[20].mxu0 %v10489_v6 }
 0x804   :  { %6979 = vmatpush1.bf16.msra.mxu0 %v13007_v46  ;;  %v13026_v46 = vld [vmem:[#allocation42_spill] sm:$0xff] }
 0x805   :  { %6981 = vmatprep.subr.bf16.mxu0 %v13008_v8  ;;  %v13027_v8 = vld [vmem:[#allocation45_spill] sm:$0xff] }
 0x808   :  { %6983 = vmatpush1.bf16.msra.mxu0 %v13009_v16  ;;  %v13028_v16 = vld [vmem:[#allocation46_spill] sm:$0xff] }
 0x809   :  { %6985 = vmatprep.subr.bf16.mxu0 %v13010_v21  ;;  %v13029_v21 = vld [vmem:[#allocation49_spill] sm:$0xff] }
 0x80c   :  { %6987 = vmatpush1.bf16.msra.mxu0 %v13011_v37  ;;  %v13030_v37 = vld [vmem:[#allocation50_spill] sm:$0xff] }
 0x80d   :  { %6989 = vmatprep.subr.bf16.mxu0 %v13012_v49  ;;  %v13031_v49 = vld [vmem:[#allocation53_spill] sm:$0xff] }
 0x810   :  { %6991 = vmatpush1.bf16.msra.mxu0 %v13013_v19  ;;  %v13032_v19 = vld [vmem:[#allocation54_spill] sm:$0xff] }
 0x811   :  { %6993 = vmatprep.subr.bf16.mxu0 %v13014_v10  ;;  %v13033_v10 = vld [vmem:[#allocation57_spill] sm:$0xff] }
 0x814   :  { %6995 = vmatpush1.bf16.msra.mxu0 %v13015_v54  ;;  %v13034_v54 = vld [vmem:[#allocation58_spill] sm:$0xff] }
 0x815   :  { %6997 = vmatprep.subr.bf16.mxu0 %v13016_v56  ;;  %v13035_v56 = vld [vmem:[#allocation60_spill] sm:$0xff] }
 0x818   :  { %6999 = vmatpush1.bf16.msra.mxu0 %v13017_v62  ;;  %v13036_v62 = vld [vmem:[#allocation61_spill] sm:$0xff] }
 0x819   :  { %7001 = vmatprep.subr.bf16.mxu0 %v13018_v59  ;;  %v13037_v59 = vld [vmem:[#allocation63_spill] sm:$0xff] }
 0x81c   :  { %7003 = vmatpush1.bf16.msra.mxu0 %v13019_v34  ;;  %v13038_v34 = vld [vmem:[#allocation59_spill] sm:$0xff] }
 0x81d   :  { %7005 = vmatprep.subr.bf16.mxu0 %v13020_v12  ;;  %v13039_v12 = vld [vmem:[#allocation93_spill] sm:$0xff]  ;;  %v174_v18 = vmul.f32 %v12899_v63, %v13038_v34 }
 0x820   :  { %7007 = vmatpush1.bf16.msra.mxu0 %v13021_v38  ;;  %v172_v38 = vmul.f32 %v13039_v12, %v13038_v34 }
 0x821   :  { %7009 = vmatprep.subr.bf16.mxu0 %v13022_v35  ;;  %v13040_v35 = vld [vmem:[#allocation95_spill] sm:$0xff] }
 0x824   :  { %7011 = vmatpush1.bf16.msra.mxu0 %v13023_v36  ;;  %v173_v36 = vmul.f32 %v13040_v35, %v13038_v34 }
 0x825   :  { %7013 = vmatprep.subr.bf16.mxu0 %v13024_v25  ;;  %v13041_v25 = vld [vmem:[#allocation96_spill] sm:$0xff] }
 0x828   :  { %7015 = vmatpush1.bf16.msra.mxu0 %v13025_v50  ;;  %v244_v50 = vadd.f32 %v13041_v25, %v172_v38  ;;  %v13043_v25 = vld [vmem:[#allocation99_spill] sm:$0xff] }
 0x829   :  { %7017 = vmatprep.subr.bf16.mxu0 %v13026_v46 }
 0x82c   :  { %7019 = vmatpush1.bf16.msra.mxu0 %v13027_v8 }
 0x82d   :  { %7021 = vmatprep.subr.bf16.mxu0 %v13028_v16 }
 0x830   :  { %7023 = vmatpush1.bf16.msra.mxu0 %v13029_v21 }
 0x831   :  { %7025 = vmatprep.subr.bf16.mxu0 %v13030_v37 }
 0x834   :  { %7027 = vmatpush1.bf16.msra.mxu0 %v13031_v49  ;;  %v245_v49 = vadd.f32 %v12973_v20, %v173_v36  ;;  %v246_v36 = vadd.f32 %v9805_v27, %v174_v18  ;;  %v146_v18 = vmul.f32 %v9825_v28, %v13042_v45 }
 0x835   :  { %7029 = vmatprep.subr.bf16.mxu0 %v13032_v19 }
 0x838   :  { %7031 = vmatpush1.bf16.msra.mxu0 %v13033_v10 }
 0x839   :  { %7033 = vmatprep.subr.bf16.mxu0 %v13034_v54 }
 0x83c   :  { %7035 = vmatpush1.bf16.msra.mxu0 %v13035_v56 }
 0x83d   :  { %7037 = vmatprep.subr.bf16.mxu0 %v13036_v62 }
 0x840   :  { %7039 = vmatpush1.bf16.msra.mxu0 %v13037_v59 }
 0x896   :  { %v2064_v46 = vpop.f32.mrb[18].mxu0  ;;  %v2135_v8 = vpop.f32.mrb[18].mxu1 }
 0x897   :  { %v2211_v16 = vadd.f32 %v2064_v46, %v244_v50  ;;  %v2066_v21 = vpop.f32.mrb[19].mxu0  ;;  %v2137_v37 = vpop.f32.mrb[19].mxu1  ;;  %v145_v50 = vmul.f32 %v13043_v25, %v13042_v45  ;;  %v2225_v46 = vadd.f32 %v2135_v8, %v12900_v15 }
 0x898   :  { %v2218_v10 = vadd.f32 %v2066_v21, %v245_v49 }
 0x899   :  { %v5490_v19 = vmul.f32 -1.442695, %v2211_v16  ;;  %v217_v21 = vadd.f32 %v9800_v32, %v145_v50 }
 0x89a   :  { %v5491_v54 = vmul.f32 -1.442695, %v2218_v10 }
 0x89b   :  { %9027 = vpow2.f32 %v5490_v19  ;;  %v2233_v19 = vadd.f32 %v2137_v37, %v217_v21 }
 0x89c   :  { %9029 = vpow2.f32 %v5491_v54 }
 0x89d   :  { %v5492_v10 = vmul.f32 -1.442695, %v2233_v19 }
 0x8a5   :  { %v9028_v56 = vpop.eup %9027 }
 0x8a6   :  { %v2215_v62 = vadd.f32 1.0, %v9028_v56  ;;  %v9030_v59 = vpop.eup %9029 }
 0x8a7   :  { %v2222_v38 = vadd.f32 1.0, %v9030_v59 }
 0x8a8   :  { %9031 = vrcp.f32 %v2215_v62 }
 0x8a9   :  { %9033 = vrcp.f32 %v2222_v38 }
 0x8b2   :  { %v9032_v35 = vpop.eup %9031 }
 0x8b3   :  { %v2226_v16 = vmul.f32 %v9032_v35, %v2225_v46  ;;  %v9034_v54 = vpop.eup %9033  ;;  %v218_v35 = vadd.f32 %v9830_v5, %v146_v18 }
 0x8b4   :  { %v2229_v34 = vsub.f32 1.0, %v9034_v54  ;;  %v2231_v59 = vmul.f32 %v9034_v54, %v10489_v6 }
 0x8b5   :  { %v2227_v49 = vadd.f32 %v2226_v16, %v246_v36 }
 0x8b7   :  { %9035 = vtanh.f32 %v2227_v49  ;;  %v147_v49 = vmul.f32 %v9839_v42, %v13042_v45 }
 0x8b8   :  { %9037 = vpow2.f32 %v5492_v10 }
 0x8b9   :  { %v219_v19 = vadd.f32 %v9844_v17, %v147_v49  ;;  %v2560_v49 = vld [vmem:[#allocation4 + $0x1a0] sm:$0xff] }
 0x8c1   :  { %v9036_v56 = vpop.eup %9035 }
 0x8c2   :  { %v2230_v62 = vmul.f32 %v9036_v56, %v2229_v34  ;;  %v9038_v8 = vpop.eup %9037 }
 0x8c3   :  { %v2237_v15 = vadd.f32 1.0, %v9038_v8 }
 0x8c4   :  { %v10616_v63 = vadd.f32 %v2231_v59, %v2230_v62 }
 0x8c5   :  { %9039 = vrcp.f32 %v2237_v15 }
 0x8cf   :  { %v9040_v36 = vpop.eup %9039 }
 0x8d6   :  { %v2206_v37 = vpop.f32.mrb[20].mxu0 }
 0x8d7   :  { %v2240_v38 = vadd.f32 %v2206_v37, %v218_v35  ;;  %v2208_v50 = vpop.f32.mrb[21].mxu0  ;;  %v2541_v35 = vld [vmem:[#allocation4 + $0xf0] sm:$0xff]  ;;  %v2547_v37 = vld [vmem:[#allocation4 + $0x128] sm:$0xff] }
 0x8d8   :  { %v2247_v46 = vadd.f32 %v2208_v50, %v9834_v43  ;;  %v2552_v50 = vld [vmem:[#allocation4 + $0x158] sm:$0xff] }
 0x8d9   :  { %v5493_v16 = vmul.f32 -1.442695, %v2240_v38 }
 0x8da   :  { %v2248_v21 = vmul.f32 %v9040_v36, %v2247_v46  ;;  %v2558_v46 = vld [vmem:[#allocation4 + $0x190] sm:$0xff]  ;;  %v2554_v36 = vld [vmem:[#allocation4 + $0x168] sm:$0xff] }
 0x8db   :  { %9041 = vpow2.f32 %v5493_v16  ;;  %v7178_v16 = vpack.c.bf16 %v2547_v37, %v2541_v35  ;;  %v2600_v35 = vld [vmem:[#allocation4 + $0x318] sm:$0xff]  ;;  %v2606_v37 = vld [vmem:[#allocation4 + $0x350] sm:$0xff] }
 0x8dc   :  { %v2249_v54 = vadd.f32 %v2248_v21, %v219_v19  ;;  %v7116_v21 = vpack.c.bf16 %v2558_v46, %v2552_v50  ;;  %v2551_v19 = vld [vmem:[#allocation4 + $0x150] sm:$0xff]  ;;  %v2608_v50 = vld [vmem:[#allocation4 + $0x360] sm:$0xff] }
 0x8e5   :  { %v9042_v15 = vpop.eup %9041 }
 0x8e6   :  { %v2244_v10 = vadd.f32 1.0, %v9042_v15  ;;  %v2557_v15 = vld [vmem:[#allocation4 + $0x188] sm:$0xff] }
 0x8e8   :  { %9043 = vrcp.f32 %v2244_v10  ;;  %v7180_v10 = vpack.c.bf16 %v2560_v49, %v2554_v36  ;;  %v2599_v49 = vld [vmem:[#allocation4 + $0x310] sm:$0xff] }
 0x8e9   :  { %9045 = vtanh.f32 %v2249_v54  ;;  %v2553_v54 = vld [vmem:[#allocation4 + $0x160] sm:$0xff] }
 0x8f2   :  { %v9044_v34 = vpop.eup %9043 }
 0x8f3   :  { %v2251_v56 = vsub.f32 1.0, %v9044_v34  ;;  %v9046_v62 = vpop.eup %9045  ;;  %v2253_v59 = vmul.f32 %v9044_v34, %v10499_v11  ;;  %v2559_v34 = vld [vmem:[#allocation4 + $0x198] sm:$0xff] }
 0x8f5   :  { %v2252_v8 = vmul.f32 %v9046_v62, %v2251_v56  ;;  %v2564_v56 = vld [vmem:[#allocation4 + $0x1c8] sm:$0xff]  ;;  %v2570_v62 = vld [vmem:[#allocation4 + $0x200] sm:$0xff] }
 0x8f7   :  { %v10626_v18 = vadd.f32 %v2253_v59, %v2252_v8  ;;  %v2566_v59 = vld [vmem:[#allocation4 + $0x1d8] sm:$0xff]  ;;  %v2572_v8 = vld [vmem:[#allocation4 + $0x210] sm:$0xff] }
 0x8f9   :  { %2319 = vmatprep.mubr.f32.mxu1 %v10626_v18  ;;  %2390 = vmatprep.mubr.f32.mxu0 %v10626_v18 }
 0x8fa   :  { %2320 = vmatmul.mubr.f32.vlgmr.msra.gmra.mrb[20].mxu1 %v10616_v63  ;;  %2391 = vmatmul.mubr.f32.vlgmr.msra.gmra.mrb[22].mxu0 %v10616_v63 }
 0x8fb   :  { %7043 = vmatpush1.bf16.msra.mxu1 %v9564_v58  ;;  %2461 = vmatprep.mubr.f32.mxu1 %v10626_v18  ;;  %v2516_v58 = vld [vmem:[#allocation4 + $0x8] sm:$0xff] }
 0x8fc   :  { %7045 = vmatprep.subr.bf16.mxu1 %v12621_v29  ;;  %v2518_v29 = vld [vmem:[#allocation4 + $0x18] sm:$0xff] }
 0x8ff   :  { %7047 = vmatpush1.bf16.msra.mxu1 %v9583_v41  ;;  %v2522_v41 = vld [vmem:[#allocation4 + $0x40] sm:$0xff] }
 0x900   :  { %7049 = vmatprep.subr.bf16.mxu1 %v12622_v22  ;;  %v7104_v22 = vpack.c.bf16 %v2522_v41, %v2516_v58  ;;  %v7118_v58 = vpack.c.bf16 %v2557_v15, %v2551_v19  ;;  %v7182_v41 = vpack.c.bf16 %v2559_v34, %v2553_v54  ;;  %v2605_v19 = vld [vmem:[#allocation4 + $0x348] sm:$0xff]  ;;  %v2601_v15 = vld [vmem:[#allocation4 + $0x320] sm:$0xff]  ;;  %v2607_v54 = vld [vmem:[#allocation4 + $0x358] sm:$0xff] }
 0x901   :  { %v7198_v34 = vpack.c.bf16 %v2607_v54, %v2601_v15  ;;  %v2655_v15 = vld [vmem:[#allocation4 + $0x518] sm:$0xff]  ;;  %v2660_v54 = vld [vmem:[#allocation4 + $0x548] sm:$0xff] }
 0x902   :  { %7105 = vmatprep.subr.bf16.mxu0 %v7104_v22  ;;  %v2563_v22 = vld [vmem:[#allocation4 + $0x1c0] sm:$0xff] }
 0x903   :  { %7051 = vmatpush1.bf16.msra.mxu1 %v12623_v0  ;;  %v2524_v0 = vld [vmem:[#allocation4 + $0x50] sm:$0xff] }
 0x904   :  { %7053 = vmatprep.subr.bf16.mxu1 %v12624_v7  ;;  %v2515_v7 = vld [vmem:[#allocation4] sm:$0xff] }
 0x907   :  { %7055 = vmatpush1.bf16.msra.mxu1 %v12625_v30  ;;  %v2521_v30 = vld [vmem:[#allocation4 + $0x38] sm:$0xff] }
 0x908   :  { %7057 = vmatprep.subr.bf16.mxu1 %v12626_v60  ;;  %v7168_v60 = vpack.c.bf16 %v2524_v0, %v2518_v29  ;;  %v7120_v29 = vpack.c.bf16 %v2570_v62, %v2564_v56  ;;  %v2569_v0 = vld [vmem:[#allocation4 + $0x1f8] sm:$0xff]  ;;  %v2612_v56 = vld [vmem:[#allocation4 + $0x388] sm:$0xff]  ;;  %v2618_v62 = vld [vmem:[#allocation4 + $0x3c0] sm:$0xff] }
 0x90b   :  { %7059 = vmatpush1.bf16.msra.mxu1 %v12627_v44  ;;  %v7106_v44 = vpack.c.bf16 %v2521_v30, %v2515_v7  ;;  %v2565_v7 = vld [vmem:[#allocation4 + $0x1d0] sm:$0xff]  ;;  %v7184_v30 = vpack.c.bf16 %v2572_v8, %v2566_v59  ;;  %v2614_v59 = vld [vmem:[#allocation4 + $0x398] sm:$0xff]  ;;  %v7136_v8 = vpack.c.bf16 %v2618_v62, %v2612_v56 }
 0x90c   :  { %7061 = vmatprep.subr.bf16.mxu1 %v12628_v26  ;;  %v2517_v26 = vld [vmem:[#allocation4 + $0x10] sm:$0xff]  ;;  %v2662_v56 = vld [vmem:[#allocation4 + $0x558] sm:$0xff] }
 0x90d   :  { %7107 = vmatpush1.bf16.msra.mxu0 %v7106_v44  ;;  %v2576_v44 = vld [vmem:[#allocation4 + $0x238] sm:$0xff] }
 0x90f   :  { %7063 = vmatpush1.bf16.msra.mxu1 %v12629_v40  ;;  %v2523_v40 = vld [vmem:[#allocation4 + $0x48] sm:$0xff] }
 0x910   :  { %7065 = vmatprep.subr.bf16.mxu1 %v12687_v61  ;;  %v2534_v61 = vld [vmem:[#allocation4 + $0xb0] sm:$0xff] }
 0x913   :  { %7067 = vmatpush1.bf16.msra.mxu1 %v12631_v52  ;;  %v2528_v52 = vld [vmem:[#allocation4 + $0x78] sm:$0xff] }
 0x914   :  { %7069 = vmatprep.subr.bf16.mxu1 %v12689_v47  ;;  %v2530_v47 = vld [vmem:[#allocation4 + $0x88] sm:$0xff]  ;;  %v7108_v45 = vpack.c.bf16 %v2534_v61, %v2528_v52  ;;  %v2584_v52 = vld [vmem:[#allocation4 + $0x280] sm:$0xff] }
 0x916   :  { %7109 = vmatprep.subr.bf16.mxu0 %v7108_v45  ;;  %v2581_v45 = vld [vmem:[#allocation4 + $0x268] sm:$0xff] }
 0x917   :  { %7071 = vmatpush1.bf16.msra.mxu1 %v12633_v4  ;;  %v7170_v4 = vpack.c.bf16 %v2523_v40, %v2517_v26  ;;  %v2582_v26 = vld [vmem:[#allocation4 + $0x270] sm:$0xff]  ;;  %v2578_v40 = vld [vmem:[#allocation4 + $0x248] sm:$0xff] }
 0x918   :  { %7073 = vmatprep.subr.bf16.mxu1 %v12691_v31  ;;  %v2536_v31 = vld [vmem:[#allocation4 + $0xc0] sm:$0xff] }
 0x91b   :  { %7075 = vmatpush1.bf16.msra.mxu1 %v12975_v9  ;;  %v7172_v9 = vpack.c.bf16 %v2536_v31, %v2530_v47  ;;  %v7124_v47 = vpack.c.bf16 %v2582_v26, %v2576_v44  ;;  %v2575_v31 = vld [vmem:[#allocation4 + $0x230] sm:$0xff]  ;;  %v2624_v44 = vld [vmem:[#allocation4 + $0x3f8] sm:$0xff] }
 0x91c   :  { %7077 = vmatprep.subr.bf16.mxu1 %v12976_v14  ;;  %v2527_v14 = vld [vmem:[#allocation4 + $0x70] sm:$0xff] }
 0x91d   :  { %v2630_v26 = vld [vmem:[#allocation4 + $0x430] sm:$0xff] }
 0x91f   :  { %7079 = vmatpush1.bf16.msra.mxu1 %v12979_v24  ;;  %v2533_v24 = vld [vmem:[#allocation4 + $0xa8] sm:$0xff] }
 0x920   :  { %7081 = vmatprep.subr.bf16.mxu1 %v12980_v33  ;;  %v2529_v33 = vld [vmem:[#allocation4 + $0x80] sm:$0xff] }
 0x923   :  { %7083 = vmatpush1.bf16.msra.mxu1 %v12983_v53  ;;  %v7110_v53 = vpack.c.bf16 %v2533_v24, %v2527_v14  ;;  %v7188_v14 = vpack.c.bf16 %v2584_v52, %v2578_v40  ;;  %v2583_v24 = vld [vmem:[#allocation4 + $0x278] sm:$0xff]  ;;  %v2626_v40 = vld [vmem:[#allocation4 + $0x408] sm:$0xff]  ;;  %v7140_v52 = vpack.c.bf16 %v2630_v26, %v2624_v44  ;;  %v2680_v26 = vld [vmem:[#allocation4 + $0x600] sm:$0xff] }
 0x924   :  { %7085 = vmatprep.subr.bf16.mxu1 %v12984_v2  ;;  %v2535_v2 = vld [vmem:[#allocation4 + $0xb8] sm:$0xff]  ;;  %v2674_v44 = vld [vmem:[#allocation4 + $0x5c8] sm:$0xff] }
 0x925   :  { %7111 = vmatpush1.bf16.msra.mxu0 %v7110_v53  ;;  %v2594_v53 = vld [vmem:[#allocation4 + $0x2e0] sm:$0xff] }
 0x927   :  { %7087 = vmatpush1.bf16.msra.mxu1 %v12987_v1  ;;  %v2540_v1 = vld [vmem:[#allocation4 + $0xe8] sm:$0xff] }
 0x928   :  { %7089 = vmatprep.subr.bf16.mxu1 %v12988_v51  ;;  %v2546_v51 = vld [vmem:[#allocation4 + $0x120] sm:$0xff] }
 0x92b   :  { %7091 = vmatpush1.bf16.msra.mxu1 %v12991_v57  ;;  %v7174_v57 = vpack.c.bf16 %v2535_v2, %v2529_v33  ;;  %v2588_v33 = vld [vmem:[#allocation4 + $0x2a8] sm:$0xff]  ;;  %v2590_v2 = vld [vmem:[#allocation4 + $0x2b8] sm:$0xff] }
 0x92c   :  { %7093 = vmatprep.subr.bf16.mxu1 %v12992_v13  ;;  %v7112_v13 = vpack.c.bf16 %v2546_v51, %v2540_v1  ;;  %v2596_v1 = vld [vmem:[#allocation4 + $0x2f0] sm:$0xff]  ;;  %v7126_v51 = vpack.c.bf16 %v2581_v45, %v2575_v31 }
 0x92e   :  { %7113 = vmatprep.subr.bf16.mxu0 %v7112_v13  ;;  %v7128_v13 = vpack.c.bf16 %v2594_v53, %v2588_v33  ;;  %v2636_v33 = vld [vmem:[#allocation4 + $0x468] sm:$0xff]  ;;  %v2642_v53 = vld [vmem:[#allocation4 + $0x4a0] sm:$0xff] }
 0x92f   :  { %7095 = vmatpush1.bf16.msra.mxu1 %v12995_v3  ;;  %v2542_v3 = vld [vmem:[#allocation4 + $0xf8] sm:$0xff] }
 0x930   :  { %7097 = vmatprep.subr.bf16.mxu1 %v12996_v55  ;;  %v2548_v55 = vld [vmem:[#allocation4 + $0x130] sm:$0xff] }
 0x933   :  { %7099 = vmatpush1.bf16.msra.mxu1 %v12999_v39  ;;  %v2539_v39 = vld [vmem:[#allocation4 + $0xe0] sm:$0xff] }
 0x934   :  { %7101 = vmatprep.subr.bf16.mxu1 %v13000_v48  ;;  %v7176_v48 = vpack.c.bf16 %v2548_v55, %v2542_v3  ;;  %v2587_v3 = vld [vmem:[#allocation4 + $0x2a0] sm:$0xff]  ;;  %v2593_v55 = vld [vmem:[#allocation4 + $0x2d8] sm:$0xff] }
 0x935   :  { %v7130_v46 = vpack.c.bf16 %v2593_v55, %v2587_v3 }
 0x937   :  { %7103 = vmatpush1.bf16.msra.mxu1 %v13003_v23  ;;  %v2545_v23 = vld [vmem:[#allocation4 + $0x118] sm:$0xff] }
 0x938   :  { %7169 = vmatprep.subr.bf16.mxu1 %v7168_v60  ;;  %v7114_v38 = vpack.c.bf16 %v2545_v23, %v2539_v39  ;;  %v2571_v60 = vld [vmem:[#allocation4 + $0x208] sm:$0xff]  ;;  %v2589_v39 = vld [vmem:[#allocation4 + $0x2b0] sm:$0xff] }
 0x939   :  { %v7186_v61 = vpack.c.bf16 %v2571_v60, %v2565_v7  ;;  %v2595_v23 = vld [vmem:[#allocation4 + $0x2e8] sm:$0xff]  ;;  %v2613_v7 = vld [vmem:[#allocation4 + $0x390] sm:$0xff] }
 0x93a   :  { %2462 = vmatmul.mubr.f32.vlgmr.msra.gmra.mrb[22].mxu1 %v10616_v63  ;;  %7115 = vmatpush1.bf16.msra.mxu0 %v7114_v38  ;;  %v2602_v38 = vld [vmem:[#allocation4 + $0x328] sm:$0xff]  ;;  %v7194_v36 = vpack.c.bf16 %v2595_v23, %v2589_v39  ;;  %v2637_v39 = vld [vmem:[#allocation4 + $0x470] sm:$0xff] }
 0x93b   :  { %7171 = vmatpush1.bf16.msra.mxu1 %v7170_v4  ;;  %7117 = vmatprep.subr.bf16.mxu0 %v7116_v21  ;;  %v7122_v4 = vpack.c.bf16 %v2569_v0, %v2563_v22  ;;  %v7196_v21 = vpack.c.bf16 %v2608_v50, %v2602_v38  ;;  %v2650_v38 = vld [vmem:[#allocation4 + $0x4e8] sm:$0xff] }
 0x93c   :  { %7173 = vmatprep.subr.bf16.mxu1 %v7172_v9  ;;  %v2577_v9 = vld [vmem:[#allocation4 + $0x240] sm:$0xff] }
 0x93e   :  { %7119 = vmatpush1.bf16.msra.mxu0 %v7118_v58  ;;  %v2620_v58 = vld [vmem:[#allocation4 + $0x3d0] sm:$0xff] }
 0x93f   :  { %7175 = vmatpush1.bf16.msra.mxu1 %v7174_v57  ;;  %7121 = vmatprep.subr.bf16.mxu0 %v7120_v29  ;;  %v7190_v57 = vpack.c.bf16 %v2583_v24, %v2577_v9  ;;  %v2617_v29 = vld [vmem:[#allocation4 + $0x3b8] sm:$0xff]  ;;  %v7200_v22 = vpack.c.bf16 %v2620_v58, %v2614_v59  ;;  %v2625_v9 = vld [vmem:[#allocation4 + $0x400] sm:$0xff]  ;;  %v2668_v59 = vld [vmem:[#allocation4 + $0x590] sm:$0xff] }
 0x940   :  { %7177 = vmatprep.subr.bf16.mxu1 %v7176_v48  ;;  %v7192_v48 = vpack.c.bf16 %v2596_v1, %v2590_v2  ;;  %v2638_v2 = vld [vmem:[#allocation4 + $0x478] sm:$0xff]  ;;  %v7144_v1 = vpack.c.bf16 %v2642_v53, %v2636_v33 }
 0x941   :  { %v2665_v58 = vld [vmem:[#allocation4 + $0x578] sm:$0xff] }
 0x942   :  { %7123 = vmatpush1.bf16.msra.mxu0 %v7122_v4  ;;  %v2632_v4 = vld [vmem:[#allocation4 + $0x440] sm:$0xff]  ;;  %v2686_v53 = vld [vmem:[#allocation4 + $0x638] sm:$0xff] }
 0x943   :  { %7179 = vmatpush1.bf16.msra.mxu1 %v7178_v16  ;;  %7125 = vmatprep.subr.bf16.mxu0 %v7124_v47  ;;  %v7132_v16 = vpack.c.bf16 %v2606_v37, %v2600_v35  ;;  %v2629_v47 = vld [vmem:[#allocation4 + $0x428] sm:$0xff]  ;;  %v7204_v31 = vpack.c.bf16 %v2632_v4, %v2626_v40  ;;  %v2648_v35 = vld [vmem:[#allocation4 + $0x4d8] sm:$0xff]  ;;  %v2654_v37 = vld [vmem:[#allocation4 + $0x510] sm:$0xff] }
 0x944   :  { %7181 = vmatprep.subr.bf16.mxu1 %v7180_v10  ;;  %v7134_v10 = vpack.c.bf16 %v2605_v19, %v2599_v49  ;;  %v7148_v50 = vpack.c.bf16 %v2654_v37, %v2648_v35  ;;  %v2649_v19 = vld [vmem:[#allocation4 + $0x4e0] sm:$0xff]  ;;  %v2671_v4 = vld [vmem:[#allocation4 + $0x5b0] sm:$0xff] }
 0x946   :  { %7127 = vmatpush1.bf16.msra.mxu0 %v7126_v51  ;;  %v2644_v51 = vld [vmem:[#allocation4 + $0x4b0] sm:$0xff] }
 0x947   :  { %7183 = vmatpush1.bf16.msra.mxu1 %v7182_v41  ;;  %7129 = vmatprep.subr.bf16.mxu0 %v7128_v13  ;;  %v2611_v41 = vld [vmem:[#allocation4 + $0x380] sm:$0xff]  ;;  %v2641_v13 = vld [vmem:[#allocation4 + $0x498] sm:$0xff]  ;;  %v7208_v3 = vpack.c.bf16 %v2644_v51, %v2638_v2  ;;  %v2692_v2 = vld [vmem:[#allocation4 + $0x670] sm:$0xff] }
 0x948   :  { %7185 = vmatprep.subr.bf16.mxu1 %v7184_v30  ;;  %v7138_v0 = vpack.c.bf16 %v2617_v29, %v2611_v41  ;;  %v2619_v30 = vld [vmem:[#allocation4 + $0x3c8] sm:$0xff]  ;;  %v7216_v41 = vpack.c.bf16 %v2668_v59, %v2662_v56  ;;  %v7224_v51 = vpack.c.bf16 %v2692_v2, %v2686_v53 }
 0x949   :  { %v7202_v60 = vpack.c.bf16 %v2619_v30, %v2613_v7  ;;  %v2672_v7 = vld [vmem:[#allocation4 + $0x5b8] sm:$0xff]  ;;  %v3080_v56 = vld [vmem:[#allocation2 + $0x648] sm:$0xff] }
 0x94a   :  { %7131 = vmatpush1.bf16.msra.mxu0 %v7130_v46  ;;  %v2656_v46 = vld [vmem:[#allocation4 + $0x520] sm:$0xff]  ;;  %v13045_v59 = vld [vmem:[#allocation92_spill] sm:$0xff] }
 0x94b   :  { %7187 = vmatpush1.bf16.msra.mxu1 %v7186_v61  ;;  %7133 = vmatprep.subr.bf16.mxu0 %v7132_v16  ;;  %v2623_v61 = vld [vmem:[#allocation4 + $0x3f0] sm:$0xff]  ;;  %v2653_v16 = vld [vmem:[#allocation4 + $0x508] sm:$0xff] }
 0x94c   :  { %7189 = vmatprep.subr.bf16.mxu1 %v7188_v14  ;;  %v7142_v45 = vpack.c.bf16 %v2629_v47, %v2623_v61  ;;  %v2631_v14 = vld [vmem:[#allocation4 + $0x438] sm:$0xff]  ;;  %v2677_v61 = vld [vmem:[#allocation4 + $0x5e8] sm:$0xff]  ;;  %v2673_v47 = vld [vmem:[#allocation4 + $0x5c0] sm:$0xff] }
 0x94d   :  { %v7206_v24 = vpack.c.bf16 %v2631_v14, %v2625_v9  ;;  %v2684_v9 = vld [vmem:[#allocation4 + $0x628] sm:$0xff]  ;;  %v2690_v14 = vld [vmem:[#allocation4 + $0x660] sm:$0xff] }
 0x94e   :  { %7135 = vmatpush1.bf16.msra.mxu0 %v7134_v10  ;;  %v7214_v10 = vpack.c.bf16 %v2655_v15, %v2649_v19  ;;  %v7160_v33 = vpack.c.bf16 %v2690_v14, %v2684_v9  ;;  %v2520_v15 = vld [vmem:[#allocation4 + $0x28] sm:$0xff] }
 0x94f   :  { %7191 = vmatpush1.bf16.msra.mxu1 %v7190_v57  ;;  %7137 = vmatprep.subr.bf16.mxu0 %v7136_v8  ;;  %v2635_v57 = vld [vmem:[#allocation4 + $0x460] sm:$0xff]  ;;  %v13049_v14 = vld [vmem:[#allocation100_spill] sm:$0xff] }
 0x950   :  { %7193 = vmatprep.subr.bf16.mxu1 %v7192_v48  ;;  %v7146_v55 = vpack.c.bf16 %v2641_v13, %v2635_v57  ;;  %v2643_v48 = vld [vmem:[#allocation4 + $0x4a8] sm:$0xff]  ;;  %v2659_v8 = vld [vmem:[#allocation4 + $0x540] sm:$0xff]  ;;  %v2689_v57 = vld [vmem:[#allocation4 + $0x658] sm:$0xff] }
 0x951   :  { %v7210_v23 = vpack.c.bf16 %v2643_v48, %v2637_v39  ;;  %v7154_v29 = vpack.c.bf16 %v2665_v58, %v2659_v8  ;;  %v2685_v13 = vld [vmem:[#allocation4 + $0x630] sm:$0xff]  ;;  %v2696_v39 = vld [vmem:[#allocation4 + $0x698] sm:$0xff]  ;;  %v178_v8 = vmul.f32 %v13039_v12, %v13045_v59  ;;  %v13046_v58 = vld [vmem:[#allocation95_spill] sm:$0xff] }
 0x952   :  { %7139 = vmatpush1.bf16.msra.mxu0 %v7138_v0  ;;  %v2667_v0 = vld [vmem:[#allocation4 + $0x588] sm:$0xff]  ;;  %v2702_v48 = vld [vmem:[#allocation4 + $0x6d0] sm:$0xff] }
 0x953   :  { %7195 = vmatpush1.bf16.msra.mxu1 %v7194_v36  ;;  %7141 = vmatprep.subr.bf16.mxu0 %v7140_v52  ;;  %v2647_v36 = vld [vmem:[#allocation4 + $0x4d0] sm:$0xff]  ;;  %v7220_v52 = vpack.c.bf16 %v2680_v26, %v2674_v44  ;;  %v7164_v37 = vpack.c.bf16 %v2702_v48, %v2696_v39 }
 0x954   :  { %7197 = vmatprep.subr.bf16.mxu1 %v7196_v21  ;;  %v7212_v21 = vpack.c.bf16 %v2656_v46, %v2650_v38  ;;  %v7150_v49 = vpack.c.bf16 %v2653_v16, %v2647_v36  ;;  %v2704_v38 = vld [vmem:[#allocation4 + $0x6e0] sm:$0xff]  ;;  %v2701_v46 = vld [vmem:[#allocation4 + $0x6c8] sm:$0xff] }
 0x955   :  { %v2697_v16 = vld [vmem:[#allocation4 + $0x6a0] sm:$0xff] }
 0x956   :  { %7143 = vmatpush1.bf16.msra.mxu0 %v7142_v45  ;;  %v2679_v45 = vld [vmem:[#allocation4 + $0x5f8] sm:$0xff] }
 0x957   :  { %7199 = vmatpush1.bf16.msra.mxu1 %v7198_v34  ;;  %7145 = vmatprep.subr.bf16.mxu0 %v7144_v1  ;;  %v2666_v34 = vld [vmem:[#allocation4 + $0x580] sm:$0xff] }
 0x958   :  { %7201 = vmatprep.subr.bf16.mxu1 %v7200_v22  ;;  %v7152_v62 = vpack.c.bf16 %v2666_v34, %v2660_v54  ;;  %v2661_v22 = vld [vmem:[#allocation4 + $0x550] sm:$0xff]  ;;  %v2683_v1 = vld [vmem:[#allocation4 + $0x620] sm:$0xff]  ;;  %v3074_v54 = vld [vmem:[#allocation2 + $0x618] sm:$0xff] }
 0x959   :  { %v7218_v30 = vpack.c.bf16 %v2667_v0, %v2661_v22  ;;  %v13048_v0 = vld [vmem:[#allocation96_spill] sm:$0xff] }
 0x95a   :  { %7147 = vmatpush1.bf16.msra.mxu0 %v7146_v55  ;;  %v7162_v55 = vpack.c.bf16 %v2689_v57, %v2683_v1 }
 0x95b   :  { %7203 = vmatpush1.bf16.msra.mxu1 %v7202_v60  ;;  %7149 = vmatprep.subr.bf16.mxu0 %v7148_v50  ;;  %v2678_v60 = vld [vmem:[#allocation4 + $0x5f0] sm:$0xff] }
 0x95c   :  { %7205 = vmatprep.subr.bf16.mxu1 %v7204_v31  ;;  %v7156_v40 = vpack.c.bf16 %v2678_v60, %v2672_v7  ;;  %v7158_v31 = vpack.c.bf16 %v2677_v61, %v2671_v4  ;;  %v2695_v50 = vld [vmem:[#allocation4 + $0x690] sm:$0xff]  ;;  %v250_v7 = vadd.f32 %v13048_v0, %v178_v8 }
 0x95d   :  { %v2538_v0 = vld [vmem:[#allocation4 + $0xd0] sm:$0xff] }
 0x95e   :  { %7151 = vmatpush1.bf16.msra.mxu0 %v7150_v49  ;;  %v7166_v49 = vpack.c.bf16 %v2701_v46, %v2695_v50 }
 0x95f   :  { %7207 = vmatpush1.bf16.msra.mxu1 %v7206_v24  ;;  %7153 = vmatprep.subr.bf16.mxu0 %v7152_v62  ;;  %v7222_v24 = vpack.c.bf16 %v2679_v45, %v2673_v47  ;;  %v10665_v62 = vpack.c.bf16 %v3080_v56, %v3074_v54 }
 0x960   :  { %7209 = vmatprep.subr.bf16.mxu1 %v7208_v3  ;;  %v2691_v3 = vld [vmem:[#allocation4 + $0x668] sm:$0xff] }
 0x961   :  { %v7226_v35 = vpack.c.bf16 %v2691_v3, %v2685_v13  ;;  %13044 = vst [vmem:[#allocation73_spill] sm:$0xff] %v10665_v62 }
 0x962   :  { %7155 = vmatpush1.bf16.msra.mxu0 %v7154_v29  ;;  %v13047_v29 = vld [vmem:[#allocation94_spill] sm:$0xff] }
 0x963   :  { %7211 = vmatpush1.bf16.msra.mxu1 %v7210_v23  ;;  %7157 = vmatprep.subr.bf16.mxu0 %v7156_v40  ;;  %v2698_v23 = vld [vmem:[#allocation4 + $0x6a8] sm:$0xff]  ;;  %v139_v22 = vmul.f32 %v13043_v25, %v13047_v29  ;;  %v141_v46 = vmul.f32 %v9839_v42, %v13047_v29  ;;  %v2525_v42 = vld [vmem:[#allocation4 + $0x58] sm:$0xff] }
 0x964   :  { %7213 = vmatprep.subr.bf16.mxu1 %v7212_v21  ;;  %v7228_v36 = vpack.c.bf16 %v2704_v38, %v2698_v23  ;;  %v2703_v21 = vld [vmem:[#allocation4 + $0x6d8] sm:$0xff] }
 0x965   :  { %v7230_v19 = vpack.c.bf16 %v2703_v21, %v2697_v16  ;;  %v211_v26 = vadd.f32 %v9800_v32, %v139_v22  ;;  %v2532_v22 = vld [vmem:[#allocation4 + $0x98] sm:$0xff] }
 0x966   :  { %7159 = vmatpush1.bf16.msra.mxu0 %v7158_v31 }
 0x967   :  { %7215 = vmatpush1.bf16.msra.mxu1 %v7214_v10  ;;  %7161 = vmatprep.subr.bf16.mxu0 %v7160_v33  ;;  %v2526_v10 = vld [vmem:[#allocation4 + $0x60] sm:$0xff] }
 0x968   :  { %7217 = vmatprep.subr.bf16.mxu1 %v7216_v41  ;;  %v7232_v34 = vpack.c.bf16 %v2526_v10, %v2520_v15  ;;  %v179_v41 = vmul.f32 %v13046_v58, %v13045_v59  ;;  %v213_v15 = vadd.f32 %v9844_v17, %v141_v46  ;;  %v3073_v58 = vld [vmem:[#allocation2 + $0x610] sm:$0xff]  ;;  %v3086_v17 = vld [vmem:[#allocation2 + $0x678] sm:$0xff] }
 0x96a   :  { %7163 = vmatpush1.bf16.msra.mxu0 %v7162_v55  ;;  %v251_v44 = vadd.f32 %v12973_v20, %v179_v41  ;;  %v13050_v20 = vld [vmem:[#allocation101_spill] sm:$0xff]  ;;  %v3079_v41 = vld [vmem:[#allocation2 + $0x640] sm:$0xff] }
 0x96b   :  { %7219 = vmatpush1.bf16.msra.mxu1 %v7218_v30  ;;  %7165 = vmatprep.subr.bf16.mxu0 %v7164_v37  ;;  %v140_v37 = vmul.f32 %v9825_v28, %v13047_v29 }
 0x96c   :  { %7221 = vmatprep.subr.bf16.mxu1 %v7220_v52 }
 0x96d   :  { %v212_v38 = vadd.f32 %v9830_v5, %v140_v37  ;;  %v3109_v37 = vld [vmem:[#allocation2 + $0x730] sm:$0xff] }
 0x96e   :  { %7167 = vmatpush1.bf16.msra.mxu0 %v7166_v49 }
 0x96f   :  { %7223 = vmatpush1.bf16.msra.mxu1 %v7222_v24  ;;  %7233 = vmatprep.subr.bf16.mxu0 %v7232_v34  ;;  %v180_v24 = vmul.f32 %v13049_v14, %v13045_v59  ;;  %v2519_v59 = vld [vmem:[#allocation4 + $0x20] sm:$0xff] }
 0x970   :  { %7225 = vmatprep.subr.bf16.mxu1 %v7224_v51 }
 0x971   :  { %v252_v2 = vadd.f32 %v9805_v27, %v180_v24 }
 0x973   :  { %7227 = vmatpush1.bf16.msra.mxu1 %v7226_v35 }
 0x974   :  { %7229 = vmatprep.subr.bf16.mxu1 %v7228_v36 }
 0x977   :  { %7231 = vmatpush1.bf16.msra.mxu1 %v7230_v19 }
 0x978   :  { %7361 = vmatprep.subr.bf16.mxu1 %v10665_v62 }
 0x9cd   :  { %v2321_v30 = vpop.f32.mrb[20].mxu1  ;;  %v2392_v60 = vpop.f32.mrb[22].mxu0 }
 0x9ce   :  { %v2468_v40 = vadd.f32 %v2321_v30, %v250_v7  ;;  %v2323_v52 = vpop.f32.mrb[21].mxu1  ;;  %v2394_v4 = vpop.f32.mrb[23].mxu0  ;;  %v2482_v53 = vadd.f32 %v2392_v60, %v13050_v20  ;;  %v3092_v7 = vld [vmem:[#allocation2 + $0x6a8] sm:$0xff]  ;;  %v7234_v60 = vpack.c.bf16 %v2525_v42, %v2519_v59  ;;  %v2549_v20 = vld [vmem:[#allocation4 + $0x138] sm:$0xff] }
 0x9cf   :  { %v2475_v61 = vadd.f32 %v2323_v52, %v251_v44  ;;  %v2490_v47 = vadd.f32 %v2394_v4, %v211_v26  ;;  %v10698_v44 = vpack.c.bf16 %v3079_v41, %v3073_v58  ;;  %v2531_v26 = vld [vmem:[#allocation4 + $0x90] sm:$0xff]  ;;  %v3091_v4 = vld [vmem:[#allocation2 + $0x6a0] sm:$0xff]  ;;  %v2580_v42 = vld [vmem:[#allocation4 + $0x258] sm:$0xff] }
 0x9d0   :  { %v5494_v12 = vmul.f32 -1.442695, %v2468_v40  ;;  %v2537_v40 = vld [vmem:[#allocation4 + $0xc8] sm:$0xff]  ;;  %v3085_v52 = vld [vmem:[#allocation2 + $0x670] sm:$0xff] }
 0x9d1   :  { %v5495_v31 = vmul.f32 -1.442695, %v2475_v61  ;;  %v5496_v57 = vmul.f32 -1.442695, %v2490_v47  ;;  %13051 = vst [vmem:[#allocation20_spill] sm:$0xff] %v10698_v44  ;;  %v7236_v61 = vpack.c.bf16 %v2538_v0, %v2532_v22  ;;  %v10706_v47 = vpack.c.bf16 %v3092_v7, %v3086_v17  ;;  %v13063_v58 = vld [vmem:[#allocation72_spill] sm:$0xff] }
 0x9d2   :  { %9047 = vpow2.f32 %v5494_v12  ;;  %v2544_v12 = vld [vmem:[#allocation4 + $0x108] sm:$0xff]  ;;  %v7238_v14 = vpack.c.bf16 %v2537_v40, %v2531_v26  ;;  %v10711_v24 = vpack.c.bf16 %v3091_v4, %v3085_v52  ;;  %v2586_v41 = vld [vmem:[#allocation4 + $0x290] sm:$0xff]  ;;  %v13065_v7 = vld [vmem:[#allocation74_spill] sm:$0xff] }
 0x9d3   :  { %9049 = vpow2.f32 %v5495_v31  ;;  %13052 = vst [vmem:[#allocation75_spill] sm:$0xff] %v10706_v47  ;;  %v13053_v31 = vld [vmem:[#allocation102_spill] sm:$0xff]  ;;  %v2579_v17 = vld [vmem:[#allocation4 + $0x250] sm:$0xff]  ;;  %v3139_v40 = vld [vmem:[#allocation2 + $0x820] sm:$0xff]  ;;  %v7252_v52 = vpack.c.bf16 %v2586_v41, %v2580_v42 }
 0x9d4   :  { %13054 = vst [vmem:[#allocation23_spill] sm:$0xff] %v10711_v24  ;;  %v3133_v26 = vld [vmem:[#allocation2 + $0x7f0] sm:$0xff] }
 0x9dc   :  { %v9048_v45 = vpop.eup %9047 }
 0x9dd   :  { %v2472_v9 = vadd.f32 1.0, %v9048_v45  ;;  %v9050_v25 = vpop.eup %9049  ;;  %v2550_v45 = vld [vmem:[#allocation4 + $0x140] sm:$0xff] }
 0x9de   :  { %v2479_v33 = vadd.f32 1.0, %v9050_v25  ;;  %v3104_v25 = vld [vmem:[#allocation2 + $0x708] sm:$0xff] }
 0x9df   :  { %9051 = vrcp.f32 %v2472_v9  ;;  %v3098_v9 = vld [vmem:[#allocation2 + $0x6d8] sm:$0xff] }
 0x9e0   :  { %9053 = vrcp.f32 %v2479_v33  ;;  %v2543_v33 = vld [vmem:[#allocation4 + $0x100] sm:$0xff] }
 0x9e9   :  { %v9052_v32 = vpop.eup %9051 }
 0x9ea   :  { %v2483_v1 = vmul.f32 %v9052_v32, %v2482_v53  ;;  %v9054_v13 = vpop.eup %9053  ;;  %v3097_v53 = vld [vmem:[#allocation2 + $0x6d0] sm:$0xff]  ;;  %v3103_v32 = vld [vmem:[#allocation2 + $0x700] sm:$0xff] }
 0x9eb   :  { %v2486_v3 = vsub.f32 1.0, %v9054_v13  ;;  %v2488_v48 = vmul.f32 %v9054_v13, %v10616_v63  ;;  %v2562_v13 = vld [vmem:[#allocation4 + $0x1b0] sm:$0xff] }
 0x9ec   :  { %v2484_v51 = vadd.f32 %v2483_v1, %v252_v2  ;;  %v7240_v2 = vpack.c.bf16 %v2550_v45, %v2544_v12  ;;  %v10716_v1 = vpack.c.bf16 %v3104_v25, %v3098_v9  ;;  %v13067_v12 = vld [vmem:[#allocation71_spill] sm:$0xff]  ;;  %v3146_v9 = vld [vmem:[#allocation2 + $0x858] sm:$0xff]  ;;  %v3152_v25 = vld [vmem:[#allocation2 + $0x888] sm:$0xff] }
 0x9ed   :  { %v2598_v45 = vld [vmem:[#allocation4 + $0x300] sm:$0xff] }
 0x9ee   :  { %9055 = vtanh.f32 %v2484_v51  ;;  %13055 = vst [vmem:[#allocation70_spill] sm:$0xff] %v10716_v1  ;;  %v2556_v51 = vld [vmem:[#allocation4 + $0x178] sm:$0xff] }
 0x9ef   :  { %9057 = vpow2.f32 %v5496_v57  ;;  %v13056_v57 = vld [vmem:[#allocation64_spill] sm:$0xff] }
 0x9f8   :  { %v9056_v55 = vpop.eup %9055 }
 0x9f9   :  { %v2487_v39 = vmul.f32 %v9056_v55, %v2486_v3  ;;  %v9058_v27 = vpop.eup %9057  ;;  %v3110_v3 = vld [vmem:[#allocation2 + $0x738] sm:$0xff]  ;;  %v3116_v55 = vld [vmem:[#allocation2 + $0x768] sm:$0xff] }
 0x9fa   :  { %v2494_v35 = vadd.f32 1.0, %v9058_v27  ;;  %v2555_v27 = vld [vmem:[#allocation4 + $0x170] sm:$0xff]  ;;  %v10726_v46 = vpack.c.bf16 %v3116_v55, %v3110_v3  ;;  %v10756_v3 = vpack.c.bf16 %v3152_v25, %v3146_v9  ;;  %v2604_v55 = vld [vmem:[#allocation4 + $0x338] sm:$0xff]  ;;  %v3188_v9 = vld [vmem:[#allocation2 + $0x9a8] sm:$0xff] }
 0x9fb   :  { %v10682_v23 = vadd.f32 %v2488_v48, %v2487_v39  ;;  %v7242_v39 = vpack.c.bf16 %v2549_v20, %v2543_v33  ;;  %v10721_v48 = vpack.c.bf16 %v3103_v32, %v3097_v53  ;;  %v10751_v33 = vpack.c.bf16 %v3139_v40, %v3133_v26  ;;  %v2591_v20 = vld [vmem:[#allocation4 + $0x2c0] sm:$0xff]  ;;  %v13069_v53 = vld [vmem:[#allocation69_spill] sm:$0xff]  ;;  %v2597_v32 = vld [vmem:[#allocation4 + $0x2f8] sm:$0xff] }
 0x9fc   :  { %9059 = vrcp.f32 %v2494_v35  ;;  %v2561_v35 = vld [vmem:[#allocation4 + $0x1a8] sm:$0xff]  ;;  %13058 = vst [vmem:[#allocation67_spill] sm:$0xff] %v10726_v46  ;;  %13070 = vst [vmem:[#allocation27_spill] sm:$0xff] %v10756_v3  ;;  %v3175_v26 = vld [vmem:[#allocation2 + $0x940] sm:$0xff] }
 0x9fd   :  { %2512 = vst [vmem:[%s11985_s5] sm:$0xff] %v10682_v23  ;;  %13057 = vst [vmem:[#allocation9_spill] sm:$0xff] %v10721_v48  ;;  %v2628_v40 = vld [vmem:[#allocation4 + $0x418] sm:$0xff] }
 0x9fe   :  { %13068 = vst [vmem:[#allocation77_spill] sm:$0xff] %v10751_v33 }
 0xa06   :  { %v9060_v49 = vpop.eup %9059 }
 0xa0d   :  { %v2463_v50 = vpop.f32.mrb[22].mxu1 }
 0xa0e   :  { %v2497_v36 = vadd.f32 %v2463_v50, %v212_v38  ;;  %v2465_v16 = vpop.f32.mrb[23].mxu1  ;;  %v3115_v38 = vld [vmem:[#allocation2 + $0x760] sm:$0xff]  ;;  %v7244_v50 = vpack.c.bf16 %v2562_v13, %v2556_v51 }
 0xa0f   :  { %v2504_v21 = vadd.f32 %v2465_v16, %v9834_v43  ;;  %v13059_v16 = vld [vmem:[#allocation68_spill] sm:$0xff]  ;;  %v3151_v51 = vld [vmem:[#allocation2 + $0x880] sm:$0xff] }
 0xa10   :  { %v5497_v19 = vmul.f32 -1.442695, %v2497_v36  ;;  %v2568_v36 = vld [vmem:[#allocation4 + $0x1e8] sm:$0xff] }
 0xa11   :  { %v2505_v10 = vmul.f32 %v9060_v49, %v2504_v21  ;;  %v2574_v21 = vld [vmem:[#allocation4 + $0x220] sm:$0xff]  ;;  %v3122_v49 = vld [vmem:[#allocation2 + $0x798] sm:$0xff] }
 0xa12   :  { %9061 = vpow2.f32 %v5497_v19  ;;  %v3128_v19 = vld [vmem:[#allocation2 + $0x7c8] sm:$0xff]  ;;  %v7248_v59 = vpack.c.bf16 %v2574_v21, %v2568_v36  ;;  %v13072_v36 = vld [vmem:[#allocation65_spill] sm:$0xff] }
 0xa13   :  { %v2506_v54 = vadd.f32 %v2505_v10, %v213_v15  ;;  %v7246_v15 = vpack.c.bf16 %v2561_v35, %v2555_v27  ;;  %v10731_v10 = vpack.c.bf16 %v3115_v38, %v3109_v37  ;;  %v3158_v27 = vld [vmem:[#allocation2 + $0x8b8] sm:$0xff]  ;;  %v3164_v35 = vld [vmem:[#allocation2 + $0x8e8] sm:$0xff]  ;;  %v7258_v37 = vpack.c.bf16 %v2597_v32, %v2591_v20  ;;  %v2627_v20 = vld [vmem:[#allocation4 + $0x410] sm:$0xff] }
 0xa14   :  { %v2609_v21 = vld [vmem:[#allocation4 + $0x368] sm:$0xff] }
 0xa15   :  { %13060 = vst [vmem:[#allocation66_spill] sm:$0xff] %v10731_v10  ;;  %v2633_v32 = vld [vmem:[#allocation4 + $0x448] sm:$0xff] }
 0xa1c   :  { %v9062_v34 = vpop.eup %9061 }
 0xa1d   :  { %v2501_v56 = vadd.f32 1.0, %v9062_v34  ;;  %v13061_v34 = vld [vmem:[#allocation17_spill] sm:$0xff] }
 0xa1f   :  { %9063 = vrcp.f32 %v2501_v56  ;;  %v2573_v56 = vld [vmem:[#allocation4 + $0x218] sm:$0xff] }
 0xa20   :  { %9065 = vtanh.f32 %v2506_v54  ;;  %v2567_v54 = vld [vmem:[#allocation4 + $0x1e0] sm:$0xff] }
 0xa21   :  { %v7250_v22 = vpack.c.bf16 %v2573_v56, %v2567_v54  ;;  %v10766_v54 = vpack.c.bf16 %v3164_v35, %v3158_v27  ;;  %v2616_v56 = vld [vmem:[#allocation4 + $0x3a8] sm:$0xff]  ;;  %v2646_v27 = vld [vmem:[#allocation4 + $0x4c0] sm:$0xff]  ;;  %v3194_v35 = vld [vmem:[#allocation2 + $0x9d8] sm:$0xff] }
 0xa23   :  { %13073 = vst [vmem:[#allocation78_spill] sm:$0xff] %v10766_v54 }
 0xa29   :  { %v9064_v28 = vpop.eup %9063 }
 0xa2a   :  { %v2508_v5 = vsub.f32 1.0, %v9064_v28  ;;  %v9066_v8 = vpop.eup %9065  ;;  %v2510_v43 = vmul.f32 %v9064_v28, %v10626_v18  ;;  %v3121_v28 = vld [vmem:[#allocation2 + $0x790] sm:$0xff] }
 0xa2c   :  { %v2509_v29 = vmul.f32 %v9066_v8, %v2508_v5  ;;  %v3127_v5 = vld [vmem:[#allocation2 + $0x7c0] sm:$0xff]  ;;  %v10736_v8 = vpack.c.bf16 %v3128_v19, %v3122_v49  ;;  %v3157_v49 = vld [vmem:[#allocation2 + $0x8b0] sm:$0xff] }
 0xa2d   :  { %v10741_v0 = vpack.c.bf16 %v3127_v5, %v3121_v28  ;;  %v3163_v19 = vld [vmem:[#allocation2 + $0x8e0] sm:$0xff]  ;;  %v3170_v5 = vld [vmem:[#allocation2 + $0x918] sm:$0xff] }
 0xa2e   :  { %v10696_v30 = vadd.f32 %v2510_v43, %v2509_v29  ;;  %13062 = vst [vmem:[#allocation97_spill] sm:$0xff] %v10736_v8  ;;  %v3134_v29 = vld [vmem:[#allocation2 + $0x7f8] sm:$0xff]  ;;  %v3140_v43 = vld [vmem:[#allocation2 + $0x828] sm:$0xff]  ;;  %v2622_v28 = vld [vmem:[#allocation4 + $0x3e0] sm:$0xff]  ;;  %v10771_v41 = vpack.c.bf16 %v3163_v19, %v3157_v49 }
 0xa2f   :  { %13064 = vst [vmem:[#allocation24_spill] sm:$0xff] %v10741_v0  ;;  %v10746_v4 = vpack.c.bf16 %v3140_v43, %v3134_v29  ;;  %v2615_v29 = vld [vmem:[#allocation4 + $0x3a0] sm:$0xff]  ;;  %v2621_v43 = vld [vmem:[#allocation4 + $0x3d8] sm:$0xff] }
 0xa30   :  { %5498 = vst [vmem:[%s11985_s5 + $0x8] sm:$0xff] %v10696_v30  ;;  %2795 = vmatprep.mubr.f32.mxu0 %v10696_v30  ;;  %2908 = vmatprep.mubr.f32.mxu1 %v10696_v30  ;;  %13074 = vst [vmem:[#allocation79_spill] sm:$0xff] %v10771_v41  ;;  %v7266_v25 = vpack.c.bf16 %v2621_v43, %v2615_v29  ;;  %v2645_v19 = vld [vmem:[#allocation4 + $0x4b8] sm:$0xff]  ;;  %v3212_v43 = vld [vmem:[#allocation2 + $0xa68] sm:$0xff] }
 0xa31   :  { %2796 = vmatmul.mubr.f32.vlgmr.msra.gmra.mrb[24].mxu0 %v13053_v31  ;;  %2909 = vmatmul.mubr.f32.vlgmr.msra.gmra.mrb[24].mxu1 %v13053_v31  ;;  %13066 = vst [vmem:[#allocation76_spill] sm:$0xff] %v10746_v4  ;;  %v3206_v29 = vld [vmem:[#allocation2 + $0xa38] sm:$0xff] }
 0xa32   :  { %7235 = vmatpush1.bf16.msra.mxu0 %v7234_v60  ;;  %7363 = vmatpush1.bf16.msra.mxu1 %v10698_v44  ;;  %v2585_v60 = vld [vmem:[#allocation4 + $0x288] sm:$0xff] }
 0xa33   :  { %2801 = vmatprep.mubr.f32.mxu0 %v10626_v18  ;;  %2914 = vmatprep.mubr.f32.mxu1 %v10626_v18 }
 0xa34   :  { %7237 = vmatprep.subr.bf16.mxu0 %v7236_v61  ;;  %7365 = vmatprep.subr.bf16.mxu1 %v10706_v47  ;;  %v2592_v61 = vld [vmem:[#allocation4 + $0x2c8] sm:$0xff] }
 0xa35   :  { %2802 = vmatmul.mubr.f32.gmra.mrb[26].mxu0 %v13056_v57  ;;  %2915 = vmatmul.mubr.f32.gmra.mrb[26].mxu1 %v13056_v57  ;;  %v7256_v13 = vpack.c.bf16 %v2598_v45, %v2592_v61  ;;  %v2634_v61 = vld [vmem:[#allocation4 + $0x450] sm:$0xff]  ;;  %v3182_v45 = vld [vmem:[#allocation2 + $0x978] sm:$0xff] }
 0xa36   :  { %7239 = vmatpush1.bf16.msra.mxu0 %v7238_v14  ;;  %7367 = vmatpush1.bf16.msra.mxu1 %v10711_v24  ;;  %v7254_v14 = vpack.c.bf16 %v2585_v60, %v2579_v17  ;;  %v7264_v17 = vpack.c.bf16 %v2622_v28, %v2616_v56  ;;  %v3169_v60 = vld [vmem:[#allocation2 + $0x910] sm:$0xff] }
 0xa37   :  { %2807 = vmatprep.mubr.f32.mxu0 %v10499_v11  ;;  %2920 = vmatprep.mubr.f32.mxu1 %v10499_v11  ;;  %v3193_v28 = vld [vmem:[#allocation2 + $0x9d0] sm:$0xff] }
 0xa38   :  { %7241 = vmatprep.subr.bf16.mxu0 %v7240_v2  ;;  %7369 = vmatprep.subr.bf16.mxu1 %v10716_v1  ;;  %v3145_v2 = vld [vmem:[#allocation2 + $0x850] sm:$0xff] }
 0xa39   :  { %2808 = vmatmul.mubr.f32.gmra.mrb[28].mxu0 %v13059_v16  ;;  %2921 = vmatmul.mubr.f32.gmra.mrb[28].mxu1 %v13059_v16  ;;  %v10761_v38 = vpack.c.bf16 %v3151_v51, %v3145_v2  ;;  %v7268_v2 = vpack.c.bf16 %v2634_v61, %v2628_v40  ;;  %v10784_v51 = vpack.c.bf16 %v3188_v9, %v3182_v45  ;;  %v2657_v40 = vld [vmem:[#allocation4 + $0x528] sm:$0xff]  ;;  %v3205_v9 = vld [vmem:[#allocation2 + $0xa30] sm:$0xff] }
 0xa3a   :  { %7243 = vmatpush1.bf16.msra.mxu0 %v7242_v39  ;;  %7371 = vmatpush1.bf16.msra.mxu1 %v10721_v48  ;;  %v2610_v39 = vld [vmem:[#allocation4 + $0x370] sm:$0xff]  ;;  %v10798_v45 = vpack.c.bf16 %v3212_v43, %v3206_v29 }
 0xa3b   :  { %2813 = vmatprep.mubr.f32.mxu0 %v13061_v34  ;;  %2926 = vmatprep.mubr.f32.mxu1 %v13061_v34  ;;  %13071 = vst [vmem:[#allocation28_spill] sm:$0xff] %v10761_v38  ;;  %13078 = vst [vmem:[#allocation80_spill] sm:$0xff] %v10784_v51  ;;  %v2675_v43 = vld [vmem:[#allocation4 + $0x5d0] sm:$0xff] }
 0xa3c   :  { %7245 = vmatprep.subr.bf16.mxu0 %v7244_v50  ;;  %7373 = vmatprep.subr.bf16.mxu1 %v10726_v46  ;;  %v2603_v50 = vld [vmem:[#allocation4 + $0x330] sm:$0xff]  ;;  %13083 = vst [vmem:[#allocation82_spill] sm:$0xff] %v10798_v45 }
 0xa3d   :  { %2814 = vmatmul.mubr.f32.gmra.mrb[30].mxu0 %v13063_v58  ;;  %2927 = vmatmul.mubr.f32.gmra.mrb[30].mxu1 %v13063_v58  ;;  %v7262_v42 = vpack.c.bf16 %v2609_v21, %v2603_v50  ;;  %v13079_v50 = vmov 0.0   ;;  %v7270_v21 = vpack.c.bf16 %v2633_v32, %v2627_v20  ;;  %v2664_v20 = vld [vmem:[#allocation4 + $0x568] sm:$0xff]  ;;  %v2670_v32 = vld [vmem:[#allocation4 + $0x5a0] sm:$0xff] }
 0xa3e   :  { %7247 = vmatpush1.bf16.msra.mxu0 %v7246_v15  ;;  %7375 = vmatpush1.bf16.msra.mxu1 %v10731_v10  ;;  %v7260_v15 = vpack.c.bf16 %v2610_v39, %v2604_v55  ;;  %v3187_v55 = vld [vmem:[#allocation2 + $0x9a0] sm:$0xff]  ;;  %v2640_v39 = vld [vmem:[#allocation4 + $0x488] sm:$0xff] }
 0xa3f   :  { %2819 = vmatprep.mubr.f32.mxu0 %v13065_v7  ;;  %2932 = vmatprep.mubr.f32.mxu1 %v13065_v7 }
 0xa40   :  { %7249 = vmatprep.subr.bf16.mxu0 %v7248_v59  ;;  %7377 = vmatprep.subr.bf16.mxu1 %v10736_v8  ;;  %v3176_v59 = vld [vmem:[#allocation2 + $0x948] sm:$0xff] }
 0xa41   :  { %2820 = vmatmul.mubr.f32.gmra.mrb[32].mxu0 %v13067_v12  ;;  %2933 = vmatmul.mubr.f32.gmra.mrb[32].mxu1 %v13067_v12 }
 0xa42   :  { %7251 = vmatpush1.bf16.msra.mxu0 %v7250_v22  ;;  %7379 = vmatpush1.bf16.msra.mxu1 %v10741_v0  ;;  %v13075_v22 = vld [vmem:[#allocation103_spill] sm:$0xff] }
 0xa43   :  { %2825 = vmatprep.mubr.f32.mxu0 %v13069_v53  ;;  %2938 = vmatprep.mubr.f32.mxu1 %v13069_v53 }
 0xa44   :  { %7253 = vmatprep.subr.bf16.mxu0 %v7252_v52  ;;  %7381 = vmatprep.subr.bf16.mxu1 %v10746_v4  ;;  %v10776_v52 = vpack.c.bf16 %v3176_v59, %v3170_v5  ;;  %v3199_v5 = vld [vmem:[#allocation2 + $0xa00] sm:$0xff]  ;;  %v2652_v59 = vld [vmem:[#allocation4 + $0x4f8] sm:$0xff] }
 0xa45   :  { %2826 = vmatmul.mubr.f32.gmra.mrb[34].mxu0 %v10489_v6  ;;  %2939 = vmatmul.mubr.f32.gmra.mrb[34].mxu1 %v10489_v6 }
 0xa46   :  { %7255 = vmatpush1.bf16.msra.mxu0 %v7254_v14  ;;  %7383 = vmatpush1.bf16.msra.mxu1 %v10751_v33  ;;  %13076 = vst [vmem:[#allocation31_spill] sm:$0xff] %v10776_v52  ;;  %v10781_v14 = vpack.c.bf16 %v3175_v26, %v3169_v60  ;;  %v10795_v60 = vpack.c.bf16 %v3199_v5, %v3193_v28  ;;  %v2651_v26 = vld [vmem:[#allocation4 + $0x4f0] sm:$0xff]  ;;  %v3230_v5 = vld [vmem:[#allocation2 + $0xaf8] sm:$0xff] }
 0xa47   :  { %2831 = vmatprep.mubr.f32.mxu0 %v13072_v36  ;;  %2944 = vmatprep.mubr.f32.mxu1 %v13072_v36  ;;  %v2682_v28 = vld [vmem:[#allocation4 + $0x610] sm:$0xff] }
 0xa48   :  { %7257 = vmatprep.subr.bf16.mxu0 %v7256_v13  ;;  %7385 = vmatprep.subr.bf16.mxu1 %v10756_v3  ;;  %13077 = vst [vmem:[#allocation32_spill] sm:$0xff] %v10781_v14  ;;  %v3181_v13 = vld [vmem:[#allocation2 + $0x970] sm:$0xff]  ;;  %13082 = vst [vmem:[#allocation36_spill] sm:$0xff] %v10795_v60 }
 0xa49   :  { %2832 = vmatmul.mubr.f32.gmra.mrb[36].mxu0 %v10616_v63  ;;  %2945 = vmatmul.mubr.f32.gmra.mrb[36].mxu1 %v10616_v63  ;;  %v10789_v49 = vpack.c.bf16 %v3187_v55, %v3181_v13  ;;  %v3224_v13 = vld [vmem:[#allocation2 + $0xac8] sm:$0xff]  ;;  %v7278_v55 = vpack.c.bf16 %v2657_v40, %v2651_v26 }
 0xa4a   :  { %7259 = vmatpush1.bf16.msra.mxu0 %v7258_v37  ;;  %7387 = vmatpush1.bf16.msra.mxu1 %v10761_v38  ;;  %v3200_v37 = vld [vmem:[#allocation2 + $0xa08] sm:$0xff] }
 0xa4b   :  { %2837 = vmatprep.mubr.f32.mxu0 %v13075_v22  ;;  %2950 = vmatprep.mubr.f32.mxu1 %v13075_v22  ;;  %13080 = vst [vmem:[#allocation81_spill] sm:$0xff] %v10789_v49  ;;  %v10792_v56 = vpack.c.bf16 %v3200_v37, %v3194_v35  ;;  %v2669_v35 = vld [vmem:[#allocation4 + $0x598] sm:$0xff]  ;;  %v7280_v37 = vpack.c.bf16 %v2670_v32, %v2664_v20  ;;  %v2694_v20 = vld [vmem:[#allocation4 + $0x680] sm:$0xff] }
 0xa4c   :  { %7261 = vmatprep.subr.bf16.mxu0 %v7260_v15  ;;  %7389 = vmatprep.subr.bf16.mxu1 %v10766_v54  ;;  %v7272_v15 = vpack.c.bf16 %v2646_v27, %v2640_v39  ;;  %v2663_v27 = vld [vmem:[#allocation4 + $0x560] sm:$0xff]  ;;  %v3242_v32 = vld [vmem:[#allocation2 + $0xb58] sm:$0xff] }
 0xa4d   :  { %2838 = vmatmul.mubr.f32.gmra.mrb[38].mxu0 %v10682_v23  ;;  %2951 = vmatmul.mubr.f32.gmra.mrb[38].mxu1 %v10682_v23  ;;  %13081 = vst [vmem:[#allocation35_spill] sm:$0xff] %v10792_v56 }
 0xa4e   :  { %7263 = vmatpush1.bf16.msra.mxu0 %v7262_v42  ;;  %7391 = vmatpush1.bf16.msra.mxu1 %v10771_v41  ;;  %v2658_v42 = vld [vmem:[#allocation4 + $0x530] sm:$0xff] }
 0xa4f   :  { %3021 = vmatprep.mubr.f32.mxu0 %v10696_v30  ;;  %7265 = vmatprep.subr.bf16.mxu0 %v7264_v17  ;;  %v2639_v30 = vld [vmem:[#allocation4 + $0x480] sm:$0xff]  ;;  %v7276_v61 = vpack.c.bf16 %v2658_v42, %v2652_v59  ;;  %v3236_v59 = vld [vmem:[#allocation2 + $0xb28] sm:$0xff]  ;;  %v7282_v42 = vpack.c.bf16 %v2669_v35, %v2663_v27  ;;  %v2693_v35 = vld [vmem:[#allocation4 + $0x678] sm:$0xff] }
 0xa50   :  { %7393 = vmatprep.subr.bf16.mxu1 %v10776_v52  ;;  %3398 = vmatprep.mubr.f32.mxu1 %v13079_v50  ;;  %v7274_v17 = vpack.c.bf16 %v2645_v19, %v2639_v30  ;;  %v3217_v30 = vld [vmem:[#allocation2 + $0xa90] sm:$0xff]  ;;  %v3223_v19 = vld [vmem:[#allocation2 + $0xac0] sm:$0xff]  ;;  %v10810_v40 = vpack.c.bf16 %v3236_v59, %v3230_v5  ;;  %v3254_v59 = vld [vmem:[#allocation2 + $0xbb8] sm:$0xff] }
 0xa51   :  { %v10807_v29 = vpack.c.bf16 %v3223_v19, %v3217_v30  ;;  %v2687_v27 = vld [vmem:[#allocation4 + $0x640] sm:$0xff]  ;;  %v3241_v19 = vld [vmem:[#allocation2 + $0xb50] sm:$0xff] }
 0xa52   :  { %7267 = vmatpush1.bf16.msra.mxu0 %v7266_v25  ;;  %7395 = vmatpush1.bf16.msra.mxu1 %v10781_v14  ;;  %v3211_v25 = vld [vmem:[#allocation2 + $0xa60] sm:$0xff]  ;;  %13087 = vst [vmem:[#allocation84_spill] sm:$0xff] %v10810_v40  ;;  %v2706_v5 = vld [vmem:[#allocation4 + $0x6f0] sm:$0xff] }
 0xa53   :  { %7269 = vmatprep.subr.bf16.mxu0 %v7268_v2  ;;  %7397 = vmatprep.subr.bf16.mxu1 %v10784_v51  ;;  %v3218_v2 = vld [vmem:[#allocation2 + $0xa98] sm:$0xff]  ;;  %v10801_v39 = vpack.c.bf16 %v3211_v25, %v3205_v9  ;;  %13086 = vst [vmem:[#allocation40_spill] sm:$0xff] %v10807_v29  ;;  %v3235_v9 = vld [vmem:[#allocation2 + $0xb20] sm:$0xff]  ;;  %v2688_v25 = vld [vmem:[#allocation4 + $0x648] sm:$0xff] }
 0xa55   :  { %13084 = vst [vmem:[#allocation83_spill] sm:$0xff] %v10801_v39 }
 0xa56   :  { %7271 = vmatpush1.bf16.msra.mxu0 %v7270_v21  ;;  %7399 = vmatpush1.bf16.msra.mxu1 %v10789_v49  ;;  %v10804_v21 = vpack.c.bf16 %v3224_v13, %v3218_v2  ;;  %v3248_v2 = vld [vmem:[#allocation2 + $0xb88] sm:$0xff] }
 0xa57   :  { %7273 = vmatprep.subr.bf16.mxu0 %v7272_v15  ;;  %7401 = vmatprep.subr.bf16.mxu1 %v10792_v56  ;;  %v2676_v15 = vld [vmem:[#allocation4 + $0x5d8] sm:$0xff]  ;;  %v10816_v30 = vpack.c.bf16 %v3248_v2, %v3242_v32  ;;  %v3072_v32 = vld [vmem:[#allocation2 + $0x608] sm:$0xff] }
 0xa58   :  { %13085 = vst [vmem:[#allocation39_spill] sm:$0xff] %v10804_v21  ;;  %v7284_v26 = vpack.c.bf16 %v2682_v28, %v2676_v15  ;;  %v3247_v15 = vld [vmem:[#allocation2 + $0xb80] sm:$0xff]  ;;  %v2700_v28 = vld [vmem:[#allocation4 + $0x6b8] sm:$0xff] }
 0xa59   :  { %13089 = vst [vmem:[#allocation43_spill] sm:$0xff] %v10816_v30  ;;  %v3078_v2 = vld [vmem:[#allocation2 + $0x638] sm:$0xff] }
 0xa5a   :  { %7275 = vmatpush1.bf16.msra.mxu0 %v7274_v17  ;;  %7403 = vmatpush1.bf16.msra.mxu1 %v10795_v60  ;;  %v2681_v17 = vld [vmem:[#allocation4 + $0x608] sm:$0xff] }
 0xa5b   :  { %7277 = vmatprep.subr.bf16.mxu0 %v7276_v61  ;;  %7405 = vmatprep.subr.bf16.mxu1 %v10798_v45  ;;  %v3229_v61 = vld [vmem:[#allocation2 + $0xaf0] sm:$0xff]  ;;  %v7286_v13 = vpack.c.bf16 %v2681_v17, %v2675_v43  ;;  %v10819_v43 = vpack.c.bf16 %v3247_v15, %v3241_v19  ;;  %v3075_v15 = vld [vmem:[#allocation2 + $0x620] sm:$0xff]  ;;  %v3222_v45 = vld [vmem:[#allocation2 + $0xab8] sm:$0xff] }
 0xa5c   :  { %v2699_v17 = vld [vmem:[#allocation4 + $0x6b0] sm:$0xff]  ;;  %v3228_v60 = vld [vmem:[#allocation2 + $0xae8] sm:$0xff] }
 0xa5d   :  { %13090 = vst [vmem:[#allocation44_spill] sm:$0xff] %v10819_v43  ;;  %v3077_v19 = vld [vmem:[#allocation2 + $0x630] sm:$0xff] }
 0xa5e   :  { %7279 = vmatpush1.bf16.msra.mxu0 %v7278_v55  ;;  %7407 = vmatpush1.bf16.msra.mxu1 %v10801_v39  ;;  %v10813_v55 = vpack.c.bf16 %v3235_v9, %v3229_v61  ;;  %v2705_v61 = vld [vmem:[#allocation4 + $0x6e8] sm:$0xff] }
 0xa5f   :  { %7281 = vmatprep.subr.bf16.mxu0 %v7280_v37  ;;  %7409 = vmatprep.subr.bf16.mxu1 %v10804_v21  ;;  %v7288_v37 = vpack.c.bf16 %v2694_v20, %v2688_v25  ;;  %v3260_v21 = vld [vmem:[#allocation2 + $0xbe8] sm:$0xff]  ;;  %v3253_v25 = vld [vmem:[#allocation2 + $0xbb0] sm:$0xff]  ;;  %v3259_v20 = vld [vmem:[#allocation2 + $0xbe0] sm:$0xff] }
 0xa60   :  { %13088 = vst [vmem:[#allocation85_spill] sm:$0xff] %v10813_v55  ;;  %v10822_v9 = vpack.c.bf16 %v3260_v21, %v3254_v59  ;;  %v3071_v21 = vld [vmem:[#allocation2 + $0x600] sm:$0xff]  ;;  %v3090_v59 = vld [vmem:[#allocation2 + $0x698] sm:$0xff]  ;;  %v3216_v39 = vld [vmem:[#allocation2 + $0xa88] sm:$0xff] }
 0xa62   :  { %7283 = vmatpush1.bf16.msra.mxu0 %v7282_v42  ;;  %7411 = vmatpush1.bf16.msra.mxu1 %v10807_v29  ;;  %v7290_v42 = vpack.c.bf16 %v2693_v35, %v2687_v27  ;;  %13091 = vst [vmem:[#allocation86_spill] sm:$0xff] %v10822_v9  ;;  %v3082_v29 = vld [vmem:[#allocation2 + $0x658] sm:$0xff]  ;;  %v10825_v27 = vpack.c.bf16 %v3259_v20, %v3253_v25  ;;  %v3087_v25 = vld [vmem:[#allocation2 + $0x680] sm:$0xff] }
 0xa63   :  { %7285 = vmatprep.subr.bf16.mxu0 %v7284_v26  ;;  %7413 = vmatprep.subr.bf16.mxu1 %v10810_v40  ;;  %v7292_v26 = vpack.c.bf16 %v2706_v5, %v2700_v28  ;;  %v3076_v40 = vld [vmem:[#allocation2 + $0x628] sm:$0xff]  ;;  %v10828_v35 = vpack.c.bf16 %v3078_v2, %v3072_v32  ;;  %v3081_v28 = vld [vmem:[#allocation2 + $0x650] sm:$0xff] }
 0xa64   :  { %13092 = vst [vmem:[#allocation87_spill] sm:$0xff] %v10825_v27  ;;  %v3084_v5 = vld [vmem:[#allocation2 + $0x668] sm:$0xff]  ;;  %v3093_v32 = vld [vmem:[#allocation2 + $0x6b0] sm:$0xff] }
 0xa65   :  { %13093 = vst [vmem:[#allocation47_spill] sm:$0xff] %v10828_v35  ;;  %v3096_v2 = vld [vmem:[#allocation2 + $0x6c8] sm:$0xff] }
 0xa66   :  { %7287 = vmatpush1.bf16.msra.mxu0 %v7286_v13  ;;  %7415 = vmatpush1.bf16.msra.mxu1 %v10813_v55  ;;  %v7294_v13 = vpack.c.bf16 %v2705_v61, %v2699_v17  ;;  %v10833_v17 = vpack.c.bf16 %v3077_v19, %v3071_v21  ;;  %v10837_v61 = vpack.c.bf16 %v3081_v28, %v3075_v15  ;;  %v3100_v21 = vld [vmem:[#allocation2 + $0x6e8] sm:$0xff]  ;;  %v3106_v19 = vld [vmem:[#allocation2 + $0x718] sm:$0xff] }
 0xa67   :  { %7289 = vmatprep.subr.bf16.mxu0 %v7288_v37  ;;  %7417 = vmatprep.subr.bf16.mxu1 %v10816_v30  ;;  %v10830_v37 = vpack.c.bf16 %v3082_v29, %v3076_v40  ;;  %v3088_v30 = vld [vmem:[#allocation2 + $0x688] sm:$0xff]  ;;  %v10839_v29 = vpack.c.bf16 %v3090_v59, %v3084_v5  ;;  %v3083_v40 = vld [vmem:[#allocation2 + $0x660] sm:$0xff]  ;;  %v3210_v55 = vld [vmem:[#allocation2 + $0xa58] sm:$0xff] }
 0xa68   :  { %13095 = vst [vmem:[#allocation88_spill] sm:$0xff] %v10833_v17  ;;  %13096 = vst [vmem:[#allocation89_spill] sm:$0xff] %v10837_v61  ;;  %v3095_v5 = vld [vmem:[#allocation2 + $0x6c0] sm:$0xff] }
 0xa69   :  { %13094 = vst [vmem:[#allocation48_spill] sm:$0xff] %v10830_v37  ;;  %13097 = vst [vmem:[#allocation51_spill] sm:$0xff] %v10839_v29  ;;  %v3099_v59 = vld [vmem:[#allocation2 + $0x6e0] sm:$0xff] }
 0xa6a   :  { %7291 = vmatpush1.bf16.msra.mxu0 %v7290_v42  ;;  %7419 = vmatpush1.bf16.msra.mxu1 %v10819_v43  ;;  %v3094_v42 = vld [vmem:[#allocation2 + $0x6b8] sm:$0xff]  ;;  %v3204_v43 = vld [vmem:[#allocation2 + $0xa28] sm:$0xff] }
 0xa6b   :  { %7293 = vmatprep.subr.bf16.mxu0 %v7292_v26  ;;  %7421 = vmatprep.subr.bf16.mxu1 %v10822_v9  ;;  %v3089_v26 = vld [vmem:[#allocation2 + $0x690] sm:$0xff]  ;;  %v10841_v20 = vpack.c.bf16 %v3094_v42, %v3088_v30  ;;  %v10851_v30 = vpack.c.bf16 %v3093_v32, %v3087_v25  ;;  %v10856_v42 = vpack.c.bf16 %v3106_v19, %v3100_v21  ;;  %v3111_v19 = vld [vmem:[#allocation2 + $0x740] sm:$0xff]  ;;  %v3202_v9 = vld [vmem:[#allocation2 + $0xa18] sm:$0xff] }
 0xa6c   :  { %v10847_v15 = vpack.c.bf16 %v3089_v26, %v3083_v40  ;;  %v3112_v40 = vld [vmem:[#allocation2 + $0x748] sm:$0xff]  ;;  %v3118_v26 = vld [vmem:[#allocation2 + $0x778] sm:$0xff]  ;;  %v3113_v21 = vld [vmem:[#allocation2 + $0x750] sm:$0xff] }
 0xa6d   :  { %13098 = vst [vmem:[#allocation52_spill] sm:$0xff] %v10841_v20  ;;  %13100 = vst [vmem:[#allocation10_spill] sm:$0xff] %v10851_v30 }
 0xa6e   :  { %7295 = vmatpush1.bf16.msra.mxu0 %v7294_v13  ;;  %7423 = vmatpush1.bf16.msra.mxu1 %v10825_v27  ;;  %v3102_v13 = vld [vmem:[#allocation2 + $0x6f8] sm:$0xff]  ;;  %13099 = vst [vmem:[#allocation90_spill] sm:$0xff] %v10847_v15  ;;  %13102 = vst [vmem:[#allocation56_spill] sm:$0xff] %v10856_v42 }
 0xa6f   :  { %7297 = vmatprep.subr.bf16.mxu0 %v10828_v35  ;;  %7425 = vmatprep.subr.bf16.mxu1 %v10830_v37  ;;  %v10853_v28 = vpack.c.bf16 %v3102_v13, %v3096_v2  ;;  %v3108_v37 = vld [vmem:[#allocation2 + $0x728] sm:$0xff]  ;;  %v3114_v27 = vld [vmem:[#allocation2 + $0x758] sm:$0xff]  ;;  %v3107_v13 = vld [vmem:[#allocation2 + $0x720] sm:$0xff] }
 0xa70   :  { %v10868_v2 = vpack.c.bf16 %v3114_v27, %v3108_v37  ;;  %v10876_v27 = vpack.c.bf16 %v3113_v21, %v3107_v13  ;;  %v3136_v13 = vld [vmem:[#allocation2 + $0x808] sm:$0xff]  ;;  %v3142_v21 = vld [vmem:[#allocation2 + $0x838] sm:$0xff] }
 0xa71   :  { %3022 = vmatmul.mubr.f32.vlgmr.msra.gmra.mrb[40].mxu0 %v13053_v31  ;;  %3399 = vmatmul.mubr.f32.vlgmr.msra.gmra.mrb[40].mxu1 %v13079_v50  ;;  %13101 = vst [vmem:[#allocation55_spill] sm:$0xff] %v10853_v28  ;;  %v3101_v31 = vld [vmem:[#allocation2 + $0x6f0] sm:$0xff] }
 0xa72   :  { %3027 = vmatprep.mubr.f32.mxu0 %v10626_v18  ;;  %7299 = vmatpush1.bf16.msra.mxu0 %v10833_v17  ;;  %v3105_v18 = vld [vmem:[#allocation2 + $0x710] sm:$0xff]  ;;  %v10862_v25 = vpack.c.bf16 %v3101_v31, %v3095_v5  ;;  %13105 = vst [vmem:[#allocation13_spill] sm:$0xff] %v10868_v2  ;;  %v3124_v5 = vld [vmem:[#allocation2 + $0x7a8] sm:$0xff]  ;;  %v3130_v31 = vld [vmem:[#allocation2 + $0x7d8] sm:$0xff] }
 0xa73   :  { %7427 = vmatpush1.bf16.msra.mxu1 %v10837_v61  ;;  %7301 = vmatprep.subr.bf16.mxu0 %v10839_v29  ;;  %v10866_v32 = vpack.c.bf16 %v3105_v18, %v3099_v59  ;;  %v3126_v61 = vld [vmem:[#allocation2 + $0x7b8] sm:$0xff]  ;;  %13107 = vst [vmem:[#allocation15_spill] sm:$0xff] %v10876_v27  ;;  %v3119_v18 = vld [vmem:[#allocation2 + $0x780] sm:$0xff] }
 0xa74   :  { %7429 = vmatprep.subr.bf16.mxu1 %v10841_v20  ;;  %3469 = vmatprep.mubr.f32.mxu1 %v13079_v50  ;;  %13103 = vst [vmem:[#allocation11_spill] sm:$0xff] %v10862_v25  ;;  %v3120_v20 = vld [vmem:[#allocation2 + $0x788] sm:$0xff] }
 0xa75   :  { %3028 = vmatmul.mubr.f32.gmra.mrb[42].mxu0 %v13056_v57  ;;  %13104 = vst [vmem:[#allocation12_spill] sm:$0xff] %v10866_v32  ;;  %v10871_v57 = vpack.c.bf16 %v3118_v26, %v3112_v40  ;;  %v10882_v59 = vpack.c.bf16 %v3126_v61, %v3120_v20  ;;  %v3125_v40 = vld [vmem:[#allocation2 + $0x7b0] sm:$0xff]  ;;  %v3123_v26 = vld [vmem:[#allocation2 + $0x7a0] sm:$0xff] }
 0xa76   :  { %3033 = vmatprep.mubr.f32.mxu0 %v10499_v11  ;;  %7303 = vmatpush1.bf16.msra.mxu0 %v10847_v15  ;;  %v3117_v11 = vld [vmem:[#allocation2 + $0x770] sm:$0xff]  ;;  %v10890_v61 = vpack.c.bf16 %v3125_v40, %v3119_v18  ;;  %v3148_v18 = vld [vmem:[#allocation2 + $0x868] sm:$0xff]  ;;  %v3154_v40 = vld [vmem:[#allocation2 + $0x898] sm:$0xff] }
 0xa77   :  { %7431 = vmatpush1.bf16.msra.mxu1 %v10851_v30  ;;  %7305 = vmatprep.subr.bf16.mxu0 %v10853_v28  ;;  %13106 = vst [vmem:[#allocation14_spill] sm:$0xff] %v10871_v57  ;;  %v10880_v37 = vpack.c.bf16 %v3117_v11, %v3111_v19  ;;  %13109 = vst [vmem:[#allocation18_spill] sm:$0xff] %v10882_v59  ;;  %v3138_v30 = vld [vmem:[#allocation2 + $0x818] sm:$0xff]  ;;  %v3131_v11 = vld [vmem:[#allocation2 + $0x7e0] sm:$0xff] }
 0xa78   :  { %7433 = vmatprep.subr.bf16.mxu1 %v10856_v42  ;;  %v3132_v42 = vld [vmem:[#allocation2 + $0x7e8] sm:$0xff]  ;;  %13111 = vst [vmem:[#allocation21_spill] sm:$0xff] %v10890_v61 }
 0xa79   :  { %3034 = vmatmul.mubr.f32.gmra.mrb[44].mxu0 %v13059_v16  ;;  %13108 = vst [vmem:[#allocation16_spill] sm:$0xff] %v10880_v37  ;;  %v10885_v16 = vpack.c.bf16 %v3130_v31, %v3124_v5  ;;  %v10896_v19 = vpack.c.bf16 %v3138_v30, %v3132_v42  ;;  %v3137_v5 = vld [vmem:[#allocation2 + $0x810] sm:$0xff]  ;;  %v3135_v31 = vld [vmem:[#allocation2 + $0x800] sm:$0xff] }
 0xa7a   :  { %3039 = vmatprep.mubr.f32.mxu0 %v13061_v34  ;;  %7307 = vmatpush1.bf16.msra.mxu0 %v10862_v25  ;;  %v3129_v34 = vld [vmem:[#allocation2 + $0x7d0] sm:$0xff]  ;;  %v10904_v30 = vpack.c.bf16 %v3137_v5, %v3131_v11  ;;  %v3160_v11 = vld [vmem:[#allocation2 + $0x8c8] sm:$0xff]  ;;  %v3166_v5 = vld [vmem:[#allocation2 + $0x8f8] sm:$0xff] }
 0xa7b   :  { %7435 = vmatpush1.bf16.msra.mxu1 %v10866_v32  ;;  %7309 = vmatprep.subr.bf16.mxu0 %v10868_v2  ;;  %13110 = vst [vmem:[#allocation19_spill] sm:$0xff] %v10885_v16  ;;  %v10894_v20 = vpack.c.bf16 %v3129_v34, %v3123_v26  ;;  %13113 = vst [vmem:[#allocation25_spill] sm:$0xff] %v10896_v19  ;;  %v3150_v32 = vld [vmem:[#allocation2 + $0x878] sm:$0xff]  ;;  %v3143_v34 = vld [vmem:[#allocation2 + $0x840] sm:$0xff] }
 0xa7c   :  { %7437 = vmatprep.subr.bf16.mxu1 %v10871_v57  ;;  %v3144_v57 = vld [vmem:[#allocation2 + $0x848] sm:$0xff]  ;;  %13115 = vst [vmem:[#allocation29_spill] sm:$0xff] %v10904_v30 }
 0xa7d   :  { %3040 = vmatmul.mubr.f32.gmra.mrb[46].mxu0 %v13063_v58  ;;  %13112 = vst [vmem:[#allocation22_spill] sm:$0xff] %v10894_v20  ;;  %v10899_v58 = vpack.c.bf16 %v3142_v21, %v3136_v13  ;;  %v10910_v26 = vpack.c.bf16 %v3150_v32, %v3144_v57  ;;  %v3149_v13 = vld [vmem:[#allocation2 + $0x870] sm:$0xff]  ;;  %v3147_v21 = vld [vmem:[#allocation2 + $0x860] sm:$0xff] }
 0xa7e   :  { %3045 = vmatprep.mubr.f32.mxu0 %v13065_v7  ;;  %7311 = vmatpush1.bf16.msra.mxu0 %v10876_v27  ;;  %v3141_v7 = vld [vmem:[#allocation2 + $0x830] sm:$0xff]  ;;  %v10918_v32 = vpack.c.bf16 %v3149_v13, %v3143_v34  ;;  %v3172_v34 = vld [vmem:[#allocation2 + $0x928] sm:$0xff]  ;;  %v3178_v13 = vld [vmem:[#allocation2 + $0x958] sm:$0xff] }
 0xa7f   :  { %7439 = vmatpush1.bf16.msra.mxu1 %v10880_v37  ;;  %7313 = vmatprep.subr.bf16.mxu0 %v10882_v59  ;;  %13114 = vst [vmem:[#allocation26_spill] sm:$0xff] %v10899_v58  ;;  %v10908_v42 = vpack.c.bf16 %v3141_v7, %v3135_v31  ;;  %13117 = vst [vmem:[#allocation33_spill] sm:$0xff] %v10910_v26  ;;  %v3162_v37 = vld [vmem:[#allocation2 + $0x8d8] sm:$0xff]  ;;  %v3155_v7 = vld [vmem:[#allocation2 + $0x8a0] sm:$0xff] }
 0xa80   :  { %7441 = vmatprep.subr.bf16.mxu1 %v10885_v16  ;;  %v3156_v16 = vld [vmem:[#allocation2 + $0x8a8] sm:$0xff]  ;;  %13119 = vst [vmem:[#allocation37_spill] sm:$0xff] %v10918_v32 }
 0xa81   :  { %3046 = vmatmul.mubr.f32.gmra.mrb[48].mxu0 %v13067_v12  ;;  %13116 = vst [vmem:[#allocation30_spill] sm:$0xff] %v10908_v42  ;;  %v10913_v12 = vpack.c.bf16 %v3154_v40, %v3148_v18  ;;  %v10924_v31 = vpack.c.bf16 %v3162_v37, %v3156_v16  ;;  %v3161_v18 = vld [vmem:[#allocation2 + $0x8d0] sm:$0xff]  ;;  %v3159_v40 = vld [vmem:[#allocation2 + $0x8c0] sm:$0xff] }
 0xa82   :  { %3051 = vmatprep.mubr.f32.mxu0 %v13069_v53  ;;  %7315 = vmatpush1.bf16.msra.mxu0 %v10890_v61  ;;  %v3153_v53 = vld [vmem:[#allocation2 + $0x890] sm:$0xff]  ;;  %v10932_v37 = vpack.c.bf16 %v3161_v18, %v3155_v7  ;;  %v3184_v7 = vld [vmem:[#allocation2 + $0x988] sm:$0xff]  ;;  %v3190_v18 = vld [vmem:[#allocation2 + $0x9b8] sm:$0xff] }
 0xa83   :  { %7443 = vmatpush1.bf16.msra.mxu1 %v10894_v20  ;;  %7317 = vmatprep.subr.bf16.mxu0 %v10896_v19  ;;  %13118 = vst [vmem:[#allocation34_spill] sm:$0xff] %v10913_v12  ;;  %v10922_v57 = vpack.c.bf16 %v3153_v53, %v3147_v21  ;;  %13121 = vst [vmem:[#allocation41_spill] sm:$0xff] %v10924_v31  ;;  %v3174_v20 = vld [vmem:[#allocation2 + $0x938] sm:$0xff]  ;;  %v3167_v53 = vld [vmem:[#allocation2 + $0x900] sm:$0xff] }
 0xa84   :  { %7445 = vmatprep.subr.bf16.mxu1 %v10899_v58  ;;  %v3168_v58 = vld [vmem:[#allocation2 + $0x908] sm:$0xff]  ;;  %13123 = vst [vmem:[#allocation45_spill] sm:$0xff] %v10932_v37 }
 0xa85   :  { %3052 = vmatmul.mubr.f32.gmra.mrb[50].mxu0 %v10489_v6  ;;  %13120 = vst [vmem:[#allocation38_spill] sm:$0xff] %v10922_v57  ;;  %v10927_v6 = vpack.c.bf16 %v3166_v5, %v3160_v11  ;;  %v10938_v21 = vpack.c.bf16 %v3174_v20, %v3168_v58  ;;  %v3173_v11 = vld [vmem:[#allocation2 + $0x930] sm:$0xff]  ;;  %v3171_v5 = vld [vmem:[#allocation2 + $0x920] sm:$0xff] }
 0xa86   :  { %3057 = vmatprep.mubr.f32.mxu0 %v13072_v36  ;;  %7319 = vmatpush1.bf16.msra.mxu0 %v10904_v30  ;;  %v3165_v36 = vld [vmem:[#allocation2 + $0x8f0] sm:$0xff] }
 0xa87   :  { %7447 = vmatpush1.bf16.msra.mxu1 %v10908_v42  ;;  %7321 = vmatprep.subr.bf16.mxu0 %v10910_v26  ;;  %13122 = vst [vmem:[#allocation42_spill] sm:$0xff] %v10927_v6  ;;  %v10936_v16 = vpack.c.bf16 %v3165_v36, %v3159_v40  ;;  %13125 = vst [vmem:[#allocation49_spill] sm:$0xff] %v10938_v21  ;;  %v3186_v42 = vld [vmem:[#allocation2 + $0x998] sm:$0xff]  ;;  %v10945_v40 = vpack.c.bf16 %v3173_v11, %v3167_v53  ;;  %v3179_v36 = vld [vmem:[#allocation2 + $0x960] sm:$0xff] }
 0xa88   :  { %7449 = vmatprep.subr.bf16.mxu1 %v10913_v12  ;;  %v3180_v12 = vld [vmem:[#allocation2 + $0x968] sm:$0xff]  ;;  %v3198_v11 = vld [vmem:[#allocation2 + $0x9f8] sm:$0xff] }
 0xa89   :  { %3058 = vmatmul.mubr.f32.gmra.mrb[52].mxu0 %v10616_v63  ;;  %13124 = vst [vmem:[#allocation46_spill] sm:$0xff] %v10936_v16  ;;  %v10941_v63 = vpack.c.bf16 %v3178_v13, %v3172_v34  ;;  %13127 = vst [vmem:[#allocation53_spill] sm:$0xff] %v10945_v40  ;;  %v10952_v58 = vpack.c.bf16 %v3186_v42, %v3180_v12  ;;  %v3185_v34 = vld [vmem:[#allocation2 + $0x990] sm:$0xff]  ;;  %v3183_v13 = vld [vmem:[#allocation2 + $0x980] sm:$0xff] }
 0xa8a   :  { %3063 = vmatprep.mubr.f32.mxu0 %v13075_v22  ;;  %7323 = vmatpush1.bf16.msra.mxu0 %v10918_v32  ;;  %v3177_v22 = vld [vmem:[#allocation2 + $0x950] sm:$0xff]  ;;  %v3192_v53 = vld [vmem:[#allocation2 + $0x9c8] sm:$0xff] }
 0xa8b   :  { %7451 = vmatpush1.bf16.msra.mxu1 %v10922_v57  ;;  %7325 = vmatprep.subr.bf16.mxu0 %v10924_v31  ;;  %13126 = vst [vmem:[#allocation50_spill] sm:$0xff] %v10941_v63  ;;  %v10950_v20 = vpack.c.bf16 %v3177_v22, %v3171_v5  ;;  %13129 = vst [vmem:[#allocation57_spill] sm:$0xff] %v10952_v58  ;;  %v3196_v57 = vld [vmem:[#allocation2 + $0x9e8] sm:$0xff]  ;;  %v10964_v12 = vpack.c.bf16 %v3198_v11, %v3192_v53  ;;  %v3191_v5 = vld [vmem:[#allocation2 + $0x9c0] sm:$0xff] }
 0xa8c   :  { %7453 = vmatprep.subr.bf16.mxu1 %v10927_v6  ;;  %v3189_v6 = vld [vmem:[#allocation2 + $0x9b0] sm:$0xff]  ;;  %v3203_v53 = vld [vmem:[#allocation2 + $0xa20] sm:$0xff] }
 0xa8d   :  { %3064 = vmatmul.mubr.f32.gmra.mrb[54].mxu0 %v10682_v23  ;;  %13128 = vst [vmem:[#allocation54_spill] sm:$0xff] %v10950_v20  ;;  %v10955_v23 = vpack.c.bf16 %v3190_v18, %v3184_v7  ;;  %v10962_v42 = vpack.c.bf16 %v3189_v6, %v3183_v13  ;;  %13133 = vst [vmem:[#allocation63_spill] sm:$0xff] %v10964_v12  ;;  %v3197_v22 = vld [vmem:[#allocation2 + $0x9f0] sm:$0xff]  ;;  %v3195_v7 = vld [vmem:[#allocation2 + $0x9e0] sm:$0xff]  ;;  %v10967_v18 = vpack.c.bf16 %v3202_v9, %v3196_v57 }
 0xa8e   :  { %7327 = vmatpush1.bf16.msra.mxu0 %v10932_v37  ;;  %3327 = vmatprep.mubr.f32.mxu0 %v13079_v50  ;;  %v10976_v13 = vpack.c.bf16 %v3210_v55, %v3204_v43  ;;  %v3209_v9 = vld [vmem:[#allocation2 + $0xa50] sm:$0xff]  ;;  %v3207_v57 = vld [vmem:[#allocation2 + $0xa40] sm:$0xff]  ;;  %v10988_v43 = vpack.c.bf16 %v3222_v45, %v3216_v39 }
 0xa8f   :  { %7455 = vmatpush1.bf16.msra.mxu1 %v10936_v16  ;;  %7329 = vmatprep.subr.bf16.mxu0 %v10938_v21  ;;  %13130 = vst [vmem:[#allocation58_spill] sm:$0xff] %v10955_v23  ;;  %v10958_v16 = vpack.c.bf16 %v3185_v34, %v3179_v36  ;;  %13132 = vst [vmem:[#allocation61_spill] sm:$0xff] %v10962_v42  ;;  %v3208_v36 = vld [vmem:[#allocation2 + $0xa48] sm:$0xff]  ;;  %v3214_v34 = vld [vmem:[#allocation2 + $0xa78] sm:$0xff] }
 0xa90   :  { %7457 = vmatprep.subr.bf16.mxu1 %v10941_v63  ;;  %13134 = vst [vmem:[#allocation59_spill] sm:$0xff] %v10967_v18  ;;  %v3201_v63 = vld [vmem:[#allocation2 + $0xa10] sm:$0xff]  ;;  %13137 = vst [vmem:[#allocation99_spill] sm:$0xff] %v10976_v13  ;;  %v10979_v11 = vpack.c.bf16 %v3214_v34, %v3208_v36  ;;  %v3219_v36 = vld [vmem:[#allocation2 + $0xaa0] sm:$0xff] }
 0xa91   :  { %13131 = vst [vmem:[#allocation60_spill] sm:$0xff] %v10958_v16  ;;  %v10974_v6 = vpack.c.bf16 %v3201_v63, %v3195_v7  ;;  %13141 = vst [vmem:[#allocation96_spill] sm:$0xff] %v10988_v43  ;;  %v3215_v63 = vld [vmem:[#allocation2 + $0xa80] sm:$0xff]  ;;  %v3221_v7 = vld [vmem:[#allocation2 + $0xab0] sm:$0xff] }
 0xa92   :  { %7331 = vmatpush1.bf16.msra.mxu0 %v10945_v40  ;;  %13138 = vst [vmem:[#allocation92_spill] sm:$0xff] %v10979_v11 }
 0xa93   :  { %7459 = vmatpush1.bf16.msra.mxu1 %v10950_v20  ;;  %7333 = vmatprep.subr.bf16.mxu0 %v10952_v58  ;;  %v10970_v20 = vpack.c.bf16 %v3197_v22, %v3191_v5  ;;  %13136 = vst [vmem:[#allocation62_spill] sm:$0xff] %v10974_v6  ;;  %v3220_v5 = vld [vmem:[#allocation2 + $0xaa8] sm:$0xff]  ;;  %v3226_v22 = vld [vmem:[#allocation2 + $0xad8] sm:$0xff] }
 0xa94   :  { %7461 = vmatprep.subr.bf16.mxu1 %v10955_v23  ;;  %v3213_v23 = vld [vmem:[#allocation2 + $0xa70] sm:$0xff]  ;;  %v10991_v34 = vpack.c.bf16 %v3226_v22, %v3220_v5  ;;  %v3231_v5 = vld [vmem:[#allocation2 + $0xb00] sm:$0xff] }
 0xa95   :  { %13135 = vst [vmem:[#allocation93_spill] sm:$0xff] %v10970_v20  ;;  %v10986_v55 = vpack.c.bf16 %v3213_v23, %v3207_v57  ;;  %v3227_v23 = vld [vmem:[#allocation2 + $0xae0] sm:$0xff]  ;;  %v3233_v57 = vld [vmem:[#allocation2 + $0xb10] sm:$0xff] }
 0xa96   :  { %7335 = vmatpush1.bf16.msra.mxu0 %v10958_v16  ;;  %13142 = vst [vmem:[#allocation100_spill] sm:$0xff] %v10991_v34 }
 0xa97   :  { %7463 = vmatpush1.bf16.msra.mxu1 %v10962_v42  ;;  %7337 = vmatprep.subr.bf16.mxu0 %v10964_v12  ;;  %v10982_v42 = vpack.c.bf16 %v3209_v9, %v3203_v53  ;;  %13140 = vst [vmem:[#allocation94_spill] sm:$0xff] %v10986_v55  ;;  %v3232_v53 = vld [vmem:[#allocation2 + $0xb08] sm:$0xff]  ;;  %v3238_v9 = vld [vmem:[#allocation2 + $0xb38] sm:$0xff] }
 0xa98   :  { %7465 = vmatprep.subr.bf16.mxu1 %v10967_v18  ;;  %v3225_v18 = vld [vmem:[#allocation2 + $0xad0] sm:$0xff]  ;;  %v11003_v22 = vpack.c.bf16 %v3238_v9, %v3232_v53  ;;  %v3243_v53 = vld [vmem:[#allocation2 + $0xb60] sm:$0xff] }
 0xa99   :  { %13139 = vst [vmem:[#allocation95_spill] sm:$0xff] %v10982_v42  ;;  %v10998_v45 = vpack.c.bf16 %v3225_v18, %v3219_v36  ;;  %v3239_v18 = vld [vmem:[#allocation2 + $0xb40] sm:$0xff]  ;;  %v3245_v36 = vld [vmem:[#allocation2 + $0xb70] sm:$0xff] }
 0xa9a   :  { %7339 = vmatpush1.bf16.msra.mxu0 %v10970_v20  ;;  %v3234_v20 = vld [vmem:[#allocation2 + $0xb18] sm:$0xff]  ;;  %13146 = vst [vmem:[#allocation68_spill] sm:$0xff] %v11003_v22 }
 0xa9b   :  { %7467 = vmatpush1.bf16.msra.mxu1 %v10974_v6  ;;  %7341 = vmatprep.subr.bf16.mxu0 %v10976_v13  ;;  %v10994_v6 = vpack.c.bf16 %v3221_v7, %v3215_v63  ;;  %13144 = vst [vmem:[#allocation102_spill] sm:$0xff] %v10998_v45  ;;  %v11000_v39 = vpack.c.bf16 %v3234_v20, %v3228_v60  ;;  %v3240_v13 = vld [vmem:[#allocation2 + $0xb48] sm:$0xff]  ;;  %v3250_v7 = vld [vmem:[#allocation2 + $0xb98] sm:$0xff] }
 0xa9c   :  { %7469 = vmatprep.subr.bf16.mxu1 %v10979_v11  ;;  %v3237_v11 = vld [vmem:[#allocation2 + $0xb30] sm:$0xff]  ;;  %v3244_v63 = vld [vmem:[#allocation2 + $0xb68] sm:$0xff] }
 0xa9d   :  { %13143 = vst [vmem:[#allocation101_spill] sm:$0xff] %v10994_v6  ;;  %13145 = vst [vmem:[#allocation64_spill] sm:$0xff] %v11000_v39  ;;  %v11010_v60 = vpack.c.bf16 %v3237_v11, %v3231_v5  ;;  %v11015_v9 = vpack.c.bf16 %v3250_v7, %v3244_v63  ;;  %v3251_v11 = vld [vmem:[#allocation2 + $0xba0] sm:$0xff]  ;;  %v3257_v5 = vld [vmem:[#allocation2 + $0xbd0] sm:$0xff] }
 0xa9e   :  { %7343 = vmatpush1.bf16.msra.mxu0 %v10982_v42  ;;  %v3246_v42 = vld [vmem:[#allocation2 + $0xb78] sm:$0xff]  ;;  %v3255_v7 = vld [vmem:[#allocation2 + $0xbc0] sm:$0xff] }
 0xa9f   :  { %7471 = vmatpush1.bf16.msra.mxu1 %v10986_v55  ;;  %7345 = vmatprep.subr.bf16.mxu0 %v10988_v43  ;;  %v11006_v55 = vpack.c.bf16 %v3233_v57, %v3227_v23  ;;  %13148 = vst [vmem:[#allocation72_spill] sm:$0xff] %v11010_v60  ;;  %v11012_v20 = vpack.c.bf16 %v3246_v42, %v3240_v13  ;;  %13150 = vst [vmem:[#allocation71_spill] sm:$0xff] %v11015_v9  ;;  %v3252_v43 = vld [vmem:[#allocation2 + $0xba8] sm:$0xff]  ;;  %v3262_v57 = vld [vmem:[#allocation2 + $0xbf8] sm:$0xff] }
 0xaa0   :  { %7473 = vmatprep.subr.bf16.mxu1 %v10991_v34  ;;  %v3249_v34 = vld [vmem:[#allocation2 + $0xb90] sm:$0xff]  ;;  %v3256_v23 = vld [vmem:[#allocation2 + $0xbc8] sm:$0xff] }
 0xaa1   :  { %13147 = vst [vmem:[#allocation17_spill] sm:$0xff] %v11006_v55  ;;  %13149 = vst [vmem:[#allocation74_spill] sm:$0xff] %v11012_v20  ;;  %v11022_v42 = vpack.c.bf16 %v3249_v34, %v3243_v53  ;;  %v11027_v63 = vpack.c.bf16 %v3262_v57, %v3256_v23  ;;  %v13162_v53 = vld [vmem:[#allocation83_spill] sm:$0xff]  ;;  %v13163_v23 = vld [vmem:[#allocation96_spill] sm:$0xff] }
 0xaa2   :  { %7347 = vmatpush1.bf16.msra.mxu0 %v10994_v6  ;;  %v3258_v6 = vld [vmem:[#allocation2 + $0xbd8] sm:$0xff]  ;;  %v13164_v57 = vld [vmem:[#allocation39_spill] sm:$0xff] }
 0xaa3   :  { %7475 = vmatpush1.bf16.msra.mxu1 %v10998_v45  ;;  %7349 = vmatprep.subr.bf16.mxu0 %v11000_v39  ;;  %v11018_v45 = vpack.c.bf16 %v3245_v36, %v3239_v18  ;;  %13152 = vst [vmem:[#allocation65_spill] sm:$0xff] %v11022_v42  ;;  %v11024_v13 = vpack.c.bf16 %v3258_v6, %v3252_v43  ;;  %13154 = vst [vmem:[#allocation104_spill] sm:$0xff] %v11027_v63  ;;  %v13158_v6 = vld [vmem:[#allocation36_spill] sm:$0xff]  ;;  %v13159_v43 = vld [vmem:[#allocation99_spill] sm:$0xff] }
 0xaa4   :  { %7477 = vmatprep.subr.bf16.mxu1 %v11003_v22  ;;  %v3261_v22 = vld [vmem:[#allocation2 + $0xbf0] sm:$0xff]  ;;  %v11030_v18 = vpack.c.bf16 %v3257_v5, %v3251_v11  ;;  %v13161_v36 = vld [vmem:[#allocation95_spill] sm:$0xff]  ;;  %v13166_v5 = vld [vmem:[#allocation40_spill] sm:$0xff] }
 0xaa5   :  { %13151 = vst [vmem:[#allocation69_spill] sm:$0xff] %v11018_v45  ;;  %13153 = vst [vmem:[#allocation103_spill] sm:$0xff] %v11024_v13  ;;  %v11034_v34 = vpack.c.bf16 %v3261_v22, %v3255_v7  ;;  %v13160_v22 = vld [vmem:[#allocation82_spill] sm:$0xff]  ;;  %v13165_v11 = vld [vmem:[#allocation101_spill] sm:$0xff] }
 0xaa6   :  { %7351 = vmatpush1.bf16.msra.mxu0 %v11006_v55  ;;  %13155 = vst [vmem:[#allocation105_spill] sm:$0xff] %v11030_v18  ;;  %v13167_v7 = vld [vmem:[#allocation84_spill] sm:$0xff] }
 0xaa7   :  { %7479 = vmatpush1.bf16.msra.mxu1 %v11010_v60  ;;  %7353 = vmatprep.subr.bf16.mxu0 %v11012_v20  ;;  %13156 = vst [vmem:[#allocation106_spill] sm:$0xff] %v11034_v34 }
 0xaa8   :  { %7481 = vmatprep.subr.bf16.mxu1 %v11015_v9 }
 0xaaa   :  { %7355 = vmatpush1.bf16.msra.mxu0 %v11018_v45 }
 0xaab   :  { %7483 = vmatpush1.bf16.msra.mxu1 %v11022_v42  ;;  %7357 = vmatprep.subr.bf16.mxu0 %v11024_v13 }
 0xaac   :  { %7485 = vmatprep.subr.bf16.mxu1 %v11027_v63 }
 0xaae   :  { %7359 = vmatpush1.bf16.msra.mxu0 %v11030_v18 }
 0xaaf   :  { %7487 = vmatpush1.bf16.msra.mxu1 %v11034_v34  ;;  %7489 = vmatprep.subr.bf16.mxu0 %v10828_v35 }
 0xab0   :  { %7553 = vmatprep.subr.bf16.mxu1 %v10665_v62 }
 0xab1   :  { %3328 = vmatmul.mubr.f32.vlgmr.msra.gmra.mrb[24].mxu0 %v13079_v50 }
 0xab2   :  { %3470 = vmatmul.mubr.f32.vlgmr.msra.gmra.mrb[42].mxu1 %v13079_v50  ;;  %7491 = vmatpush1.bf16.msra.mxu0 %v10833_v17  ;;  %v13157_v50 = vld [vmem:[#allocation93_spill] sm:$0xff] }
 0xab3   :  { %7555 = vmatpush1.bf16.msra.mxu1 %v10698_v44  ;;  %7493 = vmatprep.subr.bf16.mxu0 %v10839_v29 }
 0xab4   :  { %7557 = vmatprep.subr.bf16.mxu1 %v10706_v47 }
 0xab6   :  { %7495 = vmatpush1.bf16.msra.mxu0 %v10847_v15 }
 0xab7   :  { %7559 = vmatpush1.bf16.msra.mxu1 %v10711_v24  ;;  %7497 = vmatprep.subr.bf16.mxu0 %v10853_v28 }
 0xab8   :  { %7561 = vmatprep.subr.bf16.mxu1 %v10716_v1 }
 0xaba   :  { %7499 = vmatpush1.bf16.msra.mxu0 %v10862_v25 }
 0xabb   :  { %7563 = vmatpush1.bf16.msra.mxu1 %v10721_v48  ;;  %7501 = vmatprep.subr.bf16.mxu0 %v10868_v2 }
 0xabc   :  { %7565 = vmatprep.subr.bf16.mxu1 %v10726_v46 }
 0xabe   :  { %7503 = vmatpush1.bf16.msra.mxu0 %v10876_v27 }
 0xabf   :  { %7567 = vmatpush1.bf16.msra.mxu1 %v10731_v10  ;;  %7505 = vmatprep.subr.bf16.mxu0 %v10882_v59 }
 0xac0   :  { %7569 = vmatprep.subr.bf16.mxu1 %v10736_v8 }
 0xac2   :  { %7507 = vmatpush1.bf16.msra.mxu0 %v10890_v61 }
 0xac3   :  { %7571 = vmatpush1.bf16.msra.mxu1 %v10741_v0  ;;  %7509 = vmatprep.subr.bf16.mxu0 %v10896_v19 }
 0xac4   :  { %7573 = vmatprep.subr.bf16.mxu1 %v10746_v4 }
 0xac6   :  { %7511 = vmatpush1.bf16.msra.mxu0 %v10904_v30 }
 0xac7   :  { %7575 = vmatpush1.bf16.msra.mxu1 %v10751_v33  ;;  %7513 = vmatprep.subr.bf16.mxu0 %v10910_v26 }
 0xac8   :  { %7577 = vmatprep.subr.bf16.mxu1 %v10756_v3 }
 0xaca   :  { %7515 = vmatpush1.bf16.msra.mxu0 %v10918_v32 }
 0xacb   :  { %7579 = vmatpush1.bf16.msra.mxu1 %v10761_v38  ;;  %7517 = vmatprep.subr.bf16.mxu0 %v10924_v31 }
 0xacc   :  { %7581 = vmatprep.subr.bf16.mxu1 %v10766_v54 }
 0xace   :  { %7519 = vmatpush1.bf16.msra.mxu0 %v10932_v37 }
 0xacf   :  { %7583 = vmatpush1.bf16.msra.mxu1 %v10771_v41  ;;  %7521 = vmatprep.subr.bf16.mxu0 %v10938_v21 }
 0xad0   :  { %7585 = vmatprep.subr.bf16.mxu1 %v10776_v52 }
 0xad2   :  { %7523 = vmatpush1.bf16.msra.mxu0 %v10945_v40 }
 0xad3   :  { %7587 = vmatpush1.bf16.msra.mxu1 %v10781_v14  ;;  %7525 = vmatprep.subr.bf16.mxu0 %v10952_v58 }
 0xad4   :  { %7589 = vmatprep.subr.bf16.mxu1 %v10784_v51 }
 0xad6   :  { %7527 = vmatpush1.bf16.msra.mxu0 %v10958_v16 }
 0xad7   :  { %7591 = vmatpush1.bf16.msra.mxu1 %v10789_v49  ;;  %7529 = vmatprep.subr.bf16.mxu0 %v10964_v12  ;;  %v11110_v12 = vld [vmem:[#allocation6 + $0x18] sm:$0xff] }
 0xad8   :  { %7593 = vmatprep.subr.bf16.mxu1 %v10792_v56 }
 0xada   :  { %7531 = vmatpush1.bf16.msra.mxu0 %v13157_v50  ;;  %v13173_v50 = vld [vmem:[#allocation48_spill] sm:$0xff] }
 0xadb   :  { %7595 = vmatpush1.bf16.msra.mxu1 %v13158_v6  ;;  %7533 = vmatprep.subr.bf16.mxu0 %v13159_v43  ;;  %v13168_v43 = vld [vmem:[#allocation85_spill] sm:$0xff] }
 0xadc   :  { %7597 = vmatprep.subr.bf16.mxu1 %v13160_v22 }
 0xade   :  { %7535 = vmatpush1.bf16.msra.mxu0 %v13161_v36  ;;  %v13169_v36 = vld [vmem:[#allocation43_spill] sm:$0xff] }
 0xadf   :  { %7599 = vmatpush1.bf16.msra.mxu1 %v13162_v53  ;;  %7537 = vmatprep.subr.bf16.mxu0 %v13163_v23  ;;  %v13170_v23 = vld [vmem:[#allocation44_spill] sm:$0xff] }
 0xae0   :  { %7601 = vmatprep.subr.bf16.mxu1 %v13164_v57 }
 0xae2   :  { %7539 = vmatpush1.bf16.msra.mxu0 %v13165_v11  ;;  %v13171_v11 = vld [vmem:[#allocation86_spill] sm:$0xff] }
 0xae3   :  { %7603 = vmatpush1.bf16.msra.mxu1 %v13166_v5  ;;  %7541 = vmatprep.subr.bf16.mxu0 %v11000_v39  ;;  %v13172_v39 = vld [vmem:[#allocation87_spill] sm:$0xff] }
 0xae4   :  { %7605 = vmatprep.subr.bf16.mxu1 %v13167_v7 }
 0xae6   :  { %7543 = vmatpush1.bf16.msra.mxu0 %v11006_v55  ;;  %v13174_v55 = vld [vmem:[#allocation91_spill] sm:$0xff] }
 0xae7   :  { %7607 = vmatpush1.bf16.msra.mxu1 %v13168_v43  ;;  %7545 = vmatprep.subr.bf16.mxu0 %v11012_v20  ;;  %v11108_v20 = vsub.s32 1, %v13174_v55 }
 0xae8   :  { %7609 = vmatprep.subr.bf16.mxu1 %v13169_v36 }
 0xaea   :  { %7547 = vmatpush1.bf16.msra.mxu0 %v11018_v45  ;;  %v2722_v45 = vrot.slane %v11110_v12, %v11108_v20 }
 0xaeb   :  { %7611 = vmatpush1.bf16.msra.mxu1 %v13170_v23  ;;  %7549 = vmatprep.subr.bf16.mxu0 %v11024_v13 }
 0xaec   :  { %7613 = vmatprep.subr.bf16.mxu1 %v13171_v11 }
 0xaee   :  { %7551 = vmatpush1.bf16.msra.mxu0 %v11030_v18  ;;  %v11118_v18 = vld [vmem:[#allocation6 + $0x10] sm:$0xff] }
 0xaef   :  { %7615 = vmatpush1.bf16.msra.mxu1 %v13172_v39  ;;  %7617 = vmatprep.subr.bf16.mxu0 %v13173_v50  ;;  %v11122_v40 = vrot.slane %v11118_v18, %v11108_v20 }
 0xaf0   :  { %7745 = vmatprep.subr.bf16.mxu1 %v10665_v62 }
 0xb04   :  { %v11114_v16 = vpop.f32.mrb[24].mxu1 }
 0xb05   :  { %v2912_v13 = vpop.f32.mrb[25].mxu1 }
 0xb06   :  { %v11116_v58 = vadd.f32 %v2912_v13, %v2722_v45 }
 0xb08   :  { %13175 = vst [vmem:[#allocation107_spill] sm:$0xff] %v11116_v58  ;;  %v2916_v62 = vpop.f32.mrb[26].mxu1 }
 0xb09   :  { %v11125_v55 = vadd.f32 %v2916_v62, %v11122_v40  ;;  %v2918_v21 = vpop.f32.mrb[27].mxu1 }
 0xb0a   :  { %v11127_v37 = vadd.f32 %v2918_v21, %v2722_v45 }
 0xb0b   :  { %13176 = vst [vmem:[#allocation108_spill] sm:$0xff] %v11125_v55 }
 0xb0c   :  { %13177 = vst [vmem:[#allocation109_spill] sm:$0xff] %v11127_v37  ;;  %v2922_v31 = vpop.f32.mrb[28].mxu1 }
 0xb0d   :  { %v11130_v32 = vadd.f32 %v2922_v31, %v11122_v40  ;;  %v2924_v26 = vpop.f32.mrb[29].mxu1 }
 0xb0e   :  { %v11132_v13 = vadd.f32 %v2924_v26, %v2722_v45 }
 0xb0f   :  { %13178 = vst [vmem:[#allocation110_spill] sm:$0xff] %v11130_v32 }
 0xb10   :  { %13179 = vst [vmem:[#allocation111_spill] sm:$0xff] %v11132_v13  ;;  %v2928_v58 = vpop.f32.mrb[30].mxu1 }
 0xb11   :  { %v11135_v30 = vadd.f32 %v2928_v58, %v11122_v40  ;;  %v2930_v19 = vpop.f32.mrb[31].mxu1 }
 0xb12   :  { %v11137_v61 = vadd.f32 %v2930_v19, %v2722_v45 }
 0xb13   :  { %13180 = vst [vmem:[#allocation112_spill] sm:$0xff] %v11135_v30 }
 0xb14   :  { %13181 = vst [vmem:[#allocation113_spill] sm:$0xff] %v11137_v61  ;;  %v2934_v59 = vpop.f32.mrb[32].mxu1 }
 0xb15   :  { %v11140_v62 = vadd.f32 %v2934_v59, %v11122_v40  ;;  %v2936_v21 = vpop.f32.mrb[33].mxu1 }
 0xb16   :  { %v11142_v37 = vadd.f32 %v2936_v21, %v2722_v45 }
 0xb17   :  { %13182 = vst [vmem:[#allocation114_spill] sm:$0xff] %v11140_v62  ;;  %v9229_v62 = vld [vmem:[#allocation6 + $0x20] sm:$0xff] }
 0xb18   :  { %13183 = vst [vmem:[#allocation115_spill] sm:$0xff] %v11142_v37  ;;  %v2940_v55 = vpop.f32.mrb[34].mxu1  ;;  %v2726_v37 = vrot.slane %v9229_v62, %v11108_v20 }
 0xb19   :  { %v11145_v31 = vadd.f32 %v2940_v55, %v11122_v40  ;;  %v2942_v26 = vpop.f32.mrb[35].mxu1  ;;  %v9230_v55 = vld [vmem:[#allocation6 + $0x28] sm:$0xff] }
 0xb1a   :  { %v11147_v13 = vadd.f32 %v2942_v26, %v2722_v45 }
 0xb1b   :  { %13184 = vst [vmem:[#allocation116_spill] sm:$0xff] %v11145_v31  ;;  %v2730_v31 = vrot.slane %v9230_v55, %v11108_v20 }
 0xb1c   :  { %13185 = vst [vmem:[#allocation117_spill] sm:$0xff] %v11147_v13  ;;  %v2946_v32 = vpop.f32.mrb[36].mxu1 }
 0xb1d   :  { %v11150_v58 = vadd.f32 %v2946_v32, %v11122_v40  ;;  %v2948_v19 = vpop.f32.mrb[37].mxu1 }
 0xb1e   :  { %v11152_v61 = vadd.f32 %v2948_v19, %v2722_v45 }
 0xb1f   :  { %13186 = vst [vmem:[#allocation118_spill] sm:$0xff] %v11150_v58 }
 0xb20   :  { %13187 = vst [vmem:[#allocation119_spill] sm:$0xff] %v11152_v61  ;;  %v2952_v30 = vpop.f32.mrb[38].mxu1 }
 0xb21   :  { %v11155_v59 = vadd.f32 %v2952_v30, %v11122_v40  ;;  %v2954_v21 = vpop.f32.mrb[39].mxu1 }
 0xb22   :  { %v2955_v26 = vadd.f32 %v2954_v21, %v2722_v45 }
 0xb23   :  { %13188 = vst [vmem:[#allocation120_spill] sm:$0xff] %v11155_v59 }
 0xb44   :  { %v3023_v13 = vpop.f32.mrb[40].mxu0  ;;  %v11159_v27 = vpop.f32.mrb[40].mxu1 }
 0xb45   :  { %v11161_v32 = vadd.f32 %v3023_v13, %v2726_v37  ;;  %v3025_v58 = vpop.f32.mrb[41].mxu0  ;;  %v3402_v19 = vpop.f32.mrb[41].mxu1 }
 0xb46   :  { %v11163_v61 = vadd.f32 %v3025_v58, %v2730_v31  ;;  %v3502_v2 = vadd.f32 %v3402_v19, %v2955_v26 }
 0xb47   :  { %13189 = vst [vmem:[#allocation121_spill] sm:$0xff] %v11161_v32 }
 0xb48   :  { %13190 = vst [vmem:[#allocation122_spill] sm:$0xff] %v11163_v61  ;;  %v3029_v30 = vpop.f32.mrb[42].mxu0 }
 0xb49   :  { %v11165_v59 = vadd.f32 %v3029_v30, %v2726_v37  ;;  %v3031_v25 = vpop.f32.mrb[43].mxu0 }
 0xb4a   :  { %v11167_v28 = vadd.f32 %v3031_v25, %v2730_v31 }
 0xb4b   :  { %13191 = vst [vmem:[#allocation123_spill] sm:$0xff] %v11165_v59 }
 0xb4c   :  { %13192 = vst [vmem:[#allocation124_spill] sm:$0xff] %v11167_v28  ;;  %v3035_v62 = vpop.f32.mrb[44].mxu0 }
 0xb4d   :  { %v11169_v15 = vadd.f32 %v3035_v62, %v2726_v37  ;;  %v3037_v45 = vpop.f32.mrb[45].mxu0 }
 0xb4e   :  { %v11171_v21 = vadd.f32 %v3037_v45, %v2730_v31 }
 0xb4f   :  { %13193 = vst [vmem:[#allocation125_spill] sm:$0xff] %v11169_v15 }
 0xb50   :  { %13194 = vst [vmem:[#allocation126_spill] sm:$0xff] %v11171_v21  ;;  %v3041_v55 = vpop.f32.mrb[46].mxu0 }
 0xb51   :  { %v11173_v13 = vadd.f32 %v3041_v55, %v2726_v37  ;;  %v3043_v32 = vpop.f32.mrb[47].mxu0 }
 0xb52   :  { %v11175_v29 = vadd.f32 %v3043_v32, %v2730_v31 }
 0xb53   :  { %13195 = vst [vmem:[#allocation127_spill] sm:$0xff] %v11173_v13 }
 0xb54   :  { %13196 = vst [vmem:[#allocation128_spill] sm:$0xff] %v11175_v29  ;;  %v3047_v58 = vpop.f32.mrb[48].mxu0  ;;  %v5501_v29 = vmul.f32 -1.442695, %v3502_v2 }
 0xb55   :  { %v11177_v26 = vadd.f32 %v3047_v58, %v2726_v37  ;;  %v3049_v19 = vpop.f32.mrb[49].mxu0 }
 0xb56   :  { %v11179_v30 = vadd.f32 %v3049_v19, %v2730_v31  ;;  %9067 = vpow2.f32 %v5501_v29  ;;  %v9231_v19 = vld [vmem:[#allocation6] sm:$0xff] }
 0xb57   :  { %13197 = vst [vmem:[#allocation129_spill] sm:$0xff] %v11177_v26 }
 0xb58   :  { %13198 = vst [vmem:[#allocation130_spill] sm:$0xff] %v11179_v30  ;;  %v3053_v25 = vpop.f32.mrb[50].mxu0  ;;  %v13204_v30 = vld [vmem:[#allocation98_spill] sm:$0xff] }
 0xb59   :  { %v11181_v61 = vadd.f32 %v3053_v25, %v2726_v37  ;;  %v3055_v62 = vpop.f32.mrb[51].mxu0  ;;  %v11190_v25 = vrot.slane %v9231_v19, %v11108_v20 }
 0xb5a   :  { %v11183_v28 = vadd.f32 %v3055_v62, %v2730_v31  ;;  %v11194_v62 = vrot.slane %v11110_v12, %v13204_v30 }
 0xb5b   :  { %13199 = vst [vmem:[#allocation131_spill] sm:$0xff] %v11181_v61  ;;  %13203 = vst [vmem:[#allocation135_spill] sm:$0xff] %v11190_v25 }
 0xb5c   :  { %13200 = vst [vmem:[#allocation132_spill] sm:$0xff] %v11183_v28  ;;  %v3059_v45 = vpop.f32.mrb[52].mxu0  ;;  %v9232_v28 = vld [vmem:[#allocation6 + $0x8] sm:$0xff] }
 0xb5d   :  { %v11185_v59 = vadd.f32 %v3059_v45, %v2726_v37  ;;  %v3061_v55 = vpop.f32.mrb[53].mxu0 }
 0xb5e   :  { %v11187_v21 = vadd.f32 %v3061_v55, %v2730_v31  ;;  %v11197_v55 = vrot.slane %v9232_v28, %v11108_v20 }
 0xb5f   :  { %13201 = vst [vmem:[#allocation133_spill] sm:$0xff] %v11185_v59 }
 0xb60   :  { %13202 = vst [vmem:[#allocation134_spill] sm:$0xff] %v11187_v21  ;;  %v3065_v32 = vpop.f32.mrb[54].mxu0  ;;  %v9068_v58 = vpop.eup %9067 }
 0xb61   :  { %v3067_v15 = vpop.f32.mrb[55].mxu0  ;;  %v3506_v13 = vadd.f32 1.0, %v9068_v58  ;;  %v3066_v45 = vadd.f32 %v3065_v32, %v2726_v37 }
 0xb62   :  { %v3068_v50 = vadd.f32 %v3067_v15, %v2730_v31  ;;  %v2911_v31 = vadd.f32 %v11114_v16, %v11122_v40  ;;  %v13207_v40 = vld [vmem:[#allocation89_spill] sm:$0xff] }
 0xb63   :  { %9069 = vrcp.f32 %v3506_v13 }
 0xb6d   :  { %v9070_v59 = vpop.eup %9069 }
 0xb84   :  { %v3329_v26 = vpop.f32.mrb[24].mxu0 }
 0xb85   :  { %v8864_v2 = vadd.f32 %v3329_v26, %v11190_v25  ;;  %v3471_v29 = vpop.f32.mrb[42].mxu1  ;;  %v3331_v61 = vpop.f32.mrb[25].mxu0 }
 0xb86   :  { %v3509_v58 = vadd.f32 %v3471_v29, %v3066_v45  ;;  %v3473_v13 = vpop.f32.mrb[43].mxu1  ;;  %v8865_v12 = vadd.f32 %v3331_v61, %v11197_v55 }
 0xb87   :  { %v5499_v21 = vmul.f32 -1.442695, %v8864_v2  ;;  %v3520_v19 = vadd.f32 %v11194_v62, %v3473_v13  ;;  %v11204_v2 = vrot.slane %v11118_v18, %v13204_v30 }
 0xb88   :  { %v5502_v17 = vmul.f32 -1.442695, %v3509_v58  ;;  %v5500_v28 = vmul.f32 -1.442695, %v8865_v12 }
 0xb89   :  { %9071 = vpow2.f32 %v5499_v21  ;;  %v3521_v37 = vmul.f32 %v9070_v59, %v3520_v19  ;;  %v3494_v15 = vadd.f32 %v11204_v2, %v11159_v27 }
 0xb8a   :  { %9073 = vpow2.f32 %v5502_v17 }
 0xb8b   :  { %v3522_v32 = vadd.f32 %v3521_v37, %v3068_v50  ;;  %9075 = vpow2.f32 %v5500_v28  ;;  %v13208_v37 = vld [vmem:[#allocation52_spill] sm:$0xff] }
 0xb8c   :  { %v13210_v28 = vld [vmem:[#allocation56_spill] sm:$0xff] }
 0xb93   :  { %v9072_v20 = vpop.eup %9071 }
 0xb94   :  { %v9074_v26 = vpop.eup %9073  ;;  %v3480_v25 = vadd.f32 1.0, %v9072_v20  ;;  %v13211_v20 = vld [vmem:[#allocation12_spill] sm:$0xff] }
 0xb95   :  { %v3513_v39 = vadd.f32 1.0, %v9074_v26  ;;  %v9076_v45 = vpop.eup %9075  ;;  %v13212_v26 = vld [vmem:[#allocation14_spill] sm:$0xff] }
 0xb96   :  { %9077 = vrcp.f32 %v3480_v25  ;;  %v3487_v61 = vadd.f32 1.0, %v9076_v45  ;;  %v13213_v45 = vld [vmem:[#allocation16_spill] sm:$0xff] }
 0xb97   :  { %9079 = vrcp.f32 %v3513_v39 }
 0xb98   :  { %9081 = vtanh.f32 %v3522_v32  ;;  %v13209_v32 = vld [vmem:[#allocation10_spill] sm:$0xff] }
 0xb99   :  { %9083 = vrcp.f32 %v3487_v61  ;;  %v13214_v61 = vld [vmem:[#allocation19_spill] sm:$0xff] }
 0xba0   :  { %v9078_v17 = vpop.eup %9077 }
 0xba1   :  { %v9080_v50 = vpop.eup %9079  ;;  %v3495_v59 = vmul.f32 %v9078_v17, %v3494_v15  ;;  %v13215_v15 = vld [vmem:[#allocation22_spill] sm:$0xff] }
 0xba2   :  { %v3524_v21 = vsub.f32 1.0, %v9080_v50  ;;  %v9082_v25 = vpop.eup %9081  ;;  %v3526_v58 = vmul.f32 0.0, %v9080_v50  ;;  %v13216_v17 = vld [vmem:[#allocation26_spill] sm:$0xff] }
 0xba3   :  { %v3496_v39 = vadd.f32 %v3495_v59, %v2911_v31  ;;  %v9084_v27 = vpop.eup %9083  ;;  %v13217_v50 = vld [vmem:[#allocation30_spill] sm:$0xff] }
 0xba4   :  { %v3525_v29 = vmul.f32 %v9082_v25, %v3524_v21  ;;  %v3498_v18 = vsub.f32 1.0, %v9084_v27  ;;  %v3500_v12 = vmul.f32 0.0, %v9084_v27  ;;  %v13218_v31 = vld [vmem:[#allocation34_spill] sm:$0xff]  ;;  %v13225_v27 = vld [vmem:[#allocation61_spill] sm:$0xff] }
 0xba5   :  { %9085 = vtanh.f32 %v3496_v39  ;;  %v13219_v59 = vld [vmem:[#allocation38_spill] sm:$0xff] }
 0xba6   :  { %v11210_v13 = vadd.f32 %v3526_v58, %v3525_v29  ;;  %v13220_v21 = vld [vmem:[#allocation42_spill] sm:$0xff] }
 0xba7   :  { %v13221_v25 = vld [vmem:[#allocation46_spill] sm:$0xff] }
 0xba8   :  { %13205 = vst [vmem:[#allocation98_spill] sm:$0xff] %v11210_v13  ;;  %3594 = vmatprep.mubr.f32.mxu0 %v11210_v13  ;;  %3665 = vmatprep.mubr.f32.mxu1 %v11210_v13  ;;  %v13222_v39 = vld [vmem:[#allocation50_spill] sm:$0xff] }
 0xba9   :  { %v13223_v29 = vld [vmem:[#allocation54_spill] sm:$0xff] }
 0xbaa   :  { %v13224_v58 = vld [vmem:[#allocation58_spill] sm:$0xff] }
 0xbaf   :  { %v9086_v30 = vpop.eup %9085 }
 0xbb0   :  { %v3499_v19 = vmul.f32 %v9086_v30, %v3498_v18  ;;  %v13226_v18 = vld [vmem:[#allocation59_spill] sm:$0xff]  ;;  %v13227_v30 = vld [vmem:[#allocation62_spill] sm:$0xff] }
 0xbb2   :  { %v11214_v16 = vadd.f32 %v3500_v12, %v3499_v19  ;;  %v13228_v19 = vld [vmem:[#allocation92_spill] sm:$0xff]  ;;  %v13229_v12 = vld [vmem:[#allocation94_spill] sm:$0xff] }
 0xbb4   :  { %13206 = vst [vmem:[#allocation136_spill] sm:$0xff] %v11214_v16  ;;  %3595 = vmatmul.mubr.f32.vlgmr.msra.gmra.mrb[26].mxu0 %v11214_v16  ;;  %3666 = vmatmul.mubr.f32.vlgmr.msra.gmra.mrb[44].mxu1 %v11214_v16 }
 0xbb5   :  { %7619 = vmatpush1.bf16.msra.mxu0 %v13207_v40  ;;  %3736 = vmatprep.mubr.f32.mxu0 %v11210_v13 }
 0xbb6   :  { %7621 = vmatprep.subr.bf16.mxu0 %v13208_v37  ;;  %7747 = vmatpush1.bf16.msra.mxu1 %v10698_v44  ;;  %v13260_v44 = vld [vmem:[#allocation64_spill] sm:$0xff] }
 0xbb7   :  { %7749 = vmatprep.subr.bf16.mxu1 %v10706_v47  ;;  %v13259_v47 = vld [vmem:[#allocation101_spill] sm:$0xff] }
 0xbb9   :  { %7623 = vmatpush1.bf16.msra.mxu0 %v13209_v32 }
 0xbba   :  { %7625 = vmatprep.subr.bf16.mxu0 %v13210_v28  ;;  %7751 = vmatpush1.bf16.msra.mxu1 %v10711_v24  ;;  %v13258_v24 = vld [vmem:[#allocation96_spill] sm:$0xff] }
 0xbbb   :  { %7753 = vmatprep.subr.bf16.mxu1 %v10716_v1  ;;  %v13257_v1 = vld [vmem:[#allocation95_spill] sm:$0xff] }
 0xbbd   :  { %7627 = vmatpush1.bf16.msra.mxu0 %v13211_v20 }
 0xbbe   :  { %7629 = vmatprep.subr.bf16.mxu0 %v13212_v26  ;;  %7755 = vmatpush1.bf16.msra.mxu1 %v10721_v48  ;;  %v13256_v48 = vld [vmem:[#allocation99_spill] sm:$0xff] }
 0xbbf   :  { %7757 = vmatprep.subr.bf16.mxu1 %v10726_v46  ;;  %v13255_v46 = vld [vmem:[#allocation93_spill] sm:$0xff] }
 0xbc1   :  { %7631 = vmatpush1.bf16.msra.mxu0 %v13213_v45 }
 0xbc2   :  { %7633 = vmatprep.subr.bf16.mxu0 %v13214_v61  ;;  %7759 = vmatpush1.bf16.msra.mxu1 %v10731_v10  ;;  %v13254_v10 = vld [vmem:[#allocation63_spill] sm:$0xff] }
 0xbc3   :  { %7761 = vmatprep.subr.bf16.mxu1 %v10736_v8  ;;  %v13253_v8 = vld [vmem:[#allocation60_spill] sm:$0xff] }
 0xbc5   :  { %7635 = vmatpush1.bf16.msra.mxu0 %v13215_v15 }
 0xbc6   :  { %7637 = vmatprep.subr.bf16.mxu0 %v13216_v17  ;;  %7763 = vmatpush1.bf16.msra.mxu1 %v10741_v0  ;;  %v13252_v0 = vld [vmem:[#allocation57_spill] sm:$0xff] }
 0xbc7   :  { %7765 = vmatprep.subr.bf16.mxu1 %v10746_v4  ;;  %v13251_v4 = vld [vmem:[#allocation53_spill] sm:$0xff] }
 0xbc9   :  { %7639 = vmatpush1.bf16.msra.mxu0 %v13217_v50 }
 0xbca   :  { %7641 = vmatprep.subr.bf16.mxu0 %v13218_v31  ;;  %7767 = vmatpush1.bf16.msra.mxu1 %v10751_v33  ;;  %v13250_v33 = vld [vmem:[#allocation49_spill] sm:$0xff] }
 0xbcb   :  { %7769 = vmatprep.subr.bf16.mxu1 %v10756_v3  ;;  %v13249_v3 = vld [vmem:[#allocation45_spill] sm:$0xff] }
 0xbcd   :  { %7643 = vmatpush1.bf16.msra.mxu0 %v13219_v59 }
 0xbce   :  { %7645 = vmatprep.subr.bf16.mxu0 %v13220_v21  ;;  %7771 = vmatpush1.bf16.msra.mxu1 %v10761_v38  ;;  %v13248_v38 = vld [vmem:[#allocation41_spill] sm:$0xff] }
 0xbcf   :  { %7773 = vmatprep.subr.bf16.mxu1 %v10766_v54  ;;  %v13247_v54 = vld [vmem:[#allocation37_spill] sm:$0xff] }
 0xbd1   :  { %7647 = vmatpush1.bf16.msra.mxu0 %v13221_v25 }
 0xbd2   :  { %7649 = vmatprep.subr.bf16.mxu0 %v13222_v39  ;;  %7775 = vmatpush1.bf16.msra.mxu1 %v10771_v41  ;;  %v13246_v41 = vld [vmem:[#allocation33_spill] sm:$0xff] }
 0xbd3   :  { %7777 = vmatprep.subr.bf16.mxu1 %v10776_v52  ;;  %v13245_v52 = vld [vmem:[#allocation29_spill] sm:$0xff] }
 0xbd5   :  { %7651 = vmatpush1.bf16.msra.mxu0 %v13223_v29 }
 0xbd6   :  { %7653 = vmatprep.subr.bf16.mxu0 %v13224_v58  ;;  %7779 = vmatpush1.bf16.msra.mxu1 %v10781_v14  ;;  %v13230_v14 = vld [vmem:[#allocation100_spill] sm:$0xff] }
 0xbd7   :  { %7781 = vmatprep.subr.bf16.mxu1 %v10784_v51  ;;  %v13231_v51 = vld [vmem:[#allocation102_spill] sm:$0xff] }
 0xbd9   :  { %7655 = vmatpush1.bf16.msra.mxu0 %v13225_v27 }
 0xbda   :  { %7657 = vmatprep.subr.bf16.mxu0 %v13226_v18  ;;  %7783 = vmatpush1.bf16.msra.mxu1 %v10789_v49  ;;  %v13232_v49 = vld [vmem:[#allocation68_spill] sm:$0xff] }
 0xbdb   :  { %7785 = vmatprep.subr.bf16.mxu1 %v10792_v56  ;;  %v13244_v56 = vld [vmem:[#allocation25_spill] sm:$0xff] }
 0xbdd   :  { %7659 = vmatpush1.bf16.msra.mxu0 %v13227_v30 }
 0xbde   :  { %7661 = vmatprep.subr.bf16.mxu0 %v13228_v19  ;;  %7787 = vmatpush1.bf16.msra.mxu1 %v13158_v6  ;;  %v13242_v6 = vld [vmem:[#allocation18_spill] sm:$0xff] }
 0xbdf   :  { %7789 = vmatprep.subr.bf16.mxu1 %v13160_v22  ;;  %v13241_v22 = vld [vmem:[#allocation15_spill] sm:$0xff] }
 0xbe1   :  { %7663 = vmatpush1.bf16.msra.mxu0 %v13229_v12 }
 0xbe2   :  { %7665 = vmatprep.subr.bf16.mxu0 %v13230_v14  ;;  %7791 = vmatpush1.bf16.msra.mxu1 %v13162_v53  ;;  %v13238_v53 = vld [vmem:[#allocation55_spill] sm:$0xff] }
 0xbe3   :  { %7793 = vmatprep.subr.bf16.mxu1 %v13164_v57  ;;  %v13237_v57 = vld [vmem:[#allocation90_spill] sm:$0xff]  ;;  %v13267_v14 = vld [vmem:[#allocation119_spill] sm:$0xff] }
 0xbe5   :  { %7667 = vmatpush1.bf16.msra.mxu0 %v13231_v51  ;;  %v13266_v51 = vld [vmem:[#allocation135_spill] sm:$0xff] }
 0xbe6   :  { %7669 = vmatprep.subr.bf16.mxu0 %v13232_v49  ;;  %7795 = vmatpush1.bf16.msra.mxu1 %v13166_v5  ;;  %v13234_v5 = vld [vmem:[#allocation48_spill] sm:$0xff] }
 0xbe7   :  { %7797 = vmatprep.subr.bf16.mxu1 %v13167_v7  ;;  %v13233_v7 = vld [vmem:[#allocation87_spill] sm:$0xff] }
 0xbe9   :  { %7671 = vmatpush1.bf16.msra.mxu0 %v11010_v60 }
 0xbea   :  { %7673 = vmatprep.subr.bf16.mxu0 %v11015_v9  ;;  %7799 = vmatpush1.bf16.msra.mxu1 %v13168_v43  ;;  %v13235_v43 = vld [vmem:[#allocation88_spill] sm:$0xff]  ;;  %v13265_v9 = vld [vmem:[#allocation105_spill] sm:$0xff] }
 0xbeb   :  { %7801 = vmatprep.subr.bf16.mxu1 %v13169_v36  ;;  %v13236_v36 = vld [vmem:[#allocation51_spill] sm:$0xff] }
 0xbed   :  { %7675 = vmatpush1.bf16.msra.mxu0 %v11022_v42  ;;  %v13264_v42 = vld [vmem:[#allocation103_spill] sm:$0xff] }
 0xbee   :  { %7677 = vmatprep.subr.bf16.mxu0 %v11027_v63  ;;  %7803 = vmatpush1.bf16.msra.mxu1 %v13170_v23  ;;  %v13239_v23 = vld [vmem:[#allocation11_spill] sm:$0xff]  ;;  %v13263_v63 = vld [vmem:[#allocation69_spill] sm:$0xff] }
 0xbef   :  { %7805 = vmatprep.subr.bf16.mxu1 %v13171_v11  ;;  %v13240_v11 = vld [vmem:[#allocation13_spill] sm:$0xff] }
 0xbf1   :  { %7679 = vmatpush1.bf16.msra.mxu0 %v11034_v34  ;;  %v13262_v34 = vld [vmem:[#allocation74_spill] sm:$0xff] }
 0xbf2   :  { %7681 = vmatprep.subr.bf16.mxu0 %v10828_v35  ;;  %7807 = vmatpush1.bf16.msra.mxu1 %v13233_v7  ;;  %v13243_v7 = vld [vmem:[#allocation21_spill] sm:$0xff] }
 0xbf3   :  { %7809 = vmatprep.subr.bf16.mxu1 %v13234_v5  ;;  %v13261_v5 = vld [vmem:[#allocation17_spill] sm:$0xff] }
 0xbf4   :  { %3737 = vmatmul.mubr.f32.vlgmr.msra.gmra.mrb[56].mxu0 %v11214_v16 }
 0xbf5   :  { %7683 = vmatpush1.bf16.msra.mxu0 %v13235_v43 }
 0xbf6   :  { %7685 = vmatprep.subr.bf16.mxu0 %v13236_v36 }
 0xbf9   :  { %7687 = vmatpush1.bf16.msra.mxu0 %v13237_v57 }
 0xbfa   :  { %7689 = vmatprep.subr.bf16.mxu0 %v13238_v53 }
 0xbfd   :  { %7691 = vmatpush1.bf16.msra.mxu0 %v13239_v23 }
 0xbfe   :  { %7693 = vmatprep.subr.bf16.mxu0 %v13240_v11 }
 0xc01   :  { %7695 = vmatpush1.bf16.msra.mxu0 %v13241_v22 }
 0xc02   :  { %7697 = vmatprep.subr.bf16.mxu0 %v13242_v6 }
 0xc05   :  { %7699 = vmatpush1.bf16.msra.mxu0 %v13243_v7 }
 0xc06   :  { %7701 = vmatprep.subr.bf16.mxu0 %v13244_v56 }
 0xc09   :  { %7703 = vmatpush1.bf16.msra.mxu0 %v13245_v52 }
 0xc0a   :  { %7705 = vmatprep.subr.bf16.mxu0 %v13246_v41 }
 0xc0d   :  { %7707 = vmatpush1.bf16.msra.mxu0 %v13247_v54 }
 0xc0e   :  { %7709 = vmatprep.subr.bf16.mxu0 %v13248_v38 }
 0xc11   :  { %7711 = vmatpush1.bf16.msra.mxu0 %v13249_v3 }
 0xc12   :  { %7713 = vmatprep.subr.bf16.mxu0 %v13250_v33 }
 0xc15   :  { %7715 = vmatpush1.bf16.msra.mxu0 %v13251_v4 }
 0xc16   :  { %7717 = vmatprep.subr.bf16.mxu0 %v13252_v0 }
 0xc19   :  { %7719 = vmatpush1.bf16.msra.mxu0 %v13253_v8 }
 0xc1a   :  { %7721 = vmatprep.subr.bf16.mxu0 %v13254_v10 }
 0xc1d   :  { %7723 = vmatpush1.bf16.msra.mxu0 %v13255_v46 }
 0xc1e   :  { %7725 = vmatprep.subr.bf16.mxu0 %v13256_v48 }
 0xc21   :  { %7727 = vmatpush1.bf16.msra.mxu0 %v13257_v1 }
 0xc22   :  { %7729 = vmatprep.subr.bf16.mxu0 %v13258_v24 }
 0xc25   :  { %7731 = vmatpush1.bf16.msra.mxu0 %v13259_v47 }
 0xc26   :  { %7733 = vmatprep.subr.bf16.mxu0 %v13260_v44 }
 0xc29   :  { %7735 = vmatpush1.bf16.msra.mxu0 %v13261_v5 }
 0xc2a   :  { %7737 = vmatprep.subr.bf16.mxu0 %v13262_v34 }
 0xc2d   :  { %7739 = vmatpush1.bf16.msra.mxu0 %v13263_v63 }
 0xc2e   :  { %7741 = vmatprep.subr.bf16.mxu0 %v13264_v42 }
 0xc31   :  { %7743 = vmatpush1.bf16.msra.mxu0 %v13265_v9 }
 0xc32   :  { %7873 = vmatprep.subr.bf16.mxu0 %v10828_v35 }
 0xc87   :  { %v3596_v60 = vpop.f32.mrb[26].mxu0  ;;  %v3667_v49 = vpop.f32.mrb[44].mxu1 }
 0xc88   :  { %v8866_v24 = vadd.f32 %v3596_v60, %v13266_v51  ;;  %v3598_v1 = vpop.f32.mrb[27].mxu0  ;;  %v3669_v47 = vpop.f32.mrb[45].mxu1  ;;  %v3757_v35 = vadd.f32 %v3667_v49, %v11204_v2  ;;  %v13268_v60 = vld [vmem:[#allocation108_spill] sm:$0xff] }
 0xc89   :  { %v3765_v44 = vadd.f32 %v3669_v47, %v13267_v14  ;;  %v8867_v5 = vadd.f32 %v3598_v1, %v11197_v55 }
 0xc8a   :  { %v5503_v12 = vmul.f32 -1.442695, %v8866_v24 }
 0xc8b   :  { %v5504_v34 = vmul.f32 -1.442695, %v8867_v5  ;;  %v5505_v47 = vmul.f32 -1.442695, %v3765_v44 }
 0xc8c   :  { %9087 = vpow2.f32 %v5503_v12  ;;  %v13270_v12 = vld [vmem:[#allocation133_spill] sm:$0xff] }
 0xc8d   :  { %9089 = vpow2.f32 %v5504_v34 }
 0xc96   :  { %v9088_v63 = vpop.eup %9087 }
 0xc97   :  { %v3747_v42 = vadd.f32 1.0, %v9088_v63  ;;  %v9090_v9 = vpop.eup %9089 }
 0xc98   :  { %v3754_v48 = vadd.f32 1.0, %v9090_v9 }
 0xc99   :  { %9091 = vrcp.f32 %v3747_v42 }
 0xc9a   :  { %9093 = vrcp.f32 %v3754_v48 }
 0xca3   :  { %v9092_v46 = vpop.eup %9091 }
 0xca4   :  { %v3758_v19 = vmul.f32 %v9092_v46, %v3757_v35  ;;  %v9094_v24 = vpop.eup %9093 }
 0xca5   :  { %v3761_v1 = vsub.f32 1.0, %v9094_v24  ;;  %v3763_v34 = vmul.f32 %v9094_v24, %v11214_v16  ;;  %v13290_v16 = vld [vmem:[#allocation69_spill] sm:$0xff] }
 0xca6   :  { %v3759_v51 = vadd.f32 %v3758_v19, %v13268_v60  ;;  %v13271_v60 = vld [vmem:[#allocation134_spill] sm:$0xff] }
 0xca8   :  { %9095 = vtanh.f32 %v3759_v51 }
 0xca9   :  { %9097 = vpow2.f32 %v5505_v47 }
 0xcb2   :  { %v9096_v14 = vpop.eup %9095 }
 0xcb3   :  { %v3762_v5 = vmul.f32 %v9096_v14, %v3761_v1  ;;  %v9098_v42 = vpop.eup %9097 }
 0xcb4   :  { %v3769_v9 = vadd.f32 1.0, %v9098_v42 }
 0xcb5   :  { %v11322_v63 = vadd.f32 %v3763_v34, %v3762_v5 }
 0xcb6   :  { %9099 = vrcp.f32 %v3769_v9 }
 0xcb7   :  { %13269 = vst [vmem:[#allocation89_spill] sm:$0xff] %v11322_v63 }
 0xcc0   :  { %v9100_v51 = vpop.eup %9099 }
 0xcc7   :  { %v3738_v49 = vpop.f32.mrb[56].mxu0 }
 0xcc8   :  { %v3772_v46 = vadd.f32 %v3738_v49, %v13270_v12  ;;  %v3740_v48 = vpop.f32.mrb[57].mxu0  ;;  %v13273_v12 = vld [vmem:[#allocation92_spill] sm:$0xff] }
 0xcc9   :  { %v3779_v35 = vadd.f32 %v3740_v48, %v11194_v62  ;;  %v13275_v48 = vld [vmem:[#allocation99_spill] sm:$0xff] }
 0xcca   :  { %v5506_v44 = vmul.f32 -1.442695, %v3772_v46  ;;  %v13274_v46 = vld [vmem:[#allocation93_spill] sm:$0xff] }
 0xccb   :  { %v3780_v19 = vmul.f32 %v9100_v51, %v3779_v35  ;;  %v13276_v35 = vld [vmem:[#allocation94_spill] sm:$0xff]  ;;  %v13277_v51 = vld [vmem:[#allocation100_spill] sm:$0xff] }
 0xccc   :  { %9101 = vpow2.f32 %v5506_v44  ;;  %v13278_v44 = vld [vmem:[#allocation95_spill] sm:$0xff] }
 0xccd   :  { %v3781_v47 = vadd.f32 %v3780_v19, %v13271_v60  ;;  %v13279_v19 = vld [vmem:[#allocation96_spill] sm:$0xff]  ;;  %v13280_v60 = vld [vmem:[#allocation102_spill] sm:$0xff] }
 0xcd6   :  { %v9102_v1 = vpop.eup %9101 }
 0xcd7   :  { %v3776_v14 = vadd.f32 1.0, %v9102_v1  ;;  %v13282_v1 = vld [vmem:[#allocation101_spill] sm:$0xff] }
 0xcd9   :  { %9103 = vrcp.f32 %v3776_v14  ;;  %v13283_v14 = vld [vmem:[#allocation64_spill] sm:$0xff] }
 0xcda   :  { %9105 = vtanh.f32 %v3781_v47  ;;  %v13281_v47 = vld [vmem:[#allocation68_spill] sm:$0xff] }
 0xce3   :  { %v9104_v24 = vpop.eup %9103 }
 0xce4   :  { %v3783_v5 = vsub.f32 1.0, %v9104_v24  ;;  %v9106_v34 = vpop.eup %9105  ;;  %v3785_v9 = vmul.f32 %v9104_v24, %v11210_v13  ;;  %v13284_v24 = vld [vmem:[#allocation72_spill] sm:$0xff] }
 0xce5   :  { %v13289_v13 = vld [vmem:[#allocation104_spill] sm:$0xff] }
 0xce6   :  { %v3784_v42 = vmul.f32 %v9106_v34, %v3783_v5  ;;  %v13285_v5 = vld [vmem:[#allocation71_spill] sm:$0xff]  ;;  %v13286_v34 = vld [vmem:[#allocation17_spill] sm:$0xff] }
 0xce8   :  { %v11328_v49 = vadd.f32 %v3785_v9, %v3784_v42  ;;  %v13287_v42 = vld [vmem:[#allocation74_spill] sm:$0xff]  ;;  %v13288_v9 = vld [vmem:[#allocation65_spill] sm:$0xff] }
 0xcea   :  { %13272 = vst [vmem:[#allocation52_spill] sm:$0xff] %v11328_v49  ;;  %3853 = vmatprep.mubr.f32.mxu0 %v11328_v49  ;;  %3924 = vmatprep.mubr.f32.mxu1 %v11328_v49 }
 0xceb   :  { %3854 = vmatmul.mubr.f32.vlgmr.msra.gmra.mrb[28].mxu0 %v11322_v63  ;;  %3925 = vmatmul.mubr.f32.vlgmr.msra.gmra.mrb[46].mxu1 %v11322_v63 }
 0xcec   :  { %7811 = vmatpush1.bf16.msra.mxu1 %v13207_v40  ;;  %3995 = vmatprep.mubr.f32.mxu1 %v11328_v49 }
 0xced   :  { %7813 = vmatprep.subr.bf16.mxu1 %v13208_v37  ;;  %7875 = vmatpush1.bf16.msra.mxu0 %v13235_v43  ;;  %v13321_v43 = vld [vmem:[#allocation84_spill] sm:$0xff] }
 0xcee   :  { %7877 = vmatprep.subr.bf16.mxu0 %v13236_v36  ;;  %v13320_v36 = vld [vmem:[#allocation40_spill] sm:$0xff] }
 0xcf0   :  { %7815 = vmatpush1.bf16.msra.mxu1 %v13209_v32 }
 0xcf1   :  { %7817 = vmatprep.subr.bf16.mxu1 %v13210_v28  ;;  %7879 = vmatpush1.bf16.msra.mxu0 %v13237_v57  ;;  %v13319_v57 = vld [vmem:[#allocation39_spill] sm:$0xff] }
 0xcf2   :  { %7881 = vmatprep.subr.bf16.mxu0 %v13238_v53  ;;  %v13318_v53 = vld [vmem:[#allocation83_spill] sm:$0xff] }
 0xcf4   :  { %7819 = vmatpush1.bf16.msra.mxu1 %v13211_v20 }
 0xcf5   :  { %7821 = vmatprep.subr.bf16.mxu1 %v13212_v26  ;;  %7883 = vmatpush1.bf16.msra.mxu0 %v13239_v23  ;;  %v13317_v23 = vld [vmem:[#allocation82_spill] sm:$0xff] }
 0xcf6   :  { %7885 = vmatprep.subr.bf16.mxu0 %v13240_v11  ;;  %v13316_v11 = vld [vmem:[#allocation36_spill] sm:$0xff] }
 0xcf8   :  { %7823 = vmatpush1.bf16.msra.mxu1 %v13213_v45 }
 0xcf9   :  { %7825 = vmatprep.subr.bf16.mxu1 %v13214_v61  ;;  %7887 = vmatpush1.bf16.msra.mxu0 %v13241_v22  ;;  %v13315_v22 = vld [vmem:[#allocation35_spill] sm:$0xff] }
 0xcfa   :  { %7889 = vmatprep.subr.bf16.mxu0 %v13242_v6  ;;  %v13314_v6 = vld [vmem:[#allocation81_spill] sm:$0xff] }
 0xcfc   :  { %7827 = vmatpush1.bf16.msra.mxu1 %v13215_v15 }
 0xcfd   :  { %7829 = vmatprep.subr.bf16.mxu1 %v13216_v17  ;;  %7891 = vmatpush1.bf16.msra.mxu0 %v13243_v7  ;;  %v13313_v7 = vld [vmem:[#allocation80_spill] sm:$0xff] }
 0xcfe   :  { %7893 = vmatprep.subr.bf16.mxu0 %v13244_v56  ;;  %v13312_v56 = vld [vmem:[#allocation32_spill] sm:$0xff] }
 0xd00   :  { %7831 = vmatpush1.bf16.msra.mxu1 %v13217_v50 }
 0xd01   :  { %7833 = vmatprep.subr.bf16.mxu1 %v13218_v31  ;;  %7895 = vmatpush1.bf16.msra.mxu0 %v13245_v52  ;;  %v13311_v52 = vld [vmem:[#allocation31_spill] sm:$0xff] }
 0xd02   :  { %7897 = vmatprep.subr.bf16.mxu0 %v13246_v41  ;;  %v13310_v41 = vld [vmem:[#allocation79_spill] sm:$0xff] }
 0xd04   :  { %7835 = vmatpush1.bf16.msra.mxu1 %v13219_v59 }
 0xd05   :  { %7837 = vmatprep.subr.bf16.mxu1 %v13220_v21  ;;  %7899 = vmatpush1.bf16.msra.mxu0 %v13247_v54  ;;  %v13309_v54 = vld [vmem:[#allocation78_spill] sm:$0xff] }
 0xd06   :  { %7901 = vmatprep.subr.bf16.mxu0 %v13248_v38  ;;  %v13308_v38 = vld [vmem:[#allocation28_spill] sm:$0xff] }
 0xd08   :  { %7839 = vmatpush1.bf16.msra.mxu1 %v13221_v25 }
 0xd09   :  { %7841 = vmatprep.subr.bf16.mxu1 %v13222_v39  ;;  %7903 = vmatpush1.bf16.msra.mxu0 %v13249_v3  ;;  %v13307_v3 = vld [vmem:[#allocation27_spill] sm:$0xff] }
 0xd0a   :  { %7905 = vmatprep.subr.bf16.mxu0 %v13250_v33  ;;  %v13306_v33 = vld [vmem:[#allocation77_spill] sm:$0xff] }
 0xd0c   :  { %7843 = vmatpush1.bf16.msra.mxu1 %v13223_v29 }
 0xd0d   :  { %7845 = vmatprep.subr.bf16.mxu1 %v13224_v58  ;;  %7907 = vmatpush1.bf16.msra.mxu0 %v13251_v4  ;;  %v13305_v4 = vld [vmem:[#allocation76_spill] sm:$0xff] }
 0xd0e   :  { %7909 = vmatprep.subr.bf16.mxu0 %v13252_v0  ;;  %v13303_v0 = vld [vmem:[#allocation97_spill] sm:$0xff] }
 0xd10   :  { %7847 = vmatpush1.bf16.msra.mxu1 %v13225_v27 }
 0xd11   :  { %7849 = vmatprep.subr.bf16.mxu1 %v13226_v18  ;;  %7911 = vmatpush1.bf16.msra.mxu0 %v13253_v8  ;;  %v13302_v8 = vld [vmem:[#allocation66_spill] sm:$0xff] }
 0xd12   :  { %7913 = vmatprep.subr.bf16.mxu0 %v13254_v10  ;;  %v13299_v10 = vld [vmem:[#allocation70_spill] sm:$0xff] }
 0xd14   :  { %7851 = vmatpush1.bf16.msra.mxu1 %v13227_v30 }
 0xd15   :  { %7853 = vmatprep.subr.bf16.mxu1 %v13273_v12  ;;  %7915 = vmatpush1.bf16.msra.mxu0 %v13274_v46  ;;  %v13298_v46 = vld [vmem:[#allocation23_spill] sm:$0xff] }
 0xd16   :  { %7917 = vmatprep.subr.bf16.mxu0 %v13275_v48  ;;  %v13295_v48 = vld [vmem:[#allocation48_spill] sm:$0xff] }
 0xd18   :  { %7855 = vmatpush1.bf16.msra.mxu1 %v13276_v35 }
 0xd19   :  { %7857 = vmatprep.subr.bf16.mxu1 %v13277_v51  ;;  %7919 = vmatpush1.bf16.msra.mxu0 %v13278_v44  ;;  %v13292_v44 = vld [vmem:[#allocation106_spill] sm:$0xff]  ;;  %v13328_v51 = vld [vmem:[#allocation117_spill] sm:$0xff] }
 0xd1a   :  { %7921 = vmatprep.subr.bf16.mxu0 %v13279_v19  ;;  %v13291_v19 = vld [vmem:[#allocation103_spill] sm:$0xff] }
 0xd1c   :  { %7859 = vmatpush1.bf16.msra.mxu1 %v13280_v60  ;;  %v13327_v60 = vld [vmem:[#allocation135_spill] sm:$0xff] }
 0xd1d   :  { %7861 = vmatprep.subr.bf16.mxu1 %v13281_v47  ;;  %7923 = vmatpush1.bf16.msra.mxu0 %v13282_v1  ;;  %v13293_v1 = vld [vmem:[#allocation73_spill] sm:$0xff] }
 0xd1e   :  { %7925 = vmatprep.subr.bf16.mxu0 %v13283_v14  ;;  %v13294_v14 = vld [vmem:[#allocation105_spill] sm:$0xff] }
 0xd20   :  { %7863 = vmatpush1.bf16.msra.mxu1 %v13284_v24 }
 0xd21   :  { %7865 = vmatprep.subr.bf16.mxu1 %v13285_v5  ;;  %7927 = vmatpush1.bf16.msra.mxu0 %v13286_v34  ;;  %v13296_v34 = vld [vmem:[#allocation20_spill] sm:$0xff]  ;;  %v13326_v5 = vld [vmem:[#allocation87_spill] sm:$0xff] }
 0xd22   :  { %7929 = vmatprep.subr.bf16.mxu0 %v13287_v42  ;;  %v13297_v42 = vld [vmem:[#allocation75_spill] sm:$0xff] }
 0xd24   :  { %7867 = vmatpush1.bf16.msra.mxu1 %v13288_v9  ;;  %v13325_v9 = vld [vmem:[#allocation86_spill] sm:$0xff] }
 0xd25   :  { %7869 = vmatprep.subr.bf16.mxu1 %v13289_v13  ;;  %7931 = vmatpush1.bf16.msra.mxu0 %v13290_v16  ;;  %v13300_v16 = vld [vmem:[#allocation9_spill] sm:$0xff]  ;;  %v13324_v13 = vld [vmem:[#allocation44_spill] sm:$0xff] }
 0xd26   :  { %7933 = vmatprep.subr.bf16.mxu0 %v13291_v19  ;;  %v13301_v19 = vld [vmem:[#allocation67_spill] sm:$0xff] }
 0xd28   :  { %7871 = vmatpush1.bf16.msra.mxu1 %v13292_v44  ;;  %v13323_v44 = vld [vmem:[#allocation43_spill] sm:$0xff] }
 0xd29   :  { %7937 = vmatprep.subr.bf16.mxu1 %v13293_v1  ;;  %7935 = vmatpush1.bf16.msra.mxu0 %v13294_v14  ;;  %v13304_v14 = vld [vmem:[#allocation24_spill] sm:$0xff] }
 0xd2a   :  { %8001 = vmatprep.subr.bf16.mxu0 %v13295_v48  ;;  %v13322_v48 = vld [vmem:[#allocation85_spill] sm:$0xff] }
 0xd2b   :  { %3996 = vmatmul.mubr.f32.vlgmr.msra.gmra.mrb[48].mxu1 %v11322_v63 }
 0xd2c   :  { %7939 = vmatpush1.bf16.msra.mxu1 %v13296_v34 }
 0xd2d   :  { %7941 = vmatprep.subr.bf16.mxu1 %v13297_v42 }
 0xd30   :  { %7943 = vmatpush1.bf16.msra.mxu1 %v13298_v46 }
 0xd31   :  { %7945 = vmatprep.subr.bf16.mxu1 %v13299_v10 }
 0xd34   :  { %7947 = vmatpush1.bf16.msra.mxu1 %v13300_v16 }
 0xd35   :  { %7949 = vmatprep.subr.bf16.mxu1 %v13301_v19 }
 0xd38   :  { %7951 = vmatpush1.bf16.msra.mxu1 %v13302_v8 }
 0xd39   :  { %7953 = vmatprep.subr.bf16.mxu1 %v13303_v0 }
 0xd3c   :  { %7955 = vmatpush1.bf16.msra.mxu1 %v13304_v14 }
 0xd3d   :  { %7957 = vmatprep.subr.bf16.mxu1 %v13305_v4 }
 0xd40   :  { %7959 = vmatpush1.bf16.msra.mxu1 %v13306_v33 }
 0xd41   :  { %7961 = vmatprep.subr.bf16.mxu1 %v13307_v3 }
 0xd44   :  { %7963 = vmatpush1.bf16.msra.mxu1 %v13308_v38 }
 0xd45   :  { %7965 = vmatprep.subr.bf16.mxu1 %v13309_v54 }
 0xd48   :  { %7967 = vmatpush1.bf16.msra.mxu1 %v13310_v41 }
 0xd49   :  { %7969 = vmatprep.subr.bf16.mxu1 %v13311_v52 }
 0xd4c   :  { %7971 = vmatpush1.bf16.msra.mxu1 %v13312_v56 }
 0xd4d   :  { %7973 = vmatprep.subr.bf16.mxu1 %v13313_v7 }
 0xd50   :  { %7975 = vmatpush1.bf16.msra.mxu1 %v13314_v6 }
 0xd51   :  { %7977 = vmatprep.subr.bf16.mxu1 %v13315_v22 }
 0xd54   :  { %7979 = vmatpush1.bf16.msra.mxu1 %v13316_v11 }
 0xd55   :  { %7981 = vmatprep.subr.bf16.mxu1 %v13317_v23 }
 0xd58   :  { %7983 = vmatpush1.bf16.msra.mxu1 %v13318_v53 }
 0xd59   :  { %7985 = vmatprep.subr.bf16.mxu1 %v13319_v57 }
 0xd5c   :  { %7987 = vmatpush1.bf16.msra.mxu1 %v13320_v36 }
 0xd5d   :  { %7989 = vmatprep.subr.bf16.mxu1 %v13321_v43 }
 0xd60   :  { %7991 = vmatpush1.bf16.msra.mxu1 %v13322_v48 }
 0xd61   :  { %7993 = vmatprep.subr.bf16.mxu1 %v13323_v44 }
 0xd64   :  { %7995 = vmatpush1.bf16.msra.mxu1 %v13324_v13 }
 0xd65   :  { %7997 = vmatprep.subr.bf16.mxu1 %v13325_v9 }
 0xd68   :  { %7999 = vmatpush1.bf16.msra.mxu1 %v13326_v5 }
 0xd69   :  { %8129 = vmatprep.subr.bf16.mxu1 %v13293_v1 }
 0xdbe   :  { %v3855_v24 = vpop.f32.mrb[28].mxu0  ;;  %v3926_v47 = vpop.f32.mrb[46].mxu1 }
 0xdbf   :  { %v8868_v57 = vadd.f32 %v3855_v24, %v13327_v60  ;;  %v3857_v53 = vpop.f32.mrb[29].mxu0  ;;  %v3928_v36 = vpop.f32.mrb[47].mxu1  ;;  %v4016_v1 = vadd.f32 %v3926_v47, %v11204_v2  ;;  %v13329_v24 = vld [vmem:[#allocation110_spill] sm:$0xff] }
 0xdc0   :  { %v4024_v43 = vadd.f32 %v3928_v36, %v13328_v51  ;;  %v8869_v48 = vadd.f32 %v3857_v53, %v11197_v55 }
 0xdc1   :  { %v5507_v35 = vmul.f32 -1.442695, %v8868_v57 }
 0xdc2   :  { %v5508_v44 = vmul.f32 -1.442695, %v8869_v48  ;;  %v5509_v36 = vmul.f32 -1.442695, %v4024_v43 }
 0xdc3   :  { %9107 = vpow2.f32 %v5507_v35 }
 0xdc4   :  { %9109 = vpow2.f32 %v5508_v44 }
 0xdcd   :  { %v9108_v13 = vpop.eup %9107 }
 0xdce   :  { %v4006_v9 = vadd.f32 1.0, %v9108_v13  ;;  %v9110_v5 = vpop.eup %9109 }
 0xdcf   :  { %v4013_v23 = vadd.f32 1.0, %v9110_v5 }
 0xdd0   :  { %9111 = vrcp.f32 %v4006_v9  ;;  %v13331_v9 = vld [vmem:[#allocation131_spill] sm:$0xff] }
 0xdd1   :  { %9113 = vrcp.f32 %v4013_v23 }
 0xdda   :  { %v9112_v11 = vpop.eup %9111 }
 0xddb   :  { %v4017_v12 = vmul.f32 %v9112_v11, %v4016_v1  ;;  %v9114_v57 = vpop.eup %9113 }
 0xddc   :  { %v4020_v53 = vsub.f32 1.0, %v9114_v57  ;;  %v4022_v51 = vmul.f32 %v9114_v57, %v11322_v63  ;;  %v13351_v63 = vld [vmem:[#allocation44_spill] sm:$0xff] }
 0xddd   :  { %v4018_v60 = vadd.f32 %v4017_v12, %v13329_v24  ;;  %v13332_v24 = vld [vmem:[#allocation132_spill] sm:$0xff] }
 0xddf   :  { %9115 = vtanh.f32 %v4018_v60 }
 0xde0   :  { %9117 = vpow2.f32 %v5509_v36 }
 0xde9   :  { %v9116_v35 = vpop.eup %9115 }
 0xdea   :  { %v4021_v48 = vmul.f32 %v9116_v35, %v4020_v53  ;;  %v9118_v44 = vpop.eup %9117 }
 0xdeb   :  { %v4028_v5 = vadd.f32 1.0, %v9118_v44 }
 0xdec   :  { %v11438_v13 = vadd.f32 %v4022_v51, %v4021_v48 }
 0xded   :  { %9119 = vrcp.f32 %v4028_v5 }
 0xdee   :  { %13330 = vst [vmem:[#allocation10_spill] sm:$0xff] %v11438_v13 }
 0xdf7   :  { %v9120_v60 = vpop.eup %9119 }
 0xdfe   :  { %v3997_v47 = vpop.f32.mrb[48].mxu1 }
 0xdff   :  { %v4031_v11 = vadd.f32 %v3997_v47, %v13331_v9  ;;  %v3999_v23 = vpop.f32.mrb[49].mxu1  ;;  %v13334_v9 = vld [vmem:[#allocation92_spill] sm:$0xff] }
 0xe00   :  { %v4038_v12 = vadd.f32 %v3999_v23, %v11194_v62  ;;  %v13336_v23 = vld [vmem:[#allocation82_spill] sm:$0xff] }
 0xe01   :  { %v5510_v43 = vmul.f32 -1.442695, %v4031_v11  ;;  %v13335_v11 = vld [vmem:[#allocation36_spill] sm:$0xff] }
 0xe02   :  { %v4039_v1 = vmul.f32 %v9120_v60, %v4038_v12  ;;  %v13337_v12 = vld [vmem:[#allocation94_spill] sm:$0xff]  ;;  %v13338_v60 = vld [vmem:[#allocation100_spill] sm:$0xff] }
 0xe03   :  { %9121 = vpow2.f32 %v5510_v43  ;;  %v13339_v43 = vld [vmem:[#allocation83_spill] sm:$0xff] }
 0xe04   :  { %v4040_v36 = vadd.f32 %v4039_v1, %v13332_v24  ;;  %v13340_v1 = vld [vmem:[#allocation39_spill] sm:$0xff]  ;;  %v13341_v24 = vld [vmem:[#allocation102_spill] sm:$0xff] }
 0xe0d   :  { %v9122_v53 = vpop.eup %9121 }
 0xe0e   :  { %v4035_v35 = vadd.f32 1.0, %v9122_v53  ;;  %v13343_v53 = vld [vmem:[#allocation40_spill] sm:$0xff] }
 0xe10   :  { %9123 = vrcp.f32 %v4035_v35  ;;  %v13344_v35 = vld [vmem:[#allocation84_spill] sm:$0xff] }
 0xe11   :  { %9125 = vtanh.f32 %v4040_v36  ;;  %v13342_v36 = vld [vmem:[#allocation68_spill] sm:$0xff] }
 0xe1a   :  { %v9124_v57 = vpop.eup %9123 }
 0xe1b   :  { %v4042_v48 = vsub.f32 1.0, %v9124_v57  ;;  %v9126_v51 = vpop.eup %9125  ;;  %v4044_v5 = vmul.f32 %v9124_v57, %v11328_v49  ;;  %v13345_v57 = vld [vmem:[#allocation72_spill] sm:$0xff] }
 0xe1c   :  { %v13350_v49 = vld [vmem:[#allocation104_spill] sm:$0xff] }
 0xe1d   :  { %v4043_v44 = vmul.f32 %v9126_v51, %v4042_v48  ;;  %v13346_v48 = vld [vmem:[#allocation71_spill] sm:$0xff]  ;;  %v13347_v51 = vld [vmem:[#allocation85_spill] sm:$0xff] }
 0xe1f   :  { %v11444_v47 = vadd.f32 %v4044_v5, %v4043_v44  ;;  %v13348_v44 = vld [vmem:[#allocation43_spill] sm:$0xff]  ;;  %v13349_v5 = vld [vmem:[#allocation65_spill] sm:$0xff] }
 0xe21   :  { %13333 = vst [vmem:[#allocation56_spill] sm:$0xff] %v11444_v47  ;;  %4112 = vmatprep.mubr.f32.mxu0 %v11444_v47  ;;  %4183 = vmatprep.mubr.f32.mxu1 %v11444_v47 }
 0xe22   :  { %4113 = vmatmul.mubr.f32.vlgmr.msra.gmra.mrb[30].mxu0 %v11438_v13  ;;  %4184 = vmatmul.mubr.f32.vlgmr.msra.gmra.mrb[50].mxu1 %v11438_v13 }
 0xe23   :  { %8003 = vmatpush1.bf16.msra.mxu0 %v13207_v40  ;;  %4254 = vmatprep.mubr.f32.mxu0 %v11444_v47 }
 0xe24   :  { %8005 = vmatprep.subr.bf16.mxu0 %v13208_v37  ;;  %8131 = vmatpush1.bf16.msra.mxu1 %v13296_v34  ;;  %v13382_v34 = vld [vmem:[#allocation64_spill] sm:$0xff] }
 0xe25   :  { %8133 = vmatprep.subr.bf16.mxu1 %v13297_v42  ;;  %v13381_v42 = vld [vmem:[#allocation101_spill] sm:$0xff] }
 0xe27   :  { %8007 = vmatpush1.bf16.msra.mxu0 %v13209_v32 }
 0xe28   :  { %8009 = vmatprep.subr.bf16.mxu0 %v13210_v28  ;;  %8135 = vmatpush1.bf16.msra.mxu1 %v13298_v46  ;;  %v13380_v46 = vld [vmem:[#allocation96_spill] sm:$0xff] }
 0xe29   :  { %8137 = vmatprep.subr.bf16.mxu1 %v13299_v10  ;;  %v13379_v10 = vld [vmem:[#allocation95_spill] sm:$0xff] }
 0xe2b   :  { %8011 = vmatpush1.bf16.msra.mxu0 %v13211_v20 }
 0xe2c   :  { %8013 = vmatprep.subr.bf16.mxu0 %v13212_v26  ;;  %8139 = vmatpush1.bf16.msra.mxu1 %v13300_v16  ;;  %v13378_v16 = vld [vmem:[#allocation99_spill] sm:$0xff] }
 0xe2d   :  { %8141 = vmatprep.subr.bf16.mxu1 %v13301_v19  ;;  %v13377_v19 = vld [vmem:[#allocation93_spill] sm:$0xff] }
 0xe2f   :  { %8015 = vmatpush1.bf16.msra.mxu0 %v13213_v45 }
 0xe30   :  { %8017 = vmatprep.subr.bf16.mxu0 %v13214_v61  ;;  %8143 = vmatpush1.bf16.msra.mxu1 %v13302_v8  ;;  %v13376_v8 = vld [vmem:[#allocation63_spill] sm:$0xff] }
 0xe31   :  { %8145 = vmatprep.subr.bf16.mxu1 %v13303_v0  ;;  %v13375_v0 = vld [vmem:[#allocation60_spill] sm:$0xff] }
 0xe33   :  { %8019 = vmatpush1.bf16.msra.mxu0 %v13215_v15 }
 0xe34   :  { %8021 = vmatprep.subr.bf16.mxu0 %v13216_v17  ;;  %8147 = vmatpush1.bf16.msra.mxu1 %v13304_v14  ;;  %v13374_v14 = vld [vmem:[#allocation57_spill] sm:$0xff] }
 0xe35   :  { %8149 = vmatprep.subr.bf16.mxu1 %v13305_v4  ;;  %v13373_v4 = vld [vmem:[#allocation53_spill] sm:$0xff] }
 0xe37   :  { %8023 = vmatpush1.bf16.msra.mxu0 %v13217_v50 }
 0xe38   :  { %8025 = vmatprep.subr.bf16.mxu0 %v13218_v31  ;;  %8151 = vmatpush1.bf16.msra.mxu1 %v13306_v33  ;;  %v13372_v33 = vld [vmem:[#allocation49_spill] sm:$0xff] }
 0xe39   :  { %8153 = vmatprep.subr.bf16.mxu1 %v13307_v3  ;;  %v13371_v3 = vld [vmem:[#allocation45_spill] sm:$0xff] }
 0xe3b   :  { %8027 = vmatpush1.bf16.msra.mxu0 %v13219_v59 }
 0xe3c   :  { %8029 = vmatprep.subr.bf16.mxu0 %v13220_v21  ;;  %8155 = vmatpush1.bf16.msra.mxu1 %v13308_v38  ;;  %v13370_v38 = vld [vmem:[#allocation41_spill] sm:$0xff] }
 0xe3d   :  { %8157 = vmatprep.subr.bf16.mxu1 %v13309_v54  ;;  %v13369_v54 = vld [vmem:[#allocation37_spill] sm:$0xff] }
 0xe3f   :  { %8031 = vmatpush1.bf16.msra.mxu0 %v13221_v25 }
 0xe40   :  { %8033 = vmatprep.subr.bf16.mxu0 %v13222_v39  ;;  %8159 = vmatpush1.bf16.msra.mxu1 %v13310_v41  ;;  %v13368_v41 = vld [vmem:[#allocation33_spill] sm:$0xff] }
 0xe41   :  { %8161 = vmatprep.subr.bf16.mxu1 %v13311_v52  ;;  %v13367_v52 = vld [vmem:[#allocation29_spill] sm:$0xff] }
 0xe43   :  { %8035 = vmatpush1.bf16.msra.mxu0 %v13223_v29 }
 0xe44   :  { %8037 = vmatprep.subr.bf16.mxu0 %v13224_v58  ;;  %8163 = vmatpush1.bf16.msra.mxu1 %v13312_v56  ;;  %v13366_v56 = vld [vmem:[#allocation25_spill] sm:$0xff] }
 0xe45   :  { %8165 = vmatprep.subr.bf16.mxu1 %v13313_v7  ;;  %v13364_v7 = vld [vmem:[#allocation18_spill] sm:$0xff] }
 0xe47   :  { %8039 = vmatpush1.bf16.msra.mxu0 %v13225_v27 }
 0xe48   :  { %8041 = vmatprep.subr.bf16.mxu0 %v13226_v18  ;;  %8167 = vmatpush1.bf16.msra.mxu1 %v13314_v6  ;;  %v13363_v6 = vld [vmem:[#allocation15_spill] sm:$0xff] }
 0xe49   :  { %8169 = vmatprep.subr.bf16.mxu1 %v13315_v22  ;;  %v13360_v22 = vld [vmem:[#allocation55_spill] sm:$0xff] }
 0xe4b   :  { %8043 = vmatpush1.bf16.msra.mxu0 %v13227_v30 }
 0xe4c   :  { %8045 = vmatprep.subr.bf16.mxu0 %v13334_v9  ;;  %8171 = vmatpush1.bf16.msra.mxu1 %v13335_v11  ;;  %v13359_v11 = vld [vmem:[#allocation90_spill] sm:$0xff] }
 0xe4d   :  { %8173 = vmatprep.subr.bf16.mxu1 %v13336_v23  ;;  %v13356_v23 = vld [vmem:[#allocation48_spill] sm:$0xff] }
 0xe4f   :  { %8047 = vmatpush1.bf16.msra.mxu0 %v13337_v12 }
 0xe50   :  { %8049 = vmatprep.subr.bf16.mxu0 %v13338_v60  ;;  %8175 = vmatpush1.bf16.msra.mxu1 %v13339_v43  ;;  %v13353_v43 = vld [vmem:[#allocation106_spill] sm:$0xff]  ;;  %v13389_v60 = vld [vmem:[#allocation115_spill] sm:$0xff] }
 0xe51   :  { %8177 = vmatprep.subr.bf16.mxu1 %v13340_v1  ;;  %v13352_v1 = vld [vmem:[#allocation86_spill] sm:$0xff] }
 0xe53   :  { %8051 = vmatpush1.bf16.msra.mxu0 %v13341_v24  ;;  %v13388_v24 = vld [vmem:[#allocation135_spill] sm:$0xff] }
 0xe54   :  { %8053 = vmatprep.subr.bf16.mxu0 %v13342_v36  ;;  %8179 = vmatpush1.bf16.msra.mxu1 %v13343_v53  ;;  %v13354_v53 = vld [vmem:[#allocation47_spill] sm:$0xff] }
 0xe55   :  { %8181 = vmatprep.subr.bf16.mxu1 %v13344_v35  ;;  %v13355_v35 = vld [vmem:[#allocation87_spill] sm:$0xff] }
 0xe57   :  { %8055 = vmatpush1.bf16.msra.mxu0 %v13345_v57 }
 0xe58   :  { %8057 = vmatprep.subr.bf16.mxu0 %v13346_v48  ;;  %8183 = vmatpush1.bf16.msra.mxu1 %v13347_v51  ;;  %v13357_v51 = vld [vmem:[#allocation88_spill] sm:$0xff]  ;;  %v13387_v48 = vld [vmem:[#allocation105_spill] sm:$0xff] }
 0xe59   :  { %8185 = vmatprep.subr.bf16.mxu1 %v13348_v44  ;;  %v13358_v44 = vld [vmem:[#allocation51_spill] sm:$0xff] }
 0xe5b   :  { %8059 = vmatpush1.bf16.msra.mxu0 %v13349_v5  ;;  %v13386_v5 = vld [vmem:[#allocation103_spill] sm:$0xff] }
 0xe5c   :  { %8061 = vmatprep.subr.bf16.mxu0 %v13350_v49  ;;  %8187 = vmatpush1.bf16.msra.mxu1 %v13351_v63  ;;  %v13361_v63 = vld [vmem:[#allocation11_spill] sm:$0xff]  ;;  %v13385_v49 = vld [vmem:[#allocation69_spill] sm:$0xff] }
 0xe5d   :  { %8189 = vmatprep.subr.bf16.mxu1 %v13352_v1  ;;  %v13362_v1 = vld [vmem:[#allocation13_spill] sm:$0xff] }
 0xe5f   :  { %8063 = vmatpush1.bf16.msra.mxu0 %v13353_v43  ;;  %v13384_v43 = vld [vmem:[#allocation74_spill] sm:$0xff] }
 0xe60   :  { %8065 = vmatprep.subr.bf16.mxu0 %v13354_v53  ;;  %8191 = vmatpush1.bf16.msra.mxu1 %v13355_v35  ;;  %v13365_v35 = vld [vmem:[#allocation21_spill] sm:$0xff] }
 0xe61   :  { %8193 = vmatprep.subr.bf16.mxu1 %v13356_v23  ;;  %v13383_v23 = vld [vmem:[#allocation17_spill] sm:$0xff] }
 0xe62   :  { %4255 = vmatmul.mubr.f32.vlgmr.msra.gmra.mrb[58].mxu0 %v11438_v13 }
 0xe63   :  { %8067 = vmatpush1.bf16.msra.mxu0 %v13357_v51 }
 0xe64   :  { %8069 = vmatprep.subr.bf16.mxu0 %v13358_v44 }
 0xe67   :  { %8071 = vmatpush1.bf16.msra.mxu0 %v13359_v11 }
 0xe68   :  { %8073 = vmatprep.subr.bf16.mxu0 %v13360_v22 }
 0xe6b   :  { %8075 = vmatpush1.bf16.msra.mxu0 %v13361_v63 }
 0xe6c   :  { %8077 = vmatprep.subr.bf16.mxu0 %v13362_v1 }
 0xe6f   :  { %8079 = vmatpush1.bf16.msra.mxu0 %v13363_v6 }
 0xe70   :  { %8081 = vmatprep.subr.bf16.mxu0 %v13364_v7 }
 0xe73   :  { %8083 = vmatpush1.bf16.msra.mxu0 %v13365_v35 }
 0xe74   :  { %8085 = vmatprep.subr.bf16.mxu0 %v13366_v56 }
 0xe77   :  { %8087 = vmatpush1.bf16.msra.mxu0 %v13367_v52 }
 0xe78   :  { %8089 = vmatprep.subr.bf16.mxu0 %v13368_v41 }
 0xe7b   :  { %8091 = vmatpush1.bf16.msra.mxu0 %v13369_v54 }
 0xe7c   :  { %8093 = vmatprep.subr.bf16.mxu0 %v13370_v38 }
 0xe7f   :  { %8095 = vmatpush1.bf16.msra.mxu0 %v13371_v3 }
 0xe80   :  { %8097 = vmatprep.subr.bf16.mxu0 %v13372_v33 }
 0xe83   :  { %8099 = vmatpush1.bf16.msra.mxu0 %v13373_v4 }
 0xe84   :  { %8101 = vmatprep.subr.bf16.mxu0 %v13374_v14 }
 0xe87   :  { %8103 = vmatpush1.bf16.msra.mxu0 %v13375_v0 }
 0xe88   :  { %8105 = vmatprep.subr.bf16.mxu0 %v13376_v8 }
 0xe8b   :  { %8107 = vmatpush1.bf16.msra.mxu0 %v13377_v19 }
 0xe8c   :  { %8109 = vmatprep.subr.bf16.mxu0 %v13378_v16 }
 0xe8f   :  { %8111 = vmatpush1.bf16.msra.mxu0 %v13379_v10 }
 0xe90   :  { %8113 = vmatprep.subr.bf16.mxu0 %v13380_v46 }
 0xe93   :  { %8115 = vmatpush1.bf16.msra.mxu0 %v13381_v42 }
 0xe94   :  { %8117 = vmatprep.subr.bf16.mxu0 %v13382_v34 }
 0xe97   :  { %8119 = vmatpush1.bf16.msra.mxu0 %v13383_v23 }
 0xe98   :  { %8121 = vmatprep.subr.bf16.mxu0 %v13384_v43 }
 0xe9b   :  { %8123 = vmatpush1.bf16.msra.mxu0 %v13385_v49 }
 0xe9c   :  { %8125 = vmatprep.subr.bf16.mxu0 %v13386_v5 }
 0xe9f   :  { %8127 = vmatpush1.bf16.msra.mxu0 %v13387_v48 }
 0xea0   :  { %8257 = vmatprep.subr.bf16.mxu0 %v13354_v53 }
 0xef5   :  { %v4114_v57 = vpop.f32.mrb[30].mxu0  ;;  %v4185_v36 = vpop.f32.mrb[50].mxu1 }
 0xef6   :  { %v8870_v46 = vadd.f32 %v4114_v57, %v13388_v24  ;;  %v4116_v10 = vpop.f32.mrb[31].mxu0  ;;  %v4187_v42 = vpop.f32.mrb[51].mxu1  ;;  %v4275_v53 = vadd.f32 %v4185_v36, %v11204_v2  ;;  %v13390_v57 = vld [vmem:[#allocation112_spill] sm:$0xff] }
 0xef7   :  { %v4283_v34 = vadd.f32 %v4187_v42, %v13389_v60  ;;  %v8871_v23 = vadd.f32 %v4116_v10, %v11197_v55 }
 0xef8   :  { %v5511_v12 = vmul.f32 -1.442695, %v8870_v46 }
 0xef9   :  { %v5512_v43 = vmul.f32 -1.442695, %v8871_v23  ;;  %v5513_v42 = vmul.f32 -1.442695, %v4283_v34 }
 0xefa   :  { %9127 = vpow2.f32 %v5511_v12 }
 0xefb   :  { %9129 = vpow2.f32 %v5512_v43 }
 0xf04   :  { %v9128_v49 = vpop.eup %9127 }
 0xf05   :  { %v4265_v5 = vadd.f32 1.0, %v9128_v49  ;;  %v9130_v48 = vpop.eup %9129 }
 0xf06   :  { %v4272_v16 = vadd.f32 1.0, %v9130_v48 }
 0xf07   :  { %9131 = vrcp.f32 %v4265_v5  ;;  %v13392_v5 = vld [vmem:[#allocation129_spill] sm:$0xff] }
 0xf08   :  { %9133 = vrcp.f32 %v4272_v16 }
 0xf11   :  { %v9132_v19 = vpop.eup %9131 }
 0xf12   :  { %v4276_v9 = vmul.f32 %v9132_v19, %v4275_v53  ;;  %v9134_v46 = vpop.eup %9133 }
 0xf13   :  { %v4279_v10 = vsub.f32 1.0, %v9134_v46  ;;  %v4281_v60 = vmul.f32 %v9134_v46, %v11438_v13  ;;  %v13412_v13 = vld [vmem:[#allocation69_spill] sm:$0xff] }
 0xf14   :  { %v4277_v24 = vadd.f32 %v4276_v9, %v13390_v57  ;;  %v13393_v57 = vld [vmem:[#allocation130_spill] sm:$0xff] }
 0xf16   :  { %9135 = vtanh.f32 %v4277_v24 }
 0xf17   :  { %9137 = vpow2.f32 %v5513_v42 }
 0xf20   :  { %v9136_v12 = vpop.eup %9135 }
 0xf21   :  { %v4280_v23 = vmul.f32 %v9136_v12, %v4279_v10  ;;  %v9138_v43 = vpop.eup %9137 }
 0xf22   :  { %v4287_v48 = vadd.f32 1.0, %v9138_v43 }
 0xf23   :  { %v11554_v49 = vadd.f32 %v4281_v60, %v4280_v23 }
 0xf24   :  { %9139 = vrcp.f32 %v4287_v48 }
 0xf25   :  { %13391 = vst [vmem:[#allocation12_spill] sm:$0xff] %v11554_v49 }
 0xf2e   :  { %v9140_v24 = vpop.eup %9139 }
 0xf35   :  { %v4256_v36 = vpop.f32.mrb[58].mxu0 }
 0xf36   :  { %v4290_v19 = vadd.f32 %v4256_v36, %v13392_v5  ;;  %v4258_v16 = vpop.f32.mrb[59].mxu0  ;;  %v13395_v5 = vld [vmem:[#allocation92_spill] sm:$0xff] }
 0xf37   :  { %v4297_v9 = vadd.f32 %v4258_v16, %v11194_v62  ;;  %v13397_v16 = vld [vmem:[#allocation99_spill] sm:$0xff] }
 0xf38   :  { %v5514_v34 = vmul.f32 -1.442695, %v4290_v19  ;;  %v13396_v19 = vld [vmem:[#allocation93_spill] sm:$0xff] }
 0xf39   :  { %v4298_v53 = vmul.f32 %v9140_v24, %v4297_v9  ;;  %v13398_v9 = vld [vmem:[#allocation94_spill] sm:$0xff]  ;;  %v13399_v24 = vld [vmem:[#allocation100_spill] sm:$0xff] }
 0xf3a   :  { %9141 = vpow2.f32 %v5514_v34  ;;  %v13400_v34 = vld [vmem:[#allocation95_spill] sm:$0xff] }
 0xf3b   :  { %v4299_v42 = vadd.f32 %v4298_v53, %v13393_v57  ;;  %v13401_v53 = vld [vmem:[#allocation96_spill] sm:$0xff]  ;;  %v13402_v57 = vld [vmem:[#allocation102_spill] sm:$0xff] }
 0xf44   :  { %v9142_v10 = vpop.eup %9141 }
 0xf45   :  { %v4294_v12 = vadd.f32 1.0, %v9142_v10  ;;  %v13404_v10 = vld [vmem:[#allocation101_spill] sm:$0xff] }
 0xf47   :  { %9143 = vrcp.f32 %v4294_v12  ;;  %v13405_v12 = vld [vmem:[#allocation64_spill] sm:$0xff] }
 0xf48   :  { %9145 = vtanh.f32 %v4299_v42  ;;  %v13403_v42 = vld [vmem:[#allocation68_spill] sm:$0xff] }
 0xf51   :  { %v9144_v46 = vpop.eup %9143 }
 0xf52   :  { %v4301_v23 = vsub.f32 1.0, %v9144_v46  ;;  %v9146_v60 = vpop.eup %9145  ;;  %v4303_v48 = vmul.f32 %v9144_v46, %v11444_v47  ;;  %v13406_v46 = vld [vmem:[#allocation72_spill] sm:$0xff] }
 0xf53   :  { %v13411_v47 = vld [vmem:[#allocation104_spill] sm:$0xff] }
 0xf54   :  { %v4302_v43 = vmul.f32 %v9146_v60, %v4301_v23  ;;  %v13407_v23 = vld [vmem:[#allocation71_spill] sm:$0xff]  ;;  %v13408_v60 = vld [vmem:[#allocation17_spill] sm:$0xff] }
 0xf56   :  { %v11560_v36 = vadd.f32 %v4303_v48, %v4302_v43  ;;  %v13409_v43 = vld [vmem:[#allocation74_spill] sm:$0xff]  ;;  %v13410_v48 = vld [vmem:[#allocation65_spill] sm:$0xff] }
 0xf58   :  { %13394 = vst [vmem:[#allocation14_spill] sm:$0xff] %v11560_v36  ;;  %4371 = vmatprep.mubr.f32.mxu0 %v11560_v36  ;;  %4442 = vmatprep.mubr.f32.mxu1 %v11560_v36 }
 0xf59   :  { %4372 = vmatmul.mubr.f32.vlgmr.msra.gmra.mrb[32].mxu0 %v11554_v49  ;;  %4443 = vmatmul.mubr.f32.vlgmr.msra.gmra.mrb[52].mxu1 %v11554_v49 }
 0xf5a   :  { %8195 = vmatpush1.bf16.msra.mxu1 %v13207_v40  ;;  %4513 = vmatprep.mubr.f32.mxu1 %v11560_v36 }
 0xf5b   :  { %8197 = vmatprep.subr.bf16.mxu1 %v13208_v37  ;;  %8259 = vmatpush1.bf16.msra.mxu0 %v13357_v51  ;;  %v13443_v51 = vld [vmem:[#allocation84_spill] sm:$0xff] }
 0xf5c   :  { %8261 = vmatprep.subr.bf16.mxu0 %v13358_v44  ;;  %v13442_v44 = vld [vmem:[#allocation40_spill] sm:$0xff] }
 0xf5e   :  { %8199 = vmatpush1.bf16.msra.mxu1 %v13209_v32 }
 0xf5f   :  { %8201 = vmatprep.subr.bf16.mxu1 %v13210_v28  ;;  %8263 = vmatpush1.bf16.msra.mxu0 %v13359_v11  ;;  %v13441_v11 = vld [vmem:[#allocation39_spill] sm:$0xff] }
 0xf60   :  { %8265 = vmatprep.subr.bf16.mxu0 %v13360_v22  ;;  %v13440_v22 = vld [vmem:[#allocation83_spill] sm:$0xff] }
 0xf62   :  { %8203 = vmatpush1.bf16.msra.mxu1 %v13211_v20 }
 0xf63   :  { %8205 = vmatprep.subr.bf16.mxu1 %v13212_v26  ;;  %8267 = vmatpush1.bf16.msra.mxu0 %v13361_v63  ;;  %v13439_v63 = vld [vmem:[#allocation82_spill] sm:$0xff] }
 0xf64   :  { %8269 = vmatprep.subr.bf16.mxu0 %v13362_v1  ;;  %v13438_v1 = vld [vmem:[#allocation36_spill] sm:$0xff] }
 0xf66   :  { %8207 = vmatpush1.bf16.msra.mxu1 %v13213_v45 }
 0xf67   :  { %8209 = vmatprep.subr.bf16.mxu1 %v13214_v61  ;;  %8271 = vmatpush1.bf16.msra.mxu0 %v13363_v6  ;;  %v13437_v6 = vld [vmem:[#allocation35_spill] sm:$0xff] }
 0xf68   :  { %8273 = vmatprep.subr.bf16.mxu0 %v13364_v7  ;;  %v13436_v7 = vld [vmem:[#allocation81_spill] sm:$0xff] }
 0xf6a   :  { %8211 = vmatpush1.bf16.msra.mxu1 %v13215_v15 }
 0xf6b   :  { %8213 = vmatprep.subr.bf16.mxu1 %v13216_v17  ;;  %8275 = vmatpush1.bf16.msra.mxu0 %v13365_v35  ;;  %v13435_v35 = vld [vmem:[#allocation80_spill] sm:$0xff] }
 0xf6c   :  { %8277 = vmatprep.subr.bf16.mxu0 %v13366_v56  ;;  %v13434_v56 = vld [vmem:[#allocation32_spill] sm:$0xff] }
 0xf6e   :  { %8215 = vmatpush1.bf16.msra.mxu1 %v13217_v50 }
 0xf6f   :  { %8217 = vmatprep.subr.bf16.mxu1 %v13218_v31  ;;  %8279 = vmatpush1.bf16.msra.mxu0 %v13367_v52  ;;  %v13433_v52 = vld [vmem:[#allocation31_spill] sm:$0xff] }
 0xf70   :  { %8281 = vmatprep.subr.bf16.mxu0 %v13368_v41  ;;  %v13432_v41 = vld [vmem:[#allocation79_spill] sm:$0xff] }
 0xf72   :  { %8219 = vmatpush1.bf16.msra.mxu1 %v13219_v59 }
 0xf73   :  { %8221 = vmatprep.subr.bf16.mxu1 %v13220_v21  ;;  %8283 = vmatpush1.bf16.msra.mxu0 %v13369_v54  ;;  %v13431_v54 = vld [vmem:[#allocation78_spill] sm:$0xff] }
 0xf74   :  { %8285 = vmatprep.subr.bf16.mxu0 %v13370_v38  ;;  %v13430_v38 = vld [vmem:[#allocation28_spill] sm:$0xff] }
 0xf76   :  { %8223 = vmatpush1.bf16.msra.mxu1 %v13221_v25 }
 0xf77   :  { %8225 = vmatprep.subr.bf16.mxu1 %v13222_v39  ;;  %8287 = vmatpush1.bf16.msra.mxu0 %v13371_v3  ;;  %v13429_v3 = vld [vmem:[#allocation27_spill] sm:$0xff] }
 0xf78   :  { %8289 = vmatprep.subr.bf16.mxu0 %v13372_v33  ;;  %v13428_v33 = vld [vmem:[#allocation77_spill] sm:$0xff] }
 0xf7a   :  { %8227 = vmatpush1.bf16.msra.mxu1 %v13223_v29 }
 0xf7b   :  { %8229 = vmatprep.subr.bf16.mxu1 %v13224_v58  ;;  %8291 = vmatpush1.bf16.msra.mxu0 %v13373_v4  ;;  %v13427_v4 = vld [vmem:[#allocation76_spill] sm:$0xff] }
 0xf7c   :  { %8293 = vmatprep.subr.bf16.mxu0 %v13374_v14  ;;  %v13425_v14 = vld [vmem:[#allocation97_spill] sm:$0xff] }
 0xf7e   :  { %8231 = vmatpush1.bf16.msra.mxu1 %v13225_v27 }
 0xf7f   :  { %8233 = vmatprep.subr.bf16.mxu1 %v13226_v18  ;;  %8295 = vmatpush1.bf16.msra.mxu0 %v13375_v0  ;;  %v13424_v0 = vld [vmem:[#allocation66_spill] sm:$0xff] }
 0xf80   :  { %8297 = vmatprep.subr.bf16.mxu0 %v13376_v8  ;;  %v13421_v8 = vld [vmem:[#allocation70_spill] sm:$0xff] }
 0xf82   :  { %8235 = vmatpush1.bf16.msra.mxu1 %v13227_v30 }
 0xf83   :  { %8237 = vmatprep.subr.bf16.mxu1 %v13395_v5  ;;  %8299 = vmatpush1.bf16.msra.mxu0 %v13396_v19  ;;  %v13420_v19 = vld [vmem:[#allocation23_spill] sm:$0xff] }
 0xf84   :  { %8301 = vmatprep.subr.bf16.mxu0 %v13397_v16  ;;  %v13417_v16 = vld [vmem:[#allocation48_spill] sm:$0xff] }
 0xf86   :  { %8239 = vmatpush1.bf16.msra.mxu1 %v13398_v9 }
 0xf87   :  { %8241 = vmatprep.subr.bf16.mxu1 %v13399_v24  ;;  %8303 = vmatpush1.bf16.msra.mxu0 %v13400_v34  ;;  %v13414_v34 = vld [vmem:[#allocation106_spill] sm:$0xff]  ;;  %v13450_v24 = vld [vmem:[#allocation113_spill] sm:$0xff] }
 0xf88   :  { %8305 = vmatprep.subr.bf16.mxu0 %v13401_v53  ;;  %v13413_v53 = vld [vmem:[#allocation103_spill] sm:$0xff] }
 0xf8a   :  { %8243 = vmatpush1.bf16.msra.mxu1 %v13402_v57  ;;  %v13449_v57 = vld [vmem:[#allocation135_spill] sm:$0xff] }
 0xf8b   :  { %8245 = vmatprep.subr.bf16.mxu1 %v13403_v42  ;;  %8307 = vmatpush1.bf16.msra.mxu0 %v13404_v10  ;;  %v13415_v10 = vld [vmem:[#allocation73_spill] sm:$0xff] }
 0xf8c   :  { %8309 = vmatprep.subr.bf16.mxu0 %v13405_v12  ;;  %v13416_v12 = vld [vmem:[#allocation105_spill] sm:$0xff] }
 0xf8e   :  { %8247 = vmatpush1.bf16.msra.mxu1 %v13406_v46 }
 0xf8f   :  { %8249 = vmatprep.subr.bf16.mxu1 %v13407_v23  ;;  %8311 = vmatpush1.bf16.msra.mxu0 %v13408_v60  ;;  %v13418_v60 = vld [vmem:[#allocation20_spill] sm:$0xff]  ;;  %v13448_v23 = vld [vmem:[#allocation87_spill] sm:$0xff] }
 0xf90   :  { %8313 = vmatprep.subr.bf16.mxu0 %v13409_v43  ;;  %v13419_v43 = vld [vmem:[#allocation75_spill] sm:$0xff] }
 0xf92   :  { %8251 = vmatpush1.bf16.msra.mxu1 %v13410_v48  ;;  %v13447_v48 = vld [vmem:[#allocation86_spill] sm:$0xff] }
 0xf93   :  { %8253 = vmatprep.subr.bf16.mxu1 %v13411_v47  ;;  %8315 = vmatpush1.bf16.msra.mxu0 %v13412_v13  ;;  %v13422_v13 = vld [vmem:[#allocation9_spill] sm:$0xff]  ;;  %v13446_v47 = vld [vmem:[#allocation44_spill] sm:$0xff] }
 0xf94   :  { %8317 = vmatprep.subr.bf16.mxu0 %v13413_v53  ;;  %v13423_v53 = vld [vmem:[#allocation67_spill] sm:$0xff] }
 0xf96   :  { %8255 = vmatpush1.bf16.msra.mxu1 %v13414_v34  ;;  %v13445_v34 = vld [vmem:[#allocation43_spill] sm:$0xff] }
 0xf97   :  { %8321 = vmatprep.subr.bf16.mxu1 %v13415_v10  ;;  %8319 = vmatpush1.bf16.msra.mxu0 %v13416_v12  ;;  %v13426_v12 = vld [vmem:[#allocation24_spill] sm:$0xff] }
 0xf98   :  { %8385 = vmatprep.subr.bf16.mxu0 %v13417_v16  ;;  %v13444_v16 = vld [vmem:[#allocation85_spill] sm:$0xff] }
 0xf99   :  { %4514 = vmatmul.mubr.f32.vlgmr.msra.gmra.mrb[54].mxu1 %v11554_v49 }
 0xf9a   :  { %8323 = vmatpush1.bf16.msra.mxu1 %v13418_v60 }
 0xf9b   :  { %8325 = vmatprep.subr.bf16.mxu1 %v13419_v43 }
 0xf9e   :  { %8327 = vmatpush1.bf16.msra.mxu1 %v13420_v19 }
 0xf9f   :  { %8329 = vmatprep.subr.bf16.mxu1 %v13421_v8 }
 0xfa2   :  { %8331 = vmatpush1.bf16.msra.mxu1 %v13422_v13 }
 0xfa3   :  { %8333 = vmatprep.subr.bf16.mxu1 %v13423_v53 }
 0xfa6   :  { %8335 = vmatpush1.bf16.msra.mxu1 %v13424_v0 }
 0xfa7   :  { %8337 = vmatprep.subr.bf16.mxu1 %v13425_v14 }
 0xfaa   :  { %8339 = vmatpush1.bf16.msra.mxu1 %v13426_v12 }
 0xfab   :  { %8341 = vmatprep.subr.bf16.mxu1 %v13427_v4 }
 0xfae   :  { %8343 = vmatpush1.bf16.msra.mxu1 %v13428_v33 }
 0xfaf   :  { %8345 = vmatprep.subr.bf16.mxu1 %v13429_v3 }
 0xfb2   :  { %8347 = vmatpush1.bf16.msra.mxu1 %v13430_v38 }
 0xfb3   :  { %8349 = vmatprep.subr.bf16.mxu1 %v13431_v54 }
 0xfb6   :  { %8351 = vmatpush1.bf16.msra.mxu1 %v13432_v41 }
 0xfb7   :  { %8353 = vmatprep.subr.bf16.mxu1 %v13433_v52 }
 0xfba   :  { %8355 = vmatpush1.bf16.msra.mxu1 %v13434_v56 }
 0xfbb   :  { %8357 = vmatprep.subr.bf16.mxu1 %v13435_v35 }
 0xfbe   :  { %8359 = vmatpush1.bf16.msra.mxu1 %v13436_v7 }
 0xfbf   :  { %8361 = vmatprep.subr.bf16.mxu1 %v13437_v6 }
 0xfc2   :  { %8363 = vmatpush1.bf16.msra.mxu1 %v13438_v1 }
 0xfc3   :  { %8365 = vmatprep.subr.bf16.mxu1 %v13439_v63 }
 0xfc6   :  { %8367 = vmatpush1.bf16.msra.mxu1 %v13440_v22 }
 0xfc7   :  { %8369 = vmatprep.subr.bf16.mxu1 %v13441_v11 }
 0xfca   :  { %8371 = vmatpush1.bf16.msra.mxu1 %v13442_v44 }
 0xfcb   :  { %8373 = vmatprep.subr.bf16.mxu1 %v13443_v51 }
 0xfce   :  { %8375 = vmatpush1.bf16.msra.mxu1 %v13444_v16 }
 0xfcf   :  { %8377 = vmatprep.subr.bf16.mxu1 %v13445_v34 }
 0xfd2   :  { %8379 = vmatpush1.bf16.msra.mxu1 %v13446_v47 }
 0xfd3   :  { %8381 = vmatprep.subr.bf16.mxu1 %v13447_v48 }
 0xfd6   :  { %8383 = vmatpush1.bf16.msra.mxu1 %v13448_v23 }
 0xfd7   :  { %8513 = vmatprep.subr.bf16.mxu1 %v13415_v10 }
0x102c   :  { %v4373_v46 = vpop.f32.mrb[32].mxu0  ;;  %v4444_v42 = vpop.f32.mrb[52].mxu1 }
0x102d   :  { %v8872_v11 = vadd.f32 %v4373_v46, %v13449_v57  ;;  %v4375_v22 = vpop.f32.mrb[33].mxu0  ;;  %v4446_v44 = vpop.f32.mrb[53].mxu1  ;;  %v4534_v10 = vadd.f32 %v4444_v42, %v11204_v2  ;;  %v13451_v46 = vld [vmem:[#allocation114_spill] sm:$0xff] }
0x102e   :  { %v4542_v51 = vadd.f32 %v4446_v44, %v13450_v24  ;;  %v8873_v16 = vadd.f32 %v4375_v22, %v11197_v55 }
0x102f   :  { %v5515_v9 = vmul.f32 -1.442695, %v8872_v11 }
0x1030   :  { %v5516_v34 = vmul.f32 -1.442695, %v8873_v16  ;;  %v5517_v44 = vmul.f32 -1.442695, %v4542_v51 }
0x1031   :  { %9147 = vpow2.f32 %v5515_v9 }
0x1032   :  { %9149 = vpow2.f32 %v5516_v34 }
0x103b   :  { %v9148_v47 = vpop.eup %9147 }
0x103c   :  { %v4524_v48 = vadd.f32 1.0, %v9148_v47  ;;  %v9150_v23 = vpop.eup %9149 }
0x103d   :  { %v4531_v63 = vadd.f32 1.0, %v9150_v23 }
0x103e   :  { %9151 = vrcp.f32 %v4524_v48  ;;  %v13452_v48 = vld [vmem:[#allocation127_spill] sm:$0xff] }
0x103f   :  { %9153 = vrcp.f32 %v4531_v63 }
0x1048   :  { %v9152_v1 = vpop.eup %9151 }
0x1049   :  { %v4535_v5 = vmul.f32 %v9152_v1, %v4534_v10  ;;  %v9154_v11 = vpop.eup %9153 }
0x104a   :  { %v4538_v22 = vsub.f32 1.0, %v9154_v11  ;;  %v4540_v24 = vmul.f32 %v9154_v11, %v11554_v49  ;;  %v13471_v49 = vld [vmem:[#allocation44_spill] sm:$0xff] }
0x104b   :  { %v4536_v57 = vadd.f32 %v4535_v5, %v13451_v46  ;;  %v13453_v46 = vld [vmem:[#allocation128_spill] sm:$0xff] }
0x104d   :  { %9155 = vtanh.f32 %v4536_v57 }
0x104e   :  { %9157 = vpow2.f32 %v5517_v44 }
0x1057   :  { %v9156_v9 = vpop.eup %9155 }
0x1058   :  { %v4539_v16 = vmul.f32 %v9156_v9, %v4538_v22  ;;  %v9158_v34 = vpop.eup %9157 }
0x1059   :  { %v4546_v23 = vadd.f32 1.0, %v9158_v34 }
0x105a   :  { %v11670_v47 = vadd.f32 %v4540_v24, %v4539_v16 }
0x105b   :  { %9159 = vrcp.f32 %v4546_v23 }
0x1065   :  { %v9160_v57 = vpop.eup %9159 }
0x106c   :  { %v4515_v42 = vpop.f32.mrb[54].mxu1 }
0x106d   :  { %v4549_v1 = vadd.f32 %v4515_v42, %v13452_v48  ;;  %v4517_v63 = vpop.f32.mrb[55].mxu1  ;;  %v13454_v48 = vld [vmem:[#allocation92_spill] sm:$0xff] }
0x106e   :  { %v4556_v5 = vadd.f32 %v4517_v63, %v11194_v62  ;;  %v13456_v63 = vld [vmem:[#allocation82_spill] sm:$0xff] }
0x106f   :  { %v5518_v51 = vmul.f32 -1.442695, %v4549_v1  ;;  %v13455_v1 = vld [vmem:[#allocation36_spill] sm:$0xff] }
0x1070   :  { %v4557_v10 = vmul.f32 %v9160_v57, %v4556_v5  ;;  %v13457_v5 = vld [vmem:[#allocation94_spill] sm:$0xff]  ;;  %v13458_v57 = vld [vmem:[#allocation100_spill] sm:$0xff] }
0x1071   :  { %9161 = vpow2.f32 %v5518_v51  ;;  %v13459_v51 = vld [vmem:[#allocation83_spill] sm:$0xff] }
0x1072   :  { %v4558_v44 = vadd.f32 %v4557_v10, %v13453_v46  ;;  %v13460_v10 = vld [vmem:[#allocation39_spill] sm:$0xff]  ;;  %v13461_v46 = vld [vmem:[#allocation102_spill] sm:$0xff] }
0x107b   :  { %v9162_v22 = vpop.eup %9161 }
0x107c   :  { %v4553_v9 = vadd.f32 1.0, %v9162_v22  ;;  %v13463_v22 = vld [vmem:[#allocation40_spill] sm:$0xff] }
0x107e   :  { %9163 = vrcp.f32 %v4553_v9  ;;  %v13464_v9 = vld [vmem:[#allocation84_spill] sm:$0xff] }
0x107f   :  { %9165 = vtanh.f32 %v4558_v44  ;;  %v13462_v44 = vld [vmem:[#allocation68_spill] sm:$0xff] }
0x1088   :  { %v9164_v11 = vpop.eup %9163 }
0x1089   :  { %v4560_v16 = vsub.f32 1.0, %v9164_v11  ;;  %v9166_v24 = vpop.eup %9165  ;;  %v4562_v23 = vmul.f32 %v9164_v11, %v11560_v36  ;;  %v13465_v11 = vld [vmem:[#allocation72_spill] sm:$0xff] }
0x108a   :  { %v13470_v36 = vld [vmem:[#allocation104_spill] sm:$0xff] }
0x108b   :  { %v4561_v34 = vmul.f32 %v9166_v24, %v4560_v16  ;;  %v13466_v16 = vld [vmem:[#allocation71_spill] sm:$0xff]  ;;  %v13467_v24 = vld [vmem:[#allocation85_spill] sm:$0xff] }
0x108d   :  { %v11676_v42 = vadd.f32 %v4562_v23, %v4561_v34  ;;  %v13468_v34 = vld [vmem:[#allocation43_spill] sm:$0xff]  ;;  %v13469_v23 = vld [vmem:[#allocation65_spill] sm:$0xff] }
0x108f   :  { %4630 = vmatprep.mubr.f32.mxu0 %v11676_v42  ;;  %4701 = vmatprep.mubr.f32.mxu1 %v11676_v42 }
0x1090   :  { %4631 = vmatmul.mubr.f32.vlgmr.msra.gmra.mrb[34].mxu0 %v11670_v47  ;;  %4702 = vmatmul.mubr.f32.vlgmr.msra.gmra.mrb[56].mxu1 %v11670_v47 }
0x1091   :  { %8387 = vmatpush1.bf16.msra.mxu0 %v13207_v40  ;;  %4772 = vmatprep.mubr.f32.mxu0 %v11676_v42 }
0x1092   :  { %8389 = vmatprep.subr.bf16.mxu0 %v13208_v37  ;;  %8515 = vmatpush1.bf16.msra.mxu1 %v13418_v60  ;;  %v13502_v60 = vld [vmem:[#allocation64_spill] sm:$0xff] }
0x1093   :  { %8517 = vmatprep.subr.bf16.mxu1 %v13419_v43  ;;  %v13501_v43 = vld [vmem:[#allocation101_spill] sm:$0xff] }
0x1095   :  { %8391 = vmatpush1.bf16.msra.mxu0 %v13209_v32 }
0x1096   :  { %8393 = vmatprep.subr.bf16.mxu0 %v13210_v28  ;;  %8519 = vmatpush1.bf16.msra.mxu1 %v13420_v19  ;;  %v13500_v19 = vld [vmem:[#allocation96_spill] sm:$0xff] }
0x1097   :  { %8521 = vmatprep.subr.bf16.mxu1 %v13421_v8  ;;  %v13499_v8 = vld [vmem:[#allocation95_spill] sm:$0xff] }
0x1099   :  { %8395 = vmatpush1.bf16.msra.mxu0 %v13211_v20 }
0x109a   :  { %8397 = vmatprep.subr.bf16.mxu0 %v13212_v26  ;;  %8523 = vmatpush1.bf16.msra.mxu1 %v13422_v13  ;;  %v13498_v13 = vld [vmem:[#allocation99_spill] sm:$0xff] }
0x109b   :  { %8525 = vmatprep.subr.bf16.mxu1 %v13423_v53  ;;  %v13497_v53 = vld [vmem:[#allocation93_spill] sm:$0xff] }
0x109d   :  { %8399 = vmatpush1.bf16.msra.mxu0 %v13213_v45 }
0x109e   :  { %8401 = vmatprep.subr.bf16.mxu0 %v13214_v61  ;;  %8527 = vmatpush1.bf16.msra.mxu1 %v13424_v0  ;;  %v13496_v0 = vld [vmem:[#allocation63_spill] sm:$0xff] }
0x109f   :  { %8529 = vmatprep.subr.bf16.mxu1 %v13425_v14  ;;  %v13495_v14 = vld [vmem:[#allocation60_spill] sm:$0xff] }
0x10a1   :  { %8403 = vmatpush1.bf16.msra.mxu0 %v13215_v15 }
0x10a2   :  { %8405 = vmatprep.subr.bf16.mxu0 %v13216_v17  ;;  %8531 = vmatpush1.bf16.msra.mxu1 %v13426_v12  ;;  %v13494_v12 = vld [vmem:[#allocation57_spill] sm:$0xff] }
0x10a3   :  { %8533 = vmatprep.subr.bf16.mxu1 %v13427_v4  ;;  %v13493_v4 = vld [vmem:[#allocation53_spill] sm:$0xff] }
0x10a5   :  { %8407 = vmatpush1.bf16.msra.mxu0 %v13217_v50 }
0x10a6   :  { %8409 = vmatprep.subr.bf16.mxu0 %v13218_v31  ;;  %8535 = vmatpush1.bf16.msra.mxu1 %v13428_v33  ;;  %v13492_v33 = vld [vmem:[#allocation49_spill] sm:$0xff] }
0x10a7   :  { %8537 = vmatprep.subr.bf16.mxu1 %v13429_v3  ;;  %v13491_v3 = vld [vmem:[#allocation45_spill] sm:$0xff] }
0x10a9   :  { %8411 = vmatpush1.bf16.msra.mxu0 %v13219_v59 }
0x10aa   :  { %8413 = vmatprep.subr.bf16.mxu0 %v13220_v21  ;;  %8539 = vmatpush1.bf16.msra.mxu1 %v13430_v38  ;;  %v13490_v38 = vld [vmem:[#allocation41_spill] sm:$0xff] }
0x10ab   :  { %8541 = vmatprep.subr.bf16.mxu1 %v13431_v54  ;;  %v13489_v54 = vld [vmem:[#allocation37_spill] sm:$0xff] }
0x10ad   :  { %8415 = vmatpush1.bf16.msra.mxu0 %v13221_v25 }
0x10ae   :  { %8417 = vmatprep.subr.bf16.mxu0 %v13222_v39  ;;  %8543 = vmatpush1.bf16.msra.mxu1 %v13432_v41  ;;  %v13488_v41 = vld [vmem:[#allocation33_spill] sm:$0xff] }
0x10af   :  { %8545 = vmatprep.subr.bf16.mxu1 %v13433_v52  ;;  %v13487_v52 = vld [vmem:[#allocation29_spill] sm:$0xff] }
0x10b1   :  { %8419 = vmatpush1.bf16.msra.mxu0 %v13223_v29 }
0x10b2   :  { %8421 = vmatprep.subr.bf16.mxu0 %v13224_v58  ;;  %8547 = vmatpush1.bf16.msra.mxu1 %v13434_v56  ;;  %v13486_v56 = vld [vmem:[#allocation25_spill] sm:$0xff] }
0x10b3   :  { %8549 = vmatprep.subr.bf16.mxu1 %v13435_v35  ;;  %v13484_v35 = vld [vmem:[#allocation18_spill] sm:$0xff] }
0x10b5   :  { %8423 = vmatpush1.bf16.msra.mxu0 %v13225_v27 }
0x10b6   :  { %8425 = vmatprep.subr.bf16.mxu0 %v13226_v18  ;;  %8551 = vmatpush1.bf16.msra.mxu1 %v13436_v7  ;;  %v13483_v7 = vld [vmem:[#allocation15_spill] sm:$0xff] }
0x10b7   :  { %8553 = vmatprep.subr.bf16.mxu1 %v13437_v6  ;;  %v13480_v6 = vld [vmem:[#allocation55_spill] sm:$0xff] }
0x10b9   :  { %8427 = vmatpush1.bf16.msra.mxu0 %v13227_v30 }
0x10ba   :  { %8429 = vmatprep.subr.bf16.mxu0 %v13454_v48  ;;  %8555 = vmatpush1.bf16.msra.mxu1 %v13455_v1  ;;  %v13479_v1 = vld [vmem:[#allocation90_spill] sm:$0xff] }
0x10bb   :  { %8557 = vmatprep.subr.bf16.mxu1 %v13456_v63  ;;  %v13476_v63 = vld [vmem:[#allocation48_spill] sm:$0xff] }
0x10bd   :  { %8431 = vmatpush1.bf16.msra.mxu0 %v13457_v5 }
0x10be   :  { %8433 = vmatprep.subr.bf16.mxu0 %v13458_v57  ;;  %8559 = vmatpush1.bf16.msra.mxu1 %v13459_v51  ;;  %v13473_v51 = vld [vmem:[#allocation106_spill] sm:$0xff]  ;;  %v13509_v57 = vld [vmem:[#allocation111_spill] sm:$0xff] }
0x10bf   :  { %8561 = vmatprep.subr.bf16.mxu1 %v13460_v10  ;;  %v13472_v10 = vld [vmem:[#allocation86_spill] sm:$0xff] }
0x10c1   :  { %8435 = vmatpush1.bf16.msra.mxu0 %v13461_v46  ;;  %v13508_v46 = vld [vmem:[#allocation135_spill] sm:$0xff] }
0x10c2   :  { %8437 = vmatprep.subr.bf16.mxu0 %v13462_v44  ;;  %8563 = vmatpush1.bf16.msra.mxu1 %v13463_v22  ;;  %v13474_v22 = vld [vmem:[#allocation47_spill] sm:$0xff] }
0x10c3   :  { %8565 = vmatprep.subr.bf16.mxu1 %v13464_v9  ;;  %v13475_v9 = vld [vmem:[#allocation87_spill] sm:$0xff] }
0x10c5   :  { %8439 = vmatpush1.bf16.msra.mxu0 %v13465_v11 }
0x10c6   :  { %8441 = vmatprep.subr.bf16.mxu0 %v13466_v16  ;;  %8567 = vmatpush1.bf16.msra.mxu1 %v13467_v24  ;;  %v13477_v24 = vld [vmem:[#allocation88_spill] sm:$0xff]  ;;  %v13507_v16 = vld [vmem:[#allocation105_spill] sm:$0xff] }
0x10c7   :  { %8569 = vmatprep.subr.bf16.mxu1 %v13468_v34  ;;  %v13478_v34 = vld [vmem:[#allocation51_spill] sm:$0xff] }
0x10c9   :  { %8443 = vmatpush1.bf16.msra.mxu0 %v13469_v23  ;;  %v13506_v23 = vld [vmem:[#allocation103_spill] sm:$0xff] }
0x10ca   :  { %8445 = vmatprep.subr.bf16.mxu0 %v13470_v36  ;;  %8571 = vmatpush1.bf16.msra.mxu1 %v13471_v49  ;;  %v13481_v49 = vld [vmem:[#allocation11_spill] sm:$0xff]  ;;  %v13505_v36 = vld [vmem:[#allocation69_spill] sm:$0xff] }
0x10cb   :  { %8573 = vmatprep.subr.bf16.mxu1 %v13472_v10  ;;  %v13482_v10 = vld [vmem:[#allocation13_spill] sm:$0xff] }
0x10cd   :  { %8447 = vmatpush1.bf16.msra.mxu0 %v13473_v51  ;;  %v13504_v51 = vld [vmem:[#allocation74_spill] sm:$0xff] }
0x10ce   :  { %8449 = vmatprep.subr.bf16.mxu0 %v13474_v22  ;;  %8575 = vmatpush1.bf16.msra.mxu1 %v13475_v9  ;;  %v13485_v9 = vld [vmem:[#allocation21_spill] sm:$0xff] }
0x10cf   :  { %8577 = vmatprep.subr.bf16.mxu1 %v13476_v63  ;;  %v13503_v63 = vld [vmem:[#allocation17_spill] sm:$0xff] }
0x10d0   :  { %4773 = vmatmul.mubr.f32.vlgmr.msra.gmra.mrb[60].mxu0 %v11670_v47 }
0x10d1   :  { %8451 = vmatpush1.bf16.msra.mxu0 %v13477_v24 }
0x10d2   :  { %8453 = vmatprep.subr.bf16.mxu0 %v13478_v34 }
0x10d5   :  { %8455 = vmatpush1.bf16.msra.mxu0 %v13479_v1 }
0x10d6   :  { %8457 = vmatprep.subr.bf16.mxu0 %v13480_v6 }
0x10d9   :  { %8459 = vmatpush1.bf16.msra.mxu0 %v13481_v49 }
0x10da   :  { %8461 = vmatprep.subr.bf16.mxu0 %v13482_v10 }
0x10dd   :  { %8463 = vmatpush1.bf16.msra.mxu0 %v13483_v7 }
0x10de   :  { %8465 = vmatprep.subr.bf16.mxu0 %v13484_v35 }
0x10e1   :  { %8467 = vmatpush1.bf16.msra.mxu0 %v13485_v9 }
0x10e2   :  { %8469 = vmatprep.subr.bf16.mxu0 %v13486_v56 }
0x10e5   :  { %8471 = vmatpush1.bf16.msra.mxu0 %v13487_v52 }
0x10e6   :  { %8473 = vmatprep.subr.bf16.mxu0 %v13488_v41 }
0x10e9   :  { %8475 = vmatpush1.bf16.msra.mxu0 %v13489_v54 }
0x10ea   :  { %8477 = vmatprep.subr.bf16.mxu0 %v13490_v38 }
0x10ed   :  { %8479 = vmatpush1.bf16.msra.mxu0 %v13491_v3 }
0x10ee   :  { %8481 = vmatprep.subr.bf16.mxu0 %v13492_v33 }
0x10f1   :  { %8483 = vmatpush1.bf16.msra.mxu0 %v13493_v4 }
0x10f2   :  { %8485 = vmatprep.subr.bf16.mxu0 %v13494_v12 }
0x10f5   :  { %8487 = vmatpush1.bf16.msra.mxu0 %v13495_v14 }
0x10f6   :  { %8489 = vmatprep.subr.bf16.mxu0 %v13496_v0 }
0x10f9   :  { %8491 = vmatpush1.bf16.msra.mxu0 %v13497_v53 }
0x10fa   :  { %8493 = vmatprep.subr.bf16.mxu0 %v13498_v13 }
0x10fd   :  { %8495 = vmatpush1.bf16.msra.mxu0 %v13499_v8 }
0x10fe   :  { %8497 = vmatprep.subr.bf16.mxu0 %v13500_v19 }
0x1101   :  { %8499 = vmatpush1.bf16.msra.mxu0 %v13501_v43 }
0x1102   :  { %8501 = vmatprep.subr.bf16.mxu0 %v13502_v60 }
0x1105   :  { %8503 = vmatpush1.bf16.msra.mxu0 %v13503_v63 }
0x1106   :  { %8505 = vmatprep.subr.bf16.mxu0 %v13504_v51 }
0x1109   :  { %8507 = vmatpush1.bf16.msra.mxu0 %v13505_v36 }
0x110a   :  { %8509 = vmatprep.subr.bf16.mxu0 %v13506_v23 }
0x110d   :  { %8511 = vmatpush1.bf16.msra.mxu0 %v13507_v16 }
0x110e   :  { %8641 = vmatprep.subr.bf16.mxu0 %v13474_v22 }
0x1163   :  { %v4632_v11 = vpop.f32.mrb[34].mxu0  ;;  %v4703_v44 = vpop.f32.mrb[56].mxu1 }
0x1164   :  { %v8874_v19 = vadd.f32 %v4632_v11, %v13508_v46  ;;  %v4634_v8 = vpop.f32.mrb[35].mxu0  ;;  %v4705_v43 = vpop.f32.mrb[57].mxu1  ;;  %v4793_v22 = vadd.f32 %v4703_v44, %v11204_v2  ;;  %v13510_v11 = vld [vmem:[#allocation116_spill] sm:$0xff] }
0x1165   :  { %v4801_v60 = vadd.f32 %v4705_v43, %v13509_v57  ;;  %v8875_v63 = vadd.f32 %v4634_v8, %v11197_v55 }
0x1166   :  { %v5519_v5 = vmul.f32 -1.442695, %v8874_v19 }
0x1167   :  { %v5520_v51 = vmul.f32 -1.442695, %v8875_v63  ;;  %v5521_v43 = vmul.f32 -1.442695, %v4801_v60 }
0x1168   :  { %9167 = vpow2.f32 %v5519_v5 }
0x1169   :  { %9169 = vpow2.f32 %v5520_v51 }
0x1172   :  { %v9168_v36 = vpop.eup %9167 }
0x1173   :  { %v4783_v23 = vadd.f32 1.0, %v9168_v36  ;;  %v9170_v16 = vpop.eup %9169 }
0x1174   :  { %v4790_v13 = vadd.f32 1.0, %v9170_v16 }
0x1175   :  { %9171 = vrcp.f32 %v4783_v23  ;;  %v13511_v23 = vld [vmem:[#allocation125_spill] sm:$0xff] }
0x1176   :  { %9173 = vrcp.f32 %v4790_v13 }
0x117f   :  { %v9172_v53 = vpop.eup %9171 }
0x1180   :  { %v4794_v48 = vmul.f32 %v9172_v53, %v4793_v22  ;;  %v9174_v19 = vpop.eup %9173 }
0x1181   :  { %v4797_v8 = vsub.f32 1.0, %v9174_v19  ;;  %v4799_v57 = vmul.f32 %v9174_v19, %v11670_v47 }
0x1182   :  { %v4795_v46 = vadd.f32 %v4794_v48, %v13510_v11  ;;  %v13512_v11 = vld [vmem:[#allocation126_spill] sm:$0xff] }
0x1184   :  { %9175 = vtanh.f32 %v4795_v46 }
0x1185   :  { %9177 = vpow2.f32 %v5521_v43 }
0x118e   :  { %v9176_v5 = vpop.eup %9175 }
0x118f   :  { %v4798_v63 = vmul.f32 %v9176_v5, %v4797_v8  ;;  %v9178_v51 = vpop.eup %9177 }
0x1190   :  { %v4805_v16 = vadd.f32 1.0, %v9178_v51 }
0x1191   :  { %v11786_v36 = vadd.f32 %v4799_v57, %v4798_v63 }
0x1192   :  { %9179 = vrcp.f32 %v4805_v16 }
0x119c   :  { %v9180_v46 = vpop.eup %9179 }
0x11a3   :  { %v4774_v44 = vpop.f32.mrb[60].mxu0 }
0x11a4   :  { %v4808_v53 = vadd.f32 %v4774_v44, %v13511_v23  ;;  %v4776_v13 = vpop.f32.mrb[61].mxu0  ;;  %v13533_v23 = vld [vmem:[#allocation73_spill] sm:$0xff] }
0x11a5   :  { %v4815_v48 = vadd.f32 %v4776_v13, %v11194_v62  ;;  %v13535_v13 = vld [vmem:[#allocation48_spill] sm:$0xff] }
0x11a6   :  { %v5522_v60 = vmul.f32 -1.442695, %v4808_v53  ;;  %v13534_v53 = vld [vmem:[#allocation105_spill] sm:$0xff] }
0x11a7   :  { %v4816_v22 = vmul.f32 %v9180_v46, %v4815_v48  ;;  %v13536_v48 = vld [vmem:[#allocation20_spill] sm:$0xff]  ;;  %v13537_v46 = vld [vmem:[#allocation75_spill] sm:$0xff] }
0x11a8   :  { %9181 = vpow2.f32 %v5522_v60  ;;  %v13538_v60 = vld [vmem:[#allocation23_spill] sm:$0xff] }
0x11a9   :  { %v4817_v43 = vadd.f32 %v4816_v22, %v13512_v11  ;;  %v13539_v22 = vld [vmem:[#allocation70_spill] sm:$0xff]  ;;  %v13540_v11 = vld [vmem:[#allocation9_spill] sm:$0xff] }
0x11b2   :  { %v9182_v8 = vpop.eup %9181 }
0x11b3   :  { %v4812_v5 = vadd.f32 1.0, %v9182_v8  ;;  %v13542_v8 = vld [vmem:[#allocation66_spill] sm:$0xff] }
0x11b5   :  { %9183 = vrcp.f32 %v4812_v5  ;;  %v13543_v5 = vld [vmem:[#allocation97_spill] sm:$0xff] }
0x11b6   :  { %9185 = vtanh.f32 %v4817_v43  ;;  %v13541_v43 = vld [vmem:[#allocation67_spill] sm:$0xff] }
0x11bf   :  { %v9184_v19 = vpop.eup %9183 }
0x11c0   :  { %v4819_v63 = vsub.f32 1.0, %v9184_v19  ;;  %v9186_v57 = vpop.eup %9185  ;;  %v4821_v16 = vmul.f32 %v9184_v19, %v11676_v42  ;;  %v13544_v19 = vld [vmem:[#allocation24_spill] sm:$0xff] }
0x11c2   :  { %v4820_v51 = vmul.f32 %v9186_v57, %v4819_v63  ;;  %v13545_v63 = vld [vmem:[#allocation76_spill] sm:$0xff]  ;;  %v13546_v57 = vld [vmem:[#allocation77_spill] sm:$0xff] }
0x11c4   :  { %v11792_v44 = vadd.f32 %v4821_v16, %v4820_v51  ;;  %v13547_v51 = vld [vmem:[#allocation27_spill] sm:$0xff]  ;;  %v13548_v16 = vld [vmem:[#allocation28_spill] sm:$0xff] }
0x11c6   :  { %4889 = vmatprep.mubr.f32.mxu0 %v11792_v44  ;;  %4960 = vmatprep.mubr.f32.mxu1 %v11792_v44 }
0x11c7   :  { %4890 = vmatmul.mubr.f32.vlgmr.msra.gmra.mrb[36].mxu0 %v11786_v36  ;;  %4961 = vmatmul.mubr.f32.vlgmr.msra.gmra.mrb[58].mxu1 %v11786_v36 }
0x11c8   :  { %8579 = vmatpush1.bf16.msra.mxu1 %v13207_v40  ;;  %5031 = vmatprep.mubr.f32.mxu1 %v11792_v44 }
0x11c9   :  { %8581 = vmatprep.subr.bf16.mxu1 %v13208_v37  ;;  %8643 = vmatpush1.bf16.msra.mxu0 %v13477_v24  ;;  %v13531_v24 = vld [vmem:[#allocation103_spill] sm:$0xff] }
0x11ca   :  { %8645 = vmatprep.subr.bf16.mxu0 %v13478_v34  ;;  %v13532_v34 = vld [vmem:[#allocation106_spill] sm:$0xff] }
0x11cc   :  { %8583 = vmatpush1.bf16.msra.mxu1 %v13209_v32 }
0x11cd   :  { %8585 = vmatprep.subr.bf16.mxu1 %v13210_v28  ;;  %8647 = vmatpush1.bf16.msra.mxu0 %v13479_v1  ;;  %v13528_v1 = vld [vmem:[#allocation65_spill] sm:$0xff] }
0x11ce   :  { %8649 = vmatprep.subr.bf16.mxu0 %v13480_v6  ;;  %v13521_v6 = vld [vmem:[#allocation68_spill] sm:$0xff] }
0x11d0   :  { %8587 = vmatpush1.bf16.msra.mxu1 %v13211_v20 }
0x11d1   :  { %8589 = vmatprep.subr.bf16.mxu1 %v13212_v26  ;;  %8651 = vmatpush1.bf16.msra.mxu0 %v13481_v49  ;;  %v13526_v49 = vld [vmem:[#allocation17_spill] sm:$0xff] }
0x11d2   :  { %8653 = vmatprep.subr.bf16.mxu0 %v13482_v10  ;;  %v13529_v10 = vld [vmem:[#allocation104_spill] sm:$0xff] }
0x11d4   :  { %8591 = vmatpush1.bf16.msra.mxu1 %v13213_v45 }
0x11d5   :  { %8593 = vmatprep.subr.bf16.mxu1 %v13214_v61  ;;  %8655 = vmatpush1.bf16.msra.mxu0 %v13483_v7  ;;  %v13523_v7 = vld [vmem:[#allocation64_spill] sm:$0xff] }
0x11d6   :  { %8657 = vmatprep.subr.bf16.mxu0 %v13484_v35  ;;  %v13525_v35 = vld [vmem:[#allocation71_spill] sm:$0xff] }
0x11d8   :  { %8595 = vmatpush1.bf16.msra.mxu1 %v13215_v15 }
0x11d9   :  { %8597 = vmatprep.subr.bf16.mxu1 %v13216_v17  ;;  %8659 = vmatpush1.bf16.msra.mxu0 %v13485_v9  ;;  %v13530_v9 = vld [vmem:[#allocation69_spill] sm:$0xff] }
0x11da   :  { %8661 = vmatprep.subr.bf16.mxu0 %v13486_v56  ;;  %v13520_v56 = vld [vmem:[#allocation102_spill] sm:$0xff] }
0x11dc   :  { %8599 = vmatpush1.bf16.msra.mxu1 %v13217_v50 }
0x11dd   :  { %8601 = vmatprep.subr.bf16.mxu1 %v13218_v31  ;;  %8663 = vmatpush1.bf16.msra.mxu0 %v13487_v52  ;;  %v13519_v52 = vld [vmem:[#allocation96_spill] sm:$0xff] }
0x11de   :  { %8665 = vmatprep.subr.bf16.mxu0 %v13488_v41  ;;  %v13518_v41 = vld [vmem:[#allocation95_spill] sm:$0xff] }
0x11e0   :  { %8603 = vmatpush1.bf16.msra.mxu1 %v13219_v59 }
0x11e1   :  { %8605 = vmatprep.subr.bf16.mxu1 %v13220_v21  ;;  %8667 = vmatpush1.bf16.msra.mxu0 %v13489_v54  ;;  %v13516_v54 = vld [vmem:[#allocation94_spill] sm:$0xff] }
0x11e2   :  { %8669 = vmatprep.subr.bf16.mxu0 %v13490_v38  ;;  %v13515_v38 = vld [vmem:[#allocation99_spill] sm:$0xff] }
0x11e4   :  { %8607 = vmatpush1.bf16.msra.mxu1 %v13221_v25 }
0x11e5   :  { %8609 = vmatprep.subr.bf16.mxu1 %v13222_v39  ;;  %8671 = vmatpush1.bf16.msra.mxu0 %v13491_v3  ;;  %v13513_v3 = vld [vmem:[#allocation92_spill] sm:$0xff] }
0x11e6   :  { %8673 = vmatprep.subr.bf16.mxu0 %v13492_v33  ;;  %v13514_v33 = vld [vmem:[#allocation93_spill] sm:$0xff] }
0x11e8   :  { %8611 = vmatpush1.bf16.msra.mxu1 %v13223_v29 }
0x11e9   :  { %8613 = vmatprep.subr.bf16.mxu1 %v13224_v58  ;;  %8675 = vmatpush1.bf16.msra.mxu0 %v13493_v4  ;;  %v13517_v4 = vld [vmem:[#allocation100_spill] sm:$0xff] }
0x11ea   :  { %8677 = vmatprep.subr.bf16.mxu0 %v13494_v12  ;;  %v13527_v12 = vld [vmem:[#allocation74_spill] sm:$0xff] }
0x11ec   :  { %8615 = vmatpush1.bf16.msra.mxu1 %v13225_v27 }
0x11ed   :  { %8617 = vmatprep.subr.bf16.mxu1 %v13226_v18  ;;  %8679 = vmatpush1.bf16.msra.mxu0 %v13495_v14  ;;  %v13524_v14 = vld [vmem:[#allocation72_spill] sm:$0xff] }
0x11ee   :  { %8681 = vmatprep.subr.bf16.mxu0 %v13496_v0  ;;  %v13522_v0 = vld [vmem:[#allocation101_spill] sm:$0xff] }
0x11f0   :  { %8619 = vmatpush1.bf16.msra.mxu1 %v13227_v30 }
0x11f1   :  { %8621 = vmatprep.subr.bf16.mxu1 %v13513_v3  ;;  %8683 = vmatpush1.bf16.msra.mxu0 %v13514_v33  ;;  %v13549_v33 = vld [vmem:[#allocation78_spill] sm:$0xff] }
0x11f2   :  { %8685 = vmatprep.subr.bf16.mxu0 %v13515_v38  ;;  %v13550_v38 = vld [vmem:[#allocation79_spill] sm:$0xff] }
0x11f4   :  { %8623 = vmatpush1.bf16.msra.mxu1 %v13516_v54 }
0x11f5   :  { %8625 = vmatprep.subr.bf16.mxu1 %v13517_v4  ;;  %8687 = vmatpush1.bf16.msra.mxu0 %v13518_v41  ;;  %v13551_v41 = vld [vmem:[#allocation31_spill] sm:$0xff] }
0x11f6   :  { %8689 = vmatprep.subr.bf16.mxu0 %v13519_v52  ;;  %v13552_v52 = vld [vmem:[#allocation32_spill] sm:$0xff] }
0x11f8   :  { %8627 = vmatpush1.bf16.msra.mxu1 %v13520_v56 }
0x11f9   :  { %8629 = vmatprep.subr.bf16.mxu1 %v13521_v6  ;;  %8691 = vmatpush1.bf16.msra.mxu0 %v13522_v0  ;;  %v13553_v0 = vld [vmem:[#allocation80_spill] sm:$0xff] }
0x11fa   :  { %8693 = vmatprep.subr.bf16.mxu0 %v13523_v7  ;;  %v13554_v7 = vld [vmem:[#allocation81_spill] sm:$0xff] }
0x11fc   :  { %8631 = vmatpush1.bf16.msra.mxu1 %v13524_v14 }
0x11fd   :  { %8633 = vmatprep.subr.bf16.mxu1 %v13525_v35  ;;  %8695 = vmatpush1.bf16.msra.mxu0 %v13526_v49  ;;  %v13555_v49 = vld [vmem:[#allocation35_spill] sm:$0xff] }
0x11fe   :  { %8697 = vmatprep.subr.bf16.mxu0 %v13527_v12  ;;  %v13556_v12 = vld [vmem:[#allocation36_spill] sm:$0xff] }
0x1200   :  { %8635 = vmatpush1.bf16.msra.mxu1 %v13528_v1 }
0x1201   :  { %8637 = vmatprep.subr.bf16.mxu1 %v13529_v10  ;;  %8699 = vmatpush1.bf16.msra.mxu0 %v13530_v9  ;;  %v13557_v9 = vld [vmem:[#allocation82_spill] sm:$0xff] }
0x1202   :  { %8701 = vmatprep.subr.bf16.mxu0 %v13531_v24  ;;  %v13558_v24 = vld [vmem:[#allocation83_spill] sm:$0xff] }
0x1204   :  { %8639 = vmatpush1.bf16.msra.mxu1 %v13532_v34 }
0x1205   :  { %8705 = vmatprep.subr.bf16.mxu1 %v13533_v23  ;;  %8703 = vmatpush1.bf16.msra.mxu0 %v13534_v53  ;;  %v13559_v23 = vld [vmem:[#allocation39_spill] sm:$0xff]  ;;  %v13560_v53 = vld [vmem:[#allocation40_spill] sm:$0xff] }
0x1206   :  { %8769 = vmatprep.subr.bf16.mxu0 %v13535_v13  ;;  %v13561_v13 = vld [vmem:[#allocation84_spill] sm:$0xff] }
0x1207   :  { %5032 = vmatmul.mubr.f32.vlgmr.msra.gmra.mrb[60].mxu1 %v11786_v36 }
0x1208   :  { %8707 = vmatpush1.bf16.msra.mxu1 %v13536_v48  ;;  %v13562_v48 = vld [vmem:[#allocation85_spill] sm:$0xff] }
0x1209   :  { %8709 = vmatprep.subr.bf16.mxu1 %v13537_v46  ;;  %v13563_v46 = vld [vmem:[#allocation43_spill] sm:$0xff] }
0x120c   :  { %8711 = vmatpush1.bf16.msra.mxu1 %v13538_v60  ;;  %v13564_v60 = vld [vmem:[#allocation44_spill] sm:$0xff] }
0x120d   :  { %8713 = vmatprep.subr.bf16.mxu1 %v13539_v22  ;;  %v13565_v22 = vld [vmem:[#allocation86_spill] sm:$0xff] }
0x1210   :  { %8715 = vmatpush1.bf16.msra.mxu1 %v13540_v11  ;;  %v13566_v11 = vld [vmem:[#allocation87_spill] sm:$0xff] }
0x1211   :  { %8717 = vmatprep.subr.bf16.mxu1 %v13541_v43 }
0x1214   :  { %8719 = vmatpush1.bf16.msra.mxu1 %v13542_v8 }
0x1215   :  { %8721 = vmatprep.subr.bf16.mxu1 %v13543_v5  ;;  %v13567_v5 = vld [vmem:[#allocation135_spill] sm:$0xff] }
0x1218   :  { %8723 = vmatpush1.bf16.msra.mxu1 %v13544_v19 }
0x1219   :  { %8725 = vmatprep.subr.bf16.mxu1 %v13545_v63 }
0x121c   :  { %8727 = vmatpush1.bf16.msra.mxu1 %v13546_v57 }
0x121d   :  { %8729 = vmatprep.subr.bf16.mxu1 %v13547_v51  ;;  %v13568_v51 = vld [vmem:[#allocation109_spill] sm:$0xff] }
0x1220   :  { %8731 = vmatpush1.bf16.msra.mxu1 %v13548_v16 }
0x1221   :  { %8733 = vmatprep.subr.bf16.mxu1 %v13549_v33 }
0x1224   :  { %8735 = vmatpush1.bf16.msra.mxu1 %v13550_v38 }
0x1225   :  { %8737 = vmatprep.subr.bf16.mxu1 %v13551_v41 }
0x1228   :  { %8739 = vmatpush1.bf16.msra.mxu1 %v13552_v52 }
0x1229   :  { %8741 = vmatprep.subr.bf16.mxu1 %v13553_v0 }
0x122c   :  { %8743 = vmatpush1.bf16.msra.mxu1 %v13554_v7 }
0x122d   :  { %8745 = vmatprep.subr.bf16.mxu1 %v13555_v49 }
0x1230   :  { %8747 = vmatpush1.bf16.msra.mxu1 %v13556_v12 }
0x1231   :  { %8749 = vmatprep.subr.bf16.mxu1 %v13557_v9 }
0x1234   :  { %8751 = vmatpush1.bf16.msra.mxu1 %v13558_v24 }
0x1235   :  { %8753 = vmatprep.subr.bf16.mxu1 %v13559_v23  ;;  %v13569_v23 = vld [vmem:[#allocation118_spill] sm:$0xff] }
0x1238   :  { %8755 = vmatpush1.bf16.msra.mxu1 %v13560_v53 }
0x1239   :  { %8757 = vmatprep.subr.bf16.mxu1 %v13561_v13 }
0x123c   :  { %8759 = vmatpush1.bf16.msra.mxu1 %v13562_v48 }
0x123d   :  { %8761 = vmatprep.subr.bf16.mxu1 %v13563_v46 }
0x1240   :  { %8763 = vmatpush1.bf16.msra.mxu1 %v13564_v60 }
0x1241   :  { %8765 = vmatprep.subr.bf16.mxu1 %v13565_v22 }
0x1244   :  { %8767 = vmatpush1.bf16.msra.mxu1 %v13566_v11 }
0x129a   :  { %v4891_v43 = vpop.f32.mrb[36].mxu0  ;;  %v4962_v8 = vpop.f32.mrb[58].mxu1 }
0x129b   :  { %v8876_v19 = vadd.f32 %v4891_v43, %v13567_v5  ;;  %v4893_v63 = vpop.f32.mrb[37].mxu0  ;;  %v4964_v57 = vpop.f32.mrb[59].mxu1  ;;  %v5052_v12 = vadd.f32 %v4962_v8, %v11204_v2 }
0x129c   :  { %v5060_v16 = vadd.f32 %v4964_v57, %v13568_v51  ;;  %v8877_v38 = vadd.f32 %v4893_v63, %v11197_v55  ;;  %v13570_v57 = vld [vmem:[#allocation123_spill] sm:$0xff] }
0x129d   :  { %v5523_v33 = vmul.f32 -1.442695, %v8876_v19 }
0x129e   :  { %v5524_v41 = vmul.f32 -1.442695, %v8877_v38  ;;  %v5525_v13 = vmul.f32 -1.442695, %v5060_v16 }
0x129f   :  { %9187 = vpow2.f32 %v5523_v33 }
0x12a0   :  { %9189 = vpow2.f32 %v5524_v41 }
0x12a9   :  { %v9188_v52 = vpop.eup %9187 }
0x12aa   :  { %v5042_v0 = vadd.f32 1.0, %v9188_v52  ;;  %v9190_v7 = vpop.eup %9189 }
0x12ab   :  { %v5049_v49 = vadd.f32 1.0, %v9190_v7 }
0x12ac   :  { %9191 = vrcp.f32 %v5042_v0  ;;  %v13571_v0 = vld [vmem:[#allocation124_spill] sm:$0xff] }
0x12ad   :  { %9193 = vrcp.f32 %v5049_v49 }
0x12b6   :  { %v9192_v9 = vpop.eup %9191 }
0x12b7   :  { %v5053_v24 = vmul.f32 %v9192_v9, %v5052_v12  ;;  %v9194_v48 = vpop.eup %9193 }
0x12b8   :  { %v5056_v46 = vsub.f32 1.0, %v9194_v48  ;;  %v5058_v11 = vmul.f32 %v9194_v48, %v11786_v36 }
0x12b9   :  { %v5054_v53 = vadd.f32 %v5053_v24, %v13569_v23 }
0x12bb   :  { %9195 = vtanh.f32 %v5054_v53 }
0x12bc   :  { %9197 = vpow2.f32 %v5525_v13 }
0x12c5   :  { %v9196_v60 = vpop.eup %9195 }
0x12c6   :  { %v5057_v22 = vmul.f32 %v9196_v60, %v5056_v46  ;;  %v9198_v19 = vpop.eup %9197 }
0x12c7   :  { %v5064_v63 = vadd.f32 1.0, %v9198_v19  ;;  %v5377_v19 = vld [vmem:[#allocation4 + $0x650] sm:$0xff] }
0x12c8   :  { %v11901_v43 = vadd.f32 %v5058_v11, %v5057_v22  ;;  %v5359_v22 = vld [vmem:[#allocation4 + $0x260] sm:$0xff]  ;;  %v5360_v11 = vld [vmem:[#allocation4 + $0x298] sm:$0xff] }
0x12c9   :  { %9199 = vrcp.f32 %v5064_v63  ;;  %v5378_v63 = vld [vmem:[#allocation4 + $0x688] sm:$0xff] }
0x12d3   :  { %v9200_v41 = vpop.eup %9199 }
0x12da   :  { %v5033_v8 = vpop.f32.mrb[60].mxu1 }
0x12db   :  { %v5067_v51 = vadd.f32 %v5033_v8, %v13570_v57  ;;  %v5035_v33 = vpop.f32.mrb[61].mxu1  ;;  %v8854_v8 = vpack.c.bf16 %v5360_v11, %v5359_v22  ;;  %v8856_v57 = vpack.c.bf16 %v5378_v63, %v5377_v19  ;;  %v13578_v11 = vld [vmem:[#allocation98_spill] sm:$0xff]  ;;  %v13579_v19 = vld [vmem:[#allocation52_spill] sm:$0xff] }
0x12dc   :  { %v5074_v38 = vadd.f32 %v5035_v33, %v11194_v62  ;;  %v5362_v33 = vld [vmem:[#allocation4 + $0x308] sm:$0xff]  ;;  %v3788_v63 = vadd.f32 %v13579_v19, %v13578_v11 }
0x12dd   :  { %v5526_v16 = vmul.f32 -1.442695, %v5067_v51  ;;  %v5361_v51 = vld [vmem:[#allocation4 + $0x2d0] sm:$0xff] }
0x12de   :  { %v5075_v52 = vmul.f32 %v9200_v41, %v5074_v38  ;;  %v5379_v38 = vld [vmem:[#allocation4 + $0x6c0] sm:$0xff]  ;;  %v5380_v41 = vld [vmem:[#allocation4 + $0x6f8] sm:$0xff] }
0x12df   :  { %9201 = vpow2.f32 %v5526_v16  ;;  %v8858_v16 = vpack.c.bf16 %v5362_v33, %v5361_v51  ;;  %v13581_v51 = vld [vmem:[#allocation56_spill] sm:$0xff] }
0x12e0   :  { %v5076_v7 = vadd.f32 %v5075_v52, %v13571_v0  ;;  %v8860_v52 = vpack.c.bf16 %v5380_v41, %v5379_v38  ;;  %v5363_v0 = vld [vmem:[#allocation4 + $0x340] sm:$0xff]  ;;  %v13582_v33 = vld [vmem:[#allocation12_spill] sm:$0xff]  ;;  %v13583_v41 = vld [vmem:[#allocation14_spill] sm:$0xff] }
0x12e9   :  { %v9202_v49 = vpop.eup %9201 }
0x12ea   :  { %v5071_v12 = vadd.f32 1.0, %v9202_v49 }
0x12ec   :  { %9203 = vrcp.f32 %v5071_v12 }
0x12ed   :  { %9205 = vtanh.f32 %v5076_v7  ;;  %v5364_v7 = vld [vmem:[#allocation4 + $0x378] sm:$0xff] }
0x12ee   :  { %v8862_v49 = vpack.c.bf16 %v5364_v7, %v5363_v0 }
0x12f6   :  { %v9204_v9 = vpop.eup %9203 }
0x12f7   :  { %v5078_v24 = vsub.f32 1.0, %v9204_v9  ;;  %v9206_v23 = vpop.eup %9205  ;;  %v5080_v13 = vmul.f32 %v9204_v9, %v11792_v44 }
0x12f9   :  { %v5079_v53 = vmul.f32 %v9206_v23, %v5078_v24 }
0x12fb   :  { %v11907_v48 = vadd.f32 %v5080_v13, %v5079_v53  ;;  %v13572_v13 = vld [vmem:[#allocation107_spill] sm:$0xff] }
0x12fd   :  { %5148 = vmatprep.mubr.f32.mxu0 %v11907_v48  ;;  %5219 = vmatprep.mubr.f32.mxu1 %v11907_v48 }
0x12fe   :  { %5149 = vmatmul.mubr.f32.vlgmr.msra.gmra.mrb[38].mxu0 %v11901_v43  ;;  %5220 = vmatmul.mubr.f32.vlgmr.msra.gmra.mrb[62].mxu1 %v11901_v43 }
0x12ff   :  { %8771 = vmatpush1.bf16.msra.mxu0 %v13207_v40  ;;  %5290 = vmatprep.mubr.f32.mxu0 %v11907_v48  ;;  %v5365_v40 = vld [vmem:[#allocation4 + $0x3b0] sm:$0xff] }
0x1300   :  { %8773 = vmatprep.subr.bf16.mxu0 %v13208_v37  ;;  %v5366_v37 = vld [vmem:[#allocation4 + $0x3e8] sm:$0xff] }
0x1303   :  { %8775 = vmatpush1.bf16.msra.mxu0 %v13209_v32  ;;  %v8832_v32 = vpack.c.bf16 %v5366_v37, %v5365_v40 }
0x1304   :  { %8777 = vmatprep.subr.bf16.mxu0 %v13210_v28  ;;  %v5349_v28 = vld [vmem:[#allocation4 + $0x30] sm:$0xff] }
0x1305   :  { %8833 = vmatprep.subr.bf16.mxu1 %v8832_v32 }
0x1307   :  { %8779 = vmatpush1.bf16.msra.mxu0 %v13211_v20  ;;  %v5350_v20 = vld [vmem:[#allocation4 + $0x68] sm:$0xff] }
0x1308   :  { %8781 = vmatprep.subr.bf16.mxu0 %v13212_v26  ;;  %v8834_v26 = vpack.c.bf16 %v5350_v20, %v5349_v28 }
0x130a   :  { %8835 = vmatpush3.bf16.msra.mxu1 %v8834_v26 }
0x130b   :  { %8783 = vmatpush1.bf16.msra.mxu0 %v13213_v45  ;;  %v5367_v45 = vld [vmem:[#allocation4 + $0x420] sm:$0xff] }
0x130c   :  { %8785 = vmatprep.subr.bf16.mxu0 %v13214_v61  ;;  %v5368_v61 = vld [vmem:[#allocation4 + $0x458] sm:$0xff] }
0x130f   :  { %8787 = vmatpush1.bf16.msra.mxu0 %v13215_v15  ;;  %v8836_v15 = vpack.c.bf16 %v5368_v61, %v5367_v45 }
0x1310   :  { %8789 = vmatprep.subr.bf16.mxu0 %v13216_v17  ;;  %v5351_v17 = vld [vmem:[#allocation4 + $0xa0] sm:$0xff] }
0x1311   :  { %8837 = vmatprep.subr.bf16.mxu1 %v8836_v15 }
0x1313   :  { %8791 = vmatpush1.bf16.msra.mxu0 %v13217_v50  ;;  %v5352_v50 = vld [vmem:[#allocation4 + $0xd8] sm:$0xff] }
0x1314   :  { %8793 = vmatprep.subr.bf16.mxu0 %v13218_v31  ;;  %v8838_v31 = vpack.c.bf16 %v5352_v50, %v5351_v17 }
0x1316   :  { %8839 = vmatpush3.bf16.msra.mxu1 %v8838_v31 }
0x1317   :  { %8795 = vmatpush1.bf16.msra.mxu0 %v13219_v59  ;;  %v5369_v59 = vld [vmem:[#allocation4 + $0x490] sm:$0xff] }
0x1318   :  { %8797 = vmatprep.subr.bf16.mxu0 %v13220_v21  ;;  %v5370_v21 = vld [vmem:[#allocation4 + $0x4c8] sm:$0xff] }
0x131b   :  { %8799 = vmatpush1.bf16.msra.mxu0 %v13221_v25  ;;  %v8840_v25 = vpack.c.bf16 %v5370_v21, %v5369_v59 }
0x131c   :  { %8801 = vmatprep.subr.bf16.mxu0 %v13222_v39  ;;  %v5353_v39 = vld [vmem:[#allocation4 + $0x110] sm:$0xff] }
0x131d   :  { %8841 = vmatprep.subr.bf16.mxu1 %v8840_v25 }
0x131f   :  { %8803 = vmatpush1.bf16.msra.mxu0 %v13223_v29  ;;  %v5354_v29 = vld [vmem:[#allocation4 + $0x148] sm:$0xff] }
0x1320   :  { %8805 = vmatprep.subr.bf16.mxu0 %v13224_v58  ;;  %v8842_v58 = vpack.c.bf16 %v5354_v29, %v5353_v39 }
0x1322   :  { %8843 = vmatpush3.bf16.msra.mxu1 %v8842_v58 }
0x1323   :  { %8807 = vmatpush1.bf16.msra.mxu0 %v13225_v27  ;;  %v5371_v27 = vld [vmem:[#allocation4 + $0x500] sm:$0xff] }
0x1324   :  { %8809 = vmatprep.subr.bf16.mxu0 %v13226_v18  ;;  %v5372_v18 = vld [vmem:[#allocation4 + $0x538] sm:$0xff] }
0x1327   :  { %8811 = vmatpush1.bf16.msra.mxu0 %v13227_v30  ;;  %v8844_v30 = vpack.c.bf16 %v5372_v18, %v5371_v27 }
0x1328   :  { %8813 = vmatprep.subr.bf16.mxu0 %v13513_v3  ;;  %v5355_v3 = vld [vmem:[#allocation4 + $0x180] sm:$0xff] }
0x1329   :  { %8845 = vmatprep.subr.bf16.mxu1 %v8844_v30  ;;  %v13574_v30 = vld [vmem:[#allocation121_spill] sm:$0xff] }
0x132b   :  { %8815 = vmatpush1.bf16.msra.mxu0 %v13516_v54  ;;  %v5356_v54 = vld [vmem:[#allocation4 + $0x1b8] sm:$0xff] }
0x132c   :  { %8817 = vmatprep.subr.bf16.mxu0 %v13517_v4  ;;  %v5373_v4 = vld [vmem:[#allocation4 + $0x570] sm:$0xff] }
0x132f   :  { %8819 = vmatpush1.bf16.msra.mxu0 %v13520_v56  ;;  %v8846_v56 = vpack.c.bf16 %v5356_v54, %v5355_v3 }
0x1330   :  { %8821 = vmatprep.subr.bf16.mxu0 %v13521_v6  ;;  %v5374_v6 = vld [vmem:[#allocation4 + $0x5a8] sm:$0xff] }
0x1331   :  { %8847 = vmatpush3.bf16.msra.mxu1 %v8846_v56 }
0x1333   :  { %8823 = vmatpush1.bf16.msra.mxu0 %v13524_v14  ;;  %v5357_v14 = vld [vmem:[#allocation4 + $0x1f0] sm:$0xff] }
0x1334   :  { %8825 = vmatprep.subr.bf16.mxu0 %v13525_v35  ;;  %v5358_v35 = vld [vmem:[#allocation4 + $0x228] sm:$0xff] }
0x1335   :  { %v8850_v46 = vpack.c.bf16 %v5358_v35, %v5357_v14  ;;  %v13575_v35 = vld [vmem:[#allocation122_spill] sm:$0xff] }
0x1337   :  { %8827 = vmatpush1.bf16.msra.mxu0 %v13528_v1  ;;  %v8848_v1 = vpack.c.bf16 %v5374_v6, %v5373_v4 }
0x1338   :  { %8829 = vmatprep.subr.bf16.mxu0 %v13529_v10  ;;  %v5375_v10 = vld [vmem:[#allocation4 + $0x5e0] sm:$0xff] }
0x1339   :  { %8849 = vmatprep.subr.bf16.mxu1 %v8848_v1 }
0x133a   :  { %8851 = vmatpush3.bf16.msra.mxu1 %v8850_v46  ;;  %v13576_v46 = vld [vmem:[#allocation136_spill] sm:$0xff] }
0x133b   :  { %8831 = vmatpush1.bf16.msra.mxu0 %v13532_v34  ;;  %v5376_v34 = vld [vmem:[#allocation4 + $0x618] sm:$0xff] }
0x133c   :  { %v8852_v60 = vpack.c.bf16 %v5376_v34, %v5375_v10 }
0x133e   :  { %5291 = vmatmul.mubr.f32.vlgmr.msra.gmra.mrb[62].mxu0 %v11901_v43  ;;  %8853 = vmatprep.subr.bf16.mxu1 %v8852_v60  ;;  %v13577_v60 = vld [vmem:[#allocation89_spill] sm:$0xff] }
0x133f   :  { %8855 = vmatpush3.bf16.msra.mxu1 %v8854_v8  ;;  %v3787_v22 = vadd.f32 %v13577_v60, %v13576_v46  ;;  %v13580_v8 = vld [vmem:[#allocation10_spill] sm:$0xff] }
0x1340   :  { %8857 = vmatprep.subr.bf16.mxu1 %v8856_v57 }
0x1341   :  { %v4046_v57 = vadd.f32 %v13580_v8, %v3787_v22 }
0x1343   :  { %8859 = vmatpush3.bf16.msra.mxu1 %v8858_v16  ;;  %v4305_v38 = vadd.f32 %v13582_v33, %v4046_v57 }
0x1344   :  { %8861 = vmatprep.subr.bf16.mxu1 %v8860_v52 }
0x1345   :  { %v4564_v0 = vadd.f32 %v11670_v47, %v4305_v38 }
0x1347   :  { %8863 = vmatpush3.bf16.msra.mxu1 %v8862_v49 }
0x13d1   :  { %v5150_v12 = vpop.f32.mrb[38].mxu0  ;;  %v5221_v9 = vpop.f32.mrb[62].mxu1 }
0x13d2   :  { %v8878_v24 = vadd.f32 %v5150_v12, %v13567_v5  ;;  %v5152_v23 = vpop.f32.mrb[39].mxu0  ;;  %v5223_v53 = vpop.f32.mrb[63].mxu1  ;;  %v5311_v15 = vadd.f32 %v5221_v9, %v11204_v2  ;;  %v13573_v5 = vld [vmem:[#allocation120_spill] sm:$0xff]  ;;  %v4823_v9 = vadd.f32 %v11786_v36, %v4564_v0  ;;  %v13584_v36 = vld [vmem:[#allocation91_spill] sm:$0xff] }
0x13d3   :  { %v5319_v40 = vadd.f32 %v5223_v53, %v13572_v13  ;;  %v8879_v32 = vadd.f32 %v5152_v23, %v11197_v55 }
0x13d4   :  { %v5527_v37 = vmul.f32 -1.442695, %v8878_v24  ;;  %v5082_v13 = vadd.f32 %v11901_v43, %v4823_v9 }
0x13d5   :  { %v5528_v28 = vmul.f32 -1.442695, %v8879_v32  ;;  %v5529_v59 = vmul.f32 -1.442695, %v5319_v40 }
0x13d6   :  { %9207 = vpow2.f32 %v5527_v37 }
0x13d7   :  { %9209 = vpow2.f32 %v5528_v28 }
0x13e0   :  { %v9208_v20 = vpop.eup %9207 }
0x13e1   :  { %v5301_v26 = vadd.f32 1.0, %v9208_v20  ;;  %v9210_v45 = vpop.eup %9209 }
0x13e2   :  { %v5308_v61 = vadd.f32 1.0, %v9210_v45 }
0x13e3   :  { %9211 = vrcp.f32 %v5301_v26  ;;  %v9233_v26 = vld [vmem:[#allocation6] sm:$0xff] }
0x13e4   :  { %9213 = vrcp.f32 %v5308_v61 }
0x13ed   :  { %v9212_v17 = vpop.eup %9211 }
0x13ee   :  { %v5312_v50 = vmul.f32 %v9212_v17, %v5311_v15  ;;  %v9214_v21 = vpop.eup %9213 }
0x13ef   :  { %v5315_v55 = vsub.f32 1.0, %v9214_v21  ;;  %v5317_v29 = vmul.f32 %v9214_v21, %v11901_v43 }
0x13f0   :  { %v5313_v31 = vadd.f32 %v5312_v50, %v13573_v5 }
0x13f2   :  { %9215 = vtanh.f32 %v5313_v31 }
0x13f3   :  { %9217 = vpow2.f32 %v5529_v59 }
0x13fc   :  { %v9216_v25 = vpop.eup %9215 }
0x13fd   :  { %v5316_v39 = vmul.f32 %v9216_v25, %v5315_v55  ;;  %v9218_v2 = vpop.eup %9217 }
0x13fe   :  { %v5323_v27 = vadd.f32 1.0, %v9218_v2 }
0x13ff   :  { %v5318_v58 = vadd.f32 %v5317_v29, %v5316_v39 }
0x1400   :  { %9219 = vrcp.f32 %v5323_v27 }
0x1401   :  { %5531 = vst [vmem:[%s11985_s5 + $0x10] sm:$0xff] %v5318_v58  ;;  %v5341_v32 = vadd.f32 %v5318_v58, %v5082_v13 }
0x140a   :  { %v9220_v56 = vpop.eup %9219 }
0x1411   :  { %v5292_v18 = vpop.f32.mrb[62].mxu0 }
0x1412   :  { %v5326_v3 = vadd.f32 %v5292_v18, %v13574_v30  ;;  %v5294_v54 = vpop.f32.mrb[63].mxu0 }
0x1413   :  { %v5333_v4 = vadd.f32 %v5294_v54, %v11194_v62  ;;  %v4047_v62 = vadd.f32 %v13581_v51, %v3788_v63 }
0x1414   :  { %v5530_v6 = vmul.f32 -1.442695, %v5326_v3 }
0x1415   :  { %v5334_v14 = vmul.f32 %v9220_v56, %v5333_v4  ;;  %v4306_v16 = vadd.f32 %v13583_v41, %v4047_v62 }
0x1416   :  { %9221 = vpow2.f32 %v5530_v6 }
0x1417   :  { %v5335_v1 = vadd.f32 %v5334_v14, %v13575_v35  ;;  %v4565_v7 = vadd.f32 %v11676_v42, %v4306_v16  ;;  %v5347_v42 = vmul.f32 0.125, %v5341_v32 }
0x1419   :  { %v4824_v24 = vadd.f32 %v11792_v44, %v4565_v7  ;;  %v5383_v44 = vsub.s32 4, %v13584_v36 }
0x141b   :  { %v5083_v40 = vadd.f32 %v11907_v48, %v4824_v24  ;;  %v5384_v45 = vrot.slane %v9233_v26, %v5383_v44 }
0x1420   :  { %v9222_v10 = vpop.eup %9221 }
0x1421   :  { %v5330_v34 = vadd.f32 1.0, %v9222_v10 }
0x1423   :  { %9223 = vrcp.f32 %v5330_v34 }
0x1424   :  { %9225 = vtanh.f32 %v5335_v1 }
0x142d   :  { %v9224_v52 = vpop.eup %9223 }
0x142e   :  { %v5337_v49 = vsub.f32 1.0, %v9224_v52  ;;  %v9226_v12 = vpop.eup %9225  ;;  %v5339_v53 = vmul.f32 %v9224_v52, %v11907_v48 }
0x1430   :  { %v5338_v23 = vmul.f32 %v9226_v12, %v5337_v49 }
0x1432   :  { %v5340_v37 = vadd.f32 %v5339_v53, %v5338_v23 }
0x1434   :  { %v5342_v28 = vadd.f32 %v5340_v37, %v5083_v40  ;;  %5532 = vst [vmem:[%s11985_s5 + $0x18] sm:$0xff] %v5340_v37 }
0x1436   :  { %v5348_v47 = vmul.f32 0.125, %v5342_v28 }
0x1438   :  { %5449 = vmatprep.mubr.f32.mxu1 %v5348_v47 }
0x1439   :  { %5450 = vmatmul.mubr.f32.vlgmr.msra.gmra.mrb[64].mxu1 %v5347_v42 }
0x150c   :  { %v5565_v20 = vpop.f32.mrb[64].mxu1 }
0x150d   :  { %v5566_v61 = vpop.f32.mrb[65].mxu1 }
0x150e   :  { %v5567_v43 = vadd.f32 %v5566_v61, %v5565_v20 }
0x1510   :  { %v5452_v15 = vadd.f32 %v5567_v43, %v5384_v45 }
0x1512   :  { %5455 = vst [vmem:[%s11984_s4] sm:$0xff] %v5452_v15 }
0x1513   :  { %5464 = vsyncpa [#allocation3], 1 }
0x1514   :  { %5465 = vsyncpa [#allocation5], 1 }

</bundles_post_ra>
